<compile_context>
chip_gen: v7x
topology: tpu7x:2x2x1
jax: 0.10.0
libtpu: 0.0.40
codegen_flags: <defaults>
</compile_context>

<pallas_src>
import functools

import jax
import jax.numpy as jnp
from jax.experimental import pallas as pl
from jax.experimental.pallas import tpu as pltpu


# ------------------------------- kernel A -------------------------------------
# One batch per grid step: fused qkv conv+BN matmul for all heads, then an
# unrolled per-head loop doing softmax attention (deferred normalization) and
# that head's slice of the depthwise-3x3 positional encoding.  Writes
# attn_pre = v @ attn^T + pe(v) in bf16.

def _attn_kernel(x_ref,      # (1, C, N)         f32  input features
                 wqkv_ref,   # (2*nh*kd + C, C)  bf16 fused qkv conv+BN
                 bqkv_ref,   # (2*nh*kd + C, 1)  f32  bias
                 wpe_ref,    # (C, 9)            f32  fused depthwise 3x3 taps
                 bpe_ref,    # (C, 1)            f32  bias
                 o_ref,      # (1, C, N)         bf16 attn_pre (pre-projection)
                 *, num_heads, kd, hd, img_w, scale):
    x = x_ref[0].astype(jnp.bfloat16)                       # (C, N), cast once
    n = x.shape[-1]
    dqkv = 2 * kd + hd

    # All heads' q/k/v in one MXU matmul (bf16 operands, f32 accumulation).
    # Row layout is head-major [q_h; k_h; v_h] -- matches torch's
    # qkv.view(B, nh, 2*kd+hd, N) split.
    qkv = jnp.dot(wqkv_ref[...], x,
                  preferred_element_type=jnp.float32) + bqkv_ref[...]

    # Border masks for the 3x3 depthwise PE (shared by all heads / taps).
    pos = jax.lax.broadcasted_iota(jnp.int32, (hd, n), 1)
    col = pos % img_w
    row_ok = {-1: pos >= img_w, 0: None, 1: pos < n - img_w}
    col_ok = {-1: col >= 1, 0: None, 1: col < img_w - 1}

    def tap_mask(dh, dw):
        m, c = row_ok[dh], col_ok[dw]
        if m is None:
            return c
        return m if c is None else jnp.logical_and(m, c)

    for h in range(num_heads):
        base = h * dqkv
        # Fold the attention scale into q: kd*N multiplies instead of N*N.
        q = (qkv[base:base + kd, :] * scale).astype(jnp.bfloat16)     # (kd, N)
        k = qkv[base + kd:base + 2 * kd, :].astype(jnp.bfloat16)      # (kd, N)
        v = qkv[base + 2 * kd:base + dqkv, :]                         # (hd, N) f32

        # s[j, i] = sum_d k[d, j] * q[d, i]  -> softmax over keys (axis 0).
        s = jax.lax.dot_general(
            k, q, dimension_numbers=(((0,), (0,)), ((), ())),
            preferred_element_type=jnp.float32)                       # (N, N)
        p = jnp.exp(s - jnp.max(s, axis=0, keepdims=True))            # <= 1
        denom = jnp.sum(p, axis=0, keepdims=True)                     # (1, N)

        # out[d, i] = sum_j v[d, j] * p[j, i] : MXU-native, no (N,N) transpose.
        out = jnp.dot(v.astype(jnp.bfloat16), p.astype(jnp.bfloat16),
                      preferred_element_type=jnp.float32)             # (hd, N)
        out = out * pl.reciprocal(denom, approx=True)  # deferred softmax norm

        # Depthwise 3x3 positional encoding on this head's v (padding=1, fused
        # BN).  Shifts on the flattened row-major N axis via XLU roll; wrapped
        # positions are zeroed by the border masks.
        wpe = wpe_ref[h * hd:(h + 1) * hd, :]                         # (hd, 9)
        acc = jnp.zeros((hd, n), jnp.float32)
        t = 0
        for dh in (-1, 0, 1):
            for dw in (-1, 0, 1):
                off = dh * img_w + dw
                shifted = pltpu.roll(v, (-off) % n, axis=1) if off != 0 else v
                contrib = shifted * wpe[:, t:t + 1]
                m = tap_mask(dh, dw)
                if m is not None:
                    contrib = jnp.where(m, contrib, 0.0)
                acc = acc + contrib
                t += 1
        pe = acc + bpe_ref[h * hd:(h + 1) * hd, :]

        o_ref[0, h * hd:(h + 1) * hd, :] = (out + pe).astype(jnp.bfloat16)


# ------------------------------- kernel B -------------------------------------
# Output projection + first residual, then FFN (SiLU) + second residual.
# Tiled over (batch, N-tile); weights are fetched once (constant block index).

def _proj_ffn_kernel(x_ref,       # (1, C, tn)  f32  block input (residual source)
                     a_ref,       # (1, C, tn)  bf16 attention output (pre-proj)
                     wproj_ref,   # (C, C)      bf16
                     bproj_ref,   # (C, 1)      f32
                     w1_ref,      # (2C, C)     bf16
                     b1_ref,      # (2C, 1)     f32
                     w2_ref,      # (C, 2C)     bf16
                     b2_ref,      # (C, 1)      f32
                     o_ref):      # (1, C, tn)  f32
    x = x_ref[0]
    proj = jnp.dot(wproj_ref[...], a_ref[0],
                   preferred_element_type=jnp.float32) + bproj_ref[...]
    y1 = x + proj                                          # x + attn(x)
    h = jnp.dot(w1_ref[...], y1.astype(jnp.bfloat16),
                preferred_element_type=jnp.float32) + b1_ref[...]
    h = h * jax.nn.sigmoid(h)                              # SiLU
    f = jnp.dot(w2_ref[...], h.astype(jnp.bfloat16),
                preferred_element_type=jnp.float32) + b2_ref[...]
    o_ref[0] = y1 + f                                      # y1 + ffn(y1)


# ------------------------------- wrapper --------------------------------------

def _pick_tile_n(n):
    """Largest of (512, 256, 128) dividing N, else the full N (single tile)."""
    for t in (512, 256, 128):
        if n % t == 0:
            return t
    return n


@functools.partial(jax.jit, static_argnames=("num_heads", "attn_ratio"))
def psa_block(x, params, num_heads=4, attn_ratio=0.5):
    """PSABlock forward.  x: (B, C, H, W) float32 -> (B, C, H, W) float32."""
    B, C, H, W = x.shape
    N = H * W
    hd = C // num_heads
    kd = int(hd * attn_ratio)
    dqkv = 2 * kd + hd
    h_total = num_heads * dqkv
    scale = float(kd) ** -0.5

    assert C % num_heads == 0
    # Sublane alignment of the per-head q/k/v row slices (f32 tile = 8 rows).
    assert hd % 8 == 0 and kd % 8 == 0, "head_dim / key_dim must be multiples of 8"

    wqkv, bqkv, wproj, bproj, wpe, bpe, w1, b1, w2, b2 = params

    x2 = x.reshape(B, C, N)                     # free reshape; stays NCHW-flat

    attn_pre = pl.pallas_call(
        functools.partial(_attn_kernel, num_heads=num_heads, kd=kd, hd=hd,
                          img_w=W, scale=scale),
        out_shape=jax.ShapeDtypeStruct((B, C, N), jnp.bfloat16),
        grid_spec=pltpu.PrefetchScalarGridSpec(
            num_scalar_prefetch=0,
            grid=(B,),
            in_specs=[
                pl.BlockSpec((1, C, N), lambda b: (b, 0, 0)),
                pl.BlockSpec((h_total, C), lambda b: (0, 0)),
                pl.BlockSpec((h_total, 1), lambda b: (0, 0)),
                pl.BlockSpec((C, 9), lambda b: (0, 0)),
                pl.BlockSpec((C, 1), lambda b: (0, 0)),
            ],
            out_specs=pl.BlockSpec((1, C, N), lambda b: (b, 0, 0)),
        ),
        compiler_params=pltpu.CompilerParams(
            dimension_semantics=("parallel",)),
    )(x2, wqkv,
      bqkv.reshape(h_total, 1).astype(jnp.float32),
      wpe.reshape(C, 9).astype(jnp.float32),
      bpe.reshape(C, 1).astype(jnp.float32))

    tn = _pick_tile_n(N)
    out = pl.pallas_call(
        _proj_ffn_kernel,
        out_shape=jax.ShapeDtypeStruct((B, C, N), jnp.float32),
        grid_spec=pltpu.PrefetchScalarGridSpec(
            num_scalar_prefetch=0,
            grid=(B, N // tn),
            in_specs=[
                pl.BlockSpec((1, C, tn), lambda b, t: (b, 0, t)),
                pl.BlockSpec((1, C, tn), lambda b, t: (b, 0, t)),
                pl.BlockSpec((C, C), lambda b, t: (0, 0)),
                pl.BlockSpec((C, 1), lambda b, t: (0, 0)),
                pl.BlockSpec((2 * C, C), lambda b, t: (0, 0)),
                pl.BlockSpec((2 * C, 1), lambda b, t: (0, 0)),
                pl.BlockSpec((C, 2 * C), lambda b, t: (0, 0)),
                pl.BlockSpec((C, 1), lambda b, t: (0, 0)),
            ],
            out_specs=pl.BlockSpec((1, C, tn), lambda b, t: (b, 0, t)),
        ),
        compiler_params=pltpu.CompilerParams(
            dimension_semantics=("parallel", "parallel")),
    )(x2, attn_pre,
      wproj, bproj.reshape(C, 1).astype(jnp.float32),
      w1, b1.reshape(2 * C, 1).astype(jnp.float32),
      w2, b2.reshape(C, 1).astype(jnp.float32))

    return out.reshape(B, C, H, W)


# ------------------------- parameter construction -----------------------------

def make_params(key, c, num_heads=4, attn_ratio=0.5, eps=1e-5):
    """Deterministic synthetic fused Conv+BN (eval-mode) parameters.

    Matmul weights are stored in bf16 (MXU-native operand dtype); biases and
    the tiny depthwise 3x3 taps stay in f32.
    """
    hd = c // num_heads
    kd = int(hd * attn_ratio)
    h_total = num_heads * (2 * kd + hd)

    state = [key]

    def nk():
        state[0], sub = jax.random.split(state[0])
        return sub

    def fused_bn(cout):
        gamma = 1.0 + 0.1 * jax.random.normal(nk(), (cout,), jnp.float32)
        beta = 0.05 * jax.random.normal(nk(), (cout,), jnp.float32)
        mean = 0.05 * jax.random.normal(nk(), (cout,), jnp.float32)
        var = 1.0 + jax.random.uniform(nk(), (cout,), jnp.float32)
        scale = gamma * jax.lax.rsqrt(var + eps)
        return scale, beta - mean * scale

    def fused_1x1(cout, cin):
        w = jax.random.normal(nk(), (cout, cin), jnp.float32) / jnp.sqrt(cin)
        scale, bias = fused_bn(cout)
        return (w * scale[:, None]).astype(jnp.bfloat16), bias

    wqkv, bqkv = fused_1x1(h_total, c)      # qkv : Conv(c, 2c, 1, act=False)+BN
    wproj, bproj = fused_1x1(c, c)          # proj: Conv(c, c, 1, act=False)+BN
    w1, b1 = fused_1x1(2 * c, c)            # ffn0: Conv(c, 2c, 1)+BN (+SiLU)
    w2, b2 = fused_1x1(c, 2 * c)            # ffn1: Conv(2c, c, 1, act=False)+BN

    # pe: depthwise Conv(c, c, 3, g=c, act=False)+BN
    wpe = jax.random.normal(nk(), (c, 3, 3), jnp.float32) / 3.0
    scale, bpe = fused_bn(c)
    wpe = wpe * scale[:, None, None]

    return (wqkv, bqkv, wproj, bproj, wpe, bpe, w1, b1, w2, b2)


# --------------------------- pure-JAX reference --------------------------------

def reference(x, params, num_heads=4, attn_ratio=0.5):
    """f32 (HIGHEST precision) reference of PSABlock.forward (same bf16 weights)."""
    wqkv, bqkv, wproj, bproj, wpe, bpe, w1, b1, w2, b2 = [
        jnp.asarray(p, jnp.float32) for p in params]
    B, C, H, W = x.shape
    N = H * W
    hd = C // num_heads
    kd = int(hd * attn_ratio)
    hp = jax.lax.Precision.HIGHEST

    def conv1x1(t, w, b):                      # w: (Cout, Cin)
        y = jnp.einsum('oc,bchw->bohw', w, t, precision=hp)
        return y + b.reshape(1, -1, 1, 1)

    qkv = conv1x1(x, wqkv, bqkv)
    qkv = qkv.reshape(B, num_heads, 2 * kd + hd, N)
    q, k, v = jnp.split(qkv, [kd, 2 * kd], axis=2)
    attn = jnp.einsum('bhdi,bhdj->bhij', q, k, precision=hp) * (kd ** -0.5)
    attn = jax.nn.softmax(attn, axis=-1)
    o = jnp.einsum('bhdj,bhij->bhdi', v, attn, precision=hp).reshape(B, C, H, W)

    v_img = v.reshape(B, C, H, W)
    pe = jax.lax.conv_general_dilated(
        v_img, wpe.reshape(C, 1, 3, 3), window_strides=(1, 1),
        padding=((1, 1), (1, 1)), feature_group_count=C,
        dimension_numbers=('NCHW', 'OIHW', 'NCHW'), precision=hp)
    pe = pe + bpe.reshape(1, C, 1, 1)

    y1 = x + conv1x1(o + pe, wproj, bproj)     # x + attn(x)
    h1 = conv1x1(y1, w1, b1)
    h1 = h1 * jax.nn.sigmoid(h1)               # SiLU
    y2 = y1 + conv1x1(h1, w2, b2)              # y1 + ffn(y1)
    return y2


if __name__ == "__main__":
    # Small shapes consistent with the module (real model: C=128..512 on
    # low-resolution feature maps).  C must be divisible by 2*num_heads.
    B, C, H, W = 2, 64, 16, 16
    num_heads = 4

    key = jax.random.PRNGKey(0)
    kx, kp = jax.random.split(key)
    x = jax.random.normal(kx, (B, C, H, W), jnp.float32)
    params = make_params(kp, C, num_heads=num_heads)

    out = jax.block_until_ready(psa_block(x, params, num_heads=num_heads))
    ref = reference(x, params, num_heads=num_heads)

    assert out.shape == (B, C, H, W)
    assert bool(jnp.all(jnp.isfinite(out)))
    max_err = float(jnp.max(jnp.abs(out - ref)))
    # bf16 matmul operands (f32 accumulation) vs f32-HIGHEST reference.
    if not jnp.allclose(out, ref, rtol=2e-2, atol=2e-2):
        raise AssertionError(
            f"Pallas kernel mismatch vs reference (max abs err = {max_err:.4e})")
    print("KERNEL_OK")
</pallas_src>

<mosaic_0001>
module attributes {stable_mosaic.version = 11 : i64} {
  func.func @_proj_ffn_kernel(%arg0: i32, %arg1: i32, %arg2: memref<1x64x256xf32, #tpu.memory_space<vmem>>, %arg3: memref<1x64x256xbf16, #tpu.memory_space<vmem>>, %arg4: memref<64x64xbf16, #tpu.memory_space<vmem>>, %arg5: memref<64x1xf32, #tpu.memory_space<vmem>>, %arg6: memref<128x64xbf16, #tpu.memory_space<vmem>>, %arg7: memref<128x1xf32, #tpu.memory_space<vmem>>, %arg8: memref<64x128xbf16, #tpu.memory_space<vmem>>, %arg9: memref<64x1xf32, #tpu.memory_space<vmem>>, %arg10: memref<1x64x256xf32, #tpu.memory_space<vmem>>) attributes {dimension_semantics = [#tpu.dimension_semantics<parallel>, #tpu.dimension_semantics<parallel>], iteration_bounds = array<i64: 2, 1>, scalar_prefetch = 0 : i64, scratch_operands = 0 : i64, tpu.core_type = #tpu.core_type<tc>, window_params = [{transform_indices = @transform_0, window_bounds = array<i64: 1, 64, 256>}, {transform_indices = @transform_1, window_bounds = array<i64: 1, 64, 256>}, {pipeline_mode = #tpu.pipeline_mode<synchronous>, transform_indices = @transform_2, window_bounds = array<i64: 64, 64>}, {pipeline_mode = #tpu.pipeline_mode<synchronous>, transform_indices = @transform_3, window_bounds = array<i64: 64, 1>}, {pipeline_mode = #tpu.pipeline_mode<synchronous>, transform_indices = @transform_4, window_bounds = array<i64: 128, 64>}, {pipeline_mode = #tpu.pipeline_mode<synchronous>, transform_indices = @transform_5, window_bounds = array<i64: 128, 1>}, {pipeline_mode = #tpu.pipeline_mode<synchronous>, transform_indices = @transform_6, window_bounds = array<i64: 64, 128>}, {pipeline_mode = #tpu.pipeline_mode<synchronous>, transform_indices = @transform_7, window_bounds = array<i64: 64, 1>}, {transform_indices = @transform_8, window_bounds = array<i64: 1, 64, 256>}]} {
    %c0 = arith.constant 0 : index
    %c0_0 = arith.constant 0 : index
    %c0_1 = arith.constant 0 : index
    %0 = vector.load %arg2[%c0, %c0_0, %c0_1] : memref<1x64x256xf32, #tpu.memory_space<vmem>>, vector<1x64x256xf32>
    %1 = vector.shape_cast %0 : vector<1x64x256xf32> to vector<64x256xf32>
    %c0_2 = arith.constant 0 : index
    %c0_3 = arith.constant 0 : index
    %2 = vector.load %arg4[%c0_2, %c0_3] : memref<64x64xbf16, #tpu.memory_space<vmem>>, vector<64x64xbf16>
    %c0_4 = arith.constant 0 : index
    %c0_5 = arith.constant 0 : index
    %c0_6 = arith.constant 0 : index
    %3 = vector.load %arg3[%c0_4, %c0_5, %c0_6] : memref<1x64x256xbf16, #tpu.memory_space<vmem>>, vector<1x64x256xbf16>
    %4 = vector.shape_cast %3 : vector<1x64x256xbf16> to vector<64x256xbf16>
    %cst = arith.constant dense<0.000000e+00> : vector<64x256xf32>
    %5 = tpu.matmul %2, %4, %cst {dimension_numbers = #tpu.dot_dimension_numbers<[1], [0], [0], [1], [0, 0, 1, 1], [], []>} : vector<64x64xbf16>, vector<64x256xbf16>, vector<64x256xf32> -> vector<64x256xf32>
    %c0_7 = arith.constant 0 : index
    %c0_8 = arith.constant 0 : index
    %6 = vector.load %arg5[%c0_7, %c0_8] : memref<64x1xf32, #tpu.memory_space<vmem>>, vector<64x1xf32>
    %7 = vector.broadcast %6 : vector<64x1xf32> to vector<64x256xf32>
    %8 = arith.addf %5, %7 : vector<64x256xf32>
    %9 = arith.addf %1, %8 : vector<64x256xf32>
    %c0_9 = arith.constant 0 : index
    %c0_10 = arith.constant 0 : index
    %10 = vector.load %arg6[%c0_9, %c0_10] : memref<128x64xbf16, #tpu.memory_space<vmem>>, vector<128x64xbf16>
    %11 = arith.truncf %9 : vector<64x256xf32> to vector<64x256xbf16>
    %cst_11 = arith.constant dense<0.000000e+00> : vector<128x256xf32>
    %12 = tpu.matmul %10, %11, %cst_11 {dimension_numbers = #tpu.dot_dimension_numbers<[1], [0], [0], [1], [0, 0, 1, 1], [], []>} : vector<128x64xbf16>, vector<64x256xbf16>, vector<128x256xf32> -> vector<128x256xf32>
    %c0_12 = arith.constant 0 : index
    %c0_13 = arith.constant 0 : index
    %13 = vector.load %arg7[%c0_12, %c0_13] : memref<128x1xf32, #tpu.memory_space<vmem>>, vector<128x1xf32>
    %14 = vector.broadcast %13 : vector<128x1xf32> to vector<128x256xf32>
    %15 = arith.addf %12, %14 : vector<128x256xf32>
    %16 = arith.negf %15 : vector<128x256xf32>
    %17 = math.exp %16 : vector<128x256xf32>
    %cst_14 = arith.constant 1.000000e+00 : f32
    %18 = vector.broadcast %cst_14 : f32 to vector<128x256xf32>
    %19 = arith.addf %18, %17 : vector<128x256xf32>
    %20 = arith.divf %18, %19 : vector<128x256xf32>
    %21 = arith.mulf %15, %20 : vector<128x256xf32>
    %c0_15 = arith.constant 0 : index
    %c0_16 = arith.constant 0 : index
    %22 = vector.load %arg8[%c0_15, %c0_16] : memref<64x128xbf16, #tpu.memory_space<vmem>>, vector<64x128xbf16>
    %23 = arith.truncf %21 : vector<128x256xf32> to vector<128x256xbf16>
    %cst_17 = arith.constant dense<0.000000e+00> : vector<64x256xf32>
    %24 = tpu.matmul %22, %23, %cst_17 {dimension_numbers = #tpu.dot_dimension_numbers<[1], [0], [0], [1], [0, 0, 1, 1], [], []>} : vector<64x128xbf16>, vector<128x256xbf16>, vector<64x256xf32> -> vector<64x256xf32>
    %c0_18 = arith.constant 0 : index
    %c0_19 = arith.constant 0 : index
    %25 = vector.load %arg9[%c0_18, %c0_19] : memref<64x1xf32, #tpu.memory_space<vmem>>, vector<64x1xf32>
    %26 = vector.broadcast %25 : vector<64x1xf32> to vector<64x256xf32>
    %27 = arith.addf %24, %26 : vector<64x256xf32>
    %28 = arith.addf %9, %27 : vector<64x256xf32>
    %c0_20 = arith.constant 0 : index
    %c0_21 = arith.constant 0 : index
    %c0_22 = arith.constant 0 : index
    %29 = vector.load %arg10[%c0_20, %c0_21, %c0_22] : memref<1x64x256xf32, #tpu.memory_space<vmem>>, vector<1x64x256xf32>
    %30 = vector.shape_cast %29 : vector<1x64x256xf32> to vector<64x256xf32>
    %31 = vector.shape_cast %28 : vector<64x256xf32> to vector<1x64x256xf32>
    tpu.vector_store %arg10[%c0_20, %c0_21, %c0_22], %31 {strides = array<i32>} : memref<1x64x256xf32, #tpu.memory_space<vmem>>, vector<1x64x256xf32>,
    return
  }
  func.func @transform_0(%arg0: i32, %arg1: i32) -> (i32, i32, i32) {
    %c0_i32 = arith.constant 0 : i32
    %c0_i32_0 = arith.constant 0 : i32
    return %arg0, %c0_i32, %arg1 : i32, i32, i32
  }
  func.func @transform_1(%arg0: i32, %arg1: i32) -> (i32, i32, i32) {
    %c0_i32 = arith.constant 0 : i32
    %c0_i32_0 = arith.constant 0 : i32
    return %arg0, %c0_i32, %arg1 : i32, i32, i32
  }
  func.func @transform_2(%arg0: i32, %arg1: i32) -> (i32, i32) {
    %c0_i32 = arith.constant 0 : i32
    %c0_i32_0 = arith.constant 0 : i32
    %c0_i32_1 = arith.constant 0 : i32
    return %c0_i32, %c0_i32_0 : i32, i32
  }
  func.func @transform_3(%arg0: i32, %arg1: i32) -> (i32, i32) {
    %c0_i32 = arith.constant 0 : i32
    %c0_i32_0 = arith.constant 0 : i32
    %c0_i32_1 = arith.constant 0 : i32
    return %c0_i32, %c0_i32_0 : i32, i32
  }
  func.func @transform_4(%arg0: i32, %arg1: i32) -> (i32, i32) {
    %c0_i32 = arith.constant 0 : i32
    %c0_i32_0 = arith.constant 0 : i32
    %c0_i32_1 = arith.constant 0 : i32
    return %c0_i32, %c0_i32_0 : i32, i32
  }
  func.func @transform_5(%arg0: i32, %arg1: i32) -> (i32, i32) {
    %c0_i32 = arith.constant 0 : i32
    %c0_i32_0 = arith.constant 0 : i32
    %c0_i32_1 = arith.constant 0 : i32
    return %c0_i32, %c0_i32_0 : i32, i32
  }
  func.func @transform_6(%arg0: i32, %arg1: i32) -> (i32, i32) {
    %c0_i32 = arith.constant 0 : i32
    %c0_i32_0 = arith.constant 0 : i32
    %c0_i32_1 = arith.constant 0 : i32
    return %c0_i32, %c0_i32_0 : i32, i32
  }
  func.func @transform_7(%arg0: i32, %arg1: i32) -> (i32, i32) {
    %c0_i32 = arith.constant 0 : i32
    %c0_i32_0 = arith.constant 0 : i32
    %c0_i32_1 = arith.constant 0 : i32
    return %c0_i32, %c0_i32_0 : i32, i32
  }
  func.func @transform_8(%arg0: i32, %arg1: i32) -> (i32, i32, i32) {
    %c0_i32 = arith.constant 0 : i32
    %c0_i32_0 = arith.constant 0 : i32
    return %arg0, %c0_i32, %arg1 : i32, i32, i32
  }
}

module attributes {stable_mosaic.version = 11 : i64} {
  func.func @_attn_kernel(%arg0: i32, %arg1: memref<1x64x256xf32, #tpu.memory_space<vmem>>, %arg2: memref<128x64xbf16, #tpu.memory_space<vmem>>, %arg3: memref<128x1xf32, #tpu.memory_space<vmem>>, %arg4: memref<64x9xf32, #tpu.memory_space<vmem>>, %arg5: memref<64x1xf32, #tpu.memory_space<vmem>>, %arg6: memref<1x64x256xbf16, #tpu.memory_space<vmem>>) attributes {dimension_semantics = [#tpu.dimension_semantics<parallel>], iteration_bounds = array<i64: 2>, scalar_prefetch = 0 : i64, scratch_operands = 0 : i64, tpu.core_type = #tpu.core_type<tc>, window_params = [{transform_indices = @transform_0, window_bounds = array<i64: 1, 64, 256>}, {pipeline_mode = #tpu.pipeline_mode<synchronous>, transform_indices = @transform_1, window_bounds = array<i64: 128, 64>}, {pipeline_mode = #tpu.pipeline_mode<synchronous>, transform_indices = @transform_2, window_bounds = array<i64: 128, 1>}, {pipeline_mode = #tpu.pipeline_mode<synchronous>, transform_indices = @transform_3, window_bounds = array<i64: 64, 9>}, {pipeline_mode = #tpu.pipeline_mode<synchronous>, transform_indices = @transform_4, window_bounds = array<i64: 64, 1>}, {transform_indices = @transform_5, window_bounds = array<i64: 1, 64, 256>}]} {
    %c0 = arith.constant 0 : index
    %c0_0 = arith.constant 0 : index
    %c0_1 = arith.constant 0 : index
    %0 = vector.load %arg1[%c0, %c0_0, %c0_1] : memref<1x64x256xf32, #tpu.memory_space<vmem>>, vector<1x64x256xf32>
    %1 = vector.shape_cast %0 : vector<1x64x256xf32> to vector<64x256xf32>
    %2 = arith.truncf %1 : vector<64x256xf32> to vector<64x256xbf16>
    %c0_2 = arith.constant 0 : index
    %c0_3 = arith.constant 0 : index
    %3 = vector.load %arg2[%c0_2, %c0_3] : memref<128x64xbf16, #tpu.memory_space<vmem>>, vector<128x64xbf16>
    %cst = arith.constant dense<0.000000e+00> : vector<128x256xf32>
    %4 = tpu.matmul %3, %2, %cst {dimension_numbers = #tpu.dot_dimension_numbers<[1], [0], [0], [1], [0, 0, 1, 1], [], []>} : vector<128x64xbf16>, vector<64x256xbf16>, vector<128x256xf32> -> vector<128x256xf32>
    %c0_4 = arith.constant 0 : index
    %c0_5 = arith.constant 0 : index
    %5 = vector.load %arg3[%c0_4, %c0_5] : memref<128x1xf32, #tpu.memory_space<vmem>>, vector<128x1xf32>
    %6 = vector.broadcast %5 : vector<128x1xf32> to vector<128x256xf32>
    %7 = arith.addf %4, %6 : vector<128x256xf32>
    %8 = tpu.iota {dimensions = array<i32: 1>} : vector<16x256xi32>
    %c16_i32 = arith.constant 16 : i32
    %c0_i32 = arith.constant 0 : i32
    %9 = arith.cmpi eq, %c16_i32, %c0_i32 : i32
    %c1_i32 = arith.constant 1 : i32
    %10 = arith.select %9, %c1_i32, %c16_i32 : i32
    %11 = vector.broadcast %10 : i32 to vector<16x256xi32>
    %12 = arith.remsi %8, %11 : vector<16x256xi32>
    %c0_i32_6 = arith.constant 0 : i32
    %13 = vector.broadcast %c0_i32_6 : i32 to vector<16x256xi32>
    %14 = arith.cmpi ne, %12, %13 : vector<16x256xi32>
    %c0_i32_7 = arith.constant 0 : i32
    %15 = vector.broadcast %c0_i32_7 : i32 to vector<16x256xi32>
    %16 = arith.cmpi slt, %12, %15 : vector<16x256xi32>
    %c0_i32_8 = arith.constant 0 : i32
    %17 = arith.cmpi slt, %10, %c0_i32_8 : i32
    %18 = vector.broadcast %17 : i1 to vector<16x256xi1>
    %19 = vector.broadcast %18 : vector<16x256xi1> to vector<16x256xi1>
    %20 = arith.xori %16, %19 : vector<16x256xi1>
    %21 = arith.andi %20, %14 : vector<16x256xi1>
    %22 = vector.broadcast %10 : i32 to vector<16x256xi32>
    %23 = arith.addi %12, %22 : vector<16x256xi32>
    %24 = arith.select %21, %23, %12 : vector<16x256xi1>, vector<16x256xi32>
    %c16_i32_9 = arith.constant 16 : i32
    %25 = vector.broadcast %c16_i32_9 : i32 to vector<16x256xi32>
    %26 = arith.cmpi sge, %8, %25 : vector<16x256xi32>
    %c240_i32 = arith.constant 240 : i32
    %27 = vector.broadcast %c240_i32 : i32 to vector<16x256xi32>
    %28 = arith.cmpi slt, %8, %27 : vector<16x256xi32>
    %c1_i32_10 = arith.constant 1 : i32
    %29 = vector.broadcast %c1_i32_10 : i32 to vector<16x256xi32>
    %30 = arith.cmpi sge, %24, %29 : vector<16x256xi32>
    %c15_i32 = arith.constant 15 : i32
    %31 = vector.broadcast %c15_i32 : i32 to vector<16x256xi32>
    %32 = arith.cmpi slt, %24, %31 : vector<16x256xi32>
    %33 = vector.extract_strided_slice %7 {offsets = [0, 0], sizes = [8, 256], strides = [1, 1]} : vector<128x256xf32> to vector<8x256xf32>
    %cst_11 = arith.constant 0.353553385 : f32
    %34 = vector.broadcast %cst_11 : f32 to vector<8x256xf32>
    %35 = arith.mulf %33, %34 : vector<8x256xf32>
    %36 = arith.truncf %35 : vector<8x256xf32> to vector<8x256xbf16>
    %37 = vector.extract_strided_slice %7 {offsets = [8, 0], sizes = [8, 256], strides = [1, 1]} : vector<128x256xf32> to vector<8x256xf32>
    %38 = arith.truncf %37 : vector<8x256xf32> to vector<8x256xbf16>
    %39 = vector.extract_strided_slice %7 {offsets = [16, 0], sizes = [16, 256], strides = [1, 1]} : vector<128x256xf32> to vector<16x256xf32>
    %cst_12 = arith.constant dense<0.000000e+00> : vector<256x256xf32>
    %40 = tpu.matmul %38, %36, %cst_12 {dimension_numbers = #tpu.dot_dimension_numbers<[0], [0], [1], [1], [0, 1, 1, 1], [], []>} : vector<8x256xbf16>, vector<8x256xbf16>, vector<256x256xf32> -> vector<256x256xf32>
    %cst_13 = arith.constant dense<0xFF800000> : vector<256xf32>
    %41 = vector.multi_reduction <maximumf>, %40, %cst_13 [0] : vector<256x256xf32> to vector<256xf32>
    %42 = vector.shape_cast %41 : vector<256xf32> to vector<1x256xf32>
    %43 = vector.broadcast %42 : vector<1x256xf32> to vector<256x256xf32>
    %44 = arith.subf %40, %43 : vector<256x256xf32>
    %45 = math.exp %44 : vector<256x256xf32>
    %cst_14 = arith.constant dense<0.000000e+00> : vector<256xf32>
    %46 = vector.multi_reduction <add>, %45, %cst_14 [0] : vector<256x256xf32> to vector<256xf32>
    %47 = vector.shape_cast %46 : vector<256xf32> to vector<1x256xf32>
    %48 = arith.truncf %39 : vector<16x256xf32> to vector<16x256xbf16>
    %49 = arith.truncf %45 : vector<256x256xf32> to vector<256x256xbf16>
    %cst_15 = arith.constant dense<0.000000e+00> : vector<16x256xf32>
    %50 = tpu.matmul %48, %49, %cst_15 {dimension_numbers = #tpu.dot_dimension_numbers<[1], [0], [0], [1], [0, 0, 1, 1], [], []>} : vector<16x256xbf16>, vector<256x256xbf16>, vector<16x256xf32> -> vector<16x256xf32>
    %51 = tpu.reciprocal %47 {approx = true} : vector<1x256xf32> -> vector<1x256xf32>
    %52 = vector.broadcast %51 : vector<1x256xf32> to vector<16x256xf32>
    %53 = arith.mulf %50, %52 : vector<16x256xf32>
    %c0_16 = arith.constant 0 : index
    %c0_17 = arith.constant 0 : index
    %54 = vector.load %arg4[%c0_16, %c0_17] : memref<64x9xf32, #tpu.memory_space<vmem>>, vector<16x9xf32>
    %cst_18 = arith.constant 0.000000e+00 : f32
    %55 = vector.broadcast %cst_18 : f32 to vector<16x256xf32>
    %c17_i32 = arith.constant 17 : i32
    %56 = tpu.dynamic_rotate %39 by %c17_i32 dim 1 : vector<16x256xf32>, i32 -> vector<16x256xf32>
    %57 = vector.extract_strided_slice %54 {offsets = [0, 0], sizes = [16, 1], strides = [1, 1]} : vector<16x9xf32> to vector<16x1xf32>
    %58 = vector.broadcast %57 : vector<16x1xf32> to vector<16x256xf32>
    %59 = arith.mulf %56, %58 : vector<16x256xf32>
    %60 = arith.andi %26, %30 : vector<16x256xi1>
    %cst_19 = arith.constant 0.000000e+00 : f32
    %61 = vector.broadcast %cst_19 : f32 to vector<16x256xf32>
    %62 = arith.select %60, %59, %61 : vector<16x256xi1>, vector<16x256xf32>
    %63 = arith.addf %55, %62 : vector<16x256xf32>
    %c16_i32_20 = arith.constant 16 : i32
    %64 = tpu.dynamic_rotate %39 by %c16_i32_20 dim 1 : vector<16x256xf32>, i32 -> vector<16x256xf32>
    %65 = vector.extract_strided_slice %54 {offsets = [0, 1], sizes = [16, 1], strides = [1, 1]} : vector<16x9xf32> to vector<16x1xf32>
    %66 = vector.broadcast %65 : vector<16x1xf32> to vector<16x256xf32>
    %67 = arith.mulf %64, %66 : vector<16x256xf32>
    %cst_21 = arith.constant 0.000000e+00 : f32
    %68 = vector.broadcast %cst_21 : f32 to vector<16x256xf32>
    %69 = arith.select %26, %67, %68 : vector<16x256xi1>, vector<16x256xf32>
    %70 = arith.addf %63, %69 : vector<16x256xf32>
    %c15_i32_22 = arith.constant 15 : i32
    %71 = tpu.dynamic_rotate %39 by %c15_i32_22 dim 1 : vector<16x256xf32>, i32 -> vector<16x256xf32>
    %72 = vector.extract_strided_slice %54 {offsets = [0, 2], sizes = [16, 1], strides = [1, 1]} : vector<16x9xf32> to vector<16x1xf32>
    %73 = vector.broadcast %72 : vector<16x1xf32> to vector<16x256xf32>
    %74 = arith.mulf %71, %73 : vector<16x256xf32>
    %75 = arith.andi %26, %32 : vector<16x256xi1>
    %cst_23 = arith.constant 0.000000e+00 : f32
    %76 = vector.broadcast %cst_23 : f32 to vector<16x256xf32>
    %77 = arith.select %75, %74, %76 : vector<16x256xi1>, vector<16x256xf32>
    %78 = arith.addf %70, %77 : vector<16x256xf32>
    %c1_i32_24 = arith.constant 1 : i32
    %79 = tpu.dynamic_rotate %39 by %c1_i32_24 dim 1 : vector<16x256xf32>, i32 -> vector<16x256xf32>
    %80 = vector.extract_strided_slice %54 {offsets = [0, 3], sizes = [16, 1], strides = [1, 1]} : vector<16x9xf32> to vector<16x1xf32>
    %81 = vector.broadcast %80 : vector<16x1xf32> to vector<16x256xf32>
    %82 = arith.mulf %79, %81 : vector<16x256xf32>
    %cst_25 = arith.constant 0.000000e+00 : f32
    %83 = vector.broadcast %cst_25 : f32 to vector<16x256xf32>
    %84 = arith.select %30, %82, %83 : vector<16x256xi1>, vector<16x256xf32>
    %85 = arith.addf %78, %84 : vector<16x256xf32>
    %86 = vector.extract_strided_slice %54 {offsets = [0, 4], sizes = [16, 1], strides = [1, 1]} : vector<16x9xf32> to vector<16x1xf32>
    %87 = vector.broadcast %86 : vector<16x1xf32> to vector<16x256xf32>
    %88 = arith.mulf %39, %87 : vector<16x256xf32>
    %89 = arith.addf %85, %88 : vector<16x256xf32>
    %c255_i32 = arith.constant 255 : i32
    %90 = tpu.dynamic_rotate %39 by %c255_i32 dim 1 : vector<16x256xf32>, i32 -> vector<16x256xf32>
    %91 = vector.extract_strided_slice %54 {offsets = [0, 5], sizes = [16, 1], strides = [1, 1]} : vector<16x9xf32> to vector<16x1xf32>
    %92 = vector.broadcast %91 : vector<16x1xf32> to vector<16x256xf32>
    %93 = arith.mulf %90, %92 : vector<16x256xf32>
    %cst_26 = arith.constant 0.000000e+00 : f32
    %94 = vector.broadcast %cst_26 : f32 to vector<16x256xf32>
    %95 = arith.select %32, %93, %94 : vector<16x256xi1>, vector<16x256xf32>
    %96 = arith.addf %89, %95 : vector<16x256xf32>
    %c241_i32 = arith.constant 241 : i32
    %97 = tpu.dynamic_rotate %39 by %c241_i32 dim 1 : vector<16x256xf32>, i32 -> vector<16x256xf32>
    %98 = vector.extract_strided_slice %54 {offsets = [0, 6], sizes = [16, 1], strides = [1, 1]} : vector<16x9xf32> to vector<16x1xf32>
    %99 = vector.broadcast %98 : vector<16x1xf32> to vector<16x256xf32>
    %100 = arith.mulf %97, %99 : vector<16x256xf32>
    %101 = arith.andi %28, %30 : vector<16x256xi1>
    %cst_27 = arith.constant 0.000000e+00 : f32
    %102 = vector.broadcast %cst_27 : f32 to vector<16x256xf32>
    %103 = arith.select %101, %100, %102 : vector<16x256xi1>, vector<16x256xf32>
    %104 = arith.addf %96, %103 : vector<16x256xf32>
    %c240_i32_28 = arith.constant 240 : i32
    %105 = tpu.dynamic_rotate %39 by %c240_i32_28 dim 1 : vector<16x256xf32>, i32 -> vector<16x256xf32>
    %106 = vector.extract_strided_slice %54 {offsets = [0, 7], sizes = [16, 1], strides = [1, 1]} : vector<16x9xf32> to vector<16x1xf32>
    %107 = vector.broadcast %106 : vector<16x1xf32> to vector<16x256xf32>
    %108 = arith.mulf %105, %107 : vector<16x256xf32>
    %cst_29 = arith.constant 0.000000e+00 : f32
    %109 = vector.broadcast %cst_29 : f32 to vector<16x256xf32>
    %110 = arith.select %28, %108, %109 : vector<16x256xi1>, vector<16x256xf32>
    %111 = arith.addf %104, %110 : vector<16x256xf32>
    %c239_i32 = arith.constant 239 : i32
    %112 = tpu.dynamic_rotate %39 by %c239_i32 dim 1 : vector<16x256xf32>, i32 -> vector<16x256xf32>
    %113 = vector.extract_strided_slice %54 {offsets = [0, 8], sizes = [16, 1], strides = [1, 1]} : vector<16x9xf32> to vector<16x1xf32>
    %114 = vector.broadcast %113 : vector<16x1xf32> to vector<16x256xf32>
    %115 = arith.mulf %112, %114 : vector<16x256xf32>
    %116 = arith.andi %28, %32 : vector<16x256xi1>
    %cst_30 = arith.constant 0.000000e+00 : f32
    %117 = vector.broadcast %cst_30 : f32 to vector<16x256xf32>
    %118 = arith.select %116, %115, %117 : vector<16x256xi1>, vector<16x256xf32>
    %119 = arith.addf %111, %118 : vector<16x256xf32>
    %c0_31 = arith.constant 0 : index
    %c0_32 = arith.constant 0 : index
    %120 = vector.load %arg5[%c0_31, %c0_32] : memref<64x1xf32, #tpu.memory_space<vmem>>, vector<16x1xf32>
    %121 = vector.broadcast %120 : vector<16x1xf32> to vector<16x256xf32>
    %122 = arith.addf %119, %121 : vector<16x256xf32>
    %123 = arith.addf %53, %122 : vector<16x256xf32>
    %124 = arith.truncf %123 : vector<16x256xf32> to vector<16x256xbf16>
    %c0_33 = arith.constant 0 : index
    %c0_34 = arith.constant 0 : index
    %c0_35 = arith.constant 0 : index
    %125 = vector.load %arg6[%c0_33, %c0_34, %c0_35] : memref<1x64x256xbf16, #tpu.memory_space<vmem>>, vector<1x16x256xbf16>
    %126 = vector.shape_cast %125 : vector<1x16x256xbf16> to vector<16x256xbf16>
    %127 = vector.shape_cast %124 : vector<16x256xbf16> to vector<1x16x256xbf16>
    tpu.vector_store %arg6[%c0_33, %c0_34, %c0_35], %127 {strides = array<i32>} : memref<1x64x256xbf16, #tpu.memory_space<vmem>>, vector<1x16x256xbf16>,
    %128 = vector.extract_strided_slice %7 {offsets = [32, 0], sizes = [8, 256], strides = [1, 1]} : vector<128x256xf32> to vector<8x256xf32>
    %cst_36 = arith.constant 0.353553385 : f32
    %129 = vector.broadcast %cst_36 : f32 to vector<8x256xf32>
    %130 = arith.mulf %128, %129 : vector<8x256xf32>
    %131 = arith.truncf %130 : vector<8x256xf32> to vector<8x256xbf16>
    %132 = vector.extract_strided_slice %7 {offsets = [40, 0], sizes = [8, 256], strides = [1, 1]} : vector<128x256xf32> to vector<8x256xf32>
    %133 = arith.truncf %132 : vector<8x256xf32> to vector<8x256xbf16>
    %134 = vector.extract_strided_slice %7 {offsets = [48, 0], sizes = [16, 256], strides = [1, 1]} : vector<128x256xf32> to vector<16x256xf32>
    %cst_37 = arith.constant dense<0.000000e+00> : vector<256x256xf32>
    %135 = tpu.matmul %133, %131, %cst_37 {dimension_numbers = #tpu.dot_dimension_numbers<[0], [0], [1], [1], [0, 1, 1, 1], [], []>} : vector<8x256xbf16>, vector<8x256xbf16>, vector<256x256xf32> -> vector<256x256xf32>
    %cst_38 = arith.constant dense<0xFF800000> : vector<256xf32>
    %136 = vector.multi_reduction <maximumf>, %135, %cst_38 [0] : vector<256x256xf32> to vector<256xf32>
    %137 = vector.shape_cast %136 : vector<256xf32> to vector<1x256xf32>
    %138 = vector.broadcast %137 : vector<1x256xf32> to vector<256x256xf32>
    %139 = arith.subf %135, %138 : vector<256x256xf32>
    %140 = math.exp %139 : vector<256x256xf32>
    %cst_39 = arith.constant dense<0.000000e+00> : vector<256xf32>
    %141 = vector.multi_reduction <add>, %140, %cst_39 [0] : vector<256x256xf32> to vector<256xf32>
    %142 = vector.shape_cast %141 : vector<256xf32> to vector<1x256xf32>
    %143 = arith.truncf %134 : vector<16x256xf32> to vector<16x256xbf16>
    %144 = arith.truncf %140 : vector<256x256xf32> to vector<256x256xbf16>
    %cst_40 = arith.constant dense<0.000000e+00> : vector<16x256xf32>
    %145 = tpu.matmul %143, %144, %cst_40 {dimension_numbers = #tpu.dot_dimension_numbers<[1], [0], [0], [1], [0, 0, 1, 1], [], []>} : vector<16x256xbf16>, vector<256x256xbf16>, vector<16x256xf32> -> vector<16x256xf32>
    %146 = tpu.reciprocal %142 {approx = true} : vector<1x256xf32> -> vector<1x256xf32>
    %147 = vector.broadcast %146 : vector<1x256xf32> to vector<16x256xf32>
    %148 = arith.mulf %145, %147 : vector<16x256xf32>
    %c16 = arith.constant 16 : index
    %c0_41 = arith.constant 0 : index
    %149 = vector.load %arg4[%c16, %c0_41] : memref<64x9xf32, #tpu.memory_space<vmem>>, vector<16x9xf32>
    %cst_42 = arith.constant 0.000000e+00 : f32
    %150 = vector.broadcast %cst_42 : f32 to vector<16x256xf32>
    %c17_i32_43 = arith.constant 17 : i32
    %151 = tpu.dynamic_rotate %134 by %c17_i32_43 dim 1 : vector<16x256xf32>, i32 -> vector<16x256xf32>
    %152 = vector.extract_strided_slice %149 {offsets = [0, 0], sizes = [16, 1], strides = [1, 1]} : vector<16x9xf32> to vector<16x1xf32>
    %153 = vector.broadcast %152 : vector<16x1xf32> to vector<16x256xf32>
    %154 = arith.mulf %151, %153 : vector<16x256xf32>
    %155 = arith.andi %26, %30 : vector<16x256xi1>
    %cst_44 = arith.constant 0.000000e+00 : f32
    %156 = vector.broadcast %cst_44 : f32 to vector<16x256xf32>
    %157 = arith.select %155, %154, %156 : vector<16x256xi1>, vector<16x256xf32>
    %158 = arith.addf %150, %157 : vector<16x256xf32>
    %c16_i32_45 = arith.constant 16 : i32
    %159 = tpu.dynamic_rotate %134 by %c16_i32_45 dim 1 : vector<16x256xf32>, i32 -> vector<16x256xf32>
    %160 = vector.extract_strided_slice %149 {offsets = [0, 1], sizes = [16, 1], strides = [1, 1]} : vector<16x9xf32> to vector<16x1xf32>
    %161 = vector.broadcast %160 : vector<16x1xf32> to vector<16x256xf32>
    %162 = arith.mulf %159, %161 : vector<16x256xf32>
    %cst_46 = arith.constant 0.000000e+00 : f32
    %163 = vector.broadcast %cst_46 : f32 to vector<16x256xf32>
    %164 = arith.select %26, %162, %163 : vector<16x256xi1>, vector<16x256xf32>
    %165 = arith.addf %158, %164 : vector<16x256xf32>
    %c15_i32_47 = arith.constant 15 : i32
    %166 = tpu.dynamic_rotate %134 by %c15_i32_47 dim 1 : vector<16x256xf32>, i32 -> vector<16x256xf32>
    %167 = vector.extract_strided_slice %149 {offsets = [0, 2], sizes = [16, 1], strides = [1, 1]} : vector<16x9xf32> to vector<16x1xf32>
    %168 = vector.broadcast %167 : vector<16x1xf32> to vector<16x256xf32>
    %169 = arith.mulf %166, %168 : vector<16x256xf32>
    %170 = arith.andi %26, %32 : vector<16x256xi1>
    %cst_48 = arith.constant 0.000000e+00 : f32
    %171 = vector.broadcast %cst_48 : f32 to vector<16x256xf32>
    %172 = arith.select %170, %169, %171 : vector<16x256xi1>, vector<16x256xf32>
    %173 = arith.addf %165, %172 : vector<16x256xf32>
    %c1_i32_49 = arith.constant 1 : i32
    %174 = tpu.dynamic_rotate %134 by %c1_i32_49 dim 1 : vector<16x256xf32>, i32 -> vector<16x256xf32>
    %175 = vector.extract_strided_slice %149 {offsets = [0, 3], sizes = [16, 1], strides = [1, 1]} : vector<16x9xf32> to vector<16x1xf32>
    %176 = vector.broadcast %175 : vector<16x1xf32> to vector<16x256xf32>
    %177 = arith.mulf %174, %176 : vector<16x256xf32>
    %cst_50 = arith.constant 0.000000e+00 : f32
    %178 = vector.broadcast %cst_50 : f32 to vector<16x256xf32>
    %179 = arith.select %30, %177, %178 : vector<16x256xi1>, vector<16x256xf32>
    %180 = arith.addf %173, %179 : vector<16x256xf32>
    %181 = vector.extract_strided_slice %149 {offsets = [0, 4], sizes = [16, 1], strides = [1, 1]} : vector<16x9xf32> to vector<16x1xf32>
    %182 = vector.broadcast %181 : vector<16x1xf32> to vector<16x256xf32>
    %183 = arith.mulf %134, %182 : vector<16x256xf32>
    %184 = arith.addf %180, %183 : vector<16x256xf32>
    %c255_i32_51 = arith.constant 255 : i32
    %185 = tpu.dynamic_rotate %134 by %c255_i32_51 dim 1 : vector<16x256xf32>, i32 -> vector<16x256xf32>
    %186 = vector.extract_strided_slice %149 {offsets = [0, 5], sizes = [16, 1], strides = [1, 1]} : vector<16x9xf32> to vector<16x1xf32>
    %187 = vector.broadcast %186 : vector<16x1xf32> to vector<16x256xf32>
    %188 = arith.mulf %185, %187 : vector<16x256xf32>
    %cst_52 = arith.constant 0.000000e+00 : f32
    %189 = vector.broadcast %cst_52 : f32 to vector<16x256xf32>
    %190 = arith.select %32, %188, %189 : vector<16x256xi1>, vector<16x256xf32>
    %191 = arith.addf %184, %190 : vector<16x256xf32>
    %c241_i32_53 = arith.constant 241 : i32
    %192 = tpu.dynamic_rotate %134 by %c241_i32_53 dim 1 : vector<16x256xf32>, i32 -> vector<16x256xf32>
    %193 = vector.extract_strided_slice %149 {offsets = [0, 6], sizes = [16, 1], strides = [1, 1]} : vector<16x9xf32> to vector<16x1xf32>
    %194 = vector.broadcast %193 : vector<16x1xf32> to vector<16x256xf32>
    %195 = arith.mulf %192, %194 : vector<16x256xf32>
    %196 = arith.andi %28, %30 : vector<16x256xi1>
    %cst_54 = arith.constant 0.000000e+00 : f32
    %197 = vector.broadcast %cst_54 : f32 to vector<16x256xf32>
    %198 = arith.select %196, %195, %197 : vector<16x256xi1>, vector<16x256xf32>
    %199 = arith.addf %191, %198 : vector<16x256xf32>
    %c240_i32_55 = arith.constant 240 : i32
    %200 = tpu.dynamic_rotate %134 by %c240_i32_55 dim 1 : vector<16x256xf32>, i32 -> vector<16x256xf32>
    %201 = vector.extract_strided_slice %149 {offsets = [0, 7], sizes = [16, 1], strides = [1, 1]} : vector<16x9xf32> to vector<16x1xf32>
    %202 = vector.broadcast %201 : vector<16x1xf32> to vector<16x256xf32>
    %203 = arith.mulf %200, %202 : vector<16x256xf32>
    %cst_56 = arith.constant 0.000000e+00 : f32
    %204 = vector.broadcast %cst_56 : f32 to vector<16x256xf32>
    %205 = arith.select %28, %203, %204 : vector<16x256xi1>, vector<16x256xf32>
    %206 = arith.addf %199, %205 : vector<16x256xf32>
    %c239_i32_57 = arith.constant 239 : i32
    %207 = tpu.dynamic_rotate %134 by %c239_i32_57 dim 1 : vector<16x256xf32>, i32 -> vector<16x256xf32>
    %208 = vector.extract_strided_slice %149 {offsets = [0, 8], sizes = [16, 1], strides = [1, 1]} : vector<16x9xf32> to vector<16x1xf32>
    %209 = vector.broadcast %208 : vector<16x1xf32> to vector<16x256xf32>
    %210 = arith.mulf %207, %209 : vector<16x256xf32>
    %211 = arith.andi %28, %32 : vector<16x256xi1>
    %cst_58 = arith.constant 0.000000e+00 : f32
    %212 = vector.broadcast %cst_58 : f32 to vector<16x256xf32>
    %213 = arith.select %211, %210, %212 : vector<16x256xi1>, vector<16x256xf32>
    %214 = arith.addf %206, %213 : vector<16x256xf32>
    %c16_59 = arith.constant 16 : index
    %c0_60 = arith.constant 0 : index
    %215 = vector.load %arg5[%c16_59, %c0_60] : memref<64x1xf32, #tpu.memory_space<vmem>>, vector<16x1xf32>
    %216 = vector.broadcast %215 : vector<16x1xf32> to vector<16x256xf32>
    %217 = arith.addf %214, %216 : vector<16x256xf32>
    %218 = arith.addf %148, %217 : vector<16x256xf32>
    %219 = arith.truncf %218 : vector<16x256xf32> to vector<16x256xbf16>
    %c0_61 = arith.constant 0 : index
    %c16_62 = arith.constant 16 : index
    %c0_63 = arith.constant 0 : index
    %220 = vector.load %arg6[%c0_61, %c16_62, %c0_63] : memref<1x64x256xbf16, #tpu.memory_space<vmem>>, vector<1x16x256xbf16>
    %221 = vector.shape_cast %220 : vector<1x16x256xbf16> to vector<16x256xbf16>
    %222 = vector.shape_cast %219 : vector<16x256xbf16> to vector<1x16x256xbf16>
    tpu.vector_store %arg6[%c0_61, %c16_62, %c0_63], %222 {strides = array<i32>} : memref<1x64x256xbf16, #tpu.memory_space<vmem>>, vector<1x16x256xbf16>,
    %223 = vector.extract_strided_slice %7 {offsets = [64, 0], sizes = [8, 256], strides = [1, 1]} : vector<128x256xf32> to vector<8x256xf32>
    %cst_64 = arith.constant 0.353553385 : f32
    %224 = vector.broadcast %cst_64 : f32 to vector<8x256xf32>
    %225 = arith.mulf %223, %224 : vector<8x256xf32>
    %226 = arith.truncf %225 : vector<8x256xf32> to vector<8x256xbf16>
    %227 = vector.extract_strided_slice %7 {offsets = [72, 0], sizes = [8, 256], strides = [1, 1]} : vector<128x256xf32> to vector<8x256xf32>
    %228 = arith.truncf %227 : vector<8x256xf32> to vector<8x256xbf16>
    %229 = vector.extract_strided_slice %7 {offsets = [80, 0], sizes = [16, 256], strides = [1, 1]} : vector<128x256xf32> to vector<16x256xf32>
    %cst_65 = arith.constant dense<0.000000e+00> : vector<256x256xf32>
    %230 = tpu.matmul %228, %226, %cst_65 {dimension_numbers = #tpu.dot_dimension_numbers<[0], [0], [1], [1], [0, 1, 1, 1], [], []>} : vector<8x256xbf16>, vector<8x256xbf16>, vector<256x256xf32> -> vector<256x256xf32>
    %cst_66 = arith.constant dense<0xFF800000> : vector<256xf32>
    %231 = vector.multi_reduction <maximumf>, %230, %cst_66 [0] : vector<256x256xf32> to vector<256xf32>
    %232 = vector.shape_cast %231 : vector<256xf32> to vector<1x256xf32>
    %233 = vector.broadcast %232 : vector<1x256xf32> to vector<256x256xf32>
    %234 = arith.subf %230, %233 : vector<256x256xf32>
    %235 = math.exp %234 : vector<256x256xf32>
    %cst_67 = arith.constant dense<0.000000e+00> : vector<256xf32>
    %236 = vector.multi_reduction <add>, %235, %cst_67 [0] : vector<256x256xf32> to vector<256xf32>
    %237 = vector.shape_cast %236 : vector<256xf32> to vector<1x256xf32>
    %238 = arith.truncf %229 : vector<16x256xf32> to vector<16x256xbf16>
    %239 = arith.truncf %235 : vector<256x256xf32> to vector<256x256xbf16>
    %cst_68 = arith.constant dense<0.000000e+00> : vector<16x256xf32>
    %240 = tpu.matmul %238, %239, %cst_68 {dimension_numbers = #tpu.dot_dimension_numbers<[1], [0], [0], [1], [0, 0, 1, 1], [], []>} : vector<16x256xbf16>, vector<256x256xbf16>, vector<16x256xf32> -> vector<16x256xf32>
    %241 = tpu.reciprocal %237 {approx = true} : vector<1x256xf32> -> vector<1x256xf32>
    %242 = vector.broadcast %241 : vector<1x256xf32> to vector<16x256xf32>
    %243 = arith.mulf %240, %242 : vector<16x256xf32>
    %c32 = arith.constant 32 : index
    %c0_69 = arith.constant 0 : index
    %244 = vector.load %arg4[%c32, %c0_69] : memref<64x9xf32, #tpu.memory_space<vmem>>, vector<16x9xf32>
    %cst_70 = arith.constant 0.000000e+00 : f32
    %245 = vector.broadcast %cst_70 : f32 to vector<16x256xf32>
    %c17_i32_71 = arith.constant 17 : i32
    %246 = tpu.dynamic_rotate %229 by %c17_i32_71 dim 1 : vector<16x256xf32>, i32 -> vector<16x256xf32>
    %247 = vector.extract_strided_slice %244 {offsets = [0, 0], sizes = [16, 1], strides = [1, 1]} : vector<16x9xf32> to vector<16x1xf32>
    %248 = vector.broadcast %247 : vector<16x1xf32> to vector<16x256xf32>
    %249 = arith.mulf %246, %248 : vector<16x256xf32>
    %250 = arith.andi %26, %30 : vector<16x256xi1>
    %cst_72 = arith.constant 0.000000e+00 : f32
    %251 = vector.broadcast %cst_72 : f32 to vector<16x256xf32>
    %252 = arith.select %250, %249, %251 : vector<16x256xi1>, vector<16x256xf32>
    %253 = arith.addf %245, %252 : vector<16x256xf32>
    %c16_i32_73 = arith.constant 16 : i32
    %254 = tpu.dynamic_rotate %229 by %c16_i32_73 dim 1 : vector<16x256xf32>, i32 -> vector<16x256xf32>
    %255 = vector.extract_strided_slice %244 {offsets = [0, 1], sizes = [16, 1], strides = [1, 1]} : vector<16x9xf32> to vector<16x1xf32>
    %256 = vector.broadcast %255 : vector<16x1xf32> to vector<16x256xf32>
    %257 = arith.mulf %254, %256 : vector<16x256xf32>
    %cst_74 = arith.constant 0.000000e+00 : f32
    %258 = vector.broadcast %cst_74 : f32 to vector<16x256xf32>
    %259 = arith.select %26, %257, %258 : vector<16x256xi1>, vector<16x256xf32>
    %260 = arith.addf %253, %259 : vector<16x256xf32>
    %c15_i32_75 = arith.constant 15 : i32
    %261 = tpu.dynamic_rotate %229 by %c15_i32_75 dim 1 : vector<16x256xf32>, i32 -> vector<16x256xf32>
    %262 = vector.extract_strided_slice %244 {offsets = [0, 2], sizes = [16, 1], strides = [1, 1]} : vector<16x9xf32> to vector<16x1xf32>
    %263 = vector.broadcast %262 : vector<16x1xf32> to vector<16x256xf32>
    %264 = arith.mulf %261, %263 : vector<16x256xf32>
    %265 = arith.andi %26, %32 : vector<16x256xi1>
    %cst_76 = arith.constant 0.000000e+00 : f32
    %266 = vector.broadcast %cst_76 : f32 to vector<16x256xf32>
    %267 = arith.select %265, %264, %266 : vector<16x256xi1>, vector<16x256xf32>
    %268 = arith.addf %260, %267 : vector<16x256xf32>
    %c1_i32_77 = arith.constant 1 : i32
    %269 = tpu.dynamic_rotate %229 by %c1_i32_77 dim 1 : vector<16x256xf32>, i32 -> vector<16x256xf32>
    %270 = vector.extract_strided_slice %244 {offsets = [0, 3], sizes = [16, 1], strides = [1, 1]} : vector<16x9xf32> to vector<16x1xf32>
    %271 = vector.broadcast %270 : vector<16x1xf32> to vector<16x256xf32>
    %272 = arith.mulf %269, %271 : vector<16x256xf32>
    %cst_78 = arith.constant 0.000000e+00 : f32
    %273 = vector.broadcast %cst_78 : f32 to vector<16x256xf32>
    %274 = arith.select %30, %272, %273 : vector<16x256xi1>, vector<16x256xf32>
    %275 = arith.addf %268, %274 : vector<16x256xf32>
    %276 = vector.extract_strided_slice %244 {offsets = [0, 4], sizes = [16, 1], strides = [1, 1]} : vector<16x9xf32> to vector<16x1xf32>
    %277 = vector.broadcast %276 : vector<16x1xf32> to vector<16x256xf32>
    %278 = arith.mulf %229, %277 : vector<16x256xf32>
    %279 = arith.addf %275, %278 : vector<16x256xf32>
    %c255_i32_79 = arith.constant 255 : i32
    %280 = tpu.dynamic_rotate %229 by %c255_i32_79 dim 1 : vector<16x256xf32>, i32 -> vector<16x256xf32>
    %281 = vector.extract_strided_slice %244 {offsets = [0, 5], sizes = [16, 1], strides = [1, 1]} : vector<16x9xf32> to vector<16x1xf32>
    %282 = vector.broadcast %281 : vector<16x1xf32> to vector<16x256xf32>
    %283 = arith.mulf %280, %282 : vector<16x256xf32>
    %cst_80 = arith.constant 0.000000e+00 : f32
    %284 = vector.broadcast %cst_80 : f32 to vector<16x256xf32>
    %285 = arith.select %32, %283, %284 : vector<16x256xi1>, vector<16x256xf32>
    %286 = arith.addf %279, %285 : vector<16x256xf32>
    %c241_i32_81 = arith.constant 241 : i32
    %287 = tpu.dynamic_rotate %229 by %c241_i32_81 dim 1 : vector<16x256xf32>, i32 -> vector<16x256xf32>
    %288 = vector.extract_strided_slice %244 {offsets = [0, 6], sizes = [16, 1], strides = [1, 1]} : vector<16x9xf32> to vector<16x1xf32>
    %289 = vector.broadcast %288 : vector<16x1xf32> to vector<16x256xf32>
    %290 = arith.mulf %287, %289 : vector<16x256xf32>
    %291 = arith.andi %28, %30 : vector<16x256xi1>
    %cst_82 = arith.constant 0.000000e+00 : f32
    %292 = vector.broadcast %cst_82 : f32 to vector<16x256xf32>
    %293 = arith.select %291, %290, %292 : vector<16x256xi1>, vector<16x256xf32>
    %294 = arith.addf %286, %293 : vector<16x256xf32>
    %c240_i32_83 = arith.constant 240 : i32
    %295 = tpu.dynamic_rotate %229 by %c240_i32_83 dim 1 : vector<16x256xf32>, i32 -> vector<16x256xf32>
    %296 = vector.extract_strided_slice %244 {offsets = [0, 7], sizes = [16, 1], strides = [1, 1]} : vector<16x9xf32> to vector<16x1xf32>
    %297 = vector.broadcast %296 : vector<16x1xf32> to vector<16x256xf32>
    %298 = arith.mulf %295, %297 : vector<16x256xf32>
    %cst_84 = arith.constant 0.000000e+00 : f32
    %299 = vector.broadcast %cst_84 : f32 to vector<16x256xf32>
    %300 = arith.select %28, %298, %299 : vector<16x256xi1>, vector<16x256xf32>
    %301 = arith.addf %294, %300 : vector<16x256xf32>
    %c239_i32_85 = arith.constant 239 : i32
    %302 = tpu.dynamic_rotate %229 by %c239_i32_85 dim 1 : vector<16x256xf32>, i32 -> vector<16x256xf32>
    %303 = vector.extract_strided_slice %244 {offsets = [0, 8], sizes = [16, 1], strides = [1, 1]} : vector<16x9xf32> to vector<16x1xf32>
    %304 = vector.broadcast %303 : vector<16x1xf32> to vector<16x256xf32>
    %305 = arith.mulf %302, %304 : vector<16x256xf32>
    %306 = arith.andi %28, %32 : vector<16x256xi1>
    %cst_86 = arith.constant 0.000000e+00 : f32
    %307 = vector.broadcast %cst_86 : f32 to vector<16x256xf32>
    %308 = arith.select %306, %305, %307 : vector<16x256xi1>, vector<16x256xf32>
    %309 = arith.addf %301, %308 : vector<16x256xf32>
    %c32_87 = arith.constant 32 : index
    %c0_88 = arith.constant 0 : index
    %310 = vector.load %arg5[%c32_87, %c0_88] : memref<64x1xf32, #tpu.memory_space<vmem>>, vector<16x1xf32>
    %311 = vector.broadcast %310 : vector<16x1xf32> to vector<16x256xf32>
    %312 = arith.addf %309, %311 : vector<16x256xf32>
    %313 = arith.addf %243, %312 : vector<16x256xf32>
    %314 = arith.truncf %313 : vector<16x256xf32> to vector<16x256xbf16>
    %c0_89 = arith.constant 0 : index
    %c32_90 = arith.constant 32 : index
    %c0_91 = arith.constant 0 : index
    %315 = vector.load %arg6[%c0_89, %c32_90, %c0_91] : memref<1x64x256xbf16, #tpu.memory_space<vmem>>, vector<1x16x256xbf16>
    %316 = vector.shape_cast %315 : vector<1x16x256xbf16> to vector<16x256xbf16>
    %317 = vector.shape_cast %314 : vector<16x256xbf16> to vector<1x16x256xbf16>
    tpu.vector_store %arg6[%c0_89, %c32_90, %c0_91], %317 {strides = array<i32>} : memref<1x64x256xbf16, #tpu.memory_space<vmem>>, vector<1x16x256xbf16>,
    %318 = vector.extract_strided_slice %7 {offsets = [96, 0], sizes = [8, 256], strides = [1, 1]} : vector<128x256xf32> to vector<8x256xf32>
    %cst_92 = arith.constant 0.353553385 : f32
    %319 = vector.broadcast %cst_92 : f32 to vector<8x256xf32>
    %320 = arith.mulf %318, %319 : vector<8x256xf32>
    %321 = arith.truncf %320 : vector<8x256xf32> to vector<8x256xbf16>
    %322 = vector.extract_strided_slice %7 {offsets = [104, 0], sizes = [8, 256], strides = [1, 1]} : vector<128x256xf32> to vector<8x256xf32>
    %323 = arith.truncf %322 : vector<8x256xf32> to vector<8x256xbf16>
    %324 = vector.extract_strided_slice %7 {offsets = [112, 0], sizes = [16, 256], strides = [1, 1]} : vector<128x256xf32> to vector<16x256xf32>
    %cst_93 = arith.constant dense<0.000000e+00> : vector<256x256xf32>
    %325 = tpu.matmul %323, %321, %cst_93 {dimension_numbers = #tpu.dot_dimension_numbers<[0], [0], [1], [1], [0, 1, 1, 1], [], []>} : vector<8x256xbf16>, vector<8x256xbf16>, vector<256x256xf32> -> vector<256x256xf32>
    %cst_94 = arith.constant dense<0xFF800000> : vector<256xf32>
    %326 = vector.multi_reduction <maximumf>, %325, %cst_94 [0] : vector<256x256xf32> to vector<256xf32>
    %327 = vector.shape_cast %326 : vector<256xf32> to vector<1x256xf32>
    %328 = vector.broadcast %327 : vector<1x256xf32> to vector<256x256xf32>
    %329 = arith.subf %325, %328 : vector<256x256xf32>
    %330 = math.exp %329 : vector<256x256xf32>
    %cst_95 = arith.constant dense<0.000000e+00> : vector<256xf32>
    %331 = vector.multi_reduction <add>, %330, %cst_95 [0] : vector<256x256xf32> to vector<256xf32>
    %332 = vector.shape_cast %331 : vector<256xf32> to vector<1x256xf32>
    %333 = arith.truncf %324 : vector<16x256xf32> to vector<16x256xbf16>
    %334 = arith.truncf %330 : vector<256x256xf32> to vector<256x256xbf16>
    %cst_96 = arith.constant dense<0.000000e+00> : vector<16x256xf32>
    %335 = tpu.matmul %333, %334, %cst_96 {dimension_numbers = #tpu.dot_dimension_numbers<[1], [0], [0], [1], [0, 0, 1, 1], [], []>} : vector<16x256xbf16>, vector<256x256xbf16>, vector<16x256xf32> -> vector<16x256xf32>
    %336 = tpu.reciprocal %332 {approx = true} : vector<1x256xf32> -> vector<1x256xf32>
    %337 = vector.broadcast %336 : vector<1x256xf32> to vector<16x256xf32>
    %338 = arith.mulf %335, %337 : vector<16x256xf32>
    %c48 = arith.constant 48 : index
    %c0_97 = arith.constant 0 : index
    %339 = vector.load %arg4[%c48, %c0_97] : memref<64x9xf32, #tpu.memory_space<vmem>>, vector<16x9xf32>
    %cst_98 = arith.constant 0.000000e+00 : f32
    %340 = vector.broadcast %cst_98 : f32 to vector<16x256xf32>
    %c17_i32_99 = arith.constant 17 : i32
    %341 = tpu.dynamic_rotate %324 by %c17_i32_99 dim 1 : vector<16x256xf32>, i32 -> vector<16x256xf32>
    %342 = vector.extract_strided_slice %339 {offsets = [0, 0], sizes = [16, 1], strides = [1, 1]} : vector<16x9xf32> to vector<16x1xf32>
    %343 = vector.broadcast %342 : vector<16x1xf32> to vector<16x256xf32>
    %344 = arith.mulf %341, %343 : vector<16x256xf32>
    %345 = arith.andi %26, %30 : vector<16x256xi1>
    %cst_100 = arith.constant 0.000000e+00 : f32
    %346 = vector.broadcast %cst_100 : f32 to vector<16x256xf32>
    %347 = arith.select %345, %344, %346 : vector<16x256xi1>, vector<16x256xf32>
    %348 = arith.addf %340, %347 : vector<16x256xf32>
    %c16_i32_101 = arith.constant 16 : i32
    %349 = tpu.dynamic_rotate %324 by %c16_i32_101 dim 1 : vector<16x256xf32>, i32 -> vector<16x256xf32>
    %350 = vector.extract_strided_slice %339 {offsets = [0, 1], sizes = [16, 1], strides = [1, 1]} : vector<16x9xf32> to vector<16x1xf32>
    %351 = vector.broadcast %350 : vector<16x1xf32> to vector<16x256xf32>
    %352 = arith.mulf %349, %351 : vector<16x256xf32>
    %cst_102 = arith.constant 0.000000e+00 : f32
    %353 = vector.broadcast %cst_102 : f32 to vector<16x256xf32>
    %354 = arith.select %26, %352, %353 : vector<16x256xi1>, vector<16x256xf32>
    %355 = arith.addf %348, %354 : vector<16x256xf32>
    %c15_i32_103 = arith.constant 15 : i32
    %356 = tpu.dynamic_rotate %324 by %c15_i32_103 dim 1 : vector<16x256xf32>, i32 -> vector<16x256xf32>
    %357 = vector.extract_strided_slice %339 {offsets = [0, 2], sizes = [16, 1], strides = [1, 1]} : vector<16x9xf32> to vector<16x1xf32>
    %358 = vector.broadcast %357 : vector<16x1xf32> to vector<16x256xf32>
    %359 = arith.mulf %356, %358 : vector<16x256xf32>
    %360 = arith.andi %26, %32 : vector<16x256xi1>
    %cst_104 = arith.constant 0.000000e+00 : f32
    %361 = vector.broadcast %cst_104 : f32 to vector<16x256xf32>
    %362 = arith.select %360, %359, %361 : vector<16x256xi1>, vector<16x256xf32>
    %363 = arith.addf %355, %362 : vector<16x256xf32>
    %c1_i32_105 = arith.constant 1 : i32
    %364 = tpu.dynamic_rotate %324 by %c1_i32_105 dim 1 : vector<16x256xf32>, i32 -> vector<16x256xf32>
    %365 = vector.extract_strided_slice %339 {offsets = [0, 3], sizes = [16, 1], strides = [1, 1]} : vector<16x9xf32> to vector<16x1xf32>
    %366 = vector.broadcast %365 : vector<16x1xf32> to vector<16x256xf32>
    %367 = arith.mulf %364, %366 : vector<16x256xf32>
    %cst_106 = arith.constant 0.000000e+00 : f32
    %368 = vector.broadcast %cst_106 : f32 to vector<16x256xf32>
    %369 = arith.select %30, %367, %368 : vector<16x256xi1>, vector<16x256xf32>
    %370 = arith.addf %363, %369 : vector<16x256xf32>
    %371 = vector.extract_strided_slice %339 {offsets = [0, 4], sizes = [16, 1], strides = [1, 1]} : vector<16x9xf32> to vector<16x1xf32>
    %372 = vector.broadcast %371 : vector<16x1xf32> to vector<16x256xf32>
    %373 = arith.mulf %324, %372 : vector<16x256xf32>
    %374 = arith.addf %370, %373 : vector<16x256xf32>
    %c255_i32_107 = arith.constant 255 : i32
    %375 = tpu.dynamic_rotate %324 by %c255_i32_107 dim 1 : vector<16x256xf32>, i32 -> vector<16x256xf32>
    %376 = vector.extract_strided_slice %339 {offsets = [0, 5], sizes = [16, 1], strides = [1, 1]} : vector<16x9xf32> to vector<16x1xf32>
    %377 = vector.broadcast %376 : vector<16x1xf32> to vector<16x256xf32>
    %378 = arith.mulf %375, %377 : vector<16x256xf32>
    %cst_108 = arith.constant 0.000000e+00 : f32
    %379 = vector.broadcast %cst_108 : f32 to vector<16x256xf32>
    %380 = arith.select %32, %378, %379 : vector<16x256xi1>, vector<16x256xf32>
    %381 = arith.addf %374, %380 : vector<16x256xf32>
    %c241_i32_109 = arith.constant 241 : i32
    %382 = tpu.dynamic_rotate %324 by %c241_i32_109 dim 1 : vector<16x256xf32>, i32 -> vector<16x256xf32>
    %383 = vector.extract_strided_slice %339 {offsets = [0, 6], sizes = [16, 1], strides = [1, 1]} : vector<16x9xf32> to vector<16x1xf32>
    %384 = vector.broadcast %383 : vector<16x1xf32> to vector<16x256xf32>
    %385 = arith.mulf %382, %384 : vector<16x256xf32>
    %386 = arith.andi %28, %30 : vector<16x256xi1>
    %cst_110 = arith.constant 0.000000e+00 : f32
    %387 = vector.broadcast %cst_110 : f32 to vector<16x256xf32>
    %388 = arith.select %386, %385, %387 : vector<16x256xi1>, vector<16x256xf32>
    %389 = arith.addf %381, %388 : vector<16x256xf32>
    %c240_i32_111 = arith.constant 240 : i32
    %390 = tpu.dynamic_rotate %324 by %c240_i32_111 dim 1 : vector<16x256xf32>, i32 -> vector<16x256xf32>
    %391 = vector.extract_strided_slice %339 {offsets = [0, 7], sizes = [16, 1], strides = [1, 1]} : vector<16x9xf32> to vector<16x1xf32>
    %392 = vector.broadcast %391 : vector<16x1xf32> to vector<16x256xf32>
    %393 = arith.mulf %390, %392 : vector<16x256xf32>
    %cst_112 = arith.constant 0.000000e+00 : f32
    %394 = vector.broadcast %cst_112 : f32 to vector<16x256xf32>
    %395 = arith.select %28, %393, %394 : vector<16x256xi1>, vector<16x256xf32>
    %396 = arith.addf %389, %395 : vector<16x256xf32>
    %c239_i32_113 = arith.constant 239 : i32
    %397 = tpu.dynamic_rotate %324 by %c239_i32_113 dim 1 : vector<16x256xf32>, i32 -> vector<16x256xf32>
    %398 = vector.extract_strided_slice %339 {offsets = [0, 8], sizes = [16, 1], strides = [1, 1]} : vector<16x9xf32> to vector<16x1xf32>
    %399 = vector.broadcast %398 : vector<16x1xf32> to vector<16x256xf32>
    %400 = arith.mulf %397, %399 : vector<16x256xf32>
    %401 = arith.andi %28, %32 : vector<16x256xi1>
    %cst_114 = arith.constant 0.000000e+00 : f32
    %402 = vector.broadcast %cst_114 : f32 to vector<16x256xf32>
    %403 = arith.select %401, %400, %402 : vector<16x256xi1>, vector<16x256xf32>
    %404 = arith.addf %396, %403 : vector<16x256xf32>
    %c48_115 = arith.constant 48 : index
    %c0_116 = arith.constant 0 : index
    %405 = vector.load %arg5[%c48_115, %c0_116] : memref<64x1xf32, #tpu.memory_space<vmem>>, vector<16x1xf32>
    %406 = vector.broadcast %405 : vector<16x1xf32> to vector<16x256xf32>
    %407 = arith.addf %404, %406 : vector<16x256xf32>
    %408 = arith.addf %338, %407 : vector<16x256xf32>
    %409 = arith.truncf %408 : vector<16x256xf32> to vector<16x256xbf16>
    %c0_117 = arith.constant 0 : index
    %c48_118 = arith.constant 48 : index
    %c0_119 = arith.constant 0 : index
    %410 = vector.load %arg6[%c0_117, %c48_118, %c0_119] : memref<1x64x256xbf16, #tpu.memory_space<vmem>>, vector<1x16x256xbf16>
    %411 = vector.shape_cast %410 : vector<1x16x256xbf16> to vector<16x256xbf16>
    %412 = vector.shape_cast %409 : vector<16x256xbf16> to vector<1x16x256xbf16>
    tpu.vector_store %arg6[%c0_117, %c48_118, %c0_119], %412 {strides = array<i32>} : memref<1x64x256xbf16, #tpu.memory_space<vmem>>, vector<1x16x256xbf16>,
    return
  }
  func.func @transform_0(%arg0: i32) -> (i32, i32, i32) {
    %c0_i32 = arith.constant 0 : i32
    %c0_i32_0 = arith.constant 0 : i32
    %c0_i32_1 = arith.constant 0 : i32
    return %arg0, %c0_i32, %c0_i32_0 : i32, i32, i32
  }
  func.func @transform_1(%arg0: i32) -> (i32, i32) {
    %c0_i32 = arith.constant 0 : i32
    %c0_i32_0 = arith.constant 0 : i32
    %c0_i32_1 = arith.constant 0 : i32
    return %c0_i32, %c0_i32_0 : i32, i32
  }
  func.func @transform_2(%arg0: i32) -> (i32, i32) {
    %c0_i32 = arith.constant 0 : i32
    %c0_i32_0 = arith.constant 0 : i32
    %c0_i32_1 = arith.constant 0 : i32
    return %c0_i32, %c0_i32_0 : i32, i32
  }
  func.func @transform_3(%arg0: i32) -> (i32, i32) {
    %c0_i32 = arith.constant 0 : i32
    %c0_i32_0 = arith.constant 0 : i32
    %c0_i32_1 = arith.constant 0 : i32
    return %c0_i32, %c0_i32_0 : i32, i32
  }
  func.func @transform_4(%arg0: i32) -> (i32, i32) {
    %c0_i32 = arith.constant 0 : i32
    %c0_i32_0 = arith.constant 0 : i32
    %c0_i32_1 = arith.constant 0 : i32
    return %c0_i32, %c0_i32_0 : i32, i32
  }
  func.func @transform_5(%arg0: i32) -> (i32, i32, i32) {
    %c0_i32 = arith.constant 0 : i32
    %c0_i32_0 = arith.constant 0 : i32
    %c0_i32_1 = arith.constant 0 : i32
    return %arg0, %c0_i32, %c0_i32_0 : i32, i32, i32
  }
}

</mosaic_0001>

<bundles_post_ra>
// kernel: psa_block.3
= control target key start
LH: loop header
LB: loop body
LE: loop exit
PB: predicated region body
PF: predicated region fallthrough
CT: control target
= control target key end

     0   :  { %s1788_s27 = smov 0   ;;  %s1790_s28 = smov 0   ;;  %s2234_s0 = inlined_call_operand.vmem [shape: f32[2,64,256], index: 0, kind: input, shape index: {}]   ;;  %s2235_s1 = inlined_call_operand.vmem [shape: bf16[2,64,256], index: 1, kind: input, shape index: {}]   ;;  %s2236_s2 = inlined_call_operand.vmem [shape: bf16[64,64], index: 2, kind: input, shape index: {}]   ;;  %s2237_s3 = inlined_call_operand.vmem [shape: f32[64,1], index: 3, kind: input, shape index: {}]   ;;  %s2238_s4 = inlined_call_operand.vmem [shape: bf16[128,64], index: 4, kind: input, shape index: {}]   ;;  %s2239_s5 = inlined_call_operand.vmem [shape: f32[128,1], index: 5, kind: input, shape index: {}]   ;;  %s2240_s6 = inlined_call_operand.vmem [shape: bf16[64,128], index: 6, kind: input, shape index: {}]   ;;  %s2241_s7 = inlined_call_operand.vmem [shape: f32[64,1], index: 7, kind: input, shape index: {}]   ;;  %s2242_s8 = inlined_call_operand.vmem [shape: f32[2,64,256], index: 8, kind: output, shape index: {}]  }
   0x1   :  { %s1792_s29 = smov 0  }
   0x2 LB: > { %s30_s30 = sadd.s32 1, %s1736_s28  ;;  %p1455_p0 = scmp.ge.s32.totalorder %s1740_s29, 1  ;;  %s1740_s29 = sphi %s1792_s29, %s18_s29   ;;  %s1736_s28 = sphi %s1790_s28, %s2244_s28   ;;  %s1732_s27 = sphi %s1788_s27, %s2243_s27  }
   0x3   : > { %p32_p1 = scmp.ge.s32.totalorder %s30_s30, 2  ;;  %p300_p2 = scmp.lt.s32.totalorder %s1740_s29, 3 }
   0x5   : > { %s2246_s30 = smov (%p32_p1, %s30_s30), 0  ;;  %p301_p3 = pnand %p1455_p0, %p300_p2 }
   0x6   : > { %p352_p4 = scmp.lt.s32.totalorder (!%p301_p3), %s1732_s27, 1  ;;  %v1742_v0 = vmov (!%p301_p3), 0   ;;  %v414_v1 = vld [vmem:[%s2237_s3] sm:$0xff] (!%p301_p3)  ;;  %v416_v2 = vld [vmem:[%s2237_s3 + $0x10] sm:$0xff] (!%p301_p3)  ;;  %v415_v3 = vld [vmem:[%s2237_s3 + $0x8] sm:$0xff] (!%p301_p3)  ;;  %vm522_vm0 = vcmask (!%p301_p3), 523264  }
   0x7   : > { %304 = sbr.rel (%p301_p3) target bundleno = 837 (0x345), region = 52  ;;  %567 = vmatprep.mubr.bf16.mxu0 (!%p301_p3), %v1742_v0  ;;  %1560 = vset.pattern.permute.xlu0 (!%p301_p3), %v1742_v0  ;;  %v417_v4 = vld [vmem:[%s2237_s3 + $0x18] sm:$0xff] (!%p301_p3)  ;;  %v418_v9 = vld [vmem:[%s2237_s3 + $0x20] sm:$0xff] (!%p301_p3)  ;;  %v419_v11 = vld [vmem:[%s2237_s3 + $0x28] sm:$0xff] (!%p301_p3) }
   0x8   : > { %1561 = vset.pattern.permute.xlu1 (!%p301_p3), %v1742_v0  ;;  %840 = vmatprep.mubr.bf16.mxu1 (!%p301_p3), %v1742_v0  ;;  %v420_v14 = vld [vmem:[%s2237_s3 + $0x30] sm:$0xff] (!%p301_p3)  ;;  %v421_v15 = vld [vmem:[%s2237_s3 + $0x38] sm:$0xff] (!%p301_p3)  ;;  %v648_v17 = vld [vmem:[%s2239_s5] sm:$0xff] (!%p301_p3) }
   0x9   : > { %424 = vperm.xlu0 (!%p301_p3), %1560, %v414_v1   ;;  %434 = vperm.xlu1 (!%p301_p3), %1561, %v416_v2   ;;  %v1574_v18 = vld [vmem:[%s2236_s2] sm:$0xff] (!%p301_p3)   ;;  %v649_v19 = vld [vmem:[%s2239_s5 + $0x8] sm:$0xff] (!%p301_p3)  ;;  %v650_v20 = vld [vmem:[%s2239_s5 + $0x10] sm:$0xff] (!%p301_p3) }
   0xa   : > { %v651_v21 = vld [vmem:[%s2239_s5 + $0x18] sm:$0xff] (!%p301_p3)  ;;  %v652_v22 = vld [vmem:[%s2239_s5 + $0x20] sm:$0xff] (!%p301_p3)  ;;  %v653_v23 = vld [vmem:[%s2239_s5 + $0x28] sm:$0xff] (!%p301_p3) }
   0xb   : > { %v1575_v24 = vld [vmem:[%s2236_s2 + $0x8] sm:$0xff] (!%p301_p3)   ;;  %v654_v25 = vld [vmem:[%s2239_s5 + $0x30] sm:$0xff] (!%p301_p3)  ;;  %v655_v26 = vld [vmem:[%s2239_s5 + $0x38] sm:$0xff] (!%p301_p3) }
   0xc   : > { %v656_v27 = vld [vmem:[%s2239_s5 + $0x40] sm:$0xff] (!%p301_p3)  ;;  %v657_v28 = vld [vmem:[%s2239_s5 + $0x48] sm:$0xff] (!%p301_p3)  ;;  %v1576_v29 = vld [vmem:[%s2236_s2 + $0x10] sm:$0xff] (!%p301_p3)  }
   0xd   : > { %429 = vperm.xlu0 (!%p301_p3), %1560, %v415_v3   ;;  %439 = vperm.xlu1 (!%p301_p3), %1561, %v417_v4   ;;  %v658_v30 = vld [vmem:[%s2239_s5 + $0x50] sm:$0xff] (!%p301_p3)  ;;  %v659_v31 = vld [vmem:[%s2239_s5 + $0x58] sm:$0xff] (!%p301_p3)  ;;  %v660_v32 = vld [vmem:[%s2239_s5 + $0x60] sm:$0xff] (!%p301_p3) }
   0xe   : > { %s2248_s27 = smov (!%p352_p4, %s1732_s27), 1  ;;  %v661_v33 = vld [vmem:[%s2239_s5 + $0x68] sm:$0xff]  ;;  %v1577_v34 = vld [vmem:[%s2236_s2 + $0x18] sm:$0xff]   ;;  %v662_v35 = vld [vmem:[%s2239_s5 + $0x70] sm:$0xff] }
   0xf   : > { %s1533_s9 = sshll.u32 %s2248_s27, 6  ;;  %v663_v36 = vld [vmem:[%s2239_s5 + $0x78] sm:$0xff]  ;;  %v1169_v37 = vld [vmem:[%s2241_s7] sm:$0xff]  ;;  %v1170_v38 = vld [vmem:[%s2241_s7 + $0x8] sm:$0xff]  ;;  %s1532_s13 = sshll.u32 %s2248_s27, 7 }
  0x10   : > { %s369_s16 = scalar_lea.vmem %s2235_s1, %s1533_s9  ;;  %v1171_v39 = vld [vmem:[%s2241_s7 + $0x10] sm:$0xff]  ;;  %v1172_v40 = vld [vmem:[%s2241_s7 + $0x18] sm:$0xff]  ;;  %v1173_v41 = vld [vmem:[%s2241_s7 + $0x20] sm:$0xff]  ;;  %s1938_s17 = scalar_lea.vmem %s2234_s0, %s1532_s13 }
  0x11   : > { %v1562_v5 = vld [vmem:[%s369_s16 + $0x4] ss:$8 sps:$4 sm:$0xff]   ;;  %v1564_v6 = vld [vmem:[%s369_s16] ss:$8 sps:$4 sm:$0xff]   ;;  %v1565_v7 = vld [vmem:[%s369_s16 + $0x14] ss:$8 sps:$4 sm:$0xff]   ;;  %444 = vperm.xlu0 %1560, %v418_v9   ;;  %449 = vperm.xlu1 %1561, %v419_v11   ;;  %s2191_s26 = scalar_lea.vmem %s2242_s8, %s1532_s13 }
  0x12   : > { %535 = vmatprep.subr.bf16.mxu0 %v1562_v5  ;;  %v1567_v8 = vld [vmem:[%s369_s16 + $0x10] ss:$8 sps:$4 sm:$0xff]   ;;  %v1568_v10 = vld [vmem:[%s369_s16 + $0x24] ss:$8 sps:$4 sm:$0xff]   ;;  %v1570_v12 = vld [vmem:[%s369_s16 + $0x20] ss:$8 sps:$4 sm:$0xff]  }
  0x13   : > { %536 = vmatpush1.bf16.msra.mxu0 %v1564_v6  ;;  %v1571_v13 = vld [vmem:[%s369_s16 + $0x34] ss:$8 sps:$4 sm:$0xff]   ;;  %v1573_v16 = vld [vmem:[%s369_s16 + $0x30] ss:$8 sps:$4 sm:$0xff]   ;;  %v1174_v42 = vld [vmem:[%s2241_s7 + $0x28] sm:$0xff] }
  0x14   : > { %537 = vmatprep.subr.bf16.mxu0 %v1565_v7  ;;  %v1175_v43 = vld [vmem:[%s2241_s7 + $0x30] sm:$0xff]  ;;  %v1176_v44 = vld [vmem:[%s2241_s7 + $0x38] sm:$0xff]  ;;  %v382_v46 = vld [vmem:[%s1938_s17] sm:$0xff] }
  0x15   : > { %454 = vperm.xlu0 %1560, %v420_v14   ;;  %459 = vperm.xlu1 %1561, %v421_v15   ;;  %v383_v50 = vld [vmem:[%s1938_s17 + $0x8] sm:$0xff]  ;;  %v384_v53 = vld [vmem:[%s1938_s17 + $0x10] sm:$0xff]  ;;  %v385_v58 = vld [vmem:[%s1938_s17 + $0x18] sm:$0xff] }
  0x16   : > { %v386_v1 = vld [vmem:[%s1938_s17 + $0x20] sm:$0xff]  ;;  %v387_v5 = vld [vmem:[%s1938_s17 + $0x28] sm:$0xff]  ;;  %v389_v14 = vld [vmem:[%s1938_s17 + $0x38] sm:$0xff] }
  0x17   : > { %538 = vmatpush1.bf16.msra.mxu0 %v1567_v8 }
  0x18   : > { %539 = vmatprep.subr.bf16.mxu0 %v1568_v10  ;;  %v388_v10 = vld [vmem:[%s1938_s17 + $0x30] sm:$0xff] }
  0x19   : > { %666 = vperm.xlu0 %1560, %v648_v17   ;;  %671 = vperm.xlu1 %1561, %v649_v19  }
  0x1b   : > { %540 = vmatpush1.bf16.msra.mxu0 %v1570_v12 }
  0x1c   : > { %541 = vmatprep.subr.bf16.mxu0 %v1571_v13 }
  0x1d   : > { %676 = vperm.xlu0 %1560, %v650_v20   ;;  %681 = vperm.xlu1 %1561, %v651_v21   ;;  %v390_v21 = vld [vmem:[%s1938_s17 + $0x40] sm:$0xff] }
  0x1f   : > { %542 = vmatpush1.bf16.msra.mxu0 %v1573_v16 }
  0x21   : > { %686 = vperm.xlu0 %1560, %v652_v22   ;;  %691 = vperm.xlu1 %1561, %v653_v23  }
  0x22   : > { %1474 = vmatmul.mubr.msk.bf16.vlgmr.msra.gmra.mrb[0].mxu0 %vm522_vm0, %v1574_v18 }
  0x23   : > { %577 = vmatprep.mubr.bf16.mxu0 %v1742_v0 }
  0x25   : > { %696 = vperm.xlu0 %1560, %v654_v25   ;;  %701 = vperm.xlu1 %1561, %v655_v26   ;;  %v391_v25 = vld [vmem:[%s1938_s17 + $0x48] sm:$0xff] }
  0x29   : > { %706 = vperm.xlu0 %1560, %v656_v27   ;;  %711 = vperm.xlu1 %1561, %v657_v28  }
  0x2a   : > { %1475 = vmatmul.mubr.msk.bf16.gmra.mrb[4].mxu0 %vm522_vm0, %v1575_v24 }
  0x2b   : > { %587 = vmatprep.mubr.bf16.mxu0 %v1742_v0 }
  0x2d   : > { %716 = vperm.xlu0 %1560, %v658_v30   ;;  %721 = vperm.xlu1 %1561, %v659_v31   ;;  %v392_v30 = vld [vmem:[%s1938_s17 + $0x50] sm:$0xff] }
  0x31   : > { %726 = vperm.xlu0 %1560, %v660_v32   ;;  %731 = vperm.xlu1 %1561, %v661_v33  }
  0x32   : > { %1476 = vmatmul.mubr.msk.bf16.gmra.mrb[8].mxu0 %vm522_vm0, %v1576_v29 }
  0x33   : > { %597 = vmatprep.mubr.bf16.mxu0 %v1742_v0 }
  0x35   : > { %736 = vperm.xlu0 %1560, %v662_v35   ;;  %741 = vperm.xlu1 %1561, %v663_v36  }
  0x39   : > { %1179 = vperm.xlu0 %1560, %v1169_v37   ;;  %1184 = vperm.xlu1 %1561, %v1170_v38  }
  0x3a   : > { %1477 = vmatmul.mubr.msk.bf16.gmra.mrb[12].mxu0 %vm522_vm0, %v1577_v34  ;;  %v393_v34 = vld [vmem:[%s1938_s17 + $0x58] sm:$0xff] }
  0x3b   : > { %1273 = vmatprep.mubr.bf16.mxu0 %v1742_v0 }
  0x3d   : > { %1189 = vperm.xlu0 %1560, %v1171_v39   ;;  %1194 = vperm.xlu1 %1561, %v1172_v40  }
  0x41   : > { %1199 = vperm.xlu0 %1560, %v1173_v41   ;;  %1204 = vperm.xlu1 %1561, %v1174_v42   ;;  %v394_v41 = vld [vmem:[%s1938_s17 + $0x60] sm:$0xff] }
  0x45   : > { %1209 = vperm.xlu0 %1560, %v1175_v43   ;;  %1214 = vperm.xlu1 %1561, %v1176_v44  }
  0x88   : > { %v425_v45 = vpop.permute.xlu0 %424  ;;  %v435_v59 = vpop.permute.xlu1 %434 }
  0x8c   : > { %v430_v51 = vpop.permute.xlu0 %429  ;;  %v440_v8 = vpop.permute.xlu1 %439 }
  0x90   : > { %v445_v20 = vpop.permute.xlu0 %444  ;;  %v450_v28 = vpop.permute.xlu1 %449 }
  0x94   : > { %v455_v40 = vpop.permute.xlu0 %454 }
  0xf5   : > { %v569_v47 = vpop.f32.mrb[0].mxu0 }
  0xf6   : > { %v570_v48 = vadd.f32 %v569_v47, %v425_v45  ;;  %v571_v49 = vpop.f32.mrb[1].mxu0 }
  0xf7   : > { %v572_v52 = vadd.f32 %v571_v49, %v425_v45  ;;  %v573_v54 = vpop.f32.mrb[2].mxu0  ;;  %v395_v45 = vld [vmem:[%s1938_s17 + $0x68] sm:$0xff] }
  0xf8   : > { %v1943_v55 = vadd.f32 %v570_v48, %v382_v46  ;;  %v574_v56 = vadd.f32 %v573_v54, %v430_v51  ;;  %v575_v57 = vpop.f32.mrb[3].mxu0  ;;  %v460_v48 = vpop.permute.xlu1 %459  ;;  %v397_v54 = vld [vmem:[%s1938_s17 + $0x78] sm:$0xff] }
  0xf9   : > { %v576_v60 = vadd.f32 %v575_v57, %v430_v51  ;;  %v1946_v61 = vadd.f32 %v572_v52, %v383_v50  ;;  %v396_v50 = vld [vmem:[%s1938_s17 + $0x70] sm:$0xff] }
  0xfa   : > { %v1948_v62 = vadd.f32 %v574_v56, %v384_v53 }
  0xfb   : > { %v1950_v63 = vadd.f32 %v576_v60, %v385_v58 }
  0xfc   : > { %v640_v7 = vpack.c.bf16 %v1948_v62, %v1943_v55 }
  0xfd   : > { %v579_v2 = vpop.f32.mrb[4].mxu0  ;;  %v641_v3 = vpack.c.bf16 %v1950_v63, %v1946_v61 }
  0xfe   : > { %v580_v4 = vadd.f32 %v579_v2, %v435_v59  ;;  %v581_v6 = vpop.f32.mrb[5].mxu0 }
  0xff   : > { %v582_v9 = vadd.f32 %v581_v6, %v435_v59  ;;  %v583_v11 = vpop.f32.mrb[6].mxu0  ;;  %808 = vmatprep.subr.bf16.mxu1 %v641_v3  ;;  %v1578_v3 = vld [vmem:[%s2238_s4] sm:$0xff]   ;;  %v1581_v6 = vld [vmem:[%s2238_s4 + $0x18] sm:$0xff]  }
 0x100   : > { %v1959_v12 = vadd.f32 %v580_v4, %v386_v1  ;;  %v584_v13 = vadd.f32 %v583_v11, %v440_v8  ;;  %v585_v15 = vpop.f32.mrb[7].mxu0  ;;  %809 = vmatpush1.bf16.msra.mxu1 %v640_v7  ;;  %v1579_v4 = vld [vmem:[%s2238_s4 + $0x8] sm:$0xff]   ;;  %v1582_v7 = vld [vmem:[%s2238_s4 + $0x20] sm:$0xff]   ;;  %v667_v11 = vpop.permute.xlu0 %666 }
 0x101   : > { %v1962_v16 = vadd.f32 %v582_v9, %v387_v5  ;;  %v586_v17 = vadd.f32 %v585_v15, %v440_v8  ;;  %v1580_v5 = vld [vmem:[%s2238_s4 + $0x10] sm:$0xff]   ;;  %v1583_v8 = vld [vmem:[%s2238_s4 + $0x28] sm:$0xff]  }
 0x102   : > { %v1964_v18 = vadd.f32 %v584_v13, %v388_v10  ;;  %v1584_v9 = vld [vmem:[%s2238_s4 + $0x30] sm:$0xff]   ;;  %v1585_v10 = vld [vmem:[%s2238_s4 + $0x38] sm:$0xff]  }
 0x103   : > { %v1966_v19 = vadd.f32 %v586_v17, %v389_v14  ;;  %v672_v17 = vpop.permute.xlu1 %671 }
 0x104   : > { %v642_v27 = vpack.c.bf16 %v1964_v18, %v1959_v12 }
 0x105   : > { %v589_v22 = vpop.f32.mrb[8].mxu0  ;;  %v643_v23 = vpack.c.bf16 %v1966_v19, %v1962_v16 }
 0x106   : > { %v590_v24 = vadd.f32 %v589_v22, %v445_v20  ;;  %v591_v26 = vpop.f32.mrb[9].mxu0 }
 0x107   : > { %v592_v29 = vadd.f32 %v591_v26, %v445_v20  ;;  %v593_v31 = vpop.f32.mrb[10].mxu0  ;;  %810 = vmatprep.subr.bf16.mxu1 %v643_v23 }
 0x108   : > { %v1975_v32 = vadd.f32 %v590_v24, %v390_v21  ;;  %v594_v33 = vadd.f32 %v593_v31, %v450_v28  ;;  %v595_v35 = vpop.f32.mrb[11].mxu0  ;;  %811 = vmatpush1.bf16.msra.mxu1 %v642_v27 }
 0x109   : > { %v1978_v36 = vadd.f32 %v592_v29, %v391_v25  ;;  %v596_v37 = vadd.f32 %v595_v35, %v450_v28  ;;  %v677_v29 = vpop.permute.xlu0 %676 }
 0x10a   : > { %v1980_v38 = vadd.f32 %v594_v33, %v392_v30 }
 0x10b   : > { %v1982_v39 = vadd.f32 %v596_v37, %v393_v34  ;;  %v682_v34 = vpop.permute.xlu1 %681 }
 0x10c   : > { %v644_v47 = vpack.c.bf16 %v1980_v38, %v1975_v32 }
 0x10d   : > { %v599_v42 = vpop.f32.mrb[12].mxu0  ;;  %v645_v43 = vpack.c.bf16 %v1982_v39, %v1978_v36 }
 0x10e   : > { %v600_v44 = vadd.f32 %v599_v42, %v455_v40  ;;  %v601_v46 = vpop.f32.mrb[13].mxu0 }
 0x10f   : > { %v602_v49 = vadd.f32 %v601_v46, %v455_v40  ;;  %v603_v51 = vpop.f32.mrb[14].mxu0  ;;  %812 = vmatprep.subr.bf16.mxu1 %v645_v43 }
 0x110   : > { %v1991_v52 = vadd.f32 %v600_v44, %v394_v41  ;;  %v604_v53 = vadd.f32 %v603_v51, %v460_v48  ;;  %v605_v56 = vpop.f32.mrb[15].mxu0  ;;  %813 = vmatpush1.bf16.msra.mxu1 %v644_v47 }
 0x111   : > { %v1994_v57 = vadd.f32 %v602_v49, %v395_v45  ;;  %v606_v58 = vadd.f32 %v605_v56, %v460_v48  ;;  %v687_v49 = vpop.permute.xlu0 %686 }
 0x112   : > { %v1996_v59 = vadd.f32 %v604_v53, %v396_v50 }
 0x113   : > { %v1998_v60 = vadd.f32 %v606_v58, %v397_v54 }
 0x114   : > { %v646_v2 = vpack.c.bf16 %v1996_v59, %v1991_v52 }
 0x115   : > { %v647_v1 = vpack.c.bf16 %v1998_v60, %v1994_v57 }
 0x117   : > { %814 = vmatprep.subr.bf16.mxu1 %v647_v1 }
 0x118   : > { %815 = vmatpush1.bf16.msra.mxu1 %v646_v2  ;;  %v692_v2 = vpop.permute.xlu1 %691 }
 0x11b   : > { %1486 = vmatmul.mubr.msk.bf16.vlgmr.msra.gmra.mrb[0].mxu1 %vm522_vm0, %v1578_v3 }
 0x11c   : > { %850 = vmatprep.mubr.bf16.mxu1 %v1742_v0 }
 0x123   : > { %1487 = vmatmul.mubr.msk.bf16.gmra.mrb[4].mxu1 %vm522_vm0, %v1579_v4 }
 0x124   : > { %860 = vmatprep.mubr.bf16.mxu1 %v1742_v0 }
 0x12b   : > { %1488 = vmatmul.mubr.msk.bf16.gmra.mrb[8].mxu1 %vm522_vm0, %v1580_v5 }
 0x12c   : > { %870 = vmatprep.mubr.bf16.mxu1 %v1742_v0 }
 0x133   : > { %1489 = vmatmul.mubr.msk.bf16.gmra.mrb[12].mxu1 %vm522_vm0, %v1581_v6 }
 0x134   : > { %880 = vmatprep.mubr.bf16.mxu1 %v1742_v0 }
 0x13b   : > { %1490 = vmatmul.mubr.msk.bf16.gmra.mrb[16].mxu1 %vm522_vm0, %v1582_v7 }
 0x13c   : > { %890 = vmatprep.mubr.bf16.mxu1 %v1742_v0 }
 0x143   : > { %1491 = vmatmul.mubr.msk.bf16.gmra.mrb[20].mxu1 %vm522_vm0, %v1583_v8 }
 0x144   : > { %900 = vmatprep.mubr.bf16.mxu1 %v1742_v0 }
 0x14b   : > { %1492 = vmatmul.mubr.msk.bf16.gmra.mrb[24].mxu1 %vm522_vm0, %v1584_v9 }
 0x14c   : > { %910 = vmatprep.mubr.bf16.mxu1 %v1742_v0 }
 0x153   : > { %1493 = vmatmul.mubr.msk.bf16.gmra.mrb[28].mxu1 %vm522_vm0, %v1585_v10 }
 0x1ee   : > { %v842_v13 = vpop.f32.mrb[0].mxu1 }
 0x1ef   : > { %v2043_v14 = vadd.f32 %v842_v13, %v667_v11  ;;  %v844_v15 = vpop.f32.mrb[1].mxu1 }
 0x1f0   : > { %v2045_v20 = vadd.f32 %v844_v15, %v667_v11  ;;  %v846_v21 = vpop.f32.mrb[2].mxu1 }
 0x1f1   : > { %v1494_v22 = vmul.f32 -1.442695, %v2043_v14  ;;  %v2048_v23 = vadd.f32 %v846_v21, %v672_v17  ;;  %v848_v24 = vpop.f32.mrb[3].mxu1 }
 0x1f2   : > { %v1495_v25 = vmul.f32 -1.442695, %v2045_v20  ;;  %v2051_v26 = vadd.f32 %v848_v24, %v672_v17 }
 0x1f3   : > { %1590 = vpow2.f32 %v1494_v22  ;;  %v1496_v27 = vmul.f32 -1.442695, %v2048_v23  ;;  %v697_v22 = vpop.permute.xlu0 %696 }
 0x1f4   : > { %1592 = vpow2.f32 %v1495_v25  ;;  %v1497_v28 = vmul.f32 -1.442695, %v2051_v26 }
 0x1f5   : > { %1594 = vpow2.f32 %v1496_v27 }
 0x1f6   : > { %1596 = vpow2.f32 %v1497_v28  ;;  %v852_v30 = vpop.f32.mrb[4].mxu1 }
 0x1f7   : > { %v2055_v31 = vadd.f32 %v852_v30, %v677_v29  ;;  %v854_v33 = vpop.f32.mrb[5].mxu1 }
 0x1f8   : > { %v2057_v35 = vadd.f32 %v854_v33, %v677_v29  ;;  %v856_v37 = vpop.f32.mrb[6].mxu1 }
 0x1f9   : > { %v1498_v40 = vmul.f32 -1.442695, %v2055_v31  ;;  %v2060_v41 = vadd.f32 %v856_v37, %v682_v34  ;;  %v858_v42 = vpop.f32.mrb[7].mxu1 }
 0x1fa   : > { %v1499_v43 = vmul.f32 -1.442695, %v2057_v35  ;;  %v2063_v44 = vadd.f32 %v858_v42, %v682_v34  ;;  %v702_v34 = vpop.permute.xlu1 %701 }
 0x1fb   : > { %1598 = vpow2.f32 %v1498_v40  ;;  %v1500_v45 = vmul.f32 -1.442695, %v2060_v41 }
 0x1fc   : > { %1600 = vpow2.f32 %v1499_v43  ;;  %v1501_v46 = vmul.f32 -1.442695, %v2063_v44 }
 0x1fd   : > { %v1591_v47 = vpop.eup %1590  ;;  %1602 = vpow2.f32 %v1500_v45 }
 0x1fe   : > { %v1593_v48 = vpop.eup %1592  ;;  %v1017_v50 = vadd.f32 1.0, %v1591_v47  ;;  %1604 = vpow2.f32 %v1501_v46  ;;  %v862_v51 = vpop.f32.mrb[8].mxu1 }
 0x1ff   : > { %v1595_v53 = vpop.eup %1594  ;;  %v1018_v54 = vadd.f32 1.0, %v1593_v48  ;;  %v2067_v56 = vadd.f32 %v862_v51, %v687_v49  ;;  %v864_v58 = vpop.f32.mrb[9].mxu1 }
 0x200   : > { %v1597_v1 = vpop.eup %1596  ;;  %1606 = vrcp.f32 %v1017_v50  ;;  %v1019_v3 = vadd.f32 1.0, %v1595_v53  ;;  %v2069_v4 = vadd.f32 %v864_v58, %v687_v49  ;;  %v866_v5 = vpop.f32.mrb[10].mxu1 }
 0x201   : > { %1608 = vrcp.f32 %v1018_v54  ;;  %v1020_v6 = vadd.f32 1.0, %v1597_v1  ;;  %v1502_v7 = vmul.f32 -1.442695, %v2067_v56  ;;  %v2072_v8 = vadd.f32 %v866_v5, %v692_v2  ;;  %v868_v9 = vpop.f32.mrb[11].mxu1 }
 0x202   : > { %1610 = vrcp.f32 %v1019_v3  ;;  %v1503_v10 = vmul.f32 -1.442695, %v2069_v4  ;;  %v2075_v11 = vadd.f32 %v868_v9, %v692_v2 }
 0x203   : > { %1612 = vrcp.f32 %v1020_v6  ;;  %v1504_v13 = vmul.f32 -1.442695, %v2072_v8  ;;  %v707_v6 = vpop.permute.xlu0 %706 }
 0x204   : > { %1614 = vpow2.f32 %v1502_v7  ;;  %v1505_v15 = vmul.f32 -1.442695, %v2075_v11 }
 0x205   : > { %v1599_v17 = vpop.eup %1598  ;;  %1616 = vpow2.f32 %v1503_v10 }
 0x206   : > { %v1601_v21 = vpop.eup %1600  ;;  %v1021_v24 = vadd.f32 1.0, %v1599_v17  ;;  %1618 = vpow2.f32 %v1504_v13  ;;  %v872_v25 = vpop.f32.mrb[12].mxu1 }
 0x207   : > { %v1603_v27 = vpop.eup %1602  ;;  %v1022_v28 = vadd.f32 1.0, %v1601_v21  ;;  %1620 = vpow2.f32 %v1505_v15  ;;  %v2079_v29 = vadd.f32 %v872_v25, %v697_v22  ;;  %v874_v30 = vpop.f32.mrb[13].mxu1 }
 0x208   : > { %v1605_v33 = vpop.eup %1604  ;;  %1622 = vrcp.f32 %v1021_v24  ;;  %v1023_v37 = vadd.f32 1.0, %v1603_v27  ;;  %v2081_v40 = vadd.f32 %v874_v30, %v697_v22  ;;  %v876_v42 = vpop.f32.mrb[14].mxu1 }
 0x209   : > { %1624 = vrcp.f32 %v1022_v28  ;;  %v1024_v43 = vadd.f32 1.0, %v1605_v33  ;;  %v1506_v45 = vmul.f32 -1.442695, %v2079_v29  ;;  %v2084_v46 = vadd.f32 %v876_v42, %v702_v34  ;;  %v878_v47 = vpop.f32.mrb[15].mxu1 }
 0x20a   : > { %v1607_v48 = vpop.eup %1606  ;;  %1626 = vrcp.f32 %v1023_v37  ;;  %v1507_v49 = vmul.f32 -1.442695, %v2081_v40  ;;  %v2087_v50 = vadd.f32 %v878_v47, %v702_v34 }
 0x20b   : > { %v1609_v51 = vpop.eup %1608  ;;  %1628 = vrcp.f32 %v1024_v43  ;;  %v1508_v53 = vmul.f32 -1.442695, %v2084_v46  ;;  %v1113_v2 = vmul.f32 %v1607_v48, %v2043_v14  ;;  %v712_v14 = vpop.permute.xlu1 %711 }
 0x20c   : > { %v1611_v54 = vpop.eup %1610  ;;  %1630 = vpow2.f32 %v1506_v45  ;;  %v1509_v58 = vmul.f32 -1.442695, %v2087_v50  ;;  %v1114_v7 = vmul.f32 %v1609_v51, %v2045_v20 }
 0x20d   : > { %v1613_v1 = vpop.eup %1612  ;;  %v1115_v3 = vmul.f32 %v1611_v54, %v2048_v23  ;;  %1632 = vpow2.f32 %v1507_v49 }
 0x20e   : > { %v1615_v5 = vpop.eup %1614  ;;  %v1116_v9 = vmul.f32 %v1613_v1, %v2051_v26  ;;  %1634 = vpow2.f32 %v1508_v53  ;;  %v882_v10 = vpop.f32.mrb[16].mxu1 }
 0x20f   : > { %v1617_v13 = vpop.eup %1616  ;;  %v1153_v15 = vpack.c.bf16 %v1115_v3, %v1113_v2  ;;  %v1025_v17 = vadd.f32 1.0, %v1615_v5  ;;  %1636 = vpow2.f32 %v1509_v58  ;;  %v2095_v21 = vadd.f32 %v882_v10, %v707_v6  ;;  %v884_v22 = vpop.f32.mrb[17].mxu1 }
 0x210   : > { %v1619_v24 = vpop.eup %1618  ;;  %v1026_v25 = vadd.f32 1.0, %v1617_v13  ;;  %v2097_v23 = vadd.f32 %v884_v22, %v707_v6  ;;  %v886_v27 = vpop.f32.mrb[18].mxu1  ;;  %v1154_v28 = vpack.c.bf16 %v1116_v9, %v1114_v7 }
 0x211   : > { %v1621_v30 = vpop.eup %1620  ;;  %1638 = vrcp.f32 %v1025_v17  ;;  %v1027_v20 = vadd.f32 1.0, %v1619_v24  ;;  %v1510_v26 = vmul.f32 -1.442695, %v2095_v21  ;;  %v2100_v33 = vadd.f32 %v886_v27, %v712_v14  ;;  %v888_v34 = vpop.f32.mrb[19].mxu1 }
 0x212   : > { %v1623_v37 = vpop.eup %1622  ;;  %1640 = vrcp.f32 %v1026_v25  ;;  %v1028_v42 = vadd.f32 1.0, %v1621_v30  ;;  %v1511_v43 = vmul.f32 -1.442695, %v2097_v23  ;;  %v2103_v45 = vadd.f32 %v888_v34, %v712_v14  ;;  %1241 = vmatprep.subr.bf16.mxu0 %v1154_v28  ;;  %v717_v2 = vpop.permute.xlu0 %716 }
 0x213   : > { %v1625_v47 = vpop.eup %1624  ;;  %1642 = vrcp.f32 %v1027_v20  ;;  %v1512_v48 = vmul.f32 -1.442695, %v2100_v33  ;;  %1242 = vmatpush1.bf16.msra.mxu0 %v1153_v15  ;;  %v1117_v54 = vmul.f32 %v1623_v37, %v2055_v31  ;;  %v722_v31 = vpop.permute.xlu1 %721 }
 0x214   : > { %v1627_v49 = vpop.eup %1626  ;;  %1644 = vrcp.f32 %v1028_v42  ;;  %v1513_v51 = vmul.f32 -1.442695, %v2103_v45  ;;  %v1118_v3 = vmul.f32 %v1625_v47, %v2057_v35 }
 0x215   : > { %v1629_v53 = vpop.eup %1628  ;;  %v1119_v58 = vmul.f32 %v1627_v49, %v2060_v41  ;;  %1646 = vpow2.f32 %v1510_v26 }
 0x216   : > { %v1631_v1 = vpop.eup %1630  ;;  %v1120_v5 = vmul.f32 %v1629_v53, %v2063_v44  ;;  %1648 = vpow2.f32 %v1511_v43  ;;  %v892_v6 = vpop.f32.mrb[20].mxu1 }
 0x217   : > { %v1633_v7 = vpop.eup %1632  ;;  %v1155_v9 = vpack.c.bf16 %v1119_v58, %v1117_v54  ;;  %v1029_v10 = vadd.f32 1.0, %v1631_v1  ;;  %1650 = vpow2.f32 %v1512_v48  ;;  %v2111_v13 = vadd.f32 %v892_v6, %v717_v2  ;;  %v894_v15 = vpop.f32.mrb[21].mxu1 }
 0x218   : > { %v1635_v17 = vpop.eup %1634  ;;  %v1030_v22 = vadd.f32 1.0, %v1633_v7  ;;  %1652 = vpow2.f32 %v1513_v51  ;;  %v2113_v41 = vadd.f32 %v894_v15, %v717_v2  ;;  %v896_v24 = vpop.f32.mrb[22].mxu1  ;;  %v1156_v14 = vpack.c.bf16 %v1120_v5, %v1118_v3 }
 0x219   : > { %v1637_v35 = vpop.eup %1636  ;;  %1654 = vrcp.f32 %v1029_v10  ;;  %v1031_v44 = vadd.f32 1.0, %v1635_v17  ;;  %v1514_v25 = vmul.f32 -1.442695, %v2111_v13  ;;  %v2116_v27 = vadd.f32 %v896_v24, %v722_v31  ;;  %v898_v28 = vpop.f32.mrb[23].mxu1 }
 0x21a   : > { %1656 = vrcp.f32 %v1030_v22  ;;  %v1032_v30 = vadd.f32 1.0, %v1637_v35  ;;  %v1515_v20 = vmul.f32 -1.442695, %v2113_v41  ;;  %v2119_v26 = vadd.f32 %v898_v28, %v722_v31  ;;  %1243 = vmatprep.subr.bf16.mxu0 %v1156_v14  ;;  %v727_v49 = vpop.permute.xlu0 %726  ;;  %v732_v7 = vpop.permute.xlu1 %731 }
 0x21b   : > { %v1639_v34 = vpop.eup %1638  ;;  %1658 = vrcp.f32 %v1031_v44  ;;  %v1516_v37 = vmul.f32 -1.442695, %v2116_v27  ;;  %1244 = vmatpush1.bf16.msra.mxu0 %v1155_v9 }
 0x21c   : > { %v1641_v42 = vpop.eup %1640  ;;  %1660 = vrcp.f32 %v1032_v30  ;;  %v1517_v43 = vmul.f32 -1.442695, %v2119_v26  ;;  %v1121_v51 = vmul.f32 %v1639_v34, %v2067_v56 }
 0x21d   : > { %v1643_v47 = vpop.eup %1642  ;;  %1662 = vpow2.f32 %v1514_v25  ;;  %v1122_v1 = vmul.f32 %v1641_v42, %v2069_v4 }
 0x21e   : > { %v1645_v48 = vpop.eup %1644  ;;  %v1123_v53 = vmul.f32 %v1643_v47, %v2072_v8  ;;  %1664 = vpow2.f32 %v1515_v20  ;;  %v902_v54 = vpop.f32.mrb[24].mxu1 }
 0x21f   : > { %v1647_v58 = vpop.eup %1646  ;;  %v1124_v2 = vmul.f32 %v1645_v48, %v2075_v11  ;;  %1666 = vpow2.f32 %v1516_v37  ;;  %v2127_v3 = vadd.f32 %v902_v54, %v727_v49  ;;  %v904_v5 = vpop.f32.mrb[25].mxu1 }
 0x220   : > { %v1649_v6 = vpop.eup %1648  ;;  %v1157_v9 = vpack.c.bf16 %v1123_v53, %v1121_v51  ;;  %v1033_v10 = vadd.f32 1.0, %v1647_v58  ;;  %1668 = vpow2.f32 %v1517_v43  ;;  %v2129_v15 = vadd.f32 %v904_v5, %v727_v49  ;;  %v906_v56 = vpop.f32.mrb[26].mxu1 }
 0x221   : > { %v1651_v8 = vpop.eup %1650  ;;  %v1034_v17 = vadd.f32 1.0, %v1649_v6  ;;  %v2131_v31 = vadd.f32 %v906_v56, %v732_v7  ;;  %v908_v22 = vpop.f32.mrb[27].mxu1  ;;  %v1158_v4 = vpack.c.bf16 %v1124_v2, %v1122_v1  ;;  %v1518_v14 = vmul.f32 -1.442695, %v2127_v3 }
 0x222   : > { %v1653_v24 = vpop.eup %1652  ;;  %1670 = vrcp.f32 %v1033_v10  ;;  %v1035_v11 = vadd.f32 1.0, %v1651_v8  ;;  %v2134_v35 = vadd.f32 %v908_v22, %v732_v7  ;;  %v1519_v28 = vmul.f32 -1.442695, %v2129_v15  ;;  %v737_v43 = vpop.permute.xlu0 %736 }
 0x223   : > { %v1655_v44 = vpop.eup %1654  ;;  %1672 = vrcp.f32 %v1034_v17  ;;  %v1036_v25 = vadd.f32 1.0, %v1653_v24  ;;  %1245 = vmatprep.subr.bf16.mxu0 %v1158_v4  ;;  %v1520_v20 = vmul.f32 -1.442695, %v2131_v31  ;;  %v742_v2 = vpop.permute.xlu1 %741 }
 0x224   : > { %v1657_v30 = vpop.eup %1656  ;;  %1674 = vrcp.f32 %v1035_v11  ;;  %1246 = vmatpush1.bf16.msra.mxu0 %v1157_v9  ;;  %v1521_v37 = vmul.f32 -1.442695, %v2134_v35  ;;  %v1125_v47 = vmul.f32 %v1655_v44, %v2079_v29 }
 0x225   : > { %v1659_v34 = vpop.eup %1658  ;;  %1676 = vrcp.f32 %v1036_v25 }
 0x226   : > { %v1661_v42 = vpop.eup %1660  ;;  %v1127_v48 = vmul.f32 %v1659_v34, %v2084_v46  ;;  %1678 = vpow2.f32 %v1518_v14  ;;  %v912_v49 = vpop.f32.mrb[28].mxu1  ;;  %v1126_v46 = vmul.f32 %v1657_v30, %v2081_v40 }
 0x227   : > { %v1663_v51 = vpop.eup %1662  ;;  %v1128_v53 = vmul.f32 %v1661_v42, %v2087_v50  ;;  %1680 = vpow2.f32 %v1519_v28  ;;  %v2142_v54 = vadd.f32 %v912_v49, %v737_v43  ;;  %v914_v58 = vpop.f32.mrb[29].mxu1 }
 0x228   : > { %v1665_v1 = vpop.eup %1664  ;;  %v1159_v5 = vpack.c.bf16 %v1127_v48, %v1125_v47  ;;  %v1037_v6 = vadd.f32 1.0, %v1663_v51  ;;  %1682 = vpow2.f32 %v1520_v20  ;;  %v2144_v7 = vadd.f32 %v914_v58, %v737_v43  ;;  %v916_v9 = vpop.f32.mrb[30].mxu1 }
 0x229   : > { %v1667_v29 = vpop.eup %1666  ;;  %v1038_v10 = vadd.f32 1.0, %v1665_v1  ;;  %1684 = vpow2.f32 %v1521_v37  ;;  %v2147_v56 = vadd.f32 %v916_v9, %v742_v2  ;;  %v918_v50 = vpop.f32.mrb[31].mxu1  ;;  %v1522_v22 = vmul.f32 -1.442695, %v2142_v54 }
 0x22a   : > { %v1669_v8 = vpop.eup %1668  ;;  %1686 = vrcp.f32 %v1037_v6  ;;  %v1039_v17 = vadd.f32 1.0, %v1667_v29  ;;  %v2150_v4 = vadd.f32 %v918_v50, %v742_v2  ;;  %v1523_v11 = vmul.f32 -1.442695, %v2144_v7 }
 0x22b   : > { %1688 = vrcp.f32 %v1038_v10  ;;  %v1040_v24 = vadd.f32 1.0, %v1669_v8  ;;  %v1160_v14 = vpack.c.bf16 %v1128_v53, %v1126_v46  ;;  %v1524_v40 = vmul.f32 -1.442695, %v2147_v56 }
 0x22c   : > { %v1671_v44 = vpop.eup %1670  ;;  %1690 = vrcp.f32 %v1039_v17  ;;  %v1525_v28 = vmul.f32 -1.442695, %v2150_v4 }
 0x22d   : > { %v1673_v25 = vpop.eup %1672  ;;  %1692 = vrcp.f32 %v1040_v24  ;;  %1247 = vmatprep.subr.bf16.mxu0 %v1160_v14  ;;  %v1129_v34 = vmul.f32 %v1671_v44, %v2095_v21 }
 0x22e   : > { %v1675_v30 = vpop.eup %1674  ;;  %1694 = vpow2.f32 %v1522_v22  ;;  %1248 = vmatpush1.bf16.msra.mxu0 %v1159_v5  ;;  %v1130_v43 = vmul.f32 %v1673_v25, %v2097_v23 }
 0x22f   : > { %v1677_v20 = vpop.eup %1676  ;;  %v1131_v37 = vmul.f32 %v1675_v30, %v2100_v33  ;;  %1696 = vpow2.f32 %v1523_v11 }
 0x230   : > { %v1679_v42 = vpop.eup %1678  ;;  %v1132_v47 = vmul.f32 %v1677_v20, %v2103_v45  ;;  %1698 = vpow2.f32 %v1524_v40 }
 0x231   : > { %v1681_v48 = vpop.eup %1680  ;;  %v1161_v49 = vpack.c.bf16 %v1131_v37, %v1129_v34  ;;  %v1041_v51 = vadd.f32 1.0, %v1679_v42  ;;  %1700 = vpow2.f32 %v1525_v28 }
 0x232   : > { %v1683_v53 = vpop.eup %1682  ;;  %v1042_v58 = vadd.f32 1.0, %v1681_v48  ;;  %v1162_v1 = vpack.c.bf16 %v1132_v47, %v1130_v43 }
 0x233   : > { %v1685_v2 = vpop.eup %1684  ;;  %1702 = vrcp.f32 %v1041_v51  ;;  %v1043_v5 = vadd.f32 1.0, %v1683_v53 }
 0x234   : > { %v1687_v21 = vpop.eup %1686  ;;  %1704 = vrcp.f32 %v1042_v58  ;;  %v1044_v33 = vadd.f32 1.0, %v1685_v2  ;;  %1249 = vmatprep.subr.bf16.mxu0 %v1162_v1 }
 0x235   : > { %v1689_v6 = vpop.eup %1688  ;;  %1706 = vrcp.f32 %v1043_v5  ;;  %1250 = vmatpush1.bf16.msra.mxu0 %v1161_v49  ;;  %v1133_v9 = vmul.f32 %v1687_v21, %v2111_v13 }
 0x236   : > { %v1691_v23 = vpop.eup %1690  ;;  %1708 = vrcp.f32 %v1044_v33  ;;  %v1134_v10 = vmul.f32 %v1689_v6, %v2113_v41 }
 0x237   : > { %v1693_v45 = vpop.eup %1692  ;;  %v1135_v29 = vmul.f32 %v1691_v23, %v2116_v27 }
 0x238   : > { %v1695_v46 = vpop.eup %1694  ;;  %v1136_v50 = vmul.f32 %v1693_v45, %v2119_v26 }
 0x239   : > { %v1697_v8 = vpop.eup %1696  ;;  %v1163_v17 = vpack.c.bf16 %v1135_v29, %v1133_v9  ;;  %v1045_v22 = vadd.f32 1.0, %v1695_v46 }
 0x23a   : > { %v1699_v24 = vpop.eup %1698  ;;  %v1046_v11 = vadd.f32 1.0, %v1697_v8  ;;  %v1164_v14 = vpack.c.bf16 %v1136_v50, %v1134_v10 }
 0x23b   : > { %v1701_v44 = vpop.eup %1700  ;;  %1710 = vrcp.f32 %v1045_v22  ;;  %v1047_v40 = vadd.f32 1.0, %v1699_v24 }
 0x23c   : > { %1712 = vrcp.f32 %v1046_v11  ;;  %v1048_v25 = vadd.f32 1.0, %v1701_v44  ;;  %1251 = vmatprep.subr.bf16.mxu0 %v1164_v14 }
 0x23d   : > { %v1703_v13 = vpop.eup %1702  ;;  %1714 = vrcp.f32 %v1047_v40  ;;  %1252 = vmatpush1.bf16.msra.mxu0 %v1163_v17 }
 0x23e   : > { %v1705_v27 = vpop.eup %1704  ;;  %1716 = vrcp.f32 %v1048_v25  ;;  %v1137_v26 = vmul.f32 %v1703_v13, %v2127_v3 }
 0x23f   : > { %v1707_v41 = vpop.eup %1706  ;;  %v1138_v20 = vmul.f32 %v1705_v27, %v2129_v15 }
 0x240   : > { %v1709_v28 = vpop.eup %1708  ;;  %v1139_v30 = vmul.f32 %v1707_v41, %v2131_v31 }
 0x241   : > { %v1140_v34 = vmul.f32 %v1709_v28, %v2134_v35  ;;  %v1586_v35 = vld [vmem:[%s2240_s6] sm:$0xff]  }
 0x242   : > { %v1165_v37 = vpack.c.bf16 %v1139_v30, %v1137_v26 }
 0x243   : > { %v1166_v42 = vpack.c.bf16 %v1140_v34, %v1138_v20 }
 0x245   : > { %v1711_v43 = vpop.eup %1710  ;;  %1253 = vmatprep.subr.bf16.mxu0 %v1166_v42 }
 0x246   : > { %v1713_v47 = vpop.eup %1712  ;;  %1254 = vmatpush1.bf16.msra.mxu0 %v1165_v37  ;;  %v1141_v51 = vmul.f32 %v1711_v43, %v2142_v54  ;;  %v1587_v54 = vld [vmem:[%s2240_s6 + $0x8] sm:$0xff]  }
 0x247   : > { %v1715_v48 = vpop.eup %1714  ;;  %v1142_v3 = vmul.f32 %v1713_v47, %v2144_v7  ;;  %v1588_v7 = vld [vmem:[%s2240_s6 + $0x10] sm:$0xff]  }
 0x248   : > { %v1717_v49 = vpop.eup %1716  ;;  %v1143_v53 = vmul.f32 %v1715_v48, %v2147_v56  ;;  %v1589_v56 = vld [vmem:[%s2240_s6 + $0x18] sm:$0xff]  }
 0x249   : > { %v1144_v31 = vmul.f32 %v1717_v49, %v2150_v4  ;;  %v1180_v4 = vpop.permute.xlu0 %1179 }
 0x24a   : > { %v1167_v58 = vpack.c.bf16 %v1143_v53, %v1141_v51 }
 0x24b   : > { %v1168_v15 = vpack.c.bf16 %v1144_v31, %v1142_v3 }
 0x24d   : > { %1255 = vmatprep.subr.bf16.mxu0 %v1168_v15  ;;  %v1190_v50 = vpop.permute.xlu0 %1189 }
 0x24e   : > { %1256 = vmatpush1.bf16.msra.mxu0 %v1167_v58 }
 0x251   : > { %1274 = vmatmul.mubr.bf16.vlgmr.msra.gmra.mrb[16].mxu0 %v1586_v35  ;;  %v1200_v13 = vpop.permute.xlu0 %1199 }
 0x252   : > { %1283 = vmatprep.mubr.bf16.mxu0 %v1742_v0 }
 0x255   : > { %v1210_v43 = vpop.permute.xlu0 %1209 }
 0x259   : > { %1284 = vmatmul.mubr.bf16.gmra.mrb[20].mxu0 %v1587_v54 }
 0x25a   : > { %1293 = vmatprep.mubr.bf16.mxu0 %v1742_v0 }
 0x261   : > { %1294 = vmatmul.mubr.bf16.gmra.mrb[24].mxu0 %v1588_v7 }
 0x262   : > { %1303 = vmatprep.mubr.bf16.mxu0 %v1742_v0  ;;  %v1185_v0 = vpop.permute.xlu1 %1184 }
 0x266   : > { %v1195_v22 = vpop.permute.xlu1 %1194 }
 0x269   : > { %1304 = vmatmul.mubr.bf16.gmra.mrb[28].mxu0 %v1589_v56 }
 0x26a   : > { %v1205_v28 = vpop.permute.xlu1 %1204 }
 0x26e   : > { %v1215_v49 = vpop.permute.xlu1 %1214 }
 0x324   : > { %v1275_v1 = vpop.f32.mrb[16].mxu0 }
 0x325   : > { %v1276_v2 = vadd.f32 %v1275_v1, %v1180_v4  ;;  %v1277_v5 = vpop.f32.mrb[17].mxu0 }
 0x326   : > { %v1278_v21 = vadd.f32 %v1277_v5, %v1180_v4  ;;  %v1279_v33 = vpop.f32.mrb[18].mxu0 }
 0x327   : > { %v1314_v6 = vadd.f32 %v1276_v2, %v1943_v55  ;;  %v1280_v23 = vadd.f32 %v1279_v33, %v1185_v0  ;;  %v1281_v45 = vpop.f32.mrb[19].mxu0 }
 0x328   : > { %v1315_v9 = vadd.f32 %v1278_v21, %v1946_v61  ;;  %v1282_v29 = vadd.f32 %v1281_v45, %v1185_v0 }
 0x329   : > { %1330 = vst [vmem:[%s2191_s26] sm:$0xff] %v1314_v6  ;;  %v1316_v46 = vadd.f32 %v1280_v23, %v1948_v62 }
 0x32a   : > { %1331 = vst [vmem:[%s2191_s26 + $0x8] sm:$0xff] %v1315_v9  ;;  %v1317_v10 = vadd.f32 %v1282_v29, %v1950_v63 }
 0x32b   : > { %1332 = vst [vmem:[%s2191_s26 + $0x10] sm:$0xff] %v1316_v46 }
 0x32c   : > { %1333 = vst [vmem:[%s2191_s26 + $0x18] sm:$0xff] %v1317_v10  ;;  %v1285_v8 = vpop.f32.mrb[20].mxu0 }
 0x32d   : > { %v1286_v17 = vadd.f32 %v1285_v8, %v1190_v50  ;;  %v1287_v55 = vpop.f32.mrb[21].mxu0 }
 0x32e   : > { %v1288_v24 = vadd.f32 %v1287_v55, %v1190_v50  ;;  %v1289_v61 = vpop.f32.mrb[22].mxu0 }
 0x32f   : > { %v1318_v11 = vadd.f32 %v1286_v17, %v1959_v12  ;;  %v1290_v14 = vadd.f32 %v1289_v61, %v1195_v22  ;;  %v1291_v62 = vpop.f32.mrb[23].mxu0 }
 0x330   : > { %v1319_v44 = vadd.f32 %v1288_v24, %v1962_v16  ;;  %v1292_v40 = vadd.f32 %v1291_v62, %v1195_v22 }
 0x331   : > { %1334 = vst [vmem:[%s2191_s26 + $0x20] sm:$0xff] %v1318_v11  ;;  %v1320_v63 = vadd.f32 %v1290_v14, %v1964_v18 }
 0x332   : > { %1335 = vst [vmem:[%s2191_s26 + $0x28] sm:$0xff] %v1319_v44  ;;  %v1321_v25 = vadd.f32 %v1292_v40, %v1966_v19 }
 0x333   : > { %1336 = vst [vmem:[%s2191_s26 + $0x30] sm:$0xff] %v1320_v63 }
 0x334   : > { %1337 = vst [vmem:[%s2191_s26 + $0x38] sm:$0xff] %v1321_v25  ;;  %v1295_v27 = vpop.f32.mrb[24].mxu0 }
 0x335   : > { %v1296_v41 = vadd.f32 %v1295_v27, %v1200_v13  ;;  %v1297_v12 = vpop.f32.mrb[25].mxu0 }
 0x336   : > { %v1298_v26 = vadd.f32 %v1297_v12, %v1200_v13  ;;  %v1299_v16 = vpop.f32.mrb[26].mxu0 }
 0x337   : > { %v1322_v30 = vadd.f32 %v1296_v41, %v1975_v32  ;;  %v1300_v20 = vadd.f32 %v1299_v16, %v1205_v28  ;;  %v1301_v18 = vpop.f32.mrb[27].mxu0 }
 0x338   : > { %v1323_v34 = vadd.f32 %v1298_v26, %v1978_v36  ;;  %v1302_v37 = vadd.f32 %v1301_v18, %v1205_v28 }
 0x339   : > { %1338 = vst [vmem:[%s2191_s26 + $0x40] sm:$0xff] %v1322_v30  ;;  %v1324_v19 = vadd.f32 %v1300_v20, %v1980_v38 }
 0x33a   : > { %1339 = vst [vmem:[%s2191_s26 + $0x48] sm:$0xff] %v1323_v34  ;;  %v1325_v42 = vadd.f32 %v1302_v37, %v1982_v39 }
 0x33b   : > { %1340 = vst [vmem:[%s2191_s26 + $0x50] sm:$0xff] %v1324_v19 }
 0x33c   : > { %1341 = vst [vmem:[%s2191_s26 + $0x58] sm:$0xff] %v1325_v42  ;;  %v1305_v47 = vpop.f32.mrb[28].mxu0 }
 0x33d   : > { %v1306_v32 = vadd.f32 %v1305_v47, %v1210_v43  ;;  %v1307_v48 = vpop.f32.mrb[29].mxu0 }
 0x33e   : > { %v1308_v51 = vadd.f32 %v1307_v48, %v1210_v43  ;;  %v1309_v36 = vpop.f32.mrb[30].mxu0 }
 0x33f   : > { %v1326_v53 = vadd.f32 %v1306_v32, %v1991_v52  ;;  %v1310_v3 = vadd.f32 %v1309_v36, %v1215_v49  ;;  %v1311_v38 = vpop.f32.mrb[31].mxu0 }
 0x340   : > { %v1327_v31 = vadd.f32 %v1308_v51, %v1994_v57  ;;  %v1312_v58 = vadd.f32 %v1311_v38, %v1215_v49 }
 0x341   : > { %1342 = vst [vmem:[%s2191_s26 + $0x60] sm:$0xff] %v1326_v53  ;;  %v1328_v39 = vadd.f32 %v1310_v3, %v1996_v59 }
 0x342   : > { %1343 = vst [vmem:[%s2191_s26 + $0x68] sm:$0xff] %v1327_v31  ;;  %v1329_v15 = vadd.f32 %v1312_v58, %v1998_v60 }
 0x343   : > { %1344 = vst [vmem:[%s2191_s26 + $0x70] sm:$0xff] %v1328_v39 }
 0x344   : > { %1345 = vst [vmem:[%s2191_s26 + $0x78] sm:$0xff] %v1329_v15 }
 0x345 PF: > { %s18_s29 = sadd.s32 1, %s1740_s29   ;;  %s2243_s27 = smov %s1736_s28 }
 0x346   : > { %p15_p5 = scmp.ge.s32.totalorder %s18_s29, 4   ;;  %s2244_s28 = smov %s2246_s30 }
 0x348   :  { %17 = sbr.rel (!%p15_p5) target bundleno = 2 (0x2), region = 85 }

// kernel: psa_block.2
= control target key start
LH: loop header
LB: loop body
LE: loop exit
PB: predicated region body
PF: predicated region fallthrough
CT: control target
= control target key end

     0   :  { %s5502_s18 = smov 0   ;;  %s10940_s0 = inlined_call_operand.vmem [shape: f32[2,64,256], index: 0, kind: input, shape index: {}]   ;;  %s10941_s1 = inlined_call_operand.vmem [shape: bf16[128,64], index: 1, kind: input, shape index: {}]   ;;  %s10942_s2 = inlined_call_operand.vmem [shape: f32[128,1], index: 2, kind: input, shape index: {}]   ;;  %s10943_s3 = inlined_call_operand.vmem [shape: f32[64,9], index: 3, kind: input, shape index: {}]   ;;  %s10944_s4 = inlined_call_operand.vmem [shape: f32[64,1], index: 4, kind: input, shape index: {}]   ;;  %s10945_s5 = inlined_call_operand.vmem [shape: bf16[2,64,256], index: 5, kind: output, shape index: {}]  }
   0x1 LB: > { %s4720_s19 = sadd.s32 4294967295, %s5453_s18   ;;  %p4724_p0 = scmp.ge.s32.totalorder %s5453_s18, 1  ;;  %s5453_s18 = sphi %s5502_s18, %s15_s18  }
   0x2   : > { %p187_p1 = scmp.lt.s32.totalorder %s5453_s18, 3 }
   0x4   : > { %p188_p2 = pnand %p4724_p0, %p187_p1 }
   0x6   : > { %191 = sbr.rel (%p188_p2) target bundleno = 2445 (0x98d), region = 40 }
   0xd   : > { %p215_p3 = scmp.lt.s32.totalorder %s4720_s19, 1  ;;  %v10946_v0 = vmov 0   ;;  %v267_v1 = vld [vmem:[%s10942_s2 + $0x8] sm:$0xff]  ;;  %v266_v2 = vld [vmem:[%s10942_s2] sm:$0xff]  ;;  %v268_v22 = vld [vmem:[%s10942_s2 + $0x10] sm:$0xff]  ;;  %vm402_vm0 = vcmask 523264  }
   0xe   : > { %459 = vmatprep.mubr.bf16.mxu0 %v10946_v0  ;;  %4860 = vset.pattern.permute.xlu0 %v10946_v0  ;;  %v271_v16 = vld [vmem:[%s10942_s2 + $0x28] sm:$0xff]  ;;  %v269_v28 = vld [vmem:[%s10942_s2 + $0x18] sm:$0xff]  ;;  %v4907_v30 = vld [vmem:[%s10941_s1] sm:$0xff]   ;;  %vm11193_vm1 = vcmask 1043456   ;;  %vm11186_vm2 = vcmask 64512   ;;  %s5456_s26 = smov 17  }
   0xf   : > { %s12566_s19 = smov (!%p215_p3, %s4720_s19), 1  ;;  %701 = vmatprep.mubr.bf16.mxu1 %v10946_v0  ;;  %289 = vperm.xlu0 %4860, %v267_v1   ;;  %v270_v31 = vld [vmem:[%s10942_s2 + $0x20] sm:$0xff]  ;;  %v4908_v32 = vld [vmem:[%s10941_s1 + $0x8] sm:$0xff]   ;;  %v4909_v33 = vld [vmem:[%s10941_s1 + $0x10] sm:$0xff]   ;;  %s5458_s29 = smov 16  }
  0x10   : > { %s4823_s22 = sshll.u32 %s12566_s19, 7  ;;  %v4910_v34 = vld [vmem:[%s10941_s1 + $0x18] sm:$0xff]   ;;  %v4911_v35 = vld [vmem:[%s10941_s1 + $0x20] sm:$0xff]   ;;  %v4912_v36 = vld [vmem:[%s10941_s1 + $0x28] sm:$0xff]   ;;  %s5460_s30 = smov 15  }
  0x11   : > { %s5522_s25 = scalar_lea.vmem %s10940_s0, %s4823_s22  ;;  %v4913_v37 = vld [vmem:[%s10941_s1 + $0x30] sm:$0xff]   ;;  %v4914_v38 = vld [vmem:[%s10941_s1 + $0x38] sm:$0xff]   ;;  %s5462_s6 = smov 1  }
  0x12   : > { %v227_v3 = vld [vmem:[%s5522_s25 + $0x8] sm:$0xff]  ;;  %v229_v4 = vld [vmem:[%s5522_s25 + $0x18] sm:$0xff]  ;;  %v226_v5 = vld [vmem:[%s5522_s25] sm:$0xff]  ;;  %s5463_s9 = smov 127   ;;  %s5466_s10 = smov 113  }
  0x13   : > { %v243_v6 = vpack.c.bf16 %v229_v4, %v227_v3  ;;  %v228_v7 = vld [vmem:[%s5522_s25 + $0x10] sm:$0xff]  ;;  %v231_v8 = vld [vmem:[%s5522_s25 + $0x28] sm:$0xff]  ;;  %v233_v9 = vld [vmem:[%s5522_s25 + $0x38] sm:$0xff]  ;;  %284 = vperm.xlu0 %4860, %v266_v2   ;;  %s5467_s11 = smov 112   ;;  %s5468_s12 = smov 111  }
  0x14   : > { %v242_v10 = vpack.c.bf16 %v228_v7, %v226_v5  ;;  %v245_v11 = vpack.c.bf16 %v233_v9, %v231_v8  ;;  %v230_v12 = vld [vmem:[%s5522_s25 + $0x20] sm:$0xff]  ;;  %v232_v13 = vld [vmem:[%s5522_s25 + $0x30] sm:$0xff]  ;;  %v235_v14 = vld [vmem:[%s5522_s25 + $0x48] sm:$0xff] }
  0x15   : > { %427 = vmatprep.subr.bf16.mxu0 %v243_v6  ;;  %v237_v15 = vld [vmem:[%s5522_s25 + $0x58] sm:$0xff]  ;;  %v244_v17 = vpack.c.bf16 %v232_v13, %v230_v12  ;;  %v234_v18 = vld [vmem:[%s5522_s25 + $0x40] sm:$0xff]  ;;  %v236_v20 = vld [vmem:[%s5522_s25 + $0x50] sm:$0xff] }
  0x16   : > { %428 = vmatpush1.bf16.msra.mxu0 %v242_v10  ;;  %v247_v19 = vpack.c.bf16 %v237_v15, %v235_v14  ;;  %v239_v21 = vld [vmem:[%s5522_s25 + $0x68] sm:$0xff]  ;;  %v241_v23 = vld [vmem:[%s5522_s25 + $0x78] sm:$0xff]  ;;  %v246_v24 = vpack.c.bf16 %v236_v20, %v234_v18  ;;  %v238_v26 = vld [vmem:[%s5522_s25 + $0x60] sm:$0xff] }
  0x17   : > { %429 = vmatprep.subr.bf16.mxu0 %v245_v11  ;;  %309 = vperm.xlu0 %4860, %v271_v16   ;;  %v249_v25 = vpack.c.bf16 %v241_v23, %v239_v21  ;;  %v240_v27 = vld [vmem:[%s5522_s25 + $0x70] sm:$0xff]  ;;  %v273_v23 = vld [vmem:[%s10942_s2 + $0x38] sm:$0xff] }
  0x18   : > { %v248_v29 = vpack.c.bf16 %v240_v27, %v238_v26  ;;  %v274_v27 = vld [vmem:[%s10942_s2 + $0x40] sm:$0xff] }
  0x1a   : > { %430 = vmatpush1.bf16.msra.mxu0 %v244_v17 }
  0x1b   : > { %431 = vmatprep.subr.bf16.mxu0 %v247_v19  ;;  %294 = vperm.xlu0 %4860, %v268_v22   ;;  %v275_v19 = vld [vmem:[%s10942_s2 + $0x48] sm:$0xff] }
  0x1e   : > { %432 = vmatpush1.bf16.msra.mxu0 %v246_v24 }
  0x1f   : > { %433 = vmatprep.subr.bf16.mxu0 %v249_v25  ;;  %299 = vperm.xlu0 %4860, %v269_v28   ;;  %v272_v25 = vld [vmem:[%s10942_s2 + $0x30] sm:$0xff] }
  0x22   : > { %434 = vmatpush1.bf16.msra.mxu0 %v248_v29 }
  0x23   : > { %304 = vperm.xlu0 %4860, %v270_v31  }
  0x25   : > { %4737 = vmatmul.mubr.msk.bf16.vlgmr.msra.gmra.mrb[0].mxu0 %vm402_vm0, %v4907_v30 }
  0x26   : > { %469 = vmatprep.mubr.bf16.mxu0 %v10946_v0 }
  0x2d   : > { %4738 = vmatmul.mubr.msk.bf16.gmra.mrb[4].mxu0 %vm402_vm0, %v4908_v32 }
  0x2e   : > { %479 = vmatprep.mubr.bf16.mxu0 %v10946_v0 }
  0x35   : > { %4739 = vmatmul.mubr.msk.bf16.gmra.mrb[8].mxu0 %vm402_vm0, %v4909_v33 }
  0x36   : > { %489 = vmatprep.mubr.bf16.mxu0 %v10946_v0 }
  0x3d   : > { %4740 = vmatmul.mubr.msk.bf16.gmra.mrb[12].mxu0 %vm402_vm0, %v4910_v34 }
  0x3e   : > { %499 = vmatprep.mubr.bf16.mxu0 %v10946_v0 }
  0x45   : > { %4741 = vmatmul.mubr.msk.bf16.gmra.mrb[16].mxu0 %vm402_vm0, %v4911_v35 }
  0x46   : > { %509 = vmatprep.mubr.bf16.mxu0 %v10946_v0 }
  0x4d   : > { %4742 = vmatmul.mubr.msk.bf16.gmra.mrb[20].mxu0 %vm402_vm0, %v4912_v36 }
  0x4e   : > { %519 = vmatprep.mubr.bf16.mxu0 %v10946_v0 }
  0x55   : > { %4743 = vmatmul.mubr.msk.bf16.gmra.mrb[24].mxu0 %vm402_vm0, %v4913_v37 }
  0x56   : > { %529 = vmatprep.mubr.bf16.mxu0 %v10946_v0 }
  0x5d   : > { %4744 = vmatmul.mubr.msk.bf16.gmra.mrb[28].mxu0 %vm402_vm0, %v4914_v38 }
  0x8e   : > { %v290_v39 = vpop.permute.xlu0 %289 }
  0x92   : > { %v285_v40 = vpop.permute.xlu0 %284 }
  0x96   : > { %v310_v41 = vpop.permute.xlu0 %309 }
  0x9a   : > { %v5594_v51 = vpop.permute.xlu0 %294 }
  0x9e   : > { %v5602_v59 = vpop.permute.xlu0 %299 }
  0xa2   : > { %v305_v2 = vpop.permute.xlu0 %304 }
  0xf8   : > { %v461_v42 = vpop.f32.mrb[0].mxu0 }
  0xf9   : > { %v462_v43 = vadd.f32 %v461_v42, %v285_v40  ;;  %v463_v44 = vpop.f32.mrb[1].mxu0 }
  0xfa   : > { %v464_v45 = vadd.f32 %v463_v44, %v285_v40  ;;  %v465_v46 = vpop.f32.mrb[2].mxu0 }
  0xfb   : > { %v575_v47 = vmul.f32 0.35355338, %v462_v43  ;;  %v467_v48 = vpop.f32.mrb[3].mxu0  ;;  %v466_v49 = vadd.f32 %v465_v46, %v290_v39 }
  0xfc   : > { %v576_v50 = vmul.f32 0.35355338, %v464_v45  ;;  %v468_v11 = vadd.f32 %v467_v48, %v290_v39 }
  0xfd   : > { %v577_v52 = vpack.c.bf16 %v575_v47, %v575_v47  ;;  %v579_v53 = vpack.c.bf16 %v466_v49, %v466_v49 }
  0xfe   : > { %v578_v54 = vpack.c.bf16 %v576_v50, %v576_v50  ;;  %v580_v12 = vpack.c.bf16 %v468_v11, %v468_v11 }
  0xff   : > { %581 = vxpose.xlu1.c.b16.start.end [1/1] (short) %v579_v53, 128  ;;  %v664_v55 = vsel %vm11193_vm1, %v577_v52, 0 }
 0x100   : > { %v5597_v56 = vpop.f32.mrb[4].mxu0  ;;  %4745 = vmatprep.subr.msk.bf16.mxu1 %vm11193_vm1, %v578_v54 }
 0x101   : > { %v473_v57 = vpop.f32.mrb[5].mxu0  ;;  %670 = vmatpush1.bf16.msra.mxu1 %v664_v55 }
 0x102   : > { %v5600_v58 = vpop.f32.mrb[6].mxu0  ;;  %v5605_v61 = vadd.f32 %v473_v57, %v5594_v51 }
 0x103   : > { %v477_v60 = vpop.f32.mrb[7].mxu0 }
 0x104   : > { %11399 = vst [vmem:[#allocation2_spill] sm:$0xff] %v5605_v61  ;;  %v5608_v62 = vadd.f32 %v477_v60, %v5602_v59 }
 0x106   : > { %11400 = vst [vmem:[#allocation3_spill] sm:$0xff] %v5608_v62  ;;  %v1203_v63 = vpack.c.bf16 %v5608_v62, %v5605_v61 }
 0x108   : > { %v481_v1 = vpop.f32.mrb[8].mxu0  ;;  %1268 = vmatprep.mubr.bf16.mxu0 %v1203_v63 }
 0x109   : > { %v483_v3 = vpop.f32.mrb[9].mxu0  ;;  %v482_v26 = vadd.f32 %v481_v1, %v305_v2 }
 0x10a   : > { %v484_v4 = vadd.f32 %v483_v3, %v305_v2  ;;  %v485_v5 = vpop.f32.mrb[10].mxu0  ;;  %v276_v2 = vld [vmem:[%s10942_s2 + $0x50] sm:$0xff] }
 0x10b   : > { %v486_v6 = vadd.f32 %v485_v5, %v310_v41  ;;  %v487_v7 = vpop.f32.mrb[11].mxu0  ;;  %v1611_v28 = vmul.f32 0.35355338, %v482_v26 }
 0x10c   : > { %v1612_v8 = vmul.f32 0.35355338, %v484_v4  ;;  %v488_v22 = vadd.f32 %v487_v7, %v310_v41  ;;  %v278_v7 = vld [vmem:[%s10942_s2 + $0x60] sm:$0xff] }
 0x10d   : > { %v1615_v9 = vpack.c.bf16 %v486_v6, %v486_v6  ;;  %v1613_v29 = vpack.c.bf16 %v1611_v28, %v1611_v28 }
 0x10e   : > { %v5612_v10 = vpack.c.bf16 %v1612_v8, %v1612_v8  ;;  %v1616_v24 = vpack.c.bf16 %v488_v22, %v488_v22 }
 0x10f   : > { %1617 = vxpose.xlu0.c.b16.start.end [1/1] (short) %v1615_v9, 128  ;;  %v5643_v31 = vsel %vm11193_vm1, %v1613_v29, 0  ;;  %v279_v9 = vld [vmem:[%s10942_s2 + $0x68] sm:$0xff] }
 0x110   : > { %11401 = vst [vmem:[#allocation4_spill] sm:$0xff] %v5612_v10  ;;  %4833 = vmatprep.subr.msk.bf16.mxu1 %vm11193_vm1, %v5612_v10  ;;  %v5616_v13 = vpop.f32.mrb[12].mxu0  ;;  %11404 = vst [vmem:[#allocation7_spill] sm:$0xff] %v5643_v31 }
 0x111   : > { %v5618_v14 = vpop.f32.mrb[13].mxu0 }
 0x112   : > { %v5620_v15 = vpop.f32.mrb[14].mxu0 }
 0x113   : > { %v5622_v16 = vpop.f32.mrb[15].mxu0 }
 0x118   : > { %v5624_v17 = vpop.f32.mrb[16].mxu0 }
 0x119   : > { %11402 = vst [vmem:[#allocation5_spill] sm:$0xff] %v5624_v17  ;;  %v5626_v18 = vpop.f32.mrb[17].mxu0 }
 0x11a   : > { %11403 = vst [vmem:[#allocation6_spill] sm:$0xff] %v5626_v18  ;;  %v505_v20 = vpop.f32.mrb[18].mxu0 }
 0x11b   : > { %v507_v21 = vpop.f32.mrb[19].mxu0 }
 0x11c   : > { %597 = vxpose.xlu1.c.b16.start.end [1/1] (short) %v580_v12, 128 }
 0x120   : > { %v5692_v3 = vpop.f32.mrb[20].mxu0 }
 0x121   : > { %11413 = vst [vmem:[#allocation16_spill] sm:$0xff] %v5692_v3  ;;  %v5695_v4 = vpop.f32.mrb[21].mxu0 }
 0x122   : > { %11414 = vst [vmem:[#allocation17_spill] sm:$0xff] %v5695_v4  ;;  %v5698_v5 = vpop.f32.mrb[22].mxu0 }
 0x123   : > { %11415 = vst [vmem:[#allocation18_spill] sm:$0xff] %v5698_v5  ;;  %v5700_v6 = vpop.f32.mrb[23].mxu0 }
 0x124   : > { %11416 = vst [vmem:[#allocation19_spill] sm:$0xff] %v5700_v6 }
 0x128   : > { %v5705_v8 = vpop.f32.mrb[24].mxu0 }
 0x129   : > { %11417 = vst [vmem:[#allocation20_spill] sm:$0xff] %v5705_v8  ;;  %v5710_v11 = vpop.f32.mrb[25].mxu0 }
 0x12a   : > { %11418 = vst [vmem:[#allocation21_spill] sm:$0xff] %v5710_v11  ;;  %v5712_v12 = vpop.f32.mrb[26].mxu0 }
 0x134   : > { %329 = vperm.xlu0 %4860, %v275_v19   ;;  %v5714_v19 = vpop.f32.mrb[27].mxu0 }
 0x138   : > { %319 = vperm.xlu0 %4860, %v273_v23  }
 0x139   : > { %1633 = vxpose.xlu1.c.b16.start.end [1/1] (short) %v1616_v24, 128 }
 0x13d   : > { %4861 = vset.pattern.permute.xlu1 %v10946_v0 }
 0x159   : > { %314 = vperm.xlu1 %4861, %v272_v25  }
 0x15d   : > { %324 = vperm.xlu1 %4861, %v274_v27  }
 0x165   : > { %v589_v30 = vpop.trf.xlu1 }
 0x166   : > { %4746 = vmatmul.mubr.msk.bf16.vlgmr.msra.gmra.mrb[0].mxu1 %vm11186_vm2, %v589_v30 }
 0x167   : > { %4834 = vmatpush1.bf16.msra.mxu1 %v5643_v31  ;;  %711 = vmatprep.mubr.bf16.mxu1 %v10946_v0 }
 0x169   : > { %v590_v32 = vpop.trf.xlu1 }
 0x16d   : > { %v591_v33 = vpop.trf.xlu1 }
 0x16e   : > { %4747 = vmatmul.mubr.msk.bf16.gmra.mrb[4].mxu1 %vm11186_vm2, %v590_v32 }
 0x16f   : > { %721 = vmatprep.mubr.bf16.mxu1 %v10946_v0 }
 0x171   : > { %v592_v34 = vpop.trf.xlu1 }
 0x175   : > { %v593_v35 = vpop.trf.xlu1  ;;  %v5653_v36 = vpop.trf.xlu0 }
 0x176   : > { %4748 = vmatmul.mubr.msk.bf16.gmra.mrb[8].mxu1 %vm11186_vm2, %v591_v33  ;;  %11405 = vst [vmem:[#allocation8_spill] sm:$0xff] %v5653_v36 }
 0x177   : > { %731 = vmatprep.mubr.bf16.mxu1 %v10946_v0 }
 0x179   : > { %v5657_v37 = vpop.trf.xlu0  ;;  %v594_v38 = vpop.trf.xlu1 }
 0x17a   : > { %11406 = vst [vmem:[#allocation9_spill] sm:$0xff] %v5657_v37 }
 0x17d   : > { %v5661_v39 = vpop.trf.xlu0  ;;  %v595_v40 = vpop.trf.xlu1 }
 0x17e   : > { %4749 = vmatmul.mubr.msk.bf16.gmra.mrb[12].mxu1 %vm11186_vm2, %v592_v34  ;;  %11407 = vst [vmem:[#allocation10_spill] sm:$0xff] %v5661_v39 }
 0x17f   : > { %741 = vmatprep.mubr.bf16.mxu1 %v10946_v0 }
 0x181   : > { %v5663_v41 = vpop.trf.xlu0  ;;  %v596_v43 = vpop.trf.xlu1 }
 0x182   : > { %11408 = vst [vmem:[#allocation11_spill] sm:$0xff] %v5663_v41 }
 0x185   : > { %v5667_v42 = vpop.trf.xlu0  ;;  %v605_v45 = vpop.trf.xlu1 }
 0x186   : > { %4750 = vmatmul.mubr.msk.bf16.gmra.mrb[16].mxu1 %vm11186_vm2, %v593_v35  ;;  %11409 = vst [vmem:[#allocation12_spill] sm:$0xff] %v5667_v42 }
 0x187   : > { %751 = vmatprep.mubr.bf16.mxu1 %v10946_v0 }
 0x189   : > { %v5671_v44 = vpop.trf.xlu0  ;;  %v606_v47 = vpop.trf.xlu1 }
 0x18a   : > { %11410 = vst [vmem:[#allocation13_spill] sm:$0xff] %v5671_v44 }
 0x18d   : > { %v5674_v46 = vpop.trf.xlu0  ;;  %v607_v53 = vpop.trf.xlu1 }
 0x18e   : > { %4751 = vmatmul.mubr.msk.bf16.gmra.mrb[20].mxu1 %vm11186_vm2, %v594_v38  ;;  %11411 = vst [vmem:[#allocation14_spill] sm:$0xff] %v5674_v46 }
 0x18f   : > { %761 = vmatprep.mubr.bf16.mxu1 %v10946_v0 }
 0x191   : > { %v5677_v48 = vpop.trf.xlu0  ;;  %v608_v57 = vpop.trf.xlu1 }
 0x192   : > { %11412 = vst [vmem:[#allocation15_spill] sm:$0xff] %v5677_v48 }
 0x195   : > { %v609_v60 = vpop.trf.xlu1 }
 0x196   : > { %4752 = vmatmul.mubr.msk.bf16.gmra.mrb[24].mxu1 %vm11186_vm2, %v595_v40 }
 0x197   : > { %771 = vmatprep.mubr.bf16.mxu1 %v10946_v0 }
 0x199   : > { %v610_v63 = vpop.trf.xlu1 }
 0x19d   : > { %v611_v1 = vpop.trf.xlu1 }
 0x19e   : > { %4753 = vmatmul.mubr.msk.bf16.gmra.mrb[28].mxu1 %vm11186_vm2, %v596_v43 }
 0x19f   : > { %781 = vmatprep.mubr.bf16.mxu1 %v10946_v0 }
 0x1a6   : > { %4754 = vmatmul.mubr.msk.bf16.gmra.mrb[32].mxu1 %vm11186_vm2, %v605_v45 }
 0x1a7   : > { %791 = vmatprep.mubr.bf16.mxu1 %v10946_v0 }
 0x1ae   : > { %4755 = vmatmul.mubr.msk.bf16.gmra.mrb[36].mxu1 %vm11186_vm2, %v606_v47 }
 0x1af   : > { %801 = vmatprep.mubr.bf16.mxu1 %v10946_v0 }
 0x1b3   : > { %v330_v49 = vpop.permute.xlu0 %329 }
 0x1b4   : > { %v506_v50 = vadd.f32 %v505_v20, %v330_v49  ;;  %v508_v52 = vadd.f32 %v507_v21, %v330_v49  ;;  %v612_v20 = vpop.trf.xlu1  ;;  %v277_v21 = vld [vmem:[%s10942_s2 + $0x58] sm:$0xff] }
 0x1b6   : > { %v2633_v54 = vpack.c.bf16 %v506_v50, %v506_v50  ;;  %v2634_v55 = vpack.c.bf16 %v508_v52, %v508_v52  ;;  %4756 = vmatmul.mubr.msk.bf16.gmra.mrb[40].mxu1 %vm11186_vm2, %v607_v53 }
 0x1b7   : > { %811 = vmatprep.mubr.bf16.mxu1 %v10946_v0  ;;  %v5737_v32 = vpop.permute.xlu0 %319 }
 0x1b8   : > { %2635 = vxpose.xlu0.c.b16.start.end [1/1] (short) %v2633_v54, 128  ;;  %2651 = vxpose.xlu1.c.b16.start.end [1/1] (short) %v2634_v55, 128  ;;  %v1641_v22 = vpop.trf.xlu1  ;;  %v5745_v34 = vadd.f32 %v5622_v16, %v5737_v32 }
 0x1ba   : > { %11420 = vst [vmem:[#allocation23_spill] sm:$0xff] %v5745_v34 }
 0x1bc   : > { %v1642_v23 = vpop.trf.xlu1 }
 0x1be   : > { %4757 = vmatmul.mubr.msk.bf16.gmra.mrb[44].mxu1 %vm11186_vm2, %v608_v57 }
 0x1bf   : > { %821 = vmatprep.mubr.bf16.mxu1 %v10946_v0 }
 0x1c0   : > { %v1643_v24 = vpop.trf.xlu1 }
 0x1c4   : > { %v1644_v25 = vpop.trf.xlu1 }
 0x1c6   : > { %4758 = vmatmul.mubr.msk.bf16.gmra.mrb[48].mxu1 %vm11186_vm2, %v609_v60 }
 0x1c7   : > { %831 = vmatprep.mubr.bf16.mxu1 %v10946_v0 }
 0x1c8   : > { %v1645_v26 = vpop.trf.xlu1 }
 0x1cc   : > { %v1646_v27 = vpop.trf.xlu1 }
 0x1ce   : > { %4759 = vmatmul.mubr.msk.bf16.gmra.mrb[52].mxu1 %vm11186_vm2, %v610_v63 }
 0x1cf   : > { %841 = vmatprep.mubr.bf16.mxu1 %v10946_v0 }
 0x1d0   : > { %v1647_v28 = vpop.trf.xlu1 }
 0x1d4   : > { %v1648_v29 = vpop.trf.xlu1 }
 0x1d6   : > { %4760 = vmatmul.mubr.msk.bf16.gmra.mrb[56].mxu1 %vm11186_vm2, %v611_v1 }
 0x1d7   : > { %851 = vmatprep.mubr.bf16.mxu1 %v10946_v0 }
 0x1d8   : > { %334 = vperm.xlu1 %4861, %v276_v2   ;;  %v5733_v30 = vpop.permute.xlu1 %314 }
 0x1d9   : > { %v5741_v33 = vadd.f32 %v5618_v14, %v5733_v30 }
 0x1db   : > { %11419 = vst [vmem:[#allocation22_spill] sm:$0xff] %v5741_v33  ;;  %v2237_v35 = vpack.c.bf16 %v5745_v34, %v5741_v33 }
 0x1dc   : > { %344 = vperm.xlu1 %4861, %v278_v7   ;;  %v5929_v3 = vpop.permute.xlu1 %324 }
 0x1dd   : > { %349 = vperm.xlu0 %4860, %v279_v9   ;;  %11448 = vst [vmem:[#allocation51_spill] sm:$0xff] %v5929_v3 }
 0x1de   : > { %4761 = vmatmul.mubr.msk.bf16.gmra.mrb[60].mxu1 %vm11186_vm2, %v612_v20 }
 0x1df   : > { %1815 = vmatprep.mubr.bf16.mxu1 %v10946_v0 }
 0x1e1   : > { %339 = vperm.xlu0 %4860, %v277_v21  }
 0x1e6   : > { %4773 = vmatmul.mubr.msk.bf16.vlgmr.msra.gmra.mrb[64].mxu1 %vm11186_vm2, %v1641_v22 }
 0x1e7   : > { %1825 = vmatprep.mubr.bf16.mxu1 %v10946_v0 }
 0x1ee   : > { %4774 = vmatmul.mubr.msk.bf16.gmra.mrb[68].mxu1 %vm11186_vm2, %v1642_v23 }
 0x1ef   : > { %1835 = vmatprep.mubr.bf16.mxu1 %v10946_v0 }
 0x1f6   : > { %4775 = vmatmul.mubr.msk.bf16.gmra.mrb[72].mxu1 %vm11186_vm2, %v1643_v24 }
 0x1f7   : > { %1845 = vmatprep.mubr.bf16.mxu1 %v10946_v0 }
 0x1fe   : > { %4776 = vmatmul.mubr.msk.bf16.gmra.mrb[76].mxu1 %vm11186_vm2, %v1644_v25 }
 0x1ff   : > { %1855 = vmatprep.mubr.bf16.mxu1 %v10946_v0 }
 0x206   : > { %4777 = vmatmul.mubr.msk.bf16.gmra.mrb[80].mxu1 %vm11186_vm2, %v1645_v26 }
 0x207   : > { %1865 = vmatprep.mubr.bf16.mxu1 %v10946_v0 }
 0x20e   : > { %4778 = vmatmul.mubr.msk.bf16.gmra.mrb[84].mxu1 %vm11186_vm2, %v1646_v27 }
 0x20f   : > { %1875 = vmatprep.mubr.bf16.mxu1 %v10946_v0 }
 0x216   : > { %4779 = vmatmul.mubr.msk.bf16.gmra.mrb[88].mxu1 %vm11186_vm2, %v1647_v28 }
 0x217   : > { %1885 = vmatprep.mubr.bf16.mxu1 %v10946_v0 }
 0x21e   : > { %4780 = vmatmul.mubr.msk.bf16.gmra.mrb[92].mxu1 %vm11186_vm2, %v1648_v29  ;;  %v5750_v38 = vpop.trf.xlu0 }
 0x21f   : > { %2302 = vmatprep.mubr.bf16.mxu1 %v2237_v35  ;;  %11421 = vst [vmem:[#allocation24_spill] sm:$0xff] %v5750_v38 }
 0x222   : > { %v5752_v40 = vpop.trf.xlu0 }
 0x223   : > { %11422 = vst [vmem:[#allocation25_spill] sm:$0xff] %v5752_v40 }
 0x226   : > { %v5754_v43 = vpop.trf.xlu0 }
 0x227   : > { %11423 = vst [vmem:[#allocation26_spill] sm:$0xff] %v5754_v43 }
 0x22a   : > { %v5764_v49 = vpop.trf.xlu0 }
 0x22b   : > { %11424 = vst [vmem:[#allocation27_spill] sm:$0xff] %v5764_v49 }
 0x22e   : > { %v5780_v63 = vpop.trf.xlu0 }
 0x22f   : > { %11425 = vst [vmem:[#allocation28_spill] sm:$0xff] %v5780_v63 }
 0x232   : > { %v5789_v20 = vpop.trf.xlu0 }
 0x233   : > { %11426 = vst [vmem:[#allocation29_spill] sm:$0xff] %v5789_v20 }
 0x236   : > { %v5798_v26 = vpop.trf.xlu0 }
 0x237   : > { %11428 = vst [vmem:[#allocation31_spill] sm:$0xff] %v5798_v26 }
 0x239   : > { %v5756_v45 = vpop.f32.mrb[0].mxu1 }
 0x23a   : > { %v5758_v14 = vpop.f32.mrb[1].mxu1  ;;  %v5812_v11 = vpop.trf.xlu0 }
 0x23b   : > { %v5760_v47 = vpop.f32.mrb[2].mxu1  ;;  %11431 = vst [vmem:[#allocation34_spill] sm:$0xff] %v5812_v11 }
 0x23c   : > { %v5762_v16 = vpop.f32.mrb[3].mxu1 }
 0x241   : > { %v5766_v50 = vpop.f32.mrb[4].mxu1 }
 0x242   : > { %v862_v52 = vmax.f32 %v5756_v45, %v5766_v50  ;;  %v5770_v53 = vpop.f32.mrb[5].mxu1 }
 0x243   : > { %v899_v54 = vmax.f32 %v5758_v14, %v5770_v53  ;;  %v5774_v55 = vpop.f32.mrb[6].mxu1 }
 0x244   : > { %v863_v57 = vmax.f32 %v5760_v47, %v5774_v55  ;;  %v5778_v60 = vpop.f32.mrb[7].mxu1 }
 0x245   : > { %v900_v1 = vmax.f32 %v5762_v16, %v5778_v60 }
 0x249   : > { %v5784_v2 = vpop.f32.mrb[8].mxu1 }
 0x24a   : > { %v864_v7 = vmax.f32 %v862_v52, %v5784_v2  ;;  %v5787_v9 = vpop.f32.mrb[9].mxu1 }
 0x24b   : > { %v901_v21 = vmax.f32 %v899_v54, %v5787_v9  ;;  %v5792_v22 = vpop.f32.mrb[10].mxu1 }
 0x24c   : > { %v865_v23 = vmax.f32 %v863_v57, %v5792_v22  ;;  %v5795_v24 = vpop.f32.mrb[11].mxu1 }
 0x24d   : > { %11427 = vst [vmem:[#allocation30_spill] sm:$0xff] %v5795_v24  ;;  %v902_v25 = vmax.f32 %v900_v1, %v5795_v24 }
 0x251   : > { %v5800_v27 = vpop.f32.mrb[12].mxu1 }
 0x252   : > { %v866_v28 = vmax.f32 %v864_v7, %v5800_v27  ;;  %v5803_v29 = vpop.f32.mrb[13].mxu1 }
 0x253   : > { %11429 = vst [vmem:[#allocation32_spill] sm:$0xff] %v5803_v29  ;;  %v903_v35 = vmax.f32 %v901_v21, %v5803_v29  ;;  %v5806_v52 = vpop.f32.mrb[14].mxu1 }
 0x254   : > { %v867_v54 = vmax.f32 %v865_v23, %v5806_v52  ;;  %v5809_v0 = vpop.f32.mrb[15].mxu1 }
 0x255   : > { %11430 = vst [vmem:[#allocation33_spill] sm:$0xff] %v5809_v0  ;;  %v904_v57 = vmax.f32 %v902_v25, %v5809_v0 }
 0x259   : > { %v5814_v1 = vpop.f32.mrb[16].mxu1 }
 0x25a   : > { %v868_v8 = vmax.f32 %v866_v28, %v5814_v1  ;;  %v5817_v26 = vpop.f32.mrb[17].mxu1 }
 0x25b   : > { %11432 = vst [vmem:[#allocation35_spill] sm:$0xff] %v5817_v26  ;;  %v905_v7 = vmax.f32 %v903_v35, %v5817_v26  ;;  %v5820_v20 = vpop.f32.mrb[18].mxu1 }
 0x25c   : > { %v869_v21 = vmax.f32 %v867_v54, %v5820_v20  ;;  %v350_v63 = vpop.permute.xlu0 %349  ;;  %v5823_v23 = vpop.f32.mrb[19].mxu1 }
 0x25d   : > { %11433 = vst [vmem:[#allocation36_spill] sm:$0xff] %v5823_v23  ;;  %v526_v49 = vadd.f32 %v5712_v12, %v350_v63  ;;  %v528_v25 = vadd.f32 %v5714_v19, %v350_v63  ;;  %v906_v11 = vmax.f32 %v904_v57, %v5823_v23 }
 0x25f   : > { %v3651_v43 = vpack.c.bf16 %v526_v49, %v526_v49  ;;  %v3652_v40 = vpack.c.bf16 %v528_v25, %v528_v25 }
 0x261   : > { %3653 = vxpose.xlu0.c.b16.start.end [1/1] (short) %v3651_v43, 128  ;;  %3669 = vxpose.xlu1.c.b16.start.end [1/1] (short) %v3652_v40, 128  ;;  %v5828_v28 = vpop.f32.mrb[20].mxu1 }
 0x262   : > { %v870_v35 = vmax.f32 %v868_v8, %v5828_v28  ;;  %v5831_v38 = vpop.f32.mrb[21].mxu1 }
 0x263   : > { %11434 = vst [vmem:[#allocation37_spill] sm:$0xff] %v5831_v38  ;;  %v907_v54 = vmax.f32 %v905_v7, %v5831_v38  ;;  %v5834_v18 = vpop.f32.mrb[22].mxu1 }
 0x264   : > { %v871_v12 = vmax.f32 %v869_v21, %v5834_v18  ;;  %v5837_v17 = vpop.f32.mrb[23].mxu1 }
 0x265   : > { %11435 = vst [vmem:[#allocation38_spill] sm:$0xff] %v5837_v17  ;;  %v908_v19 = vmax.f32 %v906_v11, %v5837_v17 }
 0x269   : > { %v5840_v49 = vpop.f32.mrb[24].mxu1 }
 0x26a   : > { %v872_v40 = vmax.f32 %v870_v35, %v5840_v49  ;;  %v5843_v43 = vpop.f32.mrb[25].mxu1 }
 0x26b   : > { %11436 = vst [vmem:[#allocation39_spill] sm:$0xff] %v5843_v43  ;;  %v909_v8 = vmax.f32 %v907_v54, %v5843_v43  ;;  %v5846_v63 = vpop.f32.mrb[26].mxu1 }
 0x26c   : > { %v873_v57 = vmax.f32 %v871_v12, %v5846_v63  ;;  %v5849_v7 = vpop.f32.mrb[27].mxu1 }
 0x26d   : > { %11437 = vst [vmem:[#allocation40_spill] sm:$0xff] %v5849_v7  ;;  %v910_v21 = vmax.f32 %v908_v19, %v5849_v7 }
 0x271   : > { %v5852_v25 = vpop.f32.mrb[28].mxu1 }
 0x272   : > { %v874_v11 = vmax.f32 %v872_v40, %v5852_v25  ;;  %v5855_v48 = vpop.f32.mrb[29].mxu1 }
 0x273   : > { %11438 = vst [vmem:[#allocation41_spill] sm:$0xff] %v5855_v48  ;;  %v911_v35 = vmax.f32 %v909_v8, %v5855_v48  ;;  %v5858_v46 = vpop.f32.mrb[30].mxu1 }
 0x274   : > { %v875_v54 = vmax.f32 %v873_v57, %v5858_v46  ;;  %v5861_v44 = vpop.f32.mrb[31].mxu1 }
 0x275   : > { %11439 = vst [vmem:[#allocation42_spill] sm:$0xff] %v5861_v44  ;;  %v912_v12 = vmax.f32 %v910_v21, %v5861_v44  ;;  %v281_v21 = vld [vmem:[%s10942_s2 + $0x78] sm:$0xff] }
 0x279   : > { %v5864_v42 = vpop.f32.mrb[32].mxu1 }
 0x27a   : > { %v876_v19 = vmax.f32 %v874_v11, %v5864_v42  ;;  %v5867_v41 = vpop.f32.mrb[33].mxu1 }
 0x27b   : > { %11440 = vst [vmem:[#allocation43_spill] sm:$0xff] %v5867_v41  ;;  %v913_v40 = vmax.f32 %v911_v35, %v5867_v41  ;;  %v5870_v39 = vpop.f32.mrb[34].mxu1  ;;  %v5886_v35 = vadd.f32 %v5600_v58, %v5602_v59  ;;  %v5902_v58 = vadd.f32 %v5597_v56, %v5594_v51 }
 0x27c   : > { %v877_v8 = vmax.f32 %v875_v54, %v5870_v39  ;;  %v5873_v37 = vpop.f32.mrb[35].mxu1 }
 0x27d   : > { %11441 = vst [vmem:[#allocation44_spill] sm:$0xff] %v5873_v37  ;;  %v914_v57 = vmax.f32 %v912_v12, %v5873_v37  ;;  %11443 = vst [vmem:[#allocation46_spill] sm:$0xff] %v5886_v35  ;;  %v280_v12 = vld [vmem:[%s10942_s2 + $0x70] sm:$0xff] }
 0x27e   : > { %11445 = vst [vmem:[#allocation48_spill] sm:$0xff] %v5902_v58 }
 0x281   : > { %359 = vperm.xlu1 %4861, %v281_v21   ;;  %v5879_v36 = vpop.f32.mrb[36].mxu1 }
 0x282   : > { %v878_v11 = vmax.f32 %v876_v19, %v5879_v36  ;;  %v5882_v31 = vpop.f32.mrb[37].mxu1 }
 0x283   : > { %11442 = vst [vmem:[#allocation45_spill] sm:$0xff] %v5882_v31  ;;  %v915_v54 = vmax.f32 %v913_v40, %v5882_v31  ;;  %v5889_v10 = vpop.f32.mrb[38].mxu1 }
 0x284   : > { %v879_v21 = vmax.f32 %v877_v8, %v5889_v10  ;;  %v5895_v6 = vpop.f32.mrb[39].mxu1 }
 0x285   : > { %11444 = vst [vmem:[#allocation47_spill] sm:$0xff] %v5895_v6  ;;  %v916_v19 = vmax.f32 %v914_v57, %v5895_v6  ;;  %1289 = vrot.lane.b32.xlu1 %v5886_v35, %s5456_s26  ;;  %v5916_v57 = vld [vmem:[%s10943_s3 + $0x8] sm:$0xff] }
 0x286   : > { %354 = vperm.xlu0 %4860, %v280_v12   ;;  %v10950_v12 = vmov 4  }
 0x289   : > { %1293 = vrot.lane.b32.xlu1 %v5608_v62, %s5456_s26  ;;  %v5906_v59 = vpop.f32.mrb[40].mxu1 }
 0x28a   : > { %v880_v40 = vmax.f32 %v878_v11, %v5906_v59  ;;  %1287 = vrot.lane.b32.xlu0 %v5902_v58, %s5456_s26  ;;  %v5911_v8 = vpop.f32.mrb[41].mxu1 }
 0x28b   : > { %11446 = vst [vmem:[#allocation49_spill] sm:$0xff] %v5911_v8  ;;  %v917_v51 = vmax.f32 %v915_v54, %v5911_v8  ;;  %v5919_v56 = vpop.f32.mrb[42].mxu1  ;;  %4866 = vset.pattern.permute.xlu0 %v10950_v12 }
 0x28c   : > { %v881_v5 = vmax.f32 %v879_v21, %v5919_v56  ;;  %v5923_v11 = vpop.f32.mrb[43].mxu1 }
 0x28d   : > { %11447 = vst [vmem:[#allocation50_spill] sm:$0xff] %v5923_v11  ;;  %v918_v4 = vmax.f32 %v916_v19, %v5923_v11  ;;  %1307 = vperm.xlu1 %4861, %v5916_v57   ;;  %v10961_v19 = vmov 1  }
 0x28e   : > { %1291 = vrot.lane.b32.xlu0 %v5605_v61, %s5456_s26 }
 0x291   : > { %1326 = vrot.lane.b32.xlu1 %v5886_v35, %s5458_s29  ;;  %v5933_v54 = vpop.f32.mrb[44].mxu1 }
 0x292   : > { %v882_v12 = vmax.f32 %v880_v40, %v5933_v54  ;;  %1324 = vrot.lane.b32.xlu0 %v5902_v58, %s5458_s29  ;;  %v5938_v21 = vpop.f32.mrb[45].mxu1  ;;  %4862 = vset.pattern.permute.xlu1 %v10961_v19  ;;  %v5950_v40 = vpop.trf.xlu1 }
 0x293   : > { %11449 = vst [vmem:[#allocation52_spill] sm:$0xff] %v5938_v21  ;;  %v919_v11 = vmax.f32 %v917_v51, %v5938_v21  ;;  %v5942_v8 = vpop.f32.mrb[46].mxu1  ;;  %11451 = vst [vmem:[#allocation54_spill] sm:$0xff] %v5950_v40 }
 0x294   : > { %v883_v3 = vmax.f32 %v881_v5, %v5942_v8  ;;  %v5945_v6 = vpop.f32.mrb[47].mxu1 }
 0x295   : > { %11450 = vst [vmem:[#allocation53_spill] sm:$0xff] %v5945_v6  ;;  %v920_v31 = vmax.f32 %v918_v4, %v5945_v6  ;;  %1330 = vrot.lane.b32.xlu1 %v5608_v62, %s5458_s29 }
 0x296   : > { %1328 = vrot.lane.b32.xlu0 %v5605_v61, %s5458_s29  ;;  %v5965_v40 = vpop.trf.xlu1 }
 0x297   : > { %11453 = vst [vmem:[#allocation56_spill] sm:$0xff] %v5965_v40 }
 0x299   : > { %1342 = vperm.xlu1 %4862, %v5916_v57   ;;  %v5955_v19 = vpop.f32.mrb[48].mxu1 }
 0x29a   : > { %v884_v51 = vmax.f32 %v882_v12, %v5955_v19  ;;  %1359 = vrot.lane.b32.xlu0 %v5886_v35, %s5460_s30  ;;  %v5960_v5 = vpop.f32.mrb[49].mxu1  ;;  %v10973_v12 = vmov 2   ;;  %v5980_v40 = vpop.trf.xlu1 }
 0x29b   : > { %11452 = vst [vmem:[#allocation55_spill] sm:$0xff] %v5960_v5  ;;  %v921_v4 = vmax.f32 %v919_v11, %v5960_v5  ;;  %v5963_v6 = vpop.f32.mrb[50].mxu1  ;;  %11455 = vst [vmem:[#allocation58_spill] sm:$0xff] %v5980_v40 }
 0x29c   : > { %v885_v21 = vmax.f32 %v883_v3, %v5963_v6  ;;  %v5968_v37 = vpop.f32.mrb[51].mxu1 }
 0x29d   : > { %11454 = vst [vmem:[#allocation57_spill] sm:$0xff] %v5968_v37  ;;  %v922_v41 = vmax.f32 %v920_v31, %v5968_v37  ;;  %1357 = vrot.lane.b32.xlu1 %v5902_v58, %s5460_s30  ;;  %v5990_v37 = vld [vmem:[%s10943_s3] sm:$0xff] }
 0x29e   : > { %1363 = vrot.lane.b32.xlu0 %v5608_v62, %s5460_s30  ;;  %4863 = vset.pattern.permute.xlu1 %v10973_v12  ;;  %v6001_v48 = vpop.trf.xlu1 }
 0x29f   : > { %11458 = vst [vmem:[#allocation61_spill] sm:$0xff] %v6001_v48  ;;  %v10995_v48 = vmov 7  }
 0x2a1   : > { %1361 = vrot.lane.b32.xlu1 %v5605_v61, %s5460_s30  ;;  %v5978_v11 = vpop.f32.mrb[52].mxu1 }
 0x2a2   : > { %v886_v3 = vmax.f32 %v884_v51, %v5978_v11  ;;  %1396 = vrot.lane.b32.xlu0 %v5605_v61, %s5462_s6  ;;  %v5985_v31 = vpop.f32.mrb[53].mxu1  ;;  %v6023_v38 = vpop.trf.xlu1 }
 0x2a3   : > { %11456 = vst [vmem:[#allocation59_spill] sm:$0xff] %v5985_v31  ;;  %v923_v12 = vmax.f32 %v921_v4, %v5985_v31  ;;  %v5993_v5 = vpop.f32.mrb[54].mxu1  ;;  %11461 = vst [vmem:[#allocation64_spill] sm:$0xff] %v6023_v38 }
 0x2a4   : > { %v887_v44 = vmax.f32 %v885_v21, %v5993_v5  ;;  %v5996_v40 = vpop.f32.mrb[55].mxu1 }
 0x2a5   : > { %11457 = vst [vmem:[#allocation60_spill] sm:$0xff] %v5996_v40  ;;  %v924_v51 = vmax.f32 %v922_v41, %v5996_v40  ;;  %1371 = vperm.xlu1 %4863, %v5990_v37   ;;  %v10993_v41 = vmov 3  }
 0x2a6   : > { %1430 = vperm.xlu0 %4866, %v5916_v57   ;;  %v6039_v38 = vpop.trf.xlu1 }
 0x2a7   : > { %11463 = vst [vmem:[#allocation66_spill] sm:$0xff] %v6039_v38 }
 0x2a9   : > { %1392 = vrot.lane.b32.xlu1 %v5902_v58, %s5462_s6  ;;  %v6005_v7 = vpop.f32.mrb[56].mxu1 }
 0x2aa   : > { %v888_v4 = vmax.f32 %v886_v3, %v6005_v7  ;;  %1445 = vrot.lane.b32.xlu0 %v5605_v61, %s5463_s9  ;;  %v6010_v21 = vpop.f32.mrb[57].mxu1  ;;  %4864 = vset.pattern.permute.xlu1 %v10993_v41  ;;  %v6049_v29 = vpop.trf.xlu1 }
 0x2ab   : > { %11459 = vst [vmem:[#allocation62_spill] sm:$0xff] %v6010_v21  ;;  %v925_v40 = vmax.f32 %v923_v12, %v6010_v21  ;;  %v6014_v31 = vpop.f32.mrb[58].mxu1  ;;  %4869 = vset.pattern.permute.xlu0 %v10995_v48  ;;  %11466 = vst [vmem:[#allocation68_spill] sm:$0xff] %v6049_v29 }
 0x2ac   : > { %v889_v43 = vmax.f32 %v887_v44, %v6014_v31  ;;  %v6018_v17 = vpop.f32.mrb[59].mxu1 }
 0x2ad   : > { %11460 = vst [vmem:[#allocation63_spill] sm:$0xff] %v6018_v17  ;;  %v926_v3 = vmax.f32 %v924_v51, %v6018_v17  ;;  %1394 = vrot.lane.b32.xlu1 %v5886_v35, %s5462_s6 }
 0x2ae   : > { %1476 = vrot.lane.b32.xlu0 %v5886_v35, %s5466_s10 }
 0x2b1   : > { %1398 = vrot.lane.b32.xlu1 %v5608_v62, %s5462_s6  ;;  %v6029_v12 = vpop.f32.mrb[60].mxu1 }
 0x2b2   : > { %v890_v44 = vmax.f32 %v888_v4, %v6029_v12  ;;  %1480 = vrot.lane.b32.xlu0 %v5608_v62, %s5466_s10  ;;  %v6034_v51 = vpop.f32.mrb[61].mxu1 }
 0x2b3   : > { %11462 = vst [vmem:[#allocation65_spill] sm:$0xff] %v6034_v51  ;;  %v927_v41 = vmax.f32 %v925_v40, %v6034_v51  ;;  %v6037_v48 = vpop.f32.mrb[62].mxu1  ;;  %v11465_v51 = vmov 4  }
 0x2b4   : > { %v891_v17 = vmax.f32 %v889_v43, %v6037_v48  ;;  %v6042_v21 = vpop.f32.mrb[63].mxu1  ;;  %v6053_v43 = vpop.f32.mrb[28].mxu0 }
 0x2b5   : > { %11464 = vst [vmem:[#allocation67_spill] sm:$0xff] %v6042_v21  ;;  %v928_v23 = vmax.f32 %v926_v3, %v6042_v21  ;;  %1410 = vperm.xlu1 %4864, %v5916_v57   ;;  %11467 = vst [vmem:[#allocation69_spill] sm:$0xff] %v6053_v43 }
 0x2b6   : > { %v892_v4 = vmax.f32 %v890_v44, %v891_v17  ;;  %1513 = vrot.lane.b32.xlu0 %v5605_v61, %s5467_s11  ;;  %v6055_v17 = vpop.f32.mrb[29].mxu0 }
 0x2b7   : > { %v929_v26 = vmax.f32 %v927_v41, %v928_v23  ;;  %11468 = vst [vmem:[#allocation70_spill] sm:$0xff] %v6055_v17  ;;  %v6057_v21 = vpop.f32.mrb[30].mxu0 }
 0x2b8   : > { %v893_v0 = vrot.slane %v892_v4, 4  ;;  %11469 = vst [vmem:[#allocation71_spill] sm:$0xff] %v6057_v21  ;;  %v6059_v41 = vpop.f32.mrb[31].mxu0 }
 0x2b9   : > { %v930_v40 = vrot.slane %v929_v26, 4  ;;  %4865 = vset.pattern.permute.xlu1 %v11465_v51  ;;  %11470 = vst [vmem:[#allocation72_spill] sm:$0xff] %v6059_v41 }
 0x2ba   : > { %v894_v38 = vmax.f32 %v892_v4, %v893_v0  ;;  %1523 = vperm.xlu0 %4869, %v5990_v37   ;;  %1426 = vperm.xlu1 %4865, %v5990_v37   ;;  %v11015_v4 = vmov 5  }
 0x2bb   : > { %v931_v3 = vmax.f32 %v929_v26, %v930_v40  ;;  %v6066_v26 = vpop.trf.xlu1 }
 0x2bc   : > { %v895_v44 = vrot.slane %v894_v38, 2  ;;  %11471 = vst [vmem:[#allocation73_spill] sm:$0xff] %v6066_v26 }
 0x2bd   : > { %v932_v23 = vrot.slane %v931_v3, 2 }
 0x2be   : > { %v896_v24 = vmax.f32 %v894_v38, %v895_v44  ;;  %1544 = vrot.lane.b32.xlu0 %v5886_v35, %s5468_s12  ;;  %1441 = vrot.lane.b32.xlu1 %v5902_v58, %s5463_s9  ;;  %v6076_v38 = vadd.f32 %v5616_v13, %v5733_v30 }
 0x2bf   : > { %v933_v0 = vmax.f32 %v931_v3, %v932_v23  ;;  %4867 = vset.pattern.permute.xlu1 %v11015_v4 }
 0x2c0   : > { %v897_v40 = vrot.slane %v896_v24, 1  ;;  %11472 = vst [vmem:[#allocation74_spill] sm:$0xff] %v6076_v38 }
 0x2c1   : > { %v934_v29 = vrot.slane %v933_v0, 1 }
 0x2c2   : > { %v6068_v21 = vmax.f32 %v896_v24, %v897_v40  ;;  %1548 = vrot.lane.b32.xlu0 %v5608_v62, %s5468_s12  ;;  %1443 = vrot.lane.b32.xlu1 %v5886_v35, %s5463_s9 }
 0x2c3   : > { %v6078_v3 = vmax.f32 %v933_v0, %v934_v29  ;;  %v6096_v29 = vpop.permute.xlu1 %334 }
 0x2c4   : > { %v936_v44 = vsub.f32 %v5756_v45, %v6068_v21  ;;  %v938_v23 = vsub.f32 %v5760_v47, %v6068_v21  ;;  %v940_v24 = vsub.f32 %v5766_v50, %v6068_v21  ;;  %v942_v40 = vsub.f32 %v5774_v55, %v6068_v21  ;;  %11473 = vst [vmem:[#allocation75_spill] sm:$0xff] %v6096_v29 }
 0x2c5   : > { %v944_v4 = vsub.f32 %v5784_v2, %v6068_v21  ;;  %v946_v13 = vsub.f32 %v5792_v22, %v6068_v21  ;;  %v948_v30 = vsub.f32 %v5800_v27, %v6068_v21  ;;  %v950_v45 = vsub.f32 %v5806_v52, %v6068_v21 }
 0x2c6   : > { %v952_v47 = vsub.f32 %v5814_v1, %v6068_v21  ;;  %v954_v50 = vsub.f32 %v5820_v20, %v6068_v21  ;;  %v956_v55 = vsub.f32 %v5828_v28, %v6068_v21  ;;  %v958_v2 = vsub.f32 %v5834_v18, %v6068_v21  ;;  %1447 = vrot.lane.b32.xlu1 %v5608_v62, %s5463_s9 }
 0x2c7   : > { %v960_v22 = vsub.f32 %v5840_v49, %v6068_v21  ;;  %v962_v27 = vsub.f32 %v5846_v63, %v6068_v21  ;;  %v964_v52 = vsub.f32 %v5852_v25, %v6068_v21  ;;  %v966_v20 = vsub.f32 %v5858_v46, %v6068_v21  ;;  %2321 = vrot.lane.b32.xlu0 %v6076_v38, %s5456_s26 }
 0x2c8   : > { %v968_v18 = vsub.f32 %v5864_v42, %v6068_v21  ;;  %v970_v1 = vsub.f32 %v5870_v39, %v6068_v21  ;;  %v972_v28 = vsub.f32 %v5879_v36, %v6068_v21  ;;  %v974_v49 = vsub.f32 %v5889_v10, %v6068_v21 }
 0x2c9   : > { %v976_v63 = vsub.f32 %v5906_v59, %v6068_v21  ;;  %v978_v46 = vsub.f32 %v5919_v56, %v6068_v21  ;;  %v980_v25 = vsub.f32 %v5933_v54, %v6068_v21  ;;  %v982_v42 = vsub.f32 %v5942_v8, %v6068_v21  ;;  %v6143_v56 = vpop.permute.xlu1 %344 }
 0x2ca   : > { %1459 = vperm.xlu1 %4867, %v5916_v57   ;;  %11474 = vst [vmem:[#allocation76_spill] sm:$0xff] %v6143_v56  ;;  %v1000_v59 = vmul.f32 1.442695, %v936_v44  ;;  %v1004_v10 = vmul.f32 1.442695, %v938_v23  ;;  %v6159_v54 = vadd.f32 %v5620_v15, %v5737_v32  ;;  %v11018_v23 = vmov 6  }
 0x2cb   : > { %2325 = vrot.lane.b32.xlu0 %v5741_v33, %s5456_s26  ;;  %v1008_v39 = vmul.f32 1.442695, %v940_v24  ;;  %v1012_v8 = vmul.f32 1.442695, %v942_v40  ;;  %v1016_v26 = vmul.f32 1.442695, %v944_v4  ;;  %v6170_v24 = vpop.permute.xlu0 %339  ;;  %v11511_v29 = vsub.f32 %v5955_v19, %v6068_v21 }
 0x2cc   : > { %11475 = vst [vmem:[#allocation77_spill] sm:$0xff] %v6159_v54  ;;  %4915 = vpow2.f32 %v1000_v59  ;;  %v1020_v44 = vmul.f32 1.442695, %v946_v13  ;;  %v1024_v15 = vmul.f32 1.442695, %v948_v30  ;;  %11477 = vst [vmem:[#allocation79_spill] sm:$0xff] %v6170_v24  ;;  %v11513_v51 = vsub.f32 %v5963_v6, %v6068_v21 }
 0x2cd   : > { %4917 = vpow2.f32 %v1004_v10  ;;  %v6168_v32 = vpop.trf.xlu1  ;;  %v1028_v40 = vmul.f32 1.442695, %v950_v45  ;;  %v1032_v4 = vmul.f32 1.442695, %v952_v47  ;;  %v1036_v59 = vmul.f32 1.442695, %v954_v50 }
 0x2ce   : > { %1474 = vrot.lane.b32.xlu1 %v5902_v58, %s5466_s10  ;;  %4919 = vpow2.f32 %v1008_v39  ;;  %11476 = vst [vmem:[#allocation78_spill] sm:$0xff] %v6168_v32  ;;  %v1040_v0 = vmul.f32 1.442695, %v956_v55  ;;  %v1044_v10 = vmul.f32 1.442695, %v958_v2  ;;  %v11515_v6 = vsub.f32 %v5993_v5, %v6068_v21 }
 0x2cf   : > { %2357 = vrot.lane.b32.xlu0 %v6159_v54, %s5458_s29  ;;  %4868 = vset.pattern.permute.xlu1 %v11018_v23  ;;  %4921 = vpow2.f32 %v1012_v8  ;;  %v1048_v13 = vmul.f32 1.442695, %v960_v22  ;;  %v1052_v56 = vmul.f32 1.442695, %v962_v27  ;;  %v1056_v23 = vmul.f32 1.442695, %v964_v52  ;;  %v6184_v55 = vpop.trf.xlu0 }
 0x2d0   : > { %4923 = vpow2.f32 %v1016_v26  ;;  %v1060_v39 = vmul.f32 1.442695, %v966_v20  ;;  %v1064_v30 = vmul.f32 1.442695, %v968_v18  ;;  %v1068_v8 = vmul.f32 1.442695, %v970_v1 }
 0x2d1   : > { %4925 = vpow2.f32 %v1020_v44  ;;  %v6176_v45 = vmul.f32 1.442695, %v972_v28  ;;  %v6178_v26 = vmul.f32 1.442695, %v974_v49  ;;  %v6180_v47 = vmul.f32 1.442695, %v976_v63  ;;  %v6193_v52 = vpop.trf.xlu1 }
 0x2d2   : > { %1478 = vrot.lane.b32.xlu1 %v5605_v61, %s5466_s10  ;;  %4927 = vpow2.f32 %v1024_v15  ;;  %v6182_v50 = vmul.f32 1.442695, %v978_v46  ;;  %11478 = vst [vmem:[#allocation80_spill] sm:$0xff] %v6184_v55  ;;  %v6186_v2 = vmul.f32 1.442695, %v980_v25  ;;  %11479 = vst [vmem:[#allocation81_spill] sm:$0xff] %v6193_v52 }
 0x2d3   : > { %2361 = vrot.lane.b32.xlu0 %v5745_v34, %s5458_s29  ;;  %4929 = vpow2.f32 %v1028_v40  ;;  %v6188_v22 = vmul.f32 1.442695, %v982_v42  ;;  %v11480_v1 = vld [vmem:[#allocation30_spill] sm:$0xff]  ;;  %v11481_v63 = vld [vmem:[#allocation32_spill] sm:$0xff]  ;;  %v11482_v25 = vld [vmem:[#allocation33_spill] sm:$0xff]  ;;  %v11492_v46 = vmov 7   ;;  %v6240_v36 = vpop.trf.xlu0 }
 0x2d4   : > { %4931 = vpow2.f32 %v1032_v4  ;;  %v11483_v44 = vld [vmem:[#allocation35_spill] sm:$0xff]  ;;  %v11484_v4 = vld [vmem:[#allocation36_spill] sm:$0xff]  ;;  %v11485_v28 = vld [vmem:[#allocation37_spill] sm:$0xff]  ;;  %11493 = vst [vmem:[#allocation30_spill] sm:$0xff] %v6240_v36 }
 0x2d5   : > { %4933 = vpow2.f32 %v1036_v59  ;;  %v11487_v15 = vld [vmem:[#allocation39_spill] sm:$0xff]  ;;  %v11489_v20 = vld [vmem:[#allocation41_spill] sm:$0xff]  ;;  %v11494_v18 = vld [vmem:[#allocation44_spill] sm:$0xff]  ;;  %v6249_v24 = vpop.trf.xlu1 }
 0x2d6   : > { %1488 = vperm.xlu1 %4868, %v5990_v37   ;;  %v6203_v49 = vpop.eup %4915  ;;  %4935 = vpow2.f32 %v1040_v0  ;;  %v11486_v0 = vld [vmem:[#allocation38_spill] sm:$0xff]  ;;  %11496 = vst [vmem:[#allocation32_spill] sm:$0xff] %v6249_v24  ;;  %v11507_v36 = vld [vmem:[#allocation63_spill] sm:$0xff] }
 0x2d7   : > { %2391 = vrot.lane.b32.xlu0 %v5741_v33, %s5460_s30  ;;  %v6211_v40 = vpop.eup %4917  ;;  %4937 = vpow2.f32 %v1044_v10  ;;  %v11488_v10 = vld [vmem:[#allocation40_spill] sm:$0xff] }
 0x2d8   : > { %v6219_v27 = vpop.eup %4919  ;;  %4939 = vpow2.f32 %v1048_v13  ;;  %v1128_v42 = vadd.f32 %v6211_v40, %v6203_v49  ;;  %v11490_v13 = vld [vmem:[#allocation42_spill] sm:$0xff] }
 0x2d9   : > { %v6229_v59 = vpop.eup %4921  ;;  %4941 = vpow2.f32 %v1052_v56 }
 0x2da   : > { %1509 = vrot.lane.b32.xlu1 %v5902_v58, %s5467_s11  ;;  %v6242_v41 = vpop.eup %4923  ;;  %4943 = vpow2.f32 %v1056_v23  ;;  %v1129_v56 = vadd.f32 %v6219_v27, %v1128_v42  ;;  %v11506_v42 = vld [vmem:[#allocation62_spill] sm:$0xff] }
 0x2db   : > { %2421 = vrot.lane.b32.xlu0 %v6159_v54, %s5462_s6  ;;  %4870 = vset.pattern.permute.xlu1 %v11492_v46  ;;  %v6251_v55 = vpop.eup %4925  ;;  %4945 = vpow2.f32 %v1060_v39 }
 0x2dc   : > { %v6259_v32 = vpop.eup %4927  ;;  %4947 = vpow2.f32 %v1064_v30  ;;  %v1130_v43 = vadd.f32 %v6229_v59, %v1129_v56  ;;  %v11508_v56 = vld [vmem:[#allocation65_spill] sm:$0xff]  ;;  %v6306_v30 = vpop.trf.xlu1 }
 0x2dd   : > { %v6268_v17 = vpop.eup %4929  ;;  %4949 = vpow2.f32 %v1068_v8  ;;  %v11505_v8 = vld [vmem:[#allocation60_spill] sm:$0xff]  ;;  %11512 = vst [vmem:[#allocation35_spill] sm:$0xff] %v6306_v30 }
 0x2de   : > { %1511 = vrot.lane.b32.xlu1 %v5886_v35, %s5467_s11  ;;  %v6278_v24 = vpop.eup %4931  ;;  %4951 = vpow2.f32 %v6176_v45  ;;  %v1131_v39 = vadd.f32 %v6242_v41, %v1130_v43  ;;  %v11509_v45 = vld [vmem:[#allocation67_spill] sm:$0xff]  ;;  %v6295_v43 = vpop.trf.xlu0  ;;  %v1096_v35 = vmul.f32 1.442695, %v11511_v29  ;;  %v11514_v29 = vsub.f32 %v5978_v11, %v6068_v21 }
 0x2df   : > { %2425 = vrot.lane.b32.xlu0 %v5745_v34, %s5462_s6  ;;  %v6286_v52 = vpop.eup %4933  ;;  %4953 = vpow2.f32 %v6178_v26  ;;  %11510 = vst [vmem:[#allocation33_spill] sm:$0xff] %v6295_v43  ;;  %v1100_v43 = vmul.f32 1.442695, %v11513_v51  ;;  %v1108_v51 = vmul.f32 1.442695, %v11515_v6 }
 0x2e0   : > { %v6297_v46 = vpop.eup %4935  ;;  %4955 = vpow2.f32 %v6180_v47  ;;  %v1132_v26 = vadd.f32 %v6251_v55, %v1131_v39  ;;  %v1104_v47 = vmul.f32 1.442695, %v11514_v29  ;;  %v6351_v6 = vpop.trf.xlu1 }
 0x2e1   : > { %v6308_v23 = vpop.eup %4937  ;;  %4957 = vpow2.f32 %v6182_v50  ;;  %11521 = vst [vmem:[#allocation38_spill] sm:$0xff] %v6351_v6 }
 0x2e2   : > { %1515 = vrot.lane.b32.xlu1 %v5608_v62, %s5467_s11  ;;  %v6316_v19 = vpop.eup %4939  ;;  %4959 = vpow2.f32 %v6186_v2  ;;  %v1133_v39 = vadd.f32 %v6259_v32, %v1132_v26  ;;  %v11516_v2 = vsub.f32 %v6005_v7, %v6068_v21  ;;  %v6343_v5 = vpop.trf.xlu0  ;;  %v11520_v7 = vsub.f32 %v6029_v12, %v6068_v21 }
 0x2e3   : > { %2467 = vrot.lane.b32.xlu0 %v6076_v38, %s5463_s9  ;;  %v6323_v30 = vpop.eup %4941  ;;  %4961 = vpow2.f32 %v6188_v22  ;;  %v11517_v22 = vsub.f32 %v6014_v31, %v6068_v21  ;;  %11518 = vst [vmem:[#allocation36_spill] sm:$0xff] %v6343_v5  ;;  %v11523_v31 = vsub.f32 %v6037_v48, %v6068_v21  ;;  %v11525_v12 = vsub.f32 %v5758_v14, %v6078_v3 }
 0x2e4   : > { %v6329_v50 = vpop.eup %4943  ;;  %4963 = vpow2.f32 %v1096_v35  ;;  %v1112_v62 = vmul.f32 1.442695, %v11516_v2  ;;  %v1134_v11 = vadd.f32 %v6268_v17, %v1133_v39  ;;  %v1120_v39 = vmul.f32 1.442695, %v11520_v7 }
 0x2e5   : > { %v6336_v26 = vpop.eup %4945  ;;  %4965 = vpow2.f32 %v1100_v43  ;;  %v1116_v29 = vmul.f32 1.442695, %v11517_v22  ;;  %v1124_v2 = vmul.f32 1.442695, %v11523_v31  ;;  %v1002_v7 = vmul.f32 1.442695, %v11525_v12 }
 0x2e6   : > { %1527 = vperm.xlu1 %4870, %v5916_v57   ;;  %v6345_v35 = vpop.eup %4947  ;;  %4967 = vpow2.f32 %v1104_v47  ;;  %v1135_v57 = vadd.f32 %v6278_v24, %v1134_v11  ;;  %v11528_v21 = vsub.f32 %v5770_v53, %v6078_v3  ;;  %v11530_v12 = vsub.f32 %v5787_v9, %v6078_v3 }
 0x2e7   : > { %2471 = vrot.lane.b32.xlu0 %v5741_v33, %s5463_s9  ;;  %11519 = vst [vmem:[#allocation37_spill] sm:$0xff] %v6345_v35  ;;  %v6353_v43 = vpop.eup %4949  ;;  %4969 = vpow2.f32 %v1108_v51  ;;  %v11527_v51 = vsub.f32 %v5762_v16, %v6078_v3 }
 0x2e8   : > { %11522 = vst [vmem:[#allocation39_spill] sm:$0xff] %v6353_v43  ;;  %v6358_v22 = vpop.eup %4951  ;;  %4971 = vpow2.f32 %v1112_v62  ;;  %v1136_v47 = vadd.f32 %v6286_v52, %v1135_v57  ;;  %v1010_v62 = vmul.f32 1.442695, %v11528_v21  ;;  %v11025_v57 = vmov 8  }
 0x2e9   : > { %11524 = vst [vmem:[#allocation40_spill] sm:$0xff] %v6358_v22  ;;  %v6366_v11 = vpop.eup %4953  ;;  %4973 = vpow2.f32 %v1116_v29  ;;  %v1006_v48 = vmul.f32 1.442695, %v11527_v51  ;;  %v11529_v29 = vsub.f32 %v5778_v60, %v6078_v3  ;;  %v1018_v53 = vmul.f32 1.442695, %v11530_v12 }
 0x2ea   : > { %1542 = vrot.lane.b32.xlu1 %v5902_v58, %s5468_s12  ;;  %11526 = vst [vmem:[#allocation41_spill] sm:$0xff] %v6366_v11  ;;  %v6377_v14 = vpop.eup %4955  ;;  %4975 = vpow2.f32 %v1120_v39  ;;  %v1137_v31 = vadd.f32 %v6297_v46, %v1136_v47  ;;  %v11531_v21 = vsub.f32 %v11480_v1, %v6078_v3  ;;  %v11532_v39 = vsub.f32 %v11481_v63, %v6078_v3 }
 0x2eb   : > { %2501 = vrot.lane.b32.xlu0 %v6159_v54, %s5466_s10  ;;  %4871 = vset.pattern.permute.xlu1 %v11025_v57  ;;  %v1014_v16 = vmul.f32 1.442695, %v11529_v29  ;;  %v6386_v51 = vpop.eup %4957  ;;  %4977 = vpow2.f32 %v1124_v2  ;;  %v11533_v47 = vsub.f32 %v11482_v25, %v6078_v3  ;;  %v6397_v29 = vpop.trf.xlu0  ;;  %v11535_v2 = vsub.f32 %v11483_v44, %v6078_v3 }
 0x2ec   : > { %v1022_v57 = vmul.f32 1.442695, %v11531_v21  ;;  %v1026_v6 = vmul.f32 1.442695, %v11532_v39  ;;  %11534 = vst [vmem:[#allocation42_spill] sm:$0xff] %v6397_v29  ;;  %v6399_v5 = vpop.eup %4959  ;;  %v1138_v9 = vadd.f32 %v6308_v23, %v1137_v31  ;;  %4979 = vpow2.f32 %v1002_v7  ;;  %v6410_v25 = vpop.trf.xlu1 }
 0x2ed   : > { %v1030_v60 = vmul.f32 1.442695, %v11533_v47  ;;  %v1034_v1 = vmul.f32 1.442695, %v11535_v2  ;;  %v11536_v12 = vsub.f32 %v11484_v4, %v6078_v3  ;;  %11537 = vst [vmem:[#allocation44_spill] sm:$0xff] %v6410_v25  ;;  %v6412_v21 = vpop.eup %4961  ;;  %4981 = vpow2.f32 %v1006_v48  ;;  %v6466_v48 = vld [vmem:[%s10943_s3 + $0x10] sm:$0xff] }
 0x2ee   : > { %1546 = vrot.lane.b32.xlu1 %v5605_v61, %s5468_s12  ;;  %v6422_v4 = vpop.eup %4963  ;;  %v1139_v39 = vadd.f32 %v6316_v19, %v1138_v9  ;;  %4983 = vpow2.f32 %v1010_v62  ;;  %v11542_v25 = vsub.f32 %v11487_v15, %v6078_v3  ;;  %v11545_v15 = vsub.f32 %v11489_v20, %v6078_v3 }
 0x2ef   : > { %v1038_v63 = vmul.f32 1.442695, %v11536_v12  ;;  %2505 = vrot.lane.b32.xlu0 %v5745_v34, %s5466_s10  ;;  %v6429_v2 = vpop.eup %4965  ;;  %4985 = vpow2.f32 %v1014_v16  ;;  %v6449_v7 = vpop.trf.xlu0 }
 0x2f0   : > { %v6437_v9 = vpop.eup %4967  ;;  %v1140_v62 = vadd.f32 %v6323_v30, %v1139_v39  ;;  %4987 = vpow2.f32 %v1018_v53  ;;  %11538 = vst [vmem:[#allocation60_spill] sm:$0xff] %v6449_v7  ;;  %v6471_v39 = vpop.trf.xlu1  ;;  %v1050_v7 = vmul.f32 1.442695, %v11542_v25  ;;  %v1058_v25 = vmul.f32 1.442695, %v11545_v15  ;;  %v11547_v53 = vld [vmem:[#allocation43_spill] sm:$0xff] }
 0x2f1   : > { %v6445_v12 = vpop.eup %4969  ;;  %4989 = vpow2.f32 %v1022_v57  ;;  %v11539_v57 = vsub.f32 %v11485_v28, %v6078_v3  ;;  %11540 = vst [vmem:[#allocation62_spill] sm:$0xff] %v6471_v39  ;;  %v11541_v28 = vsub.f32 %v11486_v0, %v6078_v3  ;;  %v11543_v39 = vmov 0  }
 0x2f2   : > { %1556 = vperm.xlu1 %4871, %v5990_v37   ;;  %v6457_v47 = vpop.eup %4971  ;;  %v1141_v16 = vadd.f32 %v6329_v50, %v1140_v62  ;;  %4991 = vpow2.f32 %v1026_v6  ;;  %v1577_v37 = vld [vmem:[%s10944_s4] sm:$0xff]  ;;  %v11544_v0 = vsub.f32 %v11488_v10, %v6078_v3 }
 0x2f3   : > { %2535 = vrot.lane.b32.xlu0 %v5741_v33, %s5467_s11  ;;  %v1042_v44 = vmul.f32 1.442695, %v11539_v57  ;;  %v6475_v62 = vpop.eup %4973  ;;  %4993 = vpow2.f32 %v1030_v60  ;;  %v1046_v6 = vmul.f32 1.442695, %v11541_v28  ;;  %v1578_v28 = vld [vmem:[%s10944_s4 + $0x8] sm:$0xff]  ;;  %v6510_v61 = vpop.trf.xlu0 }
 0x2f4   : > { %v6480_v57 = vpop.eup %4975  ;;  %v1142_v31 = vadd.f32 %v6336_v26, %v1141_v16  ;;  %4995 = vpow2.f32 %v1034_v1  ;;  %v1054_v60 = vmul.f32 1.442695, %v11544_v0  ;;  %11549 = vst [vmem:[#allocation63_spill] sm:$0xff] %v6510_v61  ;;  %v11556_v61 = vld [vmem:[#allocation49_spill] sm:$0xff] }
 0x2f5   : > { %v6489_v29 = vpop.eup %4977  ;;  %4997 = vpow2.f32 %v1038_v63 }
 0x2f6   : > { %4872 = vset.pattern.permute.xlu1 %v11543_v39  ;;  %v4980_v1 = vpop.eup %4979  ;;  %v1143_v16 = vadd.f32 %v6345_v35, %v1142_v31  ;;  %4999 = vpow2.f32 %v1042_v44  ;;  %v11548_v31 = vsub.f32 %v11547_v53, %v6078_v3  ;;  %v6513_v35 = vpop.trf.xlu1 }
 0x2f7   : > { %2544 = vperm.xlu0 %4869, %v6466_v48   ;;  %1581 = vperm.xlu1 %4872, %v1577_v37   ;;  %v4982_v10 = vpop.eup %4981  ;;  %5001 = vpow2.f32 %v1046_v6  ;;  %v11546_v37 = vsub.f32 %v11490_v13, %v6078_v3  ;;  %11550 = vst [vmem:[#allocation65_spill] sm:$0xff] %v6513_v35  ;;  %v11551_v13 = vsub.f32 %v11494_v18, %v6078_v3  ;;  %v11554_v35 = vld [vmem:[#allocation47_spill] sm:$0xff] }
 0x2f8   : > { %v1066_v44 = vmul.f32 1.442695, %v11548_v31  ;;  %v4984_v20 = vpop.eup %4983  ;;  %v1144_v15 = vadd.f32 %v6353_v43, %v1143_v16  ;;  %5003 = vpow2.f32 %v1050_v7  ;;  %v1165_v39 = vadd.f32 %v4982_v10, %v4980_v1 }
 0x2f9   : > { %v1062_v0 = vmul.f32 1.442695, %v11546_v37  ;;  %v1205_v58 = vpack.c.bf16 %v4982_v10, %v4980_v1  ;;  %v4986_v63 = vpop.eup %4985  ;;  %5005 = vpow2.f32 %v1054_v60  ;;  %v1070_v6 = vmul.f32 1.442695, %v11551_v13  ;;  %v11552_v37 = vld [vmem:[#allocation45_spill] sm:$0xff] }
 0x2fa   : > { %v11553_v53 = vsub.f32 %v11552_v37, %v6078_v3  ;;  %v4988_v16 = vpop.eup %4987  ;;  %v1145_v7 = vadd.f32 %v6358_v22, %v1144_v15  ;;  %5007 = vpow2.f32 %v1058_v25  ;;  %v1166_v1 = vadd.f32 %v4984_v20, %v1165_v39 }
 0x2fb   : > { %2565 = vrot.lane.b32.xlu0 %v6159_v54, %s5468_s12  ;;  %1586 = vperm.xlu1 %4872, %v1578_v28   ;;  %v1207_v10 = vpack.c.bf16 %v4986_v63, %v4984_v20  ;;  %v4990_v60 = vpop.eup %4989  ;;  %5009 = vpow2.f32 %v1062_v0  ;;  %v11555_v18 = vsub.f32 %v11554_v35, %v6078_v3  ;;  %v11557_v37 = vsub.f32 %v11556_v61, %v6078_v3  ;;  %v11559_v20 = vld [vmem:[#allocation50_spill] sm:$0xff] }
 0x2fc   : > { %v1074_v31 = vmul.f32 1.442695, %v11553_v53  ;;  %1236 = vmatprep.subr.bf16.mxu0 %v1205_v58  ;;  %v11558_v28 = vpack.c.bf16 %v6211_v40, %v6203_v49  ;;  %v4992_v43 = vpop.eup %4991  ;;  %v1146_v25 = vadd.f32 %v6366_v11, %v1145_v7  ;;  %5011 = vpow2.f32 %v1066_v44  ;;  %v6544_v49 = vpop.trf.xlu0 }
 0x2fd   : > { %v1078_v13 = vmul.f32 1.442695, %v11555_v18  ;;  %v1082_v53 = vmul.f32 1.442695, %v11557_v37  ;;  %v1167_v58 = vadd.f32 %v4986_v63, %v1166_v1  ;;  %v1209_v39 = vpack.c.bf16 %v4990_v60, %v4988_v16  ;;  %v4994_v0 = vpop.eup %4993  ;;  %v11561_v18 = vld [vmem:[#allocation52_spill] sm:$0xff]  ;;  %11563 = vst [vmem:[#allocation67_spill] sm:$0xff] %v6544_v49 }
 0x2fe   : > { %1237 = vmatpush1.bf16.msra.mxu0 %v11558_v28  ;;  %5013 = vpow2.f32 %v1070_v6  ;;  %v11560_v35 = vsub.f32 %v11559_v20, %v6078_v3  ;;  %v11562_v61 = vsub.f32 %v11561_v18, %v6078_v3  ;;  %v6546_v40 = vpop.eup %4995  ;;  %v1147_v63 = vadd.f32 %v6377_v14, %v1146_v25  ;;  %v11565_v28 = vld [vmem:[#allocation16_spill] sm:$0xff]  ;;  %v11569_v49 = vld [vmem:[#allocation55_spill] sm:$0xff] }
 0x2ff   : > { %1238 = vmatprep.subr.bf16.mxu0 %v1207_v10  ;;  %2569 = vrot.lane.b32.xlu0 %v5745_v34, %s5468_s12  ;;  %5015 = vpow2.f32 %v1074_v31  ;;  %v1168_v44 = vadd.f32 %v4988_v16, %v1167_v58  ;;  %v1211_v6 = vpack.c.bf16 %v4994_v0, %v4992_v43  ;;  %v4998_v1 = vpop.eup %4997  ;;  %v11564_v10 = vld [vmem:[#allocation75_spill] sm:$0xff]  ;;  %v11570_v22 = vsub.f32 %v11569_v49, %v6078_v3 }
 0x300   : > { %v1086_v15 = vmul.f32 1.442695, %v11560_v35  ;;  %v1090_v37 = vmul.f32 1.442695, %v11562_v61  ;;  %2323 = vrot.lane.b32.xlu1 %v6159_v54, %s5456_s26  ;;  %v6549_v7 = vpop.permute.xlu1 %359  ;;  %v6553_v20 = vadd.f32 %v11565_v28, %v11564_v10  ;;  %5017 = vpow2.f32 %v1078_v13  ;;  %v11567_v35 = vld [vmem:[#allocation53_spill] sm:$0xff]  ;;  %v6564_v16 = vpop.eup %4999 }
 0x301   : > { %v11568_v18 = vsub.f32 %v11567_v35, %v6078_v3  ;;  %v1098_v11 = vmul.f32 1.442695, %v11570_v22  ;;  %v11571_v31 = vpack.c.bf16 %v6229_v59, %v6219_v27  ;;  %v1148_v25 = vadd.f32 %v6386_v51, %v1147_v63  ;;  %v6568_v28 = vpop.eup %5001  ;;  %v11572_v35 = vld [vmem:[#allocation57_spill] sm:$0xff] }
 0x302   : > { %11566 = vst [vmem:[#allocation43_spill] sm:$0xff] %v6553_v20  ;;  %5019 = vpow2.f32 %v1082_v53  ;;  %v1169_v58 = vadd.f32 %v4990_v60, %v1168_v44  ;;  %v1213_v13 = vpack.c.bf16 %v4998_v1, %v6546_v40  ;;  %v11573_v49 = vsub.f32 %v11572_v35, %v6078_v3  ;;  %v6580_v60 = vpop.eup %5003  ;;  %v6590_v44 = vld [vmem:[%s10943_s3 + $0x18] sm:$0xff] }
 0x303   : > { %v1094_v61 = vmul.f32 1.442695, %v11568_v18  ;;  %1239 = vmatpush1.bf16.msra.mxu0 %v11571_v31  ;;  %5021 = vpow2.f32 %v1086_v15  ;;  %v11574_v18 = vld [vmem:[#allocation59_spill] sm:$0xff]  ;;  %3339 = vrot.lane.b32.xlu0 %v6553_v20, %s5456_s26  ;;  %v1149_v53 = vadd.f32 %v6399_v5, %v1148_v25  ;;  %v1215_v15 = vpack.c.bf16 %v6568_v28, %v6564_v16  ;;  %v6592_v31 = vpop.eup %5005  ;;  %v11577_v35 = vld [vmem:[#allocation17_spill] sm:$0xff] }
 0x304   : > { %1240 = vmatprep.subr.bf16.mxu0 %v1209_v39  ;;  %v1102_v22 = vmul.f32 1.442695, %v11573_v49  ;;  %v11575_v27 = vsub.f32 %v11574_v18, %v6078_v3  ;;  %2327 = vrot.lane.b32.xlu1 %v5745_v34, %s5456_s26  ;;  %5023 = vpow2.f32 %v1090_v37  ;;  %v1170_v39 = vadd.f32 %v4992_v43, %v1169_v58  ;;  %v6585_v63 = vpop.permute.xlu1 %1289 }
 0x305   : > { %11576 = vst [vmem:[#allocation45_spill] sm:$0xff] %v6585_v63  ;;  %v6596_v49 = vadd.f32 %v11577_v35, %v11564_v10  ;;  %5025 = vpow2.f32 %v1094_v61  ;;  %v11579_v43 = vsub.f32 %v11505_v8, %v6078_v3  ;;  %v11580_v25 = vsub.f32 %v11506_v42, %v6078_v3  ;;  %v6609_v63 = vpop.eup %5007 }
 0x306   : > { %v1106_v59 = vmul.f32 1.442695, %v11575_v27  ;;  %v11581_v18 = vpack.c.bf16 %v6251_v55, %v6242_v41  ;;  %v6607_v27 = vpop.permute.xlu0 %354  ;;  %v1150_v10 = vadd.f32 %v6412_v21, %v1149_v53  ;;  %5027 = vpow2.f32 %v1098_v11  ;;  %v6614_v35 = vpop.eup %5009 }
 0x307   : > { %11578 = vst [vmem:[#allocation47_spill] sm:$0xff] %v6596_v49  ;;  %v1110_v37 = vmul.f32 1.442695, %v11579_v43  ;;  %v1114_v58 = vmul.f32 1.442695, %v11580_v25  ;;  %v1171_v61 = vadd.f32 %v4994_v0, %v1170_v39  ;;  %v1217_v8 = vpack.c.bf16 %v6592_v31, %v6580_v60  ;;  %v11584_v25 = vld [vmem:[#allocation70_spill] sm:$0xff]  ;;  %3343 = vrot.lane.b32.xlu0 %v6596_v49, %s5456_s26  ;;  %v6629_v11 = vpop.eup %5011 }
 0x308   : > { %1241 = vmatpush1.bf16.msra.mxu0 %v11581_v18  ;;  %5029 = vpow2.f32 %v1102_v22  ;;  %v11582_v42 = vsub.f32 %v11507_v36, %v6078_v3  ;;  %v11583_v55 = vsub.f32 %v11508_v56, %v6078_v3  ;;  %v6624_v53 = vadd.f32 %v11584_v25, %v6607_v27  ;;  %2340 = vperm.xlu1 %4872, %v6590_v44   ;;  %v6637_v22 = vpop.eup %5013  ;;  %v11586_v39 = vld [vmem:[#allocation79_spill] sm:$0xff]  ;;  %v11587_v18 = vld [vmem:[#allocation18_spill] sm:$0xff] }
 0x309   : > { %1242 = vmatprep.subr.bf16.mxu0 %v1211_v6  ;;  %v1151_v0 = vadd.f32 %v6422_v4, %v1150_v10  ;;  %5031 = vpow2.f32 %v1106_v59  ;;  %v1172_v36 = vadd.f32 %v6546_v40, %v1171_v61  ;;  %v6635_v6 = vpop.permute.xlu1 %1293  ;;  %v11590_v59 = vpack.c.bf16 %v6268_v17, %v6259_v32  ;;  %v6651_v10 = vpop.eup %5015 }
 0x30a   : > { %v1118_v41 = vmul.f32 1.442695, %v11582_v42  ;;  %v1122_v43 = vmul.f32 1.442695, %v11583_v55  ;;  %11585 = vst [vmem:[#allocation49_spill] sm:$0xff] %v6624_v53  ;;  %v6641_v42 = vadd.f32 %v11587_v18, %v11586_v39  ;;  %5033 = vpow2.f32 %v1110_v37  ;;  %v6649_v40 = vpop.permute.xlu0 %1287  ;;  %v6656_v18 = vpop.eup %5017 }
 0x30b   : > { %v11589_v55 = vsub.f32 %v11509_v45, %v6078_v3  ;;  %11591 = vst [vmem:[#allocation52_spill] sm:$0xff] %v6649_v40  ;;  %v1152_v61 = vadd.f32 %v6429_v2, %v1151_v0  ;;  %5035 = vpow2.f32 %v1114_v58  ;;  %v1173_v56 = vadd.f32 %v4998_v1, %v1172_v36 }
 0x30c   : > { %11588 = vst [vmem:[#allocation50_spill] sm:$0xff] %v6641_v42  ;;  %1243 = vmatpush1.bf16.msra.mxu0 %v11590_v59  ;;  %5037 = vpow2.f32 %v1118_v41  ;;  %3375 = vrot.lane.b32.xlu0 %v6641_v42, %s5458_s29  ;;  %v6662_v17 = vpop.eup %5019  ;;  %v11593_v41 = vld [vmem:[#allocation19_spill] sm:$0xff]  ;;  %v11595_v36 = vpack.c.bf16 %v6286_v52, %v6278_v24 }
 0x30d   : > { %v1126_v25 = vmul.f32 1.442695, %v11589_v55  ;;  %1244 = vmatprep.subr.bf16.mxu0 %v1213_v13  ;;  %2355 = vrot.lane.b32.xlu1 %v6076_v38, %s5458_s29  ;;  %v1153_v3 = vadd.f32 %v6437_v9, %v1152_v61  ;;  %5039 = vpow2.f32 %v1122_v43  ;;  %v1174_v32 = vadd.f32 %v6564_v16, %v1173_v56  ;;  %v6668_v1 = vpop.permute.xlu1 %1307  ;;  %v6671_v58 = vpop.eup %5021 }
 0x30e   : > { %v11592_v13 = vmov 1   ;;  %v6675_v0 = vadd.f32 %v11593_v41, %v11586_v39  ;;  %v6680_v43 = vpop.permute.xlu0 %1291  ;;  %v6682_v16 = vpop.eup %5023  ;;  %v1225_v59 = vpack.c.bf16 %v6671_v58, %v6662_v17 }
 0x30f   : > { %4873 = vset.pattern.permute.xlu1 %v11592_v13  ;;  %5041 = vpow2.f32 %v1126_v25  ;;  %11596 = vst [vmem:[#allocation16_spill] sm:$0xff] %v6680_v43  ;;  %v1154_v56 = vadd.f32 %v6445_v12, %v1153_v3  ;;  %v1175_v55 = vadd.f32 %v6568_v28, %v1174_v32  ;;  %v6688_v61 = vpop.eup %5025  ;;  %v11597_v3 = vpack.c.bf16 %v6308_v23, %v6297_v46 }
 0x310   : > { %11594 = vst [vmem:[#allocation75_spill] sm:$0xff] %v6675_v0  ;;  %1245 = vmatpush1.bf16.msra.mxu0 %v11595_v36  ;;  %3379 = vrot.lane.b32.xlu0 %v6675_v0, %s5458_s29  ;;  %v6694_v24 = vpop.eup %5027  ;;  %v1227_v28 = vpack.c.bf16 %v6688_v61, %v6682_v16 }
 0x311   : > { %1246 = vmatprep.subr.bf16.mxu0 %v1215_v15  ;;  %2359 = vrot.lane.b32.xlu1 %v5741_v33, %s5458_s29  ;;  %v1155_v52 = vadd.f32 %v6457_v47, %v1154_v56  ;;  %v1176_v39 = vadd.f32 %v6580_v60, %v1175_v55  ;;  %v6700_v15 = vpop.permute.xlu1 %1326 }
 0x312   : > { %v6702_v25 = vpop.eup %5029  ;;  %v6707_v32 = vpop.permute.xlu0 %1324 }
 0x313   : > { %11598 = vst [vmem:[#allocation53_spill] sm:$0xff] %v6707_v32  ;;  %v6709_v41 = vpop.eup %5031  ;;  %v1156_v36 = vadd.f32 %v6475_v62, %v1155_v52  ;;  %v1177_v56 = vadd.f32 %v6592_v31, %v1176_v39  ;;  %v1229_v60 = vpack.c.bf16 %v6702_v25, %v6694_v24  ;;  %v11599_v39 = vpack.c.bf16 %v6323_v30, %v6316_v19 }
 0x314   : > { %1247 = vmatpush1.bf16.msra.mxu0 %v11597_v3  ;;  %v6715_v55 = vpop.eup %5033  ;;  %3409 = vrot.lane.b32.xlu0 %v6596_v49, %s5460_s30 }
 0x315   : > { %1248 = vmatprep.subr.bf16.mxu0 %v1217_v8  ;;  %2368 = vperm.xlu1 %4873, %v6466_v48   ;;  %v6720_v46 = vpop.eup %5035  ;;  %v1157_v23 = vadd.f32 %v6480_v57, %v1156_v36  ;;  %v1178_v3 = vadd.f32 %v6609_v63, %v1177_v56  ;;  %v1231_v31 = vpack.c.bf16 %v6715_v55, %v6709_v41  ;;  %v6726_v8 = vpop.permute.xlu1 %1330 }
 0x316   : > { %v6728_v52 = vpop.eup %5037  ;;  %v6733_v45 = vpop.permute.xlu0 %1328  ;;  %v11600_v56 = vpack.c.bf16 %v6614_v35, %v6609_v63  ;;  %v11601_v63 = vmov 2  }
 0x317   : > { %v6735_v37 = vpop.eup %5039  ;;  %v6738_v32 = vadd.f32 %v6489_v29, %v1157_v23  ;;  %v1179_v36 = vadd.f32 %v6614_v35, %v1178_v3  ;;  %v1233_v40 = vpack.c.bf16 %v6728_v52, %v6720_v46  ;;  %v11602_v35 = vpack.c.bf16 %v6336_v26, %v6329_v50  ;;  %v11605_v50 = vld [vmem:[#allocation39_spill] sm:$0xff]  ;;  %v11606_v26 = vld [vmem:[#allocation37_spill] sm:$0xff] }
 0x318   : > { %1249 = vmatpush1.bf16.msra.mxu0 %v11599_v39  ;;  %3439 = vrot.lane.b32.xlu0 %v6641_v42, %s5462_s6 }
 0x319   : > { %1250 = vmatprep.subr.bf16.mxu0 %v11600_v56  ;;  %v6746_v43 = vpop.eup %5041  ;;  %2387 = vrot.lane.b32.xlu1 %v6076_v38, %s5460_s30  ;;  %v1180_v30 = vadd.f32 %v6629_v11, %v1179_v36  ;;  %v6755_v23 = vpop.permute.xlu1 %1342  ;;  %v11604_v56 = vpack.c.bf16 %v6637_v22, %v6629_v11  ;;  %v11608_v11 = vpack.c.bf16 %v6656_v18, %v6651_v10 }
 0x31a   : > { %4874 = vset.pattern.permute.xlu1 %v11601_v63  ;;  %v6761_v3 = vpop.permute.xlu0 %1359 }
 0x31b   : > { %11603 = vst [vmem:[#allocation55_spill] sm:$0xff] %v6761_v3  ;;  %v1181_v39 = vadd.f32 %v6637_v22, %v1180_v30 }
 0x31c   : > { %1251 = vmatpush1.bf16.msra.mxu0 %v11602_v35  ;;  %3443 = vrot.lane.b32.xlu0 %v6675_v0, %s5462_s6  ;;  %v11607_v35 = vpack.c.bf16 %v11605_v50, %v11606_v26  ;;  %v11610_v50 = vld [vmem:[#allocation40_spill] sm:$0xff] }
 0x31d   : > { %1252 = vmatprep.subr.bf16.mxu0 %v11604_v56  ;;  %2389 = vrot.lane.b32.xlu1 %v6159_v54, %s5460_s30  ;;  %v1182_v36 = vadd.f32 %v6651_v10, %v1181_v39  ;;  %v6772_v19 = vpop.permute.xlu1 %1357  ;;  %v11609_v56 = vld [vmem:[#allocation41_spill] sm:$0xff] }
 0x31e   : > { %v6777_v3 = vpop.permute.xlu0 %1363  ;;  %v11611_v26 = vpack.c.bf16 %v11609_v56, %v11610_v50  ;;  %v11623_v50 = vpack.c.bf16 %v6475_v62, %v6457_v47  ;;  %v11626_v47 = vpack.c.bf16 %v6489_v29, %v6480_v57  ;;  %v6898_v57 = vld [vmem:[%s10943_s3 + $0x28] sm:$0xff] }
 0x31f   : > { %v1183_v30 = vadd.f32 %v6656_v18, %v1182_v36 }
 0x320   : > { %1253 = vmatpush1.bf16.msra.mxu0 %v11607_v35  ;;  %3485 = vrot.lane.b32.xlu0 %v6553_v20, %s5463_s9 }
 0x321   : > { %1254 = vmatprep.subr.bf16.mxu0 %v11608_v11  ;;  %2393 = vrot.lane.b32.xlu1 %v5745_v34, %s5460_s30  ;;  %v1184_v22 = vadd.f32 %v6662_v17, %v1183_v30  ;;  %v6788_v39 = vpop.permute.xlu1 %1361  ;;  %v11613_v17 = vpack.c.bf16 %v6386_v51, %v6377_v14  ;;  %v11616_v14 = vpack.c.bf16 %v6412_v21, %v6399_v5 }
 0x322   : > { %v6793_v35 = vpop.permute.xlu0 %1396 }
 0x323   : > { %11612 = vst [vmem:[#allocation57_spill] sm:$0xff] %v6793_v35  ;;  %v1185_v36 = vadd.f32 %v6671_v58, %v1184_v22  ;;  %v11618_v22 = vpack.c.bf16 %v6429_v2, %v6422_v4  ;;  %v11620_v4 = vpack.c.bf16 %v6445_v12, %v6437_v9 }
 0x324   : > { %1255 = vmatpush1.bf16.msra.mxu0 %v11611_v26  ;;  %3489 = vrot.lane.b32.xlu0 %v6596_v49, %s5463_s9 }
 0x325   : > { %1256 = vmatprep.subr.bf16.mxu0 %v1225_v59  ;;  %2404 = vperm.xlu1 %4874, %v6590_v44   ;;  %v1186_v10 = vadd.f32 %v6682_v16, %v1185_v36  ;;  %v6800_v18 = vpop.permute.xlu1 %1371  ;;  %v11615_v59 = vmov 3   ;;  %v11631_v36 = vld [vmem:[#allocation46_spill] sm:$0xff] }
 0x326   : > { %v6805_v30 = vpop.permute.xlu0 %1430 }
 0x327   : > { %v1187_v11 = vadd.f32 %v6688_v61, %v1186_v10 }
 0x328   : > { %1257 = vmatpush1.bf16.msra.mxu0 %v11613_v17  ;;  %3519 = vrot.lane.b32.xlu0 %v6641_v42, %s5466_s10  ;;  %v11632_v17 = vld [vmem:[#allocation7_spill] sm:$0xff] }
 0x329   : > { %1258 = vmatprep.subr.bf16.mxu0 %v1227_v28  ;;  %2419 = vrot.lane.b32.xlu1 %v6076_v38, %s5462_s6  ;;  %v1188_v58 = vadd.f32 %v6694_v24, %v1187_v11  ;;  %v6813_v16 = vpop.permute.xlu1 %1392  ;;  %v11633_v11 = vmov 0  }
 0x32a   : > { %11614 = vst [vmem:[#allocation59_spill] sm:$0xff] %v6813_v16  ;;  %4875 = vset.pattern.permute.xlu1 %v11615_v59  ;;  %v6819_v51 = vpop.permute.xlu0 %1445 }
 0x32b   : > { %11617 = vst [vmem:[#allocation17_spill] sm:$0xff] %v6819_v51  ;;  %v1189_v61 = vadd.f32 %v6702_v25, %v1188_v58  ;;  %v540_v51 = vlaneseq }
 0x32c   : > { %1259 = vmatpush1.bf16.msra.mxu0 %v11616_v14  ;;  %3523 = vrot.lane.b32.xlu0 %v6675_v0, %s5466_s10  ;;  %v11636_v14 = vmov 5  }
 0x32d   : > { %1260 = vmatprep.subr.bf16.mxu0 %v1229_v60  ;;  %2423 = vrot.lane.b32.xlu1 %v5741_v33, %s5462_s6  ;;  %v1190_v24 = vadd.f32 %v6709_v41, %v1189_v61  ;;  %v6827_v28 = vpop.permute.xlu1 %1394  ;;  %v6844_v41 = vld [vmem:[%s10943_s3 + $0x20] sm:$0xff] }
 0x32e   : > { %v6832_v5 = vpop.permute.xlu0 %1476 }
 0x32f   : > { %11619 = vst [vmem:[#allocation70_spill] sm:$0xff] %v6832_v5  ;;  %v1191_v21 = vadd.f32 %v6715_v55, %v1190_v24 }
 0x330   : > { %1261 = vmatpush1.bf16.msra.mxu0 %v11618_v22  ;;  %3553 = vrot.lane.b32.xlu0 %v6596_v49, %s5467_s11  ;;  %v11639_v22 = vld [vmem:[#allocation8_spill] sm:$0xff] }
 0x331   : > { %1262 = vmatprep.subr.bf16.mxu0 %v1231_v31  ;;  %2432 = vperm.xlu1 %4875, %v6466_v48   ;;  %v1192_v25 = vadd.f32 %v6720_v46, %v1191_v21  ;;  %v6839_v60 = vpop.permute.xlu1 %1398  ;;  %v11622_v31 = vmov 4  }
 0x332   : > { %v6849_v2 = vpop.permute.xlu0 %1480 }
 0x333   : > { %11621 = vst [vmem:[#allocation79_spill] sm:$0xff] %v6849_v2  ;;  %v1193_v55 = vadd.f32 %v6728_v52, %v1192_v25  ;;  %v6873_v52 = vld [vmem:[%s10943_s3] sm:$0xff] }
 0x334   : > { %1263 = vmatpush1.bf16.msra.mxu0 %v11620_v4  ;;  %3562 = vperm.xlu0 %4869, %v6844_v41  }
 0x335   : > { %1264 = vmatprep.subr.bf16.mxu0 %v1233_v40  ;;  %4876 = vset.pattern.permute.xlu1 %v11622_v31  ;;  %v1194_v46 = vadd.f32 %v6735_v37, %v1193_v55  ;;  %v6856_v56 = vpop.permute.xlu1 %1410  ;;  %v11625_v40 = vpack.c.bf16 %v6746_v43, %v6735_v37  ;;  %v11629_v37 = vld [vmem:[#allocation4_spill] sm:$0xff] }
 0x336   : > { %2452 = vperm.xlu1 %4876, %v6466_v48   ;;  %v6861_v12 = vpop.permute.xlu0 %1513 }
 0x337   : > { %11624 = vst [vmem:[#allocation18_spill] sm:$0xff] %v6861_v12  ;;  %v6864_v9 = vadd.f32 %v6746_v43, %v1194_v46  ;;  %v11630_v43 = vld [vmem:[#allocation48_spill] sm:$0xff]  ;;  %v11644_v46 = vld [vmem:[#allocation69_spill] sm:$0xff] }
 0x338   : > { %1265 = vmatpush1.bf16.msra.mxu0 %v11623_v50  ;;  %4888 = vset.pattern.permute.xlu0 %v11592_v13  ;;  %v1202_v10 = vpack.c.bf16 %v11631_v36, %v11630_v43  ;;  %v6928_v50 = vadd.f32 %v11644_v46, %v6607_v27  ;;  %v7157_v43 = vand.u32 127, %v540_v51 }
 0x339   : > { %1266 = vmatprep.subr.bf16.mxu0 %v11625_v40  ;;  %1338 = vperm.xlu0 %4888, %v6873_v52   ;;  %v6882_v26 = vpop.permute.xlu1 %1426  ;;  %v11646_v40 = vmov 6  }
 0x33a   : > { %2456 = vperm.xlu1 %4876, %v6590_v44   ;;  %v6880_v62 = vpop.permute.xlu0 %1523  ;;  %11628 = vst [vmem:[#allocation39_spill] sm:$0xff] %v6882_v26  ;;  %11645 = vst [vmem:[#allocation69_spill] sm:$0xff] %v6928_v50  ;;  %vm11211_vm3 = vcmp.lt.s32.totalorder %v7157_v43, 113  ;;  %vm11241_vm4 = vcmp.lt.s32.totalorder %v7157_v43, 111  ;;  %vm11194_vm5 = vcmp.lt.s32.totalorder %v7157_v43, 17  ;;  %vm1332_vm6 = vcmp.lt.s32.totalorder %v7157_v43, 16 }
 0x33b   : > { %11627 = vst [vmem:[#allocation19_spill] sm:$0xff] %v6880_v62  ;;  %v11655_v62 = vld [vmem:[#allocation72_spill] sm:$0xff]  ;;  %11698 = vst [vmem:[#allocation114_spill] sm:$0xff] %v7157_v43  ;;  %vm567_vm7 = vcmp.ge.s32.totalorder %v7157_v43, 16  ;;  %vm1365_vm10 = vcmp.lt.s32.totalorder %v7157_v43, 15  ;;  %vm1400_vm14 = vcmp.lt.s32.totalorder %v7157_v43, 1 }
 0x33c   : > { %1267 = vmatpush1.bf16.msra.mxu0 %v11626_v47  ;;  %v11647_v47 = vld [vmem:[#allocation9_spill] sm:$0xff]  ;;  %v6966_v12 = vadd.f32 %v11655_v62, %v6549_v7  ;;  %vm1449_vm0 = vcmp.lt.s32.totalorder %v7157_v43, 127 }
 0x33d   : > { %4764 = vmatprep.subr.msk.bf16.mxu0 %vm11193_vm1, %v11629_v37  ;;  %2372 = vperm.xlu0 %4888, %v6590_v44   ;;  %v6893_v29 = vpop.permute.xlu1 %1441  ;;  %vm1517_vm1 = vcmp.lt.s32.totalorder %v7157_v43, 112 }
 0x33e   : > { %v6891_v58 = vpop.permute.xlu0 %1544  ;;  %11635 = vst [vmem:[#allocation41_spill] sm:$0xff] %v6893_v29  ;;  %2469 = vrot.lane.b32.xlu1 %v6159_v54, %s5463_s9  ;;  %11656 = vst [vmem:[#allocation72_spill] sm:$0xff] %v6966_v12 }
 0x33f   : > { %1269 = vmatmul.mubr.bf16.vlgmr.msra.gmra.mrb[32].mxu0 %v1202_v10  ;;  %11634 = vst [vmem:[#allocation37_spill] sm:$0xff] %v6891_v58  ;;  %4877 = vset.pattern.permute.xlu1 %v11636_v14  ;;  %v11663_v58 = vld [vmem:[#allocation12_spill] sm:$0xff] }
 0x340   : > { %1704 = vmatpush1.bf16.msra.mxu0 %v11632_v17  ;;  %1735 = vmatprep.mubr.bf16.mxu0 %v11633_v11 }
 0x341   : > { %3390 = vperm.xlu0 %4888, %v6898_v57   ;;  %v6906_v24 = vpop.permute.xlu1 %1443 }
 0x342   : > { %v6904_v61 = vpop.permute.xlu0 %1548  ;;  %11638 = vst [vmem:[#allocation4_spill] sm:$0xff] %v6906_v24  ;;  %2473 = vrot.lane.b32.xlu1 %v5745_v34, %s5463_s9 }
 0x343   : > { %11637 = vst [vmem:[#allocation40_spill] sm:$0xff] %v6904_v61 }
 0x345   : > { %3583 = vrot.lane.b32.xlu0 %v6641_v42, %s5468_s12  ;;  %v6917_v25 = vpop.permute.xlu1 %1447 }
 0x346   : > { %v6915_v21 = vpop.permute.xlu0 %2321  ;;  %11641 = vst [vmem:[#allocation7_spill] sm:$0xff] %v6917_v25  ;;  %2484 = vperm.xlu1 %4877, %v6590_v44  }
 0x347   : > { %4765 = vmatmul.mubr.msk.bf16.vlgmr.msra.gmra.mrb[36].mxu0 %vm11186_vm2, %v11639_v22  ;;  %11640 = vst [vmem:[#allocation46_spill] sm:$0xff] %v6915_v21  ;;  %v11650_v22 = vld [vmem:[#allocation71_spill] sm:$0xff] }
 0x348   : > { %1745 = vmatprep.mubr.bf16.mxu0 %v11633_v11  ;;  %v6952_v46 = vadd.f32 %v11650_v22, %v6549_v7  ;;  %v11657_v22 = vmov 7   ;;  %v11659_v7 = vld [vmem:[#allocation11_spill] sm:$0xff] }
 0x349   : > { %3587 = vrot.lane.b32.xlu0 %v6675_v0, %s5468_s12  ;;  %v6924_v55 = vpop.permute.xlu1 %1459 }
 0x34a   : > { %v6922_v4 = vpop.permute.xlu0 %2325  ;;  %11643 = vst [vmem:[#allocation82_spill] sm:$0xff] %v6924_v55  ;;  %2499 = vrot.lane.b32.xlu1 %v6076_v38, %s5466_s10  ;;  %11651 = vst [vmem:[#allocation71_spill] sm:$0xff] %v6952_v46 }
 0x34b   : > { %11642 = vst [vmem:[#allocation8_spill] sm:$0xff] %v6922_v4  ;;  %4878 = vset.pattern.permute.xlu1 %v11646_v40 }
 0x34d   : > { %4357 = vrot.lane.b32.xlu0 %v6928_v50, %s5456_s26  ;;  %v6940_v10 = vpop.permute.xlu1 %1474 }
 0x34e   : > { %v6938_v37 = vpop.permute.xlu0 %2357  ;;  %11648 = vst [vmem:[#allocation9_spill] sm:$0xff] %v6940_v10  ;;  %2503 = vrot.lane.b32.xlu1 %v5741_v33, %s5466_s10 }
 0x34f   : > { %4766 = vmatmul.mubr.msk.bf16.gmra.mrb[40].mxu0 %vm11186_vm2, %v11647_v47  ;;  %v11652_v47 = vld [vmem:[#allocation10_spill] sm:$0xff] }
 0x350   : > { %1755 = vmatprep.mubr.bf16.mxu0 %v11633_v11 }
 0x351   : > { %4361 = vrot.lane.b32.xlu0 %v6624_v53, %s5456_s26  ;;  %v6948_v17 = vpop.permute.xlu1 %1478 }
 0x352   : > { %v6946_v27 = vpop.permute.xlu0 %2361  ;;  %11649 = vst [vmem:[#allocation83_spill] sm:$0xff] %v6948_v17  ;;  %2512 = vperm.xlu1 %4878, %v6466_v48  }
 0x355   : > { %4393 = vrot.lane.b32.xlu0 %v6952_v46, %s5458_s29  ;;  %v6962_v21 = vpop.permute.xlu1 %1488 }
 0x356   : > { %v6960_v4 = vpop.permute.xlu0 %2391  ;;  %11654 = vst [vmem:[#allocation84_spill] sm:$0xff] %v6962_v21  ;;  %2531 = vrot.lane.b32.xlu1 %v6076_v38, %s5467_s11 }
 0x357   : > { %4767 = vmatmul.mubr.msk.bf16.gmra.mrb[44].mxu0 %vm11186_vm2, %v11652_v47  ;;  %11653 = vst [vmem:[#allocation10_spill] sm:$0xff] %v6960_v4  ;;  %4879 = vset.pattern.permute.xlu1 %v11657_v22  ;;  %v6980_v4 = vld [vmem:[%s10943_s3 + $0x38] sm:$0xff] }
 0x358   : > { %1765 = vmatprep.mubr.bf16.mxu0 %v11633_v11 }
 0x359   : > { %4397 = vrot.lane.b32.xlu0 %v6966_v12, %s5458_s29  ;;  %v6975_v10 = vpop.permute.xlu1 %1509 }
 0x35a   : > { %v6973_v47 = vpop.permute.xlu0 %2421  ;;  %11658 = vst [vmem:[#allocation85_spill] sm:$0xff] %v6975_v10  ;;  %2533 = vrot.lane.b32.xlu1 %v6159_v54, %s5467_s11  ;;  %v6998_v10 = vld [vmem:[%s10943_s3 + $0x8] sm:$0xff]  ;;  %v2596_v54 = vld [vmem:[%s10944_s4 + $0x18] sm:$0xff] }
 0x35d   : > { %4408 = vperm.xlu0 %4888, %v6980_v4   ;;  %v6990_v21 = vpop.permute.xlu1 %1511 }
 0x35e   : > { %v6988_v62 = vpop.permute.xlu0 %2425  ;;  %11660 = vst [vmem:[#allocation11_spill] sm:$0xff] %v6990_v21  ;;  %2537 = vrot.lane.b32.xlu1 %v5745_v34, %s5467_s11  ;;  %v11666_v34 = vmov 8  }
 0x35f   : > { %4768 = vmatmul.mubr.msk.bf16.gmra.mrb[48].mxu0 %vm11186_vm2, %v11659_v7 }
 0x360   : > { %1775 = vmatprep.mubr.bf16.mxu0 %v11633_v11 }
 0x361   : > { %4893 = vset.pattern.permute.xlu0 %v11601_v63  ;;  %v7003_v17 = vpop.permute.xlu1 %1515 }
 0x362   : > { %1375 = vperm.xlu0 %4893, %v6998_v10   ;;  %v7001_v7 = vpop.permute.xlu0 %2467  ;;  %11662 = vst [vmem:[#allocation87_spill] sm:$0xff] %v7003_v17  ;;  %2548 = vperm.xlu1 %4879, %v6590_v44  }
 0x363   : > { %11661 = vst [vmem:[#allocation86_spill] sm:$0xff] %v7001_v7 }
 0x365   : > { %v7012_v61 = vpop.permute.xlu1 %1527 }
 0x366   : > { %2400 = vperm.xlu0 %4893, %v6466_v48   ;;  %v7010_v21 = vpop.permute.xlu0 %2471  ;;  %11665 = vst [vmem:[#allocation88_spill] sm:$0xff] %v7012_v61  ;;  %2563 = vrot.lane.b32.xlu1 %v6076_v38, %s5468_s12 }
 0x367   : > { %4769 = vmatmul.mubr.msk.bf16.gmra.mrb[52].mxu0 %vm11186_vm2, %v11663_v58  ;;  %11664 = vst [vmem:[#allocation12_spill] sm:$0xff] %v7010_v21  ;;  %4880 = vset.pattern.permute.xlu1 %v11666_v34  ;;  %v11669_v58 = vld [vmem:[#allocation13_spill] sm:$0xff] }
 0x368   : > { %1785 = vmatprep.mubr.bf16.mxu0 %v11633_v11 }
 0x369   : > { %v7020_v17 = vpop.permute.xlu1 %1542 }
 0x36a   : > { %3418 = vperm.xlu0 %4893, %v6844_v41   ;;  %v7018_v7 = vpop.permute.xlu0 %2501  ;;  %11668 = vst [vmem:[#allocation90_spill] sm:$0xff] %v7020_v17  ;;  %2567 = vrot.lane.b32.xlu1 %v5741_v33, %s5468_s12  ;;  %v7037_v17 = vld [vmem:[%s10943_s3 + $0x30] sm:$0xff] }
 0x36b   : > { %11667 = vst [vmem:[#allocation89_spill] sm:$0xff] %v7018_v7 }
 0x36d   : > { %v7031_v38 = vpop.permute.xlu1 %1546 }
 0x36e   : > { %4427 = vrot.lane.b32.xlu0 %v6624_v53, %s5460_s30  ;;  %v7029_v21 = vpop.permute.xlu0 %2505  ;;  %11671 = vst [vmem:[#allocation91_spill] sm:$0xff] %v7031_v38  ;;  %2576 = vperm.xlu1 %4880, %v6466_v48   ;;  %v11674_v38 = vld [vmem:[#allocation14_spill] sm:$0xff] }
 0x36f   : > { %4770 = vmatmul.mubr.msk.bf16.gmra.mrb[56].mxu0 %vm11186_vm2, %v11669_v58  ;;  %11670 = vst [vmem:[#allocation13_spill] sm:$0xff] %v7029_v21  ;;  %v2595_v58 = vld [vmem:[%s10944_s4 + $0x10] sm:$0xff]  ;;  %v11679_v21 = vld [vmem:[#allocation15_spill] sm:$0xff] }
 0x370   : > { %1795 = vmatprep.mubr.bf16.mxu0 %v11633_v11 }
 0x371   : > { %v7045_v61 = vpop.permute.xlu1 %1556 }
 0x372   : > { %4436 = vperm.xlu0 %4893, %v7037_v17   ;;  %v7043_v33 = vpop.permute.xlu0 %2535  ;;  %11673 = vst [vmem:[#allocation93_spill] sm:$0xff] %v7045_v61  ;;  %4881 = vset.pattern.permute.xlu1 %v11633_v11 }
 0x373   : > { %11672 = vst [vmem:[#allocation92_spill] sm:$0xff] %v7043_v33  ;;  %2599 = vperm.xlu1 %4881, %v2595_v58   ;;  %v3255_v58 = vpack.c.bf16 %v6675_v0, %v6596_v49 }
 0x376   : > { %4894 = vset.pattern.permute.xlu0 %v11615_v59  ;;  %v7055_v7 = vpop.permute.xlu0 %2544  ;;  %v7058_v33 = vpop.permute.xlu1 %1581 }
 0x377   : > { %4771 = vmatmul.mubr.msk.bf16.gmra.mrb[60].mxu0 %vm11186_vm2, %v11674_v38  ;;  %11675 = vst [vmem:[#allocation14_spill] sm:$0xff] %v7055_v7  ;;  %1406 = vperm.xlu0 %4894, %v6873_v52   ;;  %11676 = vst [vmem:[#allocation94_spill] sm:$0xff] %v7058_v33 }
 0x378   : > { %1805 = vmatprep.mubr.bf16.mxu0 %v11633_v11  ;;  %2604 = vperm.xlu1 %4881, %v2596_v54  }
 0x37a   : > { %v7060_v61 = vpop.permute.xlu0 %2565  ;;  %v7063_v38 = vpop.permute.xlu1 %1586 }
 0x37b   : > { %11677 = vst [vmem:[#allocation95_spill] sm:$0xff] %v7060_v61  ;;  %2436 = vperm.xlu0 %4894, %v6590_v44   ;;  %11678 = vst [vmem:[#allocation96_spill] sm:$0xff] %v7063_v38 }
 0x37c   : > { %3341 = vrot.lane.b32.xlu1 %v6641_v42, %s5456_s26 }
 0x37e   : > { %v7071_v7 = vpop.permute.xlu0 %2569  ;;  %v7074_v54 = vpop.permute.xlu1 %2323 }
 0x37f   : > { %4772 = vmatmul.mubr.msk.bf16.gmra.mrb[64].mxu0 %vm11186_vm2, %v11679_v21  ;;  %11680 = vst [vmem:[#allocation15_spill] sm:$0xff] %v7071_v7  ;;  %3454 = vperm.xlu0 %4894, %v6898_v57  }
 0x380   : > { %3320 = vmatprep.mubr.bf16.mxu0 %v3255_v58  ;;  %3345 = vrot.lane.b32.xlu1 %v6675_v0, %s5456_s26 }
 0x382   : > { %v7078_v33 = vpop.permute.xlu0 %3339  ;;  %v7082_v38 = vpop.permute.xlu1 %2327 }
 0x383   : > { %11681 = vst [vmem:[#allocation97_spill] sm:$0xff] %v7078_v33  ;;  %4457 = vrot.lane.b32.xlu0 %v6952_v46, %s5462_s6 }
 0x384   : > { %3358 = vperm.xlu1 %4881, %v6898_v57  }
 0x386   : > { %v7085_v21 = vpop.permute.xlu0 %3343 }
 0x387   : > { %11682 = vst [vmem:[#allocation98_spill] sm:$0xff] %v7085_v21  ;;  %4461 = vrot.lane.b32.xlu0 %v6966_v12, %s5462_s6  ;;  %v7089_v58 = vpop.permute.xlu1 %2340 }
 0x388   : > { %3373 = vrot.lane.b32.xlu1 %v6553_v20, %s5458_s29 }
 0x389   : > { %4882 = vset.pattern.permute.xlu1 %v11592_v13 }
 0x38a   : > { %v7094_v33 = vpop.permute.xlu0 %3375 }
 0x38b   : > { %11683 = vst [vmem:[#allocation99_spill] sm:$0xff] %v7094_v33  ;;  %4472 = vperm.xlu0 %4894, %v6980_v4   ;;  %v7097_v61 = vpop.permute.xlu1 %2355 }
 0x38c   : > { %11684 = vst [vmem:[#allocation100_spill] sm:$0xff] %v7097_v61  ;;  %3377 = vrot.lane.b32.xlu1 %v6596_v49, %s5458_s29 }
 0x38e   : > { %v7101_v21 = vpop.permute.xlu0 %3379 }
 0x38f   : > { %11685 = vst [vmem:[#allocation101_spill] sm:$0xff] %v7101_v21  ;;  %4897 = vset.pattern.permute.xlu0 %v11636_v14  ;;  %v7104_v7 = vpop.permute.xlu1 %2359 }
 0x390   : > { %11686 = vst [vmem:[#allocation102_spill] sm:$0xff] %v7104_v7  ;;  %3386 = vperm.xlu1 %4882, %v6844_v41   ;;  %1455 = vperm.xlu0 %4897, %v6873_v52  }
 0x392   : > { %v7108_v55 = vpop.permute.xlu0 %3409 }
 0x393   : > { %11687 = vst [vmem:[#allocation103_spill] sm:$0xff] %v7108_v55 }
 0x394   : > { %v7110_v33 = vpop.permute.xlu1 %2368  ;;  %3405 = vrot.lane.b32.xlu1 %v6553_v20, %s5460_s30  ;;  %2480 = vperm.xlu0 %4897, %v6466_v48  }
 0x395   : > { %11688 = vst [vmem:[#allocation104_spill] sm:$0xff] %v7110_v33  ;;  %4883 = vset.pattern.permute.xlu1 %v11601_v63 }
 0x396   : > { %v7116_v61 = vpop.permute.xlu0 %3439 }
 0x397   : > { %11689 = vst [vmem:[#allocation105_spill] sm:$0xff] %v7116_v61 }
 0x398   : > { %v7118_v21 = vpop.permute.xlu1 %2387  ;;  %3407 = vrot.lane.b32.xlu1 %v6641_v42, %s5460_s30  ;;  %3498 = vperm.xlu0 %4897, %v6844_v41  }
 0x399   : > { %11690 = vst [vmem:[#allocation106_spill] sm:$0xff] %v7118_v21 }
 0x39a   : > { %v7123_v7 = vpop.permute.xlu0 %3443 }
 0x39b   : > { %11691 = vst [vmem:[#allocation107_spill] sm:$0xff] %v7123_v7  ;;  %v7143_v7 = vpop.f32.mrb[64].mxu1 }
 0x39c   : > { %v7125_v55 = vpop.permute.xlu1 %2389  ;;  %3411 = vrot.lane.b32.xlu1 %v6675_v0, %s5460_s30  ;;  %4516 = vperm.xlu0 %4897, %v7037_v17   ;;  %11694 = vst [vmem:[#allocation110_spill] sm:$0xff] %v7143_v7 }
 0x39e   : > { %v7130_v33 = vpop.permute.xlu0 %3485 }
 0x39f   : > { %11692 = vst [vmem:[#allocation108_spill] sm:$0xff] %v7130_v33  ;;  %v7147_v33 = vpop.f32.mrb[65].mxu1 }
 0x3a0   : > { %v7132_v29 = vpop.permute.xlu1 %2393  ;;  %3422 = vperm.xlu1 %4883, %v6898_v57   ;;  %4899 = vset.pattern.permute.xlu0 %v11646_v40  ;;  %11695 = vst [vmem:[#allocation111_spill] sm:$0xff] %v7147_v33  ;;  %v7149_v24 = vpop.f32.mrb[66].mxu1 }
 0x3a1   : > { %1492 = vperm.xlu0 %4899, %v6998_v10   ;;  %11696 = vst [vmem:[#allocation112_spill] sm:$0xff] %v7149_v24  ;;  %v7160_v5 = vpop.f32.mrb[67].mxu1 }
 0x3a2   : > { %v7137_v21 = vpop.permute.xlu0 %3489  ;;  %11699 = vst [vmem:[#allocation115_spill] sm:$0xff] %v7160_v5 }
 0x3a3   : > { %11693 = vst [vmem:[#allocation109_spill] sm:$0xff] %v7137_v21  ;;  %v1910_v21 = vmax.f32 %v7149_v24, %v7143_v7  ;;  %v7176_v7 = vpop.f32.mrb[68].mxu1 }
 0x3a4   : > { %v7139_v61 = vpop.permute.xlu1 %2404  ;;  %3437 = vrot.lane.b32.xlu1 %v6553_v20, %s5462_s6  ;;  %11703 = vst [vmem:[#allocation119_spill] sm:$0xff] %v7176_v7 }
 0x3a5   : > { %2516 = vperm.xlu0 %4899, %v6590_v44   ;;  %4884 = vset.pattern.permute.xlu1 %v11615_v59  ;;  %v1947_v59 = vmax.f32 %v7160_v5, %v7147_v33  ;;  %v1912_v5 = vmax.f32 %v1910_v21, %v7176_v7  ;;  %v7180_v33 = vpop.f32.mrb[69].mxu1 }
 0x3a6   : > { %v3520_v25 = vpop.permute.xlu0 %3519  ;;  %11704 = vst [vmem:[#allocation120_spill] sm:$0xff] %v7180_v33 }
 0x3a8   : > { %v7151_v26 = vpop.permute.xlu1 %2419  ;;  %3441 = vrot.lane.b32.xlu1 %v6596_v49, %s5462_s6 }
 0x3a9   : > { %11697 = vst [vmem:[#allocation113_spill] sm:$0xff] %v7151_v26  ;;  %3534 = vperm.xlu0 %4899, %v6898_v57   ;;  %v1949_v26 = vmax.f32 %v1947_v59, %v7180_v33 }
 0x3aa   : > { %v3524_v2 = vpop.permute.xlu0 %3523 }
 0x3ab   : > { %v7169_v24 = vsel %vm11211_vm3, %v3520_v25, %v3524_v2  ;;  %v7173_v51 = vsel %vm11211_vm3, %v3524_v2, %v3520_v25 }
 0x3ac   : > { %v7165_v16 = vpop.permute.xlu1 %2423  ;;  %11701 = vst [vmem:[#allocation117_spill] sm:$0xff] %v7169_v24  ;;  %11702 = vst [vmem:[#allocation118_spill] sm:$0xff] %v7173_v51  ;;  %3450 = vperm.xlu1 %4884, %v6844_v41  }
 0x3ad   : > { %11700 = vst [vmem:[#allocation116_spill] sm:$0xff] %v7165_v16  ;;  %4552 = vperm.xlu0 %4899, %v6980_v4   ;;  %v7183_v16 = vpop.f32.mrb[70].mxu1 }
 0x3ae   : > { %11705 = vst [vmem:[#allocation121_spill] sm:$0xff] %v7183_v16  ;;  %v7185_v35 = vpop.permute.xlu0 %3553  ;;  %v1914_v2 = vmax.f32 %v1912_v5, %v7183_v16  ;;  %v7193_v25 = vpop.f32.mrb[71].mxu1 }
 0x3af   : > { %11706 = vst [vmem:[#allocation122_spill] sm:$0xff] %v7185_v35  ;;  %11708 = vst [vmem:[#allocation124_spill] sm:$0xff] %v7193_v25  ;;  %v1951_v59 = vmax.f32 %v1949_v26, %v7193_v25  ;;  %v7201_v35 = vpop.f32.mrb[72].mxu1 }
 0x3b0   : > { %v7187_v24 = vpop.permute.xlu1 %2432  ;;  %4885 = vset.pattern.permute.xlu1 %v11622_v31  ;;  %11711 = vst [vmem:[#allocation127_spill] sm:$0xff] %v7201_v35  ;;  %v1911_v5 = vmax.f32 %v7201_v35, %v1914_v2  ;;  %v7205_v16 = vpop.f32.mrb[73].mxu1 }
 0x3b1   : > { %11707 = vst [vmem:[#allocation123_spill] sm:$0xff] %v7187_v24  ;;  %3470 = vperm.xlu1 %4885, %v6844_v41   ;;  %4902 = vset.pattern.permute.xlu0 %v11666_v34  ;;  %11712 = vst [vmem:[#allocation128_spill] sm:$0xff] %v7205_v16  ;;  %v1948_v7 = vmax.f32 %v7205_v16, %v1951_v59  ;;  %v7209_v24 = vpop.f32.mrb[74].mxu1 }
 0x3b2   : > { %1560 = vperm.xlu0 %4902, %v6998_v10   ;;  %11713 = vst [vmem:[#allocation129_spill] sm:$0xff] %v7209_v24  ;;  %v1913_v26 = vmax.f32 %v1911_v5, %v7209_v24  ;;  %v7218_v25 = vpop.f32.mrb[75].mxu1 }
 0x3b3   : > { %v7197_v21 = vpop.permute.xlu0 %3562  ;;  %11715 = vst [vmem:[#allocation131_spill] sm:$0xff] %v7218_v25  ;;  %v7229_v5 = vpop.f32.mrb[76].mxu1 }
 0x3b4   : > { %11709 = vst [vmem:[#allocation125_spill] sm:$0xff] %v7197_v21  ;;  %11716 = vst [vmem:[#allocation132_spill] sm:$0xff] %v7229_v5  ;;  %v1915_v16 = vmax.f32 %v1913_v26, %v7229_v5  ;;  %v7234_v24 = vpop.f32.mrb[77].mxu1 }
 0x3b5   : > { %v7199_v33 = vpop.permute.xlu1 %2452  ;;  %3474 = vperm.xlu1 %4885, %v6898_v57   ;;  %11717 = vst [vmem:[#allocation133_spill] sm:$0xff] %v7234_v24 }
 0x3b6   : > { %11710 = vst [vmem:[#allocation126_spill] sm:$0xff] %v7199_v33  ;;  %2580 = vperm.xlu0 %4902, %v6590_v44   ;;  %v1950_v44 = vmax.f32 %v1948_v7, %v7218_v25 }
 0x3b8   : > { %v7212_v10 = vpop.permute.xlu0 %1338  ;;  %v1952_v35 = vmax.f32 %v1950_v44, %v7234_v24 }
 0x3b9   : > { %11714 = vst [vmem:[#allocation130_spill] sm:$0xff] %v7212_v10  ;;  %v7214_v21 = vpop.permute.xlu1 %2456  ;;  %3487 = vrot.lane.b32.xlu1 %v6641_v42, %s5463_s9  ;;  %v7237_v10 = vpop.f32.mrb[78].mxu1 }
 0x3ba   : > { %3598 = vperm.xlu0 %4902, %v6898_v57   ;;  %4886 = vset.pattern.permute.xlu1 %v11636_v14  ;;  %11718 = vst [vmem:[#allocation134_spill] sm:$0xff] %v7237_v10  ;;  %v1916_v33 = vmax.f32 %v7237_v10, %v1915_v16  ;;  %v7245_v14 = vpop.f32.mrb[79].mxu1 }
 0x3bb   : > { %11719 = vst [vmem:[#allocation135_spill] sm:$0xff] %v7245_v14  ;;  %v1953_v26 = vmax.f32 %v7245_v14, %v1952_v35  ;;  %v7250_v31 = vpop.f32.mrb[80].mxu1 }
 0x3bc   : > { %v7223_v2 = vpop.permute.xlu0 %2372  ;;  %11720 = vst [vmem:[#allocation136_spill] sm:$0xff] %v7250_v31  ;;  %v1918_v44 = vmax.f32 %v1916_v33, %v7250_v31  ;;  %v7255_v24 = vpop.f32.mrb[81].mxu1 }
 0x3bd   : > { %v7225_v59 = vpop.permute.xlu1 %2469  ;;  %3491 = vrot.lane.b32.xlu1 %v6675_v0, %s5463_s9  ;;  %11721 = vst [vmem:[#allocation137_spill] sm:$0xff] %v7255_v24  ;;  %v1955_v10 = vmax.f32 %v1953_v26, %v7255_v24  ;;  %v7262_v51 = vpop.f32.mrb[82].mxu1 }
 0x3be   : > { %4503 = vrot.lane.b32.xlu0 %v6928_v50, %s5463_s9  ;;  %11722 = vst [vmem:[#allocation138_spill] sm:$0xff] %v7262_v51  ;;  %v1920_v35 = vmax.f32 %v1918_v44, %v7262_v51 }
 0x3c0   : > { %v7239_v7 = vpop.permute.xlu0 %3390 }
 0x3c1   : > { %v7241_v25 = vpop.permute.xlu1 %2473  ;;  %3502 = vperm.xlu1 %4886, %v6898_v57  }
 0x3c2   : > { %4507 = vrot.lane.b32.xlu0 %v6624_v53, %s5463_s9 }
 0x3c4   : > { %v3584_v5 = vpop.permute.xlu0 %3583 }
 0x3c5   : > { %3517 = vrot.lane.b32.xlu1 %v6553_v20, %s5466_s10  ;;  %v7257_v16 = vpop.permute.xlu1 %2484 }
 0x3c6   : > { %4612 = vperm.xlu0 %4902, %v7037_v17   ;;  %4887 = vset.pattern.permute.xlu1 %v11646_v40  ;;  %v7276_v40 = vpop.f32.mrb[83].mxu1 }
 0x3c7   : > { %11725 = vst [vmem:[#allocation141_spill] sm:$0xff] %v7276_v40  ;;  %v1957_v44 = vmax.f32 %v1955_v10, %v7276_v40  ;;  %v7283_v51 = vpop.f32.mrb[84].mxu1 }
 0x3c8   : > { %v3588_v14 = vpop.permute.xlu0 %3587  ;;  %11727 = vst [vmem:[#allocation143_spill] sm:$0xff] %v7283_v51 }
 0x3c9   : > { %v7268_v33 = vsel %vm11241_vm4, %v3584_v5, %v3588_v14  ;;  %v7272_v31 = vsel %vm11241_vm4, %v3588_v14, %v3584_v5  ;;  %3521 = vrot.lane.b32.xlu1 %v6596_v49, %s5466_s10  ;;  %v7278_v26 = vpop.permute.xlu1 %2499  ;;  %v7287_v14 = vmax.f32 %v1920_v35, %v7283_v51  ;;  %v7289_v5 = vpop.f32.mrb[85].mxu1 }
 0x3ca   : > { %11723 = vst [vmem:[#allocation139_spill] sm:$0xff] %v7268_v33  ;;  %11724 = vst [vmem:[#allocation140_spill] sm:$0xff] %v7272_v31  ;;  %4904 = vset.pattern.permute.xlu0 %v11633_v11  ;;  %v7296_v33 = vpop.f32.mrb[86].mxu1 }
 0x3cb   : > { %11726 = vst [vmem:[#allocation142_spill] sm:$0xff] %v7278_v26  ;;  %1302 = vperm.xlu0 %4904, %v6873_v52   ;;  %11728 = vst [vmem:[#allocation144_spill] sm:$0xff] %v7287_v14  ;;  %v7294_v26 = vmax.f32 %v1957_v44, %v7289_v5 }
 0x3cc   : > { %v4358_v24 = vpop.permute.xlu0 %4357  ;;  %11729 = vst [vmem:[#allocation145_spill] sm:$0xff] %v7289_v5  ;;  %11732 = vst [vmem:[#allocation148_spill] sm:$0xff] %v7296_v33  ;;  %v2330_v33 = vsel %vm11194_vm5, %v7074_v54, %v7082_v38 }
 0x3cd   : > { %3530 = vperm.xlu1 %4887, %v6844_v41   ;;  %v7291_v31 = vpop.permute.xlu1 %2503  ;;  %11731 = vst [vmem:[#allocation147_spill] sm:$0xff] %v7294_v26 }
 0x3ce   : > { %11730 = vst [vmem:[#allocation146_spill] sm:$0xff] %v7291_v31 }
 0x3cf   : > { %2335 = vperm.xlu0 %4904, %v6466_v48   ;;  %v7316_v48 = vpop.f32.mrb[87].mxu1 }
 0x3d0   : > { %v4362_v10 = vpop.permute.xlu0 %4361  ;;  %11736 = vst [vmem:[#allocation152_spill] sm:$0xff] %v7316_v48 }
 0x3d1   : > { %v7304_v35 = vsel %vm11194_vm5, %v4358_v24, %v4362_v10  ;;  %v7308_v31 = vsel %vm11194_vm5, %v4362_v10, %v4358_v24  ;;  %3549 = vrot.lane.b32.xlu1 %v6553_v20, %s5467_s11  ;;  %v7312_v44 = vpop.permute.xlu1 %2512  ;;  %v7324_v10 = vpop.f32.mrb[88].mxu1 }
 0x3d2   : > { %11733 = vst [vmem:[#allocation149_spill] sm:$0xff] %v7304_v35  ;;  %11734 = vst [vmem:[#allocation150_spill] sm:$0xff] %v7308_v31  ;;  %4889 = vset.pattern.permute.xlu1 %v11657_v22 }
 0x3d3   : > { %11735 = vst [vmem:[#allocation151_spill] sm:$0xff] %v7312_v44  ;;  %3353 = vperm.xlu0 %4904, %v6844_v41   ;;  %11738 = vst [vmem:[#allocation154_spill] sm:$0xff] %v7324_v10  ;;  %v7327_v44 = vpop.f32.mrb[89].mxu1 }
 0x3d4   : > { %v4394_v52 = vpop.permute.xlu0 %4393  ;;  %11739 = vst [vmem:[#allocation155_spill] sm:$0xff] %v7327_v44  ;;  %v7330_v35 = vpop.f32.mrb[90].mxu1 }
 0x3d5   : > { %3551 = vrot.lane.b32.xlu1 %v6641_v42, %s5467_s11  ;;  %v7322_v24 = vpop.permute.xlu1 %2531  ;;  %11740 = vst [vmem:[#allocation156_spill] sm:$0xff] %v7330_v35  ;;  %v7338_v51 = vpop.f32.mrb[91].mxu1 }
 0x3d6   : > { %11737 = vst [vmem:[#allocation153_spill] sm:$0xff] %v7322_v24  ;;  %11741 = vst [vmem:[#allocation157_spill] sm:$0xff] %v7338_v51  ;;  %v7342_v10 = vpop.f32.mrb[92].mxu1 }
 0x3d7   : > { %4371 = vperm.xlu0 %4904, %v7037_v17   ;;  %11742 = vst [vmem:[#allocation158_spill] sm:$0xff] %v7342_v10  ;;  %v7346_v44 = vpop.f32.mrb[93].mxu1 }
 0x3d8   : > { %v4398_v40 = vpop.permute.xlu0 %4397  ;;  %11743 = vst [vmem:[#allocation159_spill] sm:$0xff] %v7346_v44  ;;  %v7348_v26 = vpop.f32.mrb[94].mxu1 }
 0x3d9   : > { %3555 = vrot.lane.b32.xlu1 %v6675_v0, %s5467_s11  ;;  %v4400_v5 = vsel %vm1332_vm6, %v4394_v52, %v4398_v40  ;;  %v4402_v24 = vsel %vm1332_vm6, %v4398_v40, %v4394_v52  ;;  %v7340_v31 = vpop.permute.xlu1 %2533  ;;  %11744 = vst [vmem:[#allocation160_spill] sm:$0xff] %v7348_v26  ;;  %v11829_v0 = vld [vmem:[#allocation23_spill] sm:$0xff] }
 0x3da   : > { %v2462_v22 = vmul.f32 %v7214_v21, %v11829_v0 }
 0x3db   : > { %4537 = vrot.lane.b32.xlu0 %v6952_v46, %s5466_s10 }
 0x3dc   : > { %v4409_v35 = vpop.permute.xlu0 %4408 }
 0x3dd   : > { %3566 = vperm.xlu1 %4889, %v6898_v57   ;;  %v7351_v48 = vmul.f32 %v4409_v35, %v4402_v24  ;;  %v7353_v14 = vmul.f32 %v4409_v35, %v4400_v5  ;;  %v7355_v40 = vpop.permute.xlu1 %2537  ;;  %v4632_v35 = vld [vmem:[%s10944_s4 + $0x38] sm:$0xff] }
 0x3df   : > { %11745 = vst [vmem:[#allocation161_spill] sm:$0xff] %v7351_v48  ;;  %11746 = vst [vmem:[#allocation162_spill] sm:$0xff] %v7353_v14  ;;  %4541 = vrot.lane.b32.xlu0 %v6966_v12, %s5466_s10  ;;  %v3613_v48 = vld [vmem:[%s10944_s4 + $0x20] sm:$0xff] }
 0x3e1   : > { %3581 = vrot.lane.b32.xlu1 %v6553_v20, %s5468_s12  ;;  %v7361_v52 = vpop.permute.xlu0 %1375  ;;  %v7363_v44 = vpop.permute.xlu1 %2548 }
 0x3e2   : > { %4890 = vset.pattern.permute.xlu1 %v11666_v34  ;;  %v11755_v34 = vmov 0 }
 0x3e3   : > { %4569 = vrot.lane.b32.xlu0 %v6952_v46, %s5467_s11 }
 0x3e5   : > { %3585 = vrot.lane.b32.xlu1 %v6596_v49, %s5468_s12  ;;  %v7370_v57 = vpop.permute.xlu0 %2400  ;;  %v7372_v5 = vpop.permute.xlu1 %2563  ;;  %v1159_v49 = vrot.slane %v6738_v32, 4 }
 0x3e6   : > { %11747 = vst [vmem:[#allocation163_spill] sm:$0xff] %v7370_v57  ;;  %11748 = vst [vmem:[#allocation164_spill] sm:$0xff] %v7372_v5  ;;  %v7388_v5 = vadd.s32 128, %v7157_v43  ;;  %v11770_v57 = vmov 0 }
 0x3e7   : > { %4573 = vrot.lane.b32.xlu0 %v6966_v12, %s5467_s11  ;;  %v1160_v20 = vadd.f32 %v1159_v49, %v6738_v32  ;;  %v2346_v49 = vmul.f32 %v7089_v58, %v2330_v33  ;;  %v2364_v32 = vsel %vm1332_vm6, %v6938_v37, %v6946_v27 }
 0x3e8   : > { %11751 = vst [vmem:[#allocation167_spill] sm:$0xff] %v7388_v5  ;;  %v554_v51 = vand.u32 15, %v7388_v5  ;;  %vm11296_vm2 = vcmp.lt.s32.totalorder %v7388_v5, 240 }
 0x3e9   : > { %3594 = vperm.xlu1 %4890, %v6844_v41   ;;  %v7380_v24 = vpop.permute.xlu0 %3418  ;;  %v7382_v14 = vpop.permute.xlu1 %2567  ;;  %v1196_v41 = vrot.slane %v6864_v9, 4  ;;  %v1161_v33 = vrot.slane %v1160_v20, 2 }
 0x3ea   : > { %11749 = vst [vmem:[#allocation165_spill] sm:$0xff] %v7380_v24  ;;  %11750 = vst [vmem:[#allocation166_spill] sm:$0xff] %v7382_v14  ;;  %v3614_v14 = vld [vmem:[%s10944_s4 + $0x28] sm:$0xff]  ;;  %v2332_v24 = vsel %vm11194_vm5, %v7082_v38, %v7074_v54  ;;  %vm7435_vm9 = vcmp.ge.s32.totalorder %v554_v51, 1  ;;  %v11759_v38 = vmov 0  ;;  %v11762_v54 = vmov 0 }
 0x3eb   : > { %4640 = vperm.xlu0 %4904, %v4632_v35   ;;  %v547_v35 = vand.u32 15, %v7157_v43  ;;  %v11760_v38 = vsel %vm7435_vm9, 4294967295, %v11759_v38  ;;  %vm7474_vm13 = vcmp.lt.s32.totalorder %v554_v51, 15  ;;  %v2428_v51 = vsel %vm1400_vm14, %v6973_v47, %v6988_v62 }
 0x3ec   : > { %11761 = vst [vmem:[#allocation173_spill] sm:$0xff] %v11760_v38  ;;  %v11771_v57 = vsel %vm7474_vm13, 4294967295, %v11770_v57 }
 0x3ed   : > { %4891 = vset.pattern.permute.xlu1 %v11633_v11  ;;  %v7391_v26 = vpop.permute.xlu0 %4427  ;;  %v7395_v10 = vpop.permute.xlu1 %2576  ;;  %v1197_v11 = vadd.f32 %v1196_v41, %v6864_v9  ;;  %vm7422_vm8 = vcmp.ge.s32.totalorder %v547_v35, 1  ;;  %v2378_v41 = vmul.f32 %v7223_v2, %v2364_v32  ;;  %vm7440_vm11 = vcmp.lt.s32.totalorder %v547_v35, 15  ;;  %11772 = vst [vmem:[#allocation178_spill] sm:$0xff] %v11771_v57  ;;  %v12071_v57 = vld [vmem:[#allocation137_spill] sm:$0xff] }
 0x3ee   : > { %11752 = vst [vmem:[#allocation168_spill] sm:$0xff] %v7391_v26  ;;  %3617 = vperm.xlu1 %4891, %v3613_v48   ;;  %11753 = vst [vmem:[#allocation169_spill] sm:$0xff] %v7395_v10  ;;  %v2366_v26 = vsel %vm1332_vm6, %v6946_v27, %v6938_v37  ;;  %v11756_v34 = vsel %vm7422_vm8, 4294967295, %v11755_v34  ;;  %v11763_v54 = vsel %vm7440_vm11, 4294967295, %v11762_v54  ;;  %v11765_v37 = vmov 0 }
 0x3ef   : > { %4603 = vrot.lane.b32.xlu0 %v6624_v53, %s5468_s12  ;;  %v2377_v48 = vmul.f32 %v7223_v2, %v2366_v26  ;;  %11757 = vst [vmem:[#allocation171_spill] sm:$0xff] %v11756_v34  ;;  %v2345_v26 = vmul.f32 %v7089_v58, %v2332_v24  ;;  %11764 = vst [vmem:[#allocation174_spill] sm:$0xff] %v11763_v54  ;;  %v2396_v27 = vsel %vm1365_vm10, %v7125_v55, %v7132_v29 }
 0x3f0   : > { %vm7450_vm12 = vmand %vm567_vm7, %vm7422_vm8  ;;  %v2398_v2 = vsel %vm1365_vm10, %v7132_v29, %v7125_v55  ;;  %v2410_v32 = vmul.f32 %v7139_v61, %v2396_v27 }
 0x3f1   : > { %v7410_v10 = vpop.permute.xlu0 %4436  ;;  %v2381_v58 = vsel %vm567_vm7, %v2377_v48, 0.0  ;;  %v11766_v37 = vsel %vm7450_vm12, 4294967295, %v11765_v37  ;;  %v2349_v35 = vsel %vm7450_vm12, %v2345_v26, 0.0  ;;  %v2409_v48 = vmul.f32 %v7139_v61, %v2398_v2  ;;  %vm7483_vm15 = vmand %vm567_vm7, %vm7440_vm11 }
 0x3f2   : > { %11754 = vst [vmem:[#allocation170_spill] sm:$0xff] %v7410_v10  ;;  %3622 = vperm.xlu1 %4891, %v3614_v14   ;;  %v7432_v9 = vpop.permute.xlu1 %2599  ;;  %11767 = vst [vmem:[#allocation175_spill] sm:$0xff] %v11766_v37  ;;  %v1198_v14 = vrot.slane %v1197_v11, 2  ;;  %v2385_v29 = vadd.f32 %v2381_v58, %v2349_v35  ;;  %v11773_v26 = vmov 0  ;;  %v1162_v61 = vadd.f32 %v1161_v33, %v1160_v20 }
 0x3f3   : > { %11758 = vst [vmem:[#allocation172_spill] sm:$0xff] %v7432_v9  ;;  %v2350_v9 = vsel %vm7435_vm9, %v2346_v49, 0.0  ;;  %v11774_v26 = vsel %vm7483_vm15, 4294967295, %v11773_v26  ;;  %v2413_v58 = vsel %vm7483_vm15, %v2409_v48, 0.0  ;;  %v2414_v20 = vsel %vm7474_vm13, %v2410_v32, 0.0 }
 0x3f4   : > { %v2386_v55 = vadd.f32 %v2378_v41, %v2350_v9  ;;  %11775 = vst [vmem:[#allocation179_spill] sm:$0xff] %v11774_v26  ;;  %v1199_v49 = vadd.f32 %v1198_v14, %v1197_v11  ;;  %v2430_v9 = vsel %vm1400_vm14, %v6988_v62, %v6973_v47  ;;  %v2417_v14 = vadd.f32 %v2413_v58, %v2385_v29 }
 0x3f5   : > { %v1163_v47 = vrot.slane %v1162_v61, 1 }
 0x3f6   : > { %4359 = vrot.lane.b32.xlu1 %v6952_v46, %s5456_s26  ;;  %v7464_v24 = vpop.permute.xlu0 %1406  ;;  %v2418_v33 = vadd.f32 %v2414_v20, %v2386_v55  ;;  %v1200_v32 = vrot.slane %v1199_v49, 1  ;;  %v7516_v55 = vpop.f32.mrb[95].mxu1 }
 0x3f7   : > { %11768 = vst [vmem:[#allocation176_spill] sm:$0xff] %v7464_v24  ;;  %v7472_v10 = vpop.permute.xlu1 %2604  ;;  %11776 = vst [vmem:[#allocation180_spill] sm:$0xff] %v7516_v55  ;;  %v1164_v29 = vadd.f32 %v1163_v47, %v1162_v61  ;;  %v1336_v47 = vsel %vm1332_vm6, %v6726_v8, %v6700_v15 }
 0x3f8   : > { %11769 = vst [vmem:[#allocation177_spill] sm:$0xff] %v7472_v10 }
 0x3f9   : > { %5043 = vrcp.f32 %v1164_v29 }
 0x3fa   : > { %4363 = vrot.lane.b32.xlu1 %v6966_v12, %s5456_s26  ;;  %v2437_v41 = vpop.permute.xlu0 %2436 }
 0x3fb   : > { %v2441_v11 = vmul.f32 %v2437_v41, %v2430_v9  ;;  %v2442_v27 = vmul.f32 %v2437_v41, %v2428_v51  ;;  %v7501_v2 = vpop.permute.xlu1 %3341  ;;  %v1201_v41 = vadd.f32 %v1200_v32, %v1199_v49 }
 0x3fd   : > { %v2445_v35 = vsel %vm7422_vm8, %v2441_v11, 0.0  ;;  %v2446_v10 = vsel %vm7435_vm9, %v2442_v27, 0.0  ;;  %5045 = vrcp.f32 %v1201_v41  ;;  %v11778_v27 = vld [vmem:[#allocation45_spill] sm:$0xff]  ;;  %v1334_v41 = vsel %vm1332_vm6, %v6700_v15, %v6726_v8 }
 0x3fe   : > { %v7507_v62 = vadd.f32 %v2445_v35, %v2417_v14  ;;  %v7509_v24 = vadd.f32 %v2446_v10, %v2418_v33  ;;  %4376 = vperm.xlu1 %4891, %v6980_v4   ;;  %v7512_v48 = vpop.permute.xlu0 %3454  ;;  %v1299_v49 = vsel %vm11194_vm5, %v6635_v6, %v11778_v27  ;;  %v1368_v15 = vsel %vm1365_vm10, %v6788_v39, %v6772_v19  ;;  %v11785_v8 = vld [vmem:[#allocation53_spill] sm:$0xff] }
 0x3ff   : > { %v7514_v51 = vpop.permute.xlu1 %3345  ;;  %v1312_v33 = vmul.f32 %v6668_v1, %v1299_v49 }
 0x402   : > { %4391 = vrot.lane.b32.xlu1 %v6928_v50, %s5458_s29  ;;  %v4458_v9 = vpop.permute.xlu0 %4457 }
 0x403   : > { %v7520_v58 = vpop.permute.xlu1 %3358  ;;  %4892 = vset.pattern.permute.xlu1 %v11592_v13  ;;  %v1297_v13 = vsel %vm11194_vm5, %v11778_v27, %v6635_v6  ;;  %v1347_v6 = vmul.f32 %v6755_v23, %v1336_v47 }
 0x404   : > { %v1313_v35 = vmul.f32 %v6668_v1, %v1297_v13  ;;  %v1318_v1 = vsel %vm7450_vm12, %v1312_v33, 0.0 }
 0x405   : > { %v1351_v47 = vsel %vm567_vm7, %v1347_v6, 0.0  ;;  %v1402_v6 = vsel %vm1400_vm14, %v6827_v28, %v6839_v60 }
 0x406   : > { %4395 = vrot.lane.b32.xlu1 %v6624_v53, %s5458_s29  ;;  %v4462_v10 = vpop.permute.xlu0 %4461  ;;  %v1319_v49 = vsel %vm7435_vm9, %v1313_v35, 0.0  ;;  %v5044_v35 = vpop.eup %5043 }
 0x407   : > { %v7525_v20 = vpop.permute.xlu1 %3373  ;;  %v4464_v61 = vsel %vm1400_vm14, %v4458_v9, %v4462_v10  ;;  %v4466_v11 = vsel %vm1400_vm14, %v4462_v10, %v4458_v9  ;;  %v1348_v10 = vmul.f32 %v6755_v23, %v1334_v41  ;;  %v7579_v23 = vsel %vm1332_vm6, %v11785_v8, %v6733_v45 }
 0x408   : > { %11777 = vst [vmem:[#allocation181_spill] sm:$0xff] %v7525_v20  ;;  %v1366_v41 = vsel %vm1365_vm10, %v6772_v19, %v6788_v39  ;;  %v1404_v19 = vsel %vm1400_vm14, %v6839_v60, %v6827_v28  ;;  %v11795_v28 = vld [vmem:[#allocation55_spill] sm:$0xff] }
 0x409   : > { %v1367_v60 = vsel %vm1365_vm10, %v11795_v28, %v6777_v3 }
 0x40a   : > { %4404 = vperm.xlu1 %4892, %v7037_v17   ;;  %v4473_v14 = vpop.permute.xlu0 %4472 }
 0x40b   : > { %v7546_v32 = vpop.permute.xlu1 %3377  ;;  %v7548_v29 = vmul.f32 %v4473_v14, %v4466_v11  ;;  %v7550_v9 = vmul.f32 %v4473_v14, %v4464_v61  ;;  %v11782_v11 = vld [vmem:[#allocation16_spill] sm:$0xff] }
 0x40c   : > { %11779 = vst [vmem:[#allocation45_spill] sm:$0xff] %v7546_v32  ;;  %v11783_v61 = vld [vmem:[#allocation52_spill] sm:$0xff]  ;;  %v11827_v32 = vld [vmem:[#allocation89_spill] sm:$0xff] }
 0x40d   : > { %11780 = vst [vmem:[#allocation182_spill] sm:$0xff] %v7548_v29  ;;  %11781 = vst [vmem:[#allocation183_spill] sm:$0xff] %v7550_v9  ;;  %v7567_v27 = vsel %vm11194_vm5, %v11783_v61, %v11782_v11  ;;  %v7590_v14 = vsel %vm11194_vm5, %v11782_v11, %v11783_v61  ;;  %v7599_v9 = vmul.f32 %v6800_v18, %v1368_v15  ;;  %v5046_v61 = vpop.eup %5045 }
 0x40e   : > { %4423 = vrot.lane.b32.xlu1 %v6928_v50, %s5460_s30  ;;  %11784 = vst [vmem:[#allocation16_spill] sm:$0xff] %v7567_v27  ;;  %11786 = vst [vmem:[#allocation52_spill] sm:$0xff] %v7579_v23  ;;  %v7608_v29 = vmul.f32 %v6800_v18, %v1366_v41  ;;  %v7626_v18 = vmul.f32 %v6856_v56, %v1402_v6  ;;  %v7632_v27 = vadd.f32 %v1351_v47, %v1318_v1  ;;  %v11797_v6 = vld [vmem:[#allocation3_spill] sm:$0xff] }
 0x40f   : > { %v7581_v13 = vpop.permute.xlu1 %3386  ;;  %v7583_v33 = vpop.permute.xlu0 %1455  ;;  %4895 = vset.pattern.permute.xlu1 %v11601_v63  ;;  %11789 = vst [vmem:[#allocation185_spill] sm:$0xff] %v7590_v14  ;;  %11790 = vst [vmem:[#allocation186_spill] sm:$0xff] %v7599_v9  ;;  %v7605_v63 = vsel %vm1332_vm6, %v6733_v45, %v11785_v8  ;;  %v7620_v45 = vadd.f32 %v1348_v10, %v1319_v49  ;;  %v7623_v8 = vmul.f32 %v6856_v56, %v1404_v19  ;;  %v11811_v9 = vld [vmem:[#allocation4_spill] sm:$0xff] }
 0x410   : > { %11787 = vst [vmem:[#allocation53_spill] sm:$0xff] %v7581_v13  ;;  %11788 = vst [vmem:[#allocation184_spill] sm:$0xff] %v7583_v33  ;;  %v1369_v10 = vsel %vm1365_vm10, %v6777_v3, %v11795_v28  ;;  %v7651_v47 = vmul.f32 %v6805_v30, %v11631_v36  ;;  %v7655_v19 = vmul.f32 %v6805_v30, %v11797_v6  ;;  %v11800_v28 = vld [vmem:[#allocation59_spill] sm:$0xff] }
 0x411   : > { %11791 = vst [vmem:[#allocation187_spill] sm:$0xff] %v7605_v63  ;;  %11792 = vst [vmem:[#allocation188_spill] sm:$0xff] %v7608_v29  ;;  %v11803_v36 = vld [vmem:[#allocation79_spill] sm:$0xff]  ;;  %v1380_v33 = vmul.f32 %v7361_v52, %v1369_v10  ;;  %v3348_v10 = vsel %vm11194_vm5, %v7501_v2, %v7514_v51 }
 0x412   : > { %v1270_v11 = vpop.f32.mrb[32].mxu0  ;;  %4425 = vrot.lane.b32.xlu1 %v6952_v46, %s5460_s30  ;;  %v11810_v29 = vld [vmem:[#allocation7_spill] sm:$0xff] }
 0x413   : > { %v7618_v39 = vmul.f32 %v5044_v35, %v1270_v11  ;;  %v1272_v15 = vpop.f32.mrb[33].mxu0  ;;  %v7644_v11 = vpop.permute.xlu1 %3405 }
 0x414   : > { %v7628_v41 = vmul.f32 %v5046_v61, %v1272_v15  ;;  %v1274_v55 = vpop.f32.mrb[34].mxu0  ;;  %11796 = vst [vmem:[#allocation55_spill] sm:$0xff] %v7644_v11  ;;  %v7659_v3 = vpop.permute.xlu0 %2480 }
 0x415   : > { %11793 = vst [vmem:[#allocation189_spill] sm:$0xff] %v7618_v39  ;;  %v7642_v56 = vmul.f32 %v5044_v35, %v1274_v55  ;;  %v1276_v49 = vpop.f32.mrb[35].mxu0  ;;  %11798 = vst [vmem:[#allocation3_spill] sm:$0xff] %v7659_v3  ;;  %v11799_v35 = vld [vmem:[#allocation57_spill] sm:$0xff]  ;;  %v11805_v3 = vld [vmem:[#allocation48_spill] sm:$0xff]  ;;  %v1451_v55 = vsel %vm1449_vm0, %v11811_v9, %v11810_v29 }
 0x416   : > { %11794 = vst [vmem:[#allocation190_spill] sm:$0xff] %v7628_v41  ;;  %v7657_v15 = vmul.f32 %v5046_v61, %v1276_v49  ;;  %v7668_v1 = vsel %vm1400_vm14, %v11800_v28, %v11799_v35  ;;  %v7674_v30 = vsel %vm1400_vm14, %v11799_v35, %v11800_v28  ;;  %v11804_v61 = vld [vmem:[#allocation70_spill] sm:$0xff]  ;;  %v11806_v41 = vld [vmem:[#allocation39_spill] sm:$0xff]  ;;  %4429 = vrot.lane.b32.xlu1 %v6966_v12, %s5460_s30  ;;  %s4824_s30 = sshll.u32 %s12566_s19, 6 }
 0x417   : > { %11801 = vst [vmem:[#allocation57_spill] sm:$0xff] %v7668_v1  ;;  %11802 = vst [vmem:[#allocation59_spill] sm:$0xff] %v7674_v30  ;;  %v7680_v49 = vsel %vm11211_vm3, %v11804_v61, %v11803_v36  ;;  %v7690_v39 = vmul.f32 %v11806_v41, %v11805_v3  ;;  %v7698_v35 = vsel %vm11211_vm3, %v11803_v36, %v11804_v61  ;;  %v11808_v28 = vld [vmem:[#allocation2_spill] sm:$0xff]  ;;  %v11812_v3 = vld [vmem:[#allocation17_spill] sm:$0xff]  ;;  %v3408_v61 = vpop.permute.xlu1 %3407  ;;  %s8100_s15 = scalar_lea.vmem %s10945_s5, %s4824_s30 }
 0x418   : > { %v7702_v6 = vmul.f32 %v11806_v41, %v11808_v28  ;;  %v7724_v41 = vsel %vm1449_vm0, %v11810_v29, %v11811_v9  ;;  %v11816_v28 = vld [vmem:[#allocation99_spill] sm:$0xff]  ;;  %v2476_v29 = vsel %vm1449_vm0, %v7225_v59, %v7241_v25  ;;  %v3364_v1 = vmul.f32 %v7520_v58, %v3348_v10  ;;  %v11828_v10 = vld [vmem:[#allocation77_spill] sm:$0xff] }
 0x419   : > { %11807 = vst [vmem:[#allocation79_spill] sm:$0xff] %v7690_v39  ;;  %v11813_v39 = vld [vmem:[#allocation41_spill] sm:$0xff] }
 0x41a   : > { %11809 = vst [vmem:[#allocation70_spill] sm:$0xff] %v7702_v6  ;;  %v7712_v14 = vsel %vm1449_vm0, %v11813_v39, %v11812_v3  ;;  %v7718_v36 = vsel %vm1449_vm0, %v11812_v3, %v11813_v39  ;;  %v11817_v6 = vld [vmem:[#allocation101_spill] sm:$0xff]  ;;  %v7732_v13 = vpop.f32.mrb[36].mxu0  ;;  %v7734_v39 = vpop.permute.xlu0 %3498  ;;  %4440 = vperm.xlu1 %4895, %v6980_v4   ;;  %v3368_v0 = vsel %vm7435_vm9, %v3364_v1, 0.0 }
 0x41b   : > { %11814 = vst [vmem:[#allocation48_spill] sm:$0xff] %v7712_v14  ;;  %11815 = vst [vmem:[#allocation39_spill] sm:$0xff] %v7718_v36  ;;  %v3384_v12 = vsel %vm1332_vm6, %v11817_v6, %v11816_v28  ;;  %v1381_v14 = vmul.f32 %v7361_v52, %v1367_v60  ;;  %v7741_v9 = vpop.f32.mrb[37].mxu0  ;;  %v3350_v52 = vsel %vm11194_vm5, %v7514_v51, %v7501_v2  ;;  %v11821_v60 = vld [vmem:[#allocation82_spill] sm:$0xff]  ;;  %v3412_v46 = vpop.permute.xlu1 %3411 }
 0x41c   : > { %11818 = vst [vmem:[#allocation2_spill] sm:$0xff] %v7732_v13  ;;  %11819 = vst [vmem:[#allocation7_spill] sm:$0xff] %v7734_v39  ;;  %v3395_v3 = vmul.f32 %v7239_v7, %v3384_v12  ;;  %v7752_v39 = vmul.f32 %v11821_v60, %v1451_v55  ;;  %v7755_v12 = vmul.f32 %v7257_v16, %v2476_v29  ;;  %v7757_v36 = vpop.f32.mrb[38].mxu0  ;;  %v11824_v55 = vld [vmem:[#allocation107_spill] sm:$0xff]  ;;  %v11825_v29 = vld [vmem:[#allocation105_spill] sm:$0xff] }
 0x41d   : > { %11820 = vst [vmem:[#allocation4_spill] sm:$0xff] %v7741_v9  ;;  %11822 = vst [vmem:[#allocation17_spill] sm:$0xff] %v7757_v36  ;;  %v3363_v11 = vmul.f32 %v7520_v58, %v3350_v52  ;;  %v3382_v2 = vsel %vm1332_vm6, %v11816_v28, %v11817_v6  ;;  %v7767_v51 = vpop.f32.mrb[39].mxu0  ;;  %v3446_v30 = vsel %vm1400_vm14, %v11825_v29, %v11824_v55  ;;  %v11826_v52 = vld [vmem:[#allocation13_spill] sm:$0xff]  ;;  %v1386_v28 = vsel %vm7483_vm15, %v1380_v33, 0.0 }
 0x41e   : > { %11823 = vst [vmem:[#allocation41_spill] sm:$0xff] %v7767_v51  ;;  %v2508_v4 = vsel %vm11211_vm3, %v11827_v32, %v11826_v52  ;;  %v2510_v58 = vsel %vm11211_vm3, %v11826_v52, %v11827_v32  ;;  %v2461_v6 = vmul.f32 %v7214_v21, %v11828_v10  ;;  %v1387_v20 = vsel %vm7474_vm13, %v1381_v14, 0.0  ;;  %v7791_v63 = vpop.permute.xlu0 %4516  ;;  %4455 = vrot.lane.b32.xlu1 %v6928_v50, %s5462_s6  ;;  %vm7870_vm5 = vmand %vm11296_vm2, %vm7435_vm9 }
 0x41f   : > { %v3448_v23 = vsel %vm1400_vm14, %v11824_v55, %v11825_v29  ;;  %v3396_v32 = vmul.f32 %v7239_v7, %v3382_v2  ;;  %v3399_v52 = vsel %vm567_vm7, %v3395_v3, 0.0  ;;  %v2478_v33 = vsel %vm1449_vm0, %v7241_v25, %v7225_v59 }
 0x420   : > { %v2490_v14 = vmul.f32 %v7257_v16, %v2478_v33  ;;  %v2493_v55 = vsel %vm7440_vm11, %v7755_v12, 0.0  ;;  %v3367_v29 = vsel %vm7450_vm12, %v3363_v11, 0.0  ;;  %v1390_v21 = vadd.f32 %v1386_v28, %v7632_v27  ;;  %v3423_v16 = vpop.permute.xlu1 %3422 }
 0x421   : > { %v1391_v7 = vadd.f32 %v1387_v20, %v7620_v45  ;;  %v3414_v25 = vsel %vm1365_vm10, %v3408_v61, %v3412_v46  ;;  %v3416_v59 = vsel %vm1365_vm10, %v3412_v46, %v3408_v61  ;;  %v11830_v3 = vmov 3  }
 0x422   : > { %4896 = vset.pattern.permute.xlu1 %v11830_v3  ;;  %v7820_v11 = vpop.f32.mrb[40].mxu0  ;;  %v3459_v1 = vmul.f32 %v7512_v48, %v3448_v23  ;;  %v3460_v12 = vmul.f32 %v7512_v48, %v3446_v30  ;;  %v3427_v27 = vmul.f32 %v3423_v16, %v3416_v59  ;;  %v3428_v2 = vmul.f32 %v3423_v16, %v3414_v25  ;;  %v1493_v20 = vpop.permute.xlu0 %1492 }
 0x423   : > { %11831 = vst [vmem:[#allocation99_spill] sm:$0xff] %v7820_v11  ;;  %v2465_v45 = vadd.f32 %v2461_v6, %v7507_v62  ;;  %v1896_v28 = vmax.f32 %v7732_v13, %v7820_v11  ;;  %v7827_v46 = vpop.f32.mrb[41].mxu0  ;;  %v3403_v61 = vadd.f32 %v3399_v52, %v3367_v29  ;;  %v3404_v33 = vadd.f32 %v3396_v32, %v3368_v0 }
 0x424   : > { %11832 = vst [vmem:[#allocation101_spill] sm:$0xff] %v7827_v46  ;;  %v2466_v3 = vadd.f32 %v2462_v22, %v7509_v24  ;;  %v1933_v10 = vmax.f32 %v7741_v9, %v7827_v46  ;;  %v7832_v23 = vpop.f32.mrb[42].mxu0  ;;  %v3431_v48 = vsel %vm7483_vm15, %v3427_v27, 0.0  ;;  %v3432_v62 = vsel %vm7474_vm13, %v3428_v2, 0.0  ;;  %4459 = vrot.lane.b32.xlu1 %v6624_v53, %s5462_s6  ;;  %v7848_v29 = vpop.permute.xlu1 %3437 }
 0x425   : > { %11833 = vst [vmem:[#allocation82_spill] sm:$0xff] %v7832_v23  ;;  %v11834_v30 = vsel %vm7422_vm8, %v7623_v8, 0.0  ;;  %v1897_v22 = vmax.f32 %v7757_v36, %v7832_v23  ;;  %v7846_v24 = vpop.f32.mrb[43].mxu0  ;;  %v3435_v32 = vadd.f32 %v3431_v48, %v3403_v61  ;;  %v3436_v52 = vadd.f32 %v3432_v62, %v3404_v33  ;;  %v11840_v48 = vld [vmem:[#allocation40_spill] sm:$0xff]  ;;  %v11841_v62 = vld [vmem:[#allocation37_spill] sm:$0xff] }
 0x426   : > { %v1423_v6 = vadd.f32 %v11834_v30, %v1390_v21  ;;  %11835 = vst [vmem:[#allocation107_spill] sm:$0xff] %v7846_v24  ;;  %v2494_v0 = vsel %vm7474_vm13, %v2490_v14, 0.0  ;;  %v11836_v25 = vsel %vm7435_vm9, %v7626_v18, 0.0  ;;  %v3463_v8 = vsel %vm7422_vm8, %v3459_v1, 0.0  ;;  %v2517_v16 = vpop.permute.xlu0 %2516 }
 0x427   : > { %v1424_v59 = vadd.f32 %v11836_v25, %v1391_v7  ;;  %v1934_v21 = vmax.f32 %v7767_v51, %v7846_v24  ;;  %v3464_v27 = vsel %vm7435_vm9, %v3460_v12, 0.0  ;;  %v2521_v2 = vmul.f32 %v2517_v16, %v2508_v4 }
 0x428   : > { %v2522_v61 = vmul.f32 %v2517_v16, %v2510_v58  ;;  %v7862_v33 = vadd.f32 %v3463_v8, %v3435_v32  ;;  %v1465_v14 = vmul.f32 %v11821_v60, %v7724_v41  ;;  %v11837_v18 = vmov 0  ;;  %4468 = vperm.xlu1 %4896, %v7037_v17   ;;  %v7882_v60 = vpop.permute.xlu1 %3441  ;;  %v11844_v8 = vld [vmem:[#allocation117_spill] sm:$0xff] }
 0x429   : > { %v11838_v18 = vsel %vm7870_vm5, 4294967295, %v11837_v18  ;;  %v2497_v7 = vadd.f32 %v2493_v55, %v2465_v45  ;;  %v2498_v1 = vadd.f32 %v2494_v0, %v2466_v3  ;;  %v7875_v12 = vadd.f32 %v3464_v27, %v3436_v52  ;;  %v11845_v27 = vld [vmem:[#allocation118_spill] sm:$0xff] }
 0x42a   : > { %11839 = vst [vmem:[#allocation105_spill] sm:$0xff] %v11838_v18  ;;  %v1439_v4 = vadd.f32 %v7651_v47, %v1423_v6  ;;  %v2525_v58 = vsel %vm7422_vm8, %v2521_v2, 0.0  ;;  %v2526_v41 = vsel %vm7870_vm5, %v2522_v61, 0.0  ;;  %v1552_v55 = vsel %vm11241_vm4, %v11841_v62, %v11840_v48  ;;  %v7888_v45 = vpop.f32.mrb[44].mxu0  ;;  %v3535_v32 = vpop.permute.xlu0 %3534 }
 0x42b   : > { %11842 = vst [vmem:[#allocation13_spill] sm:$0xff] %v7888_v45  ;;  %v1497_v3 = vmul.f32 %v1493_v20, %v7680_v49  ;;  %v1498_v30 = vmul.f32 %v1493_v20, %v7698_v35  ;;  %v7892_v47 = vadd.f32 %v2525_v58, %v2497_v7  ;;  %v7894_v6 = vadd.f32 %v2526_v41, %v2498_v1  ;;  %v7899_v0 = vpop.f32.mrb[45].mxu0  ;;  %v11849_v7 = vld [vmem:[#allocation9_spill] sm:$0xff]  ;;  %v11851_v58 = vld [vmem:[#allocation18_spill] sm:$0xff]  ;;  %v11853_v41 = vld [vmem:[#allocation87_spill] sm:$0xff] }
 0x42c   : > { %v7897_v52 = vmax.f32 %v1896_v28, %v7888_v45  ;;  %11843 = vst [vmem:[#allocation89_spill] sm:$0xff] %v7899_v0  ;;  %v1440_v25 = vadd.f32 %v7655_v19, %v1424_v59  ;;  %v7903_v16 = vmul.f32 %v3535_v32, %v11844_v8  ;;  %v7906_v2 = vmul.f32 %v3535_v32, %v11845_v27  ;;  %v7916_v28 = vpop.f32.mrb[46].mxu0  ;;  %v11848_v59 = vld [vmem:[#allocation83_spill] sm:$0xff]  ;;  %v11850_v1 = vld [vmem:[#allocation85_spill] sm:$0xff] }
 0x42d   : > { %v1468_v49 = vsel %vm7440_vm11, %v7752_v39, 0.0  ;;  %v1469_v35 = vsel %vm7474_vm13, %v1465_v14, 0.0  ;;  %v7914_v20 = vmax.f32 %v1933_v10, %v7899_v0  ;;  %11846 = vst [vmem:[#allocation23_spill] sm:$0xff] %v7916_v28  ;;  %v11847_v61 = vmov 4   ;;  %v11852_v14 = vld [vmem:[#allocation11_spill] sm:$0xff]  ;;  %v7938_v27 = vpop.f32.mrb[47].mxu0 }
 0x42e   : > { %4898 = vset.pattern.permute.xlu1 %v11847_v61  ;;  %v1554_v19 = vsel %vm11241_vm4, %v11840_v48, %v11841_v62  ;;  %v1483_v39 = vsel %vm11211_vm3, %v11849_v7, %v11848_v59  ;;  %v1520_v10 = vsel %vm1517_vm1, %v11851_v58, %v11850_v1  ;;  %v1521_v32 = vsel %vm1517_vm1, %v11853_v41, %v11852_v14  ;;  %v7941_v48 = vpop.permute.xlu1 %3450  ;;  %v11855_v62 = vld [vmem:[#allocation88_spill] sm:$0xff]  ;;  %v7951_v51 = vpop.permute.xlu0 %4552 }
 0x42f   : > { %v7936_v8 = vmax.f32 %v1897_v22, %v7916_v28  ;;  %11854 = vst [vmem:[#allocation40_spill] sm:$0xff] %v7938_v27  ;;  %4488 = vperm.xlu1 %4898, %v7037_v17   ;;  %v1533_v61 = vmul.f32 %v11855_v62, %v1521_v32  ;;  %v7945_v0 = vmax.f32 %v1934_v21, %v7938_v27  ;;  %v1503_v24 = vsel %vm7422_vm8, %v1497_v3, 0.0  ;;  %v11857_v22 = vld [vmem:[#allocation84_spill] sm:$0xff] }
 0x430   : > { %v1504_v46 = vsel %vm7870_vm5, %v1498_v30, 0.0  ;;  %11856 = vst [vmem:[#allocation37_spill] sm:$0xff] %v7951_v51  ;;  %v1485_v17 = vsel %vm11211_vm3, %v11848_v59, %v11849_v7  ;;  %v7958_v9 = vmul.f32 %v11857_v22, %v1483_v39  ;;  %v1472_v32 = vadd.f32 %v1468_v49, %v1439_v4  ;;  %v11858_v30 = vld [vmem:[#allocation19_spill] sm:$0xff]  ;;  %v11860_v4 = vld [vmem:[#allocation90_spill] sm:$0xff]  ;;  %vm8031_vm3 = vmand %vm11296_vm2, %vm7474_vm13 }
 0x431   : > { %v1473_v28 = vadd.f32 %v1469_v35, %v1440_v25  ;;  %v7961_v21 = vmul.f32 %v11857_v22, %v1485_v17  ;;  %v7967_v3 = vsel %vm1517_vm1, %v11850_v1, %v11851_v58  ;;  %v7970_v51 = vmul.f32 %v11858_v30, %v1520_v10  ;;  %v11859_v7 = vld [vmem:[#allocation91_spill] sm:$0xff]  ;;  %v7987_v1 = vld [vmem:[%s10943_s3 + $0x38] sm:$0xff]  ;;  %v11865_v22 = vld [vmem:[#allocation102_spill] sm:$0xff] }
 0x432   : > { %v1519_v59 = vsel %vm1517_vm1, %v11852_v14, %v11853_v41  ;;  %v1551_v25 = vsel %vm11241_vm4, %v11860_v4, %v11859_v7  ;;  %v1553_v49 = vsel %vm11241_vm4, %v11859_v7, %v11860_v4  ;;  %v1507_v35 = vadd.f32 %v1503_v24, %v1472_v32  ;;  %v11861_v14 = vld [vmem:[#allocation93_spill] sm:$0xff]  ;;  %v7999_v24 = vpop.f32.mrb[48].mxu0  ;;  %v11867_v7 = vld [vmem:[#allocation15_spill] sm:$0xff] }
 0x433   : > { %v1508_v39 = vadd.f32 %v1504_v46, %v1473_v28  ;;  %4492 = vperm.xlu1 %4898, %v7987_v1   ;;  %v1532_v58 = vmul.f32 %v11855_v62, %v1519_v59  ;;  %v1537_v10 = vsel %vm11296_vm2, %v1533_v61, 0.0  ;;  %v7994_v41 = vmul.f32 %v11861_v14, %v1551_v25  ;;  %11862 = vst [vmem:[#allocation117_spill] sm:$0xff] %v7999_v24  ;;  %v8001_v46 = vpop.permute.xlu1 %3470  ;;  %v11864_v28 = vld [vmem:[#allocation100_spill] sm:$0xff]  ;;  %v8009_v59 = vpop.f32.mrb[49].mxu0  ;;  %v11868_v4 = vld [vmem:[#allocation95_spill] sm:$0xff] }
 0x434   : > { %v7997_v17 = vmul.f32 %v11861_v14, %v1553_v49  ;;  %11863 = vst [vmem:[#allocation118_spill] sm:$0xff] %v8001_v46  ;;  %v2365_v32 = vsel %vm1332_vm6, %v11865_v22, %v11864_v28  ;;  %v1900_v62 = vmax.f32 %v7897_v52, %v7999_v24  ;;  %11866 = vst [vmem:[#allocation83_spill] sm:$0xff] %v8009_v59  ;;  %v1561_v61 = vpop.permute.xlu0 %1560  ;;  %v8025_v27 = vpop.f32.mrb[50].mxu0  ;;  %v11870_v23 = vmov 0  ;;  %v11878_v46 = vld [vmem:[#allocation96_spill] sm:$0xff] }
 0x435   : > { %v2572_v25 = vsel %vm11241_vm4, %v11868_v4, %v11867_v7  ;;  %v2574_v49 = vsel %vm11241_vm4, %v11867_v7, %v11868_v4  ;;  %v2542_v14 = vsel %vm1517_vm1, %v7355_v40, %v7340_v31  ;;  %v1937_v52 = vmax.f32 %v7914_v20, %v8009_v59  ;;  %11869 = vst [vmem:[#allocation9_spill] sm:$0xff] %v8025_v27  ;;  %v8038_v11 = vpop.f32.mrb[51].mxu0 }
 0x436   : > { %v1565_v24 = vmul.f32 %v1561_v61, %v1552_v55  ;;  %v1566_v45 = vmul.f32 %v1561_v61, %v1554_v19  ;;  %v11871_v23 = vsel %vm8031_vm3, 4294967295, %v11870_v23  ;;  %v2554_v7 = vmul.f32 %v7363_v44, %v2542_v14  ;;  %11873 = vst [vmem:[#allocation18_spill] sm:$0xff] %v8038_v11  ;;  %v11876_v14 = vld [vmem:[#allocation116_spill] sm:$0xff] }
 0x437   : > { %11872 = vst [vmem:[#allocation85_spill] sm:$0xff] %v11871_v23  ;;  %v1901_v4 = vmax.f32 %v7936_v8, %v8025_v27  ;;  %v1540_v20 = vadd.f32 %v1532_v58, %v1507_v35  ;;  %v1541_v59 = vadd.f32 %v1537_v10, %v1508_v39  ;;  %v11874_v36 = vmov 5   ;;  %v3475_v35 = vpop.permute.xlu1 %3474 }
 0x438   : > { %4900 = vset.pattern.permute.xlu1 %v11874_v36  ;;  %v2540_v55 = vsel %vm1517_vm1, %v7340_v31, %v7355_v40  ;;  %v1938_v19 = vmax.f32 %v7945_v0, %v8038_v11  ;;  %v1571_v61 = vsel %vm7440_vm11, %v1565_v24, 0.0  ;;  %v1572_v8 = vsel %vm8031_vm3, %v1566_v45, 0.0  ;;  %v2581_v58 = vpop.permute.xlu0 %2580  ;;  %v11875_v0 = vld [vmem:[#allocation104_spill] sm:$0xff]  ;;  %v11877_v24 = vld [vmem:[#allocation113_spill] sm:$0xff] }
 0x439   : > { %4520 = vperm.xlu1 %4900, %v7987_v1   ;;  %v2363_v36 = vsel %vm1332_vm6, %v11864_v28, %v11865_v22  ;;  %v2553_v31 = vmul.f32 %v7363_v44, %v2540_v55  ;;  %v1575_v40 = vadd.f32 %v1571_v61, %v1540_v20  ;;  %v1576_v39 = vadd.f32 %v1572_v8, %v1541_v59 }
 0x43a   : > { %v2375_v10 = vmul.f32 %v11875_v0, %v2365_v32  ;;  %v2427_v45 = vsel %vm1400_vm14, %v11877_v24, %v11876_v14  ;;  %v2585_v11 = vmul.f32 %v2581_v58, %v2572_v25  ;;  %v2586_v27 = vmul.f32 %v2581_v58, %v2574_v49  ;;  %v8072_v59 = vpop.f32.mrb[52].mxu0  ;;  %v11889_v58 = vld [vmem:[#allocation123_spill] sm:$0xff] }
 0x43b   : > { %v2558_v13 = vsel %vm11296_vm2, %v2554_v7, 0.0  ;;  %v1591_v28 = vadd.f32 %v11878_v46, %v1575_v40  ;;  %v1592_v44 = vadd.f32 %v11878_v46, %v1576_v39  ;;  %v2561_v22 = vadd.f32 %v2553_v31, %v7892_v47  ;;  %11879 = vst [vmem:[#allocation11_spill] sm:$0xff] %v8072_v59  ;;  %v3488_v46 = vpop.permute.xlu1 %3487  ;;  %v8083_v55 = vpop.f32.mrb[53].mxu0  ;;  %v11887_v40 = vld [vmem:[#allocation140_spill] sm:$0xff] }
 0x43c   : > { %v2429_v32 = vsel %vm1400_vm14, %v11876_v14, %v11877_v24  ;;  %v2562_v25 = vadd.f32 %v2558_v13, %v7894_v6  ;;  %v2589_v49 = vsel %vm7440_vm11, %v2585_v11, 0.0  ;;  %v2590_v7 = vsel %vm8031_vm3, %v2586_v27, 0.0  ;;  %11881 = vst [vmem:[#allocation87_spill] sm:$0xff] %v8083_v55  ;;  %v5446_v13 = vld [vmem:[%s10943_s3 + $0x30] sm:$0xff]  ;;  %v3599_v11 = vpop.permute.xlu0 %3598  ;;  %v8095_v27 = vpop.f32.mrb[54].mxu0 }
 0x43d   : > { %v11880_v20 = vmov 6   ;;  %v8081_v47 = vmax.f32 %v1900_v62, %v8072_v59  ;;  %v1595_v61 = vadd.f32 %v1591_v28, %v7642_v56  ;;  %v1596_v8 = vadd.f32 %v1592_v44, %v7657_v15  ;;  %11883 = vst [vmem:[#allocation84_spill] sm:$0xff] %v8095_v27  ;;  %v11885_v15 = vld [vmem:[#allocation139_spill] sm:$0xff]  ;;  %v8119_v28 = vpop.f32.mrb[55].mxu0 }
 0x43e   : > { %4901 = vset.pattern.permute.xlu1 %v11880_v20  ;;  %v8087_v31 = vadd.f32 %v2589_v49, %v2561_v22  ;;  %v8093_v6 = vmax.f32 %v1937_v52, %v8083_v55  ;;  %v8102_v56 = vadd.f32 %v2590_v7, %v2562_v25  ;;  %v8105_v62 = vmul.f32 %v3599_v11, %v11885_v15  ;;  %v11891_v20 = vld [vmem:[#allocation106_spill] sm:$0xff] }
 0x43f   : > { %4548 = vperm.xlu1 %4901, %v5446_v13   ;;  %v8108_v39 = vmul.f32 %v3599_v11, %v11887_v40  ;;  %v8111_v14 = vmul.f32 %v11889_v58, %v2429_v32  ;;  %v8114_v52 = vmul.f32 %v11889_v58, %v2427_v45  ;;  %v8117_v24 = vmax.f32 %v1901_v4, %v8095_v27  ;;  %v3492_v4 = vpop.permute.xlu1 %3491  ;;  %v11894_v40 = vld [vmem:[#allocation75_spill] sm:$0xff]  ;;  %v11895_v7 = vld [vmem:[#allocation74_spill] sm:$0xff]  ;;  %v11929_v27 = vld [vmem:[#allocation184_spill] sm:$0xff] }
 0x440   : > { %11882 = vst [vmem:[#allocation88_spill] sm:$0xff] %v8087_v31  ;;  %11884 = vst [vmem:[#allocation19_spill] sm:$0xff] %v8102_v56  ;;  %v4826_v44 = vpack.c.bf16 %v1596_v8, %v1595_v61  ;;  %v8129_v32 = vmul.f32 %v11858_v30, %v7967_v3  ;;  %v8132_v45 = vmax.f32 %v1938_v19, %v8119_v28  ;;  %v8137_v49 = vsel %vm11296_vm2, %v7970_v51, 0.0  ;;  %v11892_v61 = vld [vmem:[#allocation10_spill] sm:$0xff]  ;;  %v4504_v19 = vpop.permute.xlu0 %4503 }
 0x441   : > { %11886 = vst [vmem:[#allocation91_spill] sm:$0xff] %v8105_v62  ;;  %11888 = vst [vmem:[#allocation90_spill] sm:$0xff] %v8108_v39  ;;  %v2397_v8 = vsel %vm1365_vm10, %v11892_v61, %v11891_v20  ;;  %v3479_v3 = vmul.f32 %v3475_v35, %v6641_v42  ;;  %v11893_v30 = vmov 7   ;;  %v8153_v11 = vmul.f32 %v11875_v0, %v2363_v36  ;;  %v11896_v51 = vld [vmem:[#allocation126_spill] sm:$0xff]  ;;  %v11898_v0 = vld [vmem:[#allocation187_spill] sm:$0xff] }
 0x442   : > { %11890 = vst [vmem:[#allocation93_spill] sm:$0xff] %v8119_v28  ;;  %1610 = vst [vmem:[%s8100_s15 + $0x8] sm:$0xff] %v4826_v44  ;;  %v8157_v15 = vsel %vm567_vm7, %v2375_v10, 0.0  ;;  %v3480_v58 = vmul.f32 %v3475_v35, %v11894_v40  ;;  %v8168_v25 = vmul.f32 %v11896_v51, %v11895_v7  ;;  %v2395_v36 = vsel %vm1365_vm10, %v11891_v20, %v11892_v61  ;;  %v11899_v35 = vld [vmem:[#allocation130_spill] sm:$0xff]  ;;  %v8179_v44 = vpop.f32.mrb[56].mxu0 }
 0x443   : > { %4903 = vset.pattern.permute.xlu1 %v11893_v30  ;;  %v1345_v10 = vmul.f32 %v11899_v35, %v11898_v0  ;;  %11901 = vst [vmem:[#allocation102_spill] sm:$0xff] %v8179_v44  ;;  %v3494_v30 = vsel %vm1449_vm0, %v3488_v46, %v3492_v4  ;;  %v3496_v22 = vsel %vm1449_vm0, %v3492_v4, %v3488_v46  ;;  %v3503_v42 = vpop.permute.xlu1 %3502  ;;  %v8187_v31 = vpop.f32.mrb[57].mxu0  ;;  %vm11940_vm4 = vcmp.lt.s32.totalorder %v7157_v43, 17 }
 0x444   : > { %4580 = vperm.xlu1 %4903, %v5446_v13   ;;  %11897 = vst [vmem:[#allocation100_spill] sm:$0xff] %v8168_v25  ;;  %v11900_v13 = vld [vmem:[#allocation163_spill] sm:$0xff]  ;;  %v1904_v56 = vmax.f32 %v8081_v47, %v8179_v44  ;;  %11902 = vst [vmem:[#allocation15_spill] sm:$0xff] %v8187_v31  ;;  %v3483_v20 = vadd.f32 %v3479_v3, %v7862_v33  ;;  %v3507_v61 = vmul.f32 %v3503_v42, %v3494_v30  ;;  %v8192_v28 = vpop.f32.mrb[58].mxu0  ;;  %v11908_v30 = vld [vmem:[#allocation52_spill] sm:$0xff] }
 0x445   : > { %v8177_v40 = vmul.f32 %v11900_v13, %v2397_v8  ;;  %v3508_v0 = vmul.f32 %v3503_v42, %v3496_v22  ;;  %v4508_v8 = vpop.permute.xlu0 %4507  ;;  %v1941_v7 = vmax.f32 %v8093_v6, %v8187_v31  ;;  %11903 = vst [vmem:[#allocation95_spill] sm:$0xff] %v8192_v28  ;;  %v3484_v55 = vadd.f32 %v3480_v58, %v7875_v12  ;;  %v8202_v42 = vpop.f32.mrb[59].mxu0  ;;  %v11928_v44 = vld [vmem:[#allocation48_spill] sm:$0xff] }
 0x446   : > { %v4511_v46 = vsel %vm1449_vm0, %v4504_v19, %v4508_v8  ;;  %v4513_v47 = vsel %vm1449_vm0, %v4508_v8, %v4504_v19  ;;  %v1905_v33 = vmax.f32 %v8117_v24, %v8192_v28  ;;  %11904 = vst [vmem:[#allocation104_spill] sm:$0xff] %v8202_v42  ;;  %v3511_v6 = vsel %vm7440_vm11, %v3507_v61, 0.0  ;;  %v11936_v25 = vld [vmem:[#allocation16_spill] sm:$0xff] }
 0x447   : > { %v3512_v22 = vsel %vm7474_vm13, %v3508_v0, 0.0  ;;  %v8209_v12 = vmul.f32 %v7791_v63, %v4511_v46  ;;  %v1942_v4 = vmax.f32 %v8132_v45, %v8202_v42  ;;  %v3515_v3 = vadd.f32 %v3511_v6, %v3483_v20  ;;  %v8216_v24 = vpop.permute.xlu1 %3517  ;;  %v11911_v20 = vld [vmem:[#allocation45_spill] sm:$0xff]  ;;  %v11923_v42 = vld [vmem:[#allocation103_spill] sm:$0xff] }
 0x448   : > { %4584 = vperm.xlu1 %4903, %v7987_v1   ;;  %v3516_v19 = vadd.f32 %v3512_v22, %v3484_v55  ;;  %v8214_v58 = vmul.f32 %v7791_v63, %v4513_v47  ;;  %11907 = vst [vmem:[#allocation96_spill] sm:$0xff] %v8216_v24  ;;  %v1346_v8 = vmul.f32 %v11899_v35, %v11908_v30  ;;  %v3543_v0 = vsel %vm7422_vm8, %v7903_v16, 0.0  ;;  %v11910_v63 = vld [vmem:[#allocation181_spill] sm:$0xff]  ;;  %v11912_v47 = vld [vmem:[#allocation12_spill] sm:$0xff]  ;;  %v11913_v35 = vld [vmem:[#allocation86_spill] sm:$0xff] }
 0x449   : > { %11905 = vst [vmem:[#allocation116_spill] sm:$0xff] %v8209_v12  ;;  %v8221_v61 = vmul.f32 %v11900_v13, %v2395_v36  ;;  %v3544_v45 = vsel %vm7870_vm5, %v7906_v2, 0.0  ;;  %v8229_v55 = vpop.permute.xlu0 %4612  ;;  %v3383_v46 = vsel %vm1332_vm6, %v11911_v20, %v11910_v63  ;;  %v8239_v36 = vsel %vm1449_vm0, %v11913_v35, %v11912_v47  ;;  %v11914_v13 = vld [vmem:[#allocation71_spill] sm:$0xff]  ;;  %v11916_v30 = vld [vmem:[#allocation109_spill] sm:$0xff] }
 0x44a   : > { %11906 = vst [vmem:[#allocation113_spill] sm:$0xff] %v8214_v58  ;;  %11909 = vst [vmem:[#allocation139_spill] sm:$0xff] %v8229_v55  ;;  %v8243_v16 = vadd.f32 %v3543_v0, %v3515_v3  ;;  %v8245_v6 = vadd.f32 %v3544_v45, %v3516_v19  ;;  %v1349_v2 = vsel %vm567_vm7, %v1345_v10, 0.0  ;;  %v8253_v22 = vsel %vm1449_vm0, %v11912_v47, %v11913_v35  ;;  %v11917_v55 = vld [vmem:[#allocation108_spill] sm:$0xff]  ;;  %v11919_v0 = vld [vmem:[#allocation59_spill] sm:$0xff]  ;;  %v8277_v28 = vpop.f32.mrb[60].mxu0 }
 0x44b   : > { %v3493_v24 = vsel %vm1449_vm0, %v11917_v55, %v11916_v30  ;;  %v8263_v3 = vsel %vm1449_vm0, %v11916_v30, %v11917_v55  ;;  %v11918_v19 = vmov 8   ;;  %v11920_v45 = vld [vmem:[#allocation176_spill] sm:$0xff]  ;;  %v11921_v35 = vld [vmem:[#allocation57_spill] sm:$0xff]  ;;  %v11922_v12 = vld [vmem:[#allocation55_spill] sm:$0xff]  ;;  %11924 = vst [vmem:[#allocation123_spill] sm:$0xff] %v8277_v28  ;;  %v8279_v55 = vpop.permute.xlu1 %3521  ;;  %v8298_v59 = vmul.f32 %v11929_v27, %v11928_v44 }
 0x44c   : > { %4505 = vrot.lane.b32.xlu1 %v11914_v13, %s5463_s9  ;;  %11915 = vst [vmem:[#allocation140_spill] sm:$0xff] %v8245_v6  ;;  %v1413_v47 = vmul.f32 %v11920_v45, %v11919_v0  ;;  %v1414_v58 = vmul.f32 %v11920_v45, %v11921_v35  ;;  %v3415_v31 = vsel %vm1365_vm10, %v11923_v42, %v11922_v12  ;;  %11925 = vst [vmem:[#allocation106_spill] sm:$0xff] %v8279_v55  ;;  %v8290_v35 = vpop.f32.mrb[61].mxu0  ;;  %v11930_v30 = vld [vmem:[#allocation39_spill] sm:$0xff]  ;;  %v11935_v44 = vld [vmem:[#allocation185_spill] sm:$0xff] }
 0x44d   : > { %4905 = vset.pattern.permute.xlu1 %v11918_v19  ;;  %v11926_v19 = vld [vmem:[#allocation53_spill] sm:$0xff]  ;;  %v3413_v0 = vsel %vm1365_vm10, %v11922_v12, %v11923_v42  ;;  %v1906_v45 = vmax.f32 %v1904_v56, %v8277_v28  ;;  %11927 = vst [vmem:[#allocation10_spill] sm:$0xff] %v8290_v35  ;;  %v3381_v55 = vsel %vm1332_vm6, %v11910_v63, %v11911_v20  ;;  %v8305_v42 = vpop.f32.mrb[62].mxu0  ;;  %v11932_v56 = vld [vmem:[#allocation72_spill] sm:$0xff]  ;;  %v1303_v12 = vpop.permute.xlu0 %1302 }
 0x44e   : > { %v3393_v10 = vmul.f32 %v11926_v19, %v3383_v46  ;;  %v8302_v46 = vmul.f32 %v11929_v27, %v11930_v30  ;;  %v1943_v13 = vmax.f32 %v1941_v7, %v8290_v35  ;;  %11931 = vst [vmem:[#allocation75_spill] sm:$0xff] %v8305_v42  ;;  %v11933_v28 = vld [vmem:[#allocation165_spill] sm:$0xff]  ;;  %v1907_v63 = vmax.f32 %v1905_v33, %v8305_v42  ;;  %v8313_v20 = vpop.f32.mrb[63].mxu0 }
 0x44f   : > { %v8310_v39 = vmul.f32 %v11933_v28, %v3415_v31  ;;  %11934 = vst [vmem:[#allocation126_spill] sm:$0xff] %v8313_v20  ;;  %v1310_v62 = vmul.f32 %v1303_v12, %v11935_v44  ;;  %v1311_v27 = vmul.f32 %v1303_v12, %v11936_v25  ;;  %v1417_v7 = vsel %vm7422_vm8, %v1413_v47, 0.0 }
 0x450   : > { %4509 = vrot.lane.b32.xlu1 %v11932_v56, %s5463_s9  ;;  %v1418_v30 = vsel %vm7435_vm9, %v1414_v58, 0.0  ;;  %v8322_v35 = vmul.f32 %v11933_v28, %v3413_v0  ;;  %v1944_v31 = vmax.f32 %v1942_v4, %v8313_v20  ;;  %v8325_v56 = vpop.permute.xlu1 %3530  ;;  %v8328_v33 = vmul.f32 %v11926_v19, %v3381_v55  ;;  %v11938_v55 = vld [vmem:[#allocation46_spill] sm:$0xff]  ;;  %v11939_v19 = vld [vmem:[#allocation8_spill] sm:$0xff] }
 0x451   : > { %11937 = vst [vmem:[#allocation187_spill] sm:$0xff] %v8325_v56  ;;  %v8332_v44 = vsel %vm567_vm7, %v3393_v10, 0.0  ;;  %v1316_v25 = vsel %vm7450_vm12, %v1310_v62, 0.0  ;;  %v1317_v58 = vsel %vm7435_vm9, %v1311_v27, 0.0  ;;  %v3447_v28 = vsel %vm1400_vm14, %v7882_v60, %v7848_v29  ;;  %v2336_v0 = vpop.permute.xlu0 %2335 }
 0x452   : > { %v1353_v4 = vadd.f32 %v1349_v2, %v1316_v25  ;;  %v1354_v47 = vadd.f32 %v1346_v8, %v1317_v58  ;;  %v2331_v10 = vsel %vm11940_vm4, %v11939_v19, %v11938_v55  ;;  %v1466_v62 = vsel %vm7440_vm11, %v8298_v59, 0.0  ;;  %v8363_v25 = vpop.f32.mrb[64].mxu0  ;;  %v11942_v59 = vld [vmem:[#allocation186_spill] sm:$0xff]  ;;  %v11944_v8 = vld [vmem:[#allocation188_spill] sm:$0xff] }
 0x453   : > { %v1467_v12 = vsel %vm7474_vm13, %v8302_v46, 0.0  ;;  %v2343_v2 = vmul.f32 %v2336_v0, %v2331_v10  ;;  %v3445_v27 = vsel %vm1400_vm14, %v7848_v29, %v7882_v60  ;;  %11941 = vst [vmem:[#allocation130_spill] sm:$0xff] %v8363_v25  ;;  %v11943_v46 = vsel %vm7483_vm15, %v11942_v59, 0.0  ;;  %v8382_v60 = vpop.f32.mrb[65].mxu0 }
 0x454   : > { %4616 = vperm.xlu1 %4905, %v7987_v1   ;;  %v1388_v58 = vadd.f32 %v11943_v46, %v1353_v4  ;;  %v11945_v10 = vsel %vm7474_vm13, %v11944_v8, 0.0  ;;  %v8373_v20 = vpop.permute.xlu1 %3549  ;;  %v11947_v1 = vld [vmem:[#allocation7_spill] sm:$0xff]  ;;  %v8379_v6 = vmul.f32 %v7941_v48, %v3447_v28  ;;  %v1908_v29 = vmax.f32 %v1906_v45, %v8363_v25  ;;  %11949 = vst [vmem:[#allocation181_spill] sm:$0xff] %v8382_v60  ;;  %v11950_v45 = vld [vmem:[#allocation148_spill] sm:$0xff] }
 0x455   : > { %v1389_v56 = vadd.f32 %v11945_v10, %v1354_v47  ;;  %11946 = vst [vmem:[#allocation163_spill] sm:$0xff] %v8373_v20  ;;  %v8376_v42 = vmul.f32 %v11947_v1, %v3493_v24  ;;  %v2329_v4 = vsel %vm11940_vm4, %v11938_v55, %v11939_v19  ;;  %v1945_v8 = vmax.f32 %v1943_v13, %v8382_v60  ;;  %v8389_v47 = vpop.f32.mrb[66].mxu0  ;;  %v11951_v10 = vld [vmem:[#allocation144_spill] sm:$0xff]  ;;  %v11959_v60 = vld [vmem:[#allocation97_spill] sm:$0xff] }
 0x456   : > { %v1421_v59 = vadd.f32 %v1417_v7, %v1388_v58  ;;  %v2344_v24 = vmul.f32 %v2336_v0, %v2329_v4  ;;  %v8394_v28 = vmul.f32 %v7941_v48, %v3445_v27  ;;  %v11952_v20 = vmax.f32 %v11950_v45, %v11951_v10  ;;  %v8400_v55 = vpop.f32.mrb[67].mxu0  ;;  %v11957_v27 = vld [vmem:[#allocation79_spill] sm:$0xff]  ;;  %v11958_v4 = vld [vmem:[#allocation70_spill] sm:$0xff] }
 0x457   : > { %11948 = vst [vmem:[#allocation52_spill] sm:$0xff] %v8376_v42  ;;  %v1422_v46 = vadd.f32 %v1418_v30, %v1389_v56  ;;  %v1909_v42 = vmax.f32 %v1907_v63, %v8389_v47  ;;  %v2347_v13 = vsel %vm7450_vm12, %v2343_v2, 0.0  ;;  %v11953_v7 = vmov 0   ;;  %v11954_v56 = vld [vmem:[#allocation152_spill] sm:$0xff]  ;;  %v11955_v30 = vld [vmem:[#allocation147_spill] sm:$0xff] }
 0x458   : > { %4535 = vrot.lane.b32.xlu1 %v6928_v50, %s5466_s10  ;;  %v1919_v25 = vmax.f32 %v11952_v20, %v1908_v29  ;;  %v11956_v19 = vmax.f32 %v11954_v56, %v11955_v30  ;;  %v1946_v48 = vmax.f32 %v1944_v31, %v8400_v55  ;;  %v1437_v58 = vadd.f32 %v11957_v27, %v1421_v59  ;;  %v3354_v20 = vpop.permute.xlu0 %3353  ;;  %v3552_v29 = vpop.permute.xlu1 %3551  ;;  %v11960_v30 = vld [vmem:[#allocation98_spill] sm:$0xff]  ;;  %v11962_v27 = vld [vmem:[#allocation155_spill] sm:$0xff] }
 0x459   : > { %4906 = vset.pattern.permute.xlu1 %v11953_v7  ;;  %v1438_v10 = vadd.f32 %v11958_v4, %v1422_v46  ;;  %v8413_v63 = vmul.f32 %v11947_v1, %v8263_v3  ;;  %v3461_v2 = vsel %vm7422_vm8, %v8379_v6, 0.0  ;;  %v3349_v31 = vsel %vm11940_vm4, %v11960_v30, %v11959_v60  ;;  %v11961_v6 = vld [vmem:[#allocation154_spill] sm:$0xff] }
 0x45a   : > { %v1956_v0 = vmax.f32 %v11956_v19, %v1945_v8  ;;  %v1921_v7 = vmax.f32 %v1919_v25, %v1909_v42  ;;  %v1470_v59 = vadd.f32 %v1466_v62, %v1437_v58  ;;  %v2348_v46 = vsel %vm7435_vm9, %v2344_v24, 0.0  ;;  %v11967_v58 = vld [vmem:[#allocation156_spill] sm:$0xff] }
 0x45b   : > { %v1471_v19 = vadd.f32 %v1467_v12, %v1438_v10  ;;  %v3462_v3 = vsel %vm7435_vm9, %v8394_v28, 0.0  ;;  %v2383_v1 = vadd.f32 %v8157_v15, %v2347_v13  ;;  %v3361_v25 = vmul.f32 %v3354_v20, %v3349_v31  ;;  %v11965_v15 = vld [vmem:[#allocation43_spill] sm:$0xff]  ;;  %v11966_v13 = vld [vmem:[#allocation118_spill] sm:$0xff] }
 0x45c   : > { %v1958_v8 = vmax.f32 %v1956_v0, %v1946_v48  ;;  %4539 = vrot.lane.b32.xlu1 %v6624_v53, %s5466_s10  ;;  %v1923_v42 = vmax.f32 %v1921_v7, %v11961_v6  ;;  %v11963_v62 = vsel %vm7422_vm8, %v7958_v9, 0.0  ;;  %v11964_v24 = vsel %vm7870_vm5, %v7961_v21, 0.0  ;;  %v3556_v7 = vpop.permute.xlu1 %3555 }
 0x45d   : > { %v1505_v12 = vadd.f32 %v11963_v62, %v1470_v59  ;;  %v1506_v0 = vadd.f32 %v11964_v24, %v1471_v19  ;;  %v3347_v28 = vsel %vm11940_vm4, %v11959_v60, %v11960_v30  ;;  %v3477_v48 = vmul.f32 %v11966_v13, %v11965_v15  ;;  %v11969_v60 = vld [vmem:[#allocation158_spill] sm:$0xff] }
 0x45e   : > { %v1960_v4 = vmax.f32 %v1958_v8, %v11962_v27  ;;  %v1924_v10 = vmax.f32 %v11967_v58, %v1923_v42  ;;  %v2384_v31 = vadd.f32 %v8153_v11, %v2348_v46  ;;  %v3362_v9 = vmul.f32 %v3354_v20, %v3347_v28  ;;  %v11968_v8 = vld [vmem:[#allocation157_spill] sm:$0xff]  ;;  %v11971_v46 = vld [vmem:[#allocation159_spill] sm:$0xff] }
 0x45f   : > { %v1538_v62 = vadd.f32 %v8129_v32, %v1505_v12  ;;  %v1539_v21 = vadd.f32 %v8137_v49, %v1506_v0  ;;  %v3365_v19 = vsel %vm7450_vm12, %v3361_v25, 0.0  ;;  %v11970_v42 = vsel %vm7483_vm15, %v8177_v40, 0.0  ;;  %v11974_v0 = vld [vmem:[#allocation47_spill] sm:$0xff] }
 0x460   : > { %v1961_v59 = vmax.f32 %v11968_v8, %v1960_v4  ;;  %4567 = vrot.lane.b32.xlu1 %v6928_v50, %s5467_s11  ;;  %v1925_v30 = vmax.f32 %v11969_v60, %v1924_v10  ;;  %v2415_v11 = vadd.f32 %v11970_v42, %v2383_v1  ;;  %v3366_v20 = vsel %vm7435_vm9, %v3362_v9, 0.0  ;;  %v3567_v1 = vpop.permute.xlu1 %3566  ;;  %v11975_v10 = vld [vmem:[#allocation160_spill] sm:$0xff] }
 0x461   : > { %v3401_v32 = vadd.f32 %v8332_v44, %v3365_v19  ;;  %v11972_v25 = vsel %vm7440_vm11, %v7994_v41, 0.0  ;;  %v11973_v12 = vsel %vm8031_vm3, %v7997_v17, 0.0  ;;  %v3402_v40 = vadd.f32 %v8328_v33, %v3366_v20  ;;  %v11978_v17 = vld [vmem:[#allocation180_spill] sm:$0xff]  ;;  %v11979_v19 = vld [vmem:[#allocation94_spill] sm:$0xff] }
 0x462   : > { %v1962_v49 = vmax.f32 %v11971_v46, %v1961_v59  ;;  %v1573_v4 = vadd.f32 %v11972_v25, %v1538_v62  ;;  %v1574_v24 = vadd.f32 %v11973_v12, %v1539_v21  ;;  %v3478_v28 = vmul.f32 %v11966_v13, %v11974_v0  ;;  %v11983_v12 = vld [vmem:[#allocation190_spill] sm:$0xff] }
 0x463   : > { %v1926_v44 = vmax.f32 %v11975_v10, %v1925_v30  ;;  %v11976_v9 = vsel %vm7474_vm13, %v8221_v61, 0.0  ;;  %v11977_v41 = vsel %vm7483_vm15, %v8310_v39, 0.0  ;;  %v11980_v13 = vsel %vm7474_vm13, %v8322_v35, 0.0  ;;  %v11982_v35 = vld [vmem:[#allocation189_spill] sm:$0xff] }
 0x464   : > { %v2416_v59 = vadd.f32 %v11976_v9, %v2384_v31  ;;  %v3433_v62 = vadd.f32 %v11977_v41, %v3401_v32  ;;  %v1963_v21 = vmax.f32 %v11978_v17, %v1962_v49  ;;  %v1589_v33 = vadd.f32 %v11979_v19, %v1573_v4  ;;  %4571 = vrot.lane.b32.xlu1 %v6624_v53, %s5467_s11  ;;  %v4631_v49 = vld [vmem:[%s10944_s4 + $0x30] sm:$0xff]  ;;  %v8504_v0 = vpop.permute.xlu1 %3581 }
 0x465   : > { %v1590_v42 = vadd.f32 %v11979_v19, %v1574_v24  ;;  %v3434_v30 = vadd.f32 %v11980_v13, %v3402_v40  ;;  %v1927_v61 = vrot.slane %v1926_v44, 4  ;;  %v11981_v39 = vsel %vm7422_vm8, %v8111_v14, 0.0  ;;  %11984 = vst [vmem:[#allocation45_spill] sm:$0xff] %v8504_v0 }
 0x466   : > { %v2447_v31 = vadd.f32 %v11981_v39, %v2415_v11  ;;  %v3465_v20 = vadd.f32 %v3461_v2, %v3433_v62  ;;  %v3558_v32 = vsel %vm1517_vm1, %v3552_v29, %v3556_v7  ;;  %v1964_v25 = vrot.slane %v1963_v21, 4 }
 0x467   : > { %v1593_v4 = vadd.f32 %v1589_v33, %v11982_v35  ;;  %v1594_v24 = vadd.f32 %v1590_v42, %v11983_v12  ;;  %v3466_v40 = vadd.f32 %v3462_v3, %v3434_v30  ;;  %v1928_v9 = vmax.f32 %v1926_v44, %v1927_v61  ;;  %v11986_v42 = vld [vmem:[#allocation22_spill] sm:$0xff]  ;;  %v11987_v30 = vld [vmem:[#allocation3_spill] sm:$0xff] }
 0x468   : > { %v11985_v14 = vsel %vm7435_vm9, %v8114_v52, 0.0  ;;  %v3560_v11 = vsel %vm1517_vm1, %v3556_v7, %v3552_v29  ;;  %v3571_v41 = vmul.f32 %v3567_v1, %v3558_v32  ;;  %v1965_v62 = vmax.f32 %v1963_v21, %v1964_v25  ;;  %4635 = vperm.xlu1 %4906, %v4631_v49   ;;  %v11990_v21 = vld [vmem:[#allocation140_spill] sm:$0xff]  ;;  %v11993_v35 = vld [vmem:[#allocation91_spill] sm:$0xff]  ;;  %v11994_v12 = vld [vmem:[#allocation90_spill] sm:$0xff] }
 0x469   : > { %v2448_v2 = vadd.f32 %v11985_v14, %v2416_v59  ;;  %v4825_v19 = vpack.c.bf16 %v1594_v24, %v1593_v4  ;;  %v3481_v13 = vadd.f32 %v3477_v48, %v3465_v20  ;;  %v3572_v33 = vmul.f32 %v3567_v1, %v3560_v11  ;;  %v8522_v48 = vpop.permute.xlu1 %3585  ;;  %v11989_v1 = vld [vmem:[#allocation52_spill] sm:$0xff] }
 0x46a   : > { %v2460_v3 = vmul.f32 %v11896_v51, %v11986_v42  ;;  %v2487_v44 = vmul.f32 %v11987_v30, %v8239_v36  ;;  %v1929_v61 = vrot.slane %v1928_v9, 2  ;;  %v3482_v39 = vadd.f32 %v3478_v28, %v3466_v40  ;;  %11988 = vst [vmem:[#allocation12_spill] sm:$0xff] %v8522_v48  ;;  %v11991_v32 = vld [vmem:[#allocation100_spill] sm:$0xff]  ;;  %v8542_v40 = vpop.permute.xlu0 %4371 }
 0x46b   : > { %v2488_v52 = vmul.f32 %v11987_v30, %v8253_v22  ;;  %v1966_v59 = vrot.slane %v1965_v62, 2  ;;  %1609 = vst [vmem:[%s8100_s15] sm:$0xff] %v4825_v19  ;;  %v3576_v29 = vsel %vm11296_vm2, %v3572_v33, 0.0  ;;  %v3579_v7 = vadd.f32 %v3571_v41, %v8243_v16  ;;  %v11999_v33 = vld [vmem:[#allocation150_spill] sm:$0xff]  ;;  %vm12135_vm2 = vmmov %vm11940_vm4 }
 0x46c   : > { %v3509_v51 = vsel %vm7440_vm11, %v11989_v1, 0.0  ;;  %v3510_v36 = vsel %vm7474_vm13, %v8413_v63, 0.0  ;;  %v1930_v28 = vmax.f32 %v1928_v9, %v1929_v61  ;;  %v3580_v22 = vadd.f32 %v3576_v29, %v11990_v21  ;;  %4599 = vrot.lane.b32.xlu1 %v6928_v50, %s5468_s12  ;;  %v12006_v29 = vld [vmem:[#allocation99_spill] sm:$0xff]  ;;  %v12007_v1 = vld [vmem:[#allocation82_spill] sm:$0xff] }
 0x46d   : > { %v1967_v20 = vmax.f32 %v1965_v62, %v1966_v59  ;;  %v2463_v49 = vadd.f32 %v11991_v32, %v2447_v31  ;;  %v2464_v25 = vadd.f32 %v2460_v3, %v2448_v2  ;;  %v8534_v16 = vadd.f32 %v3509_v51, %v3481_v13  ;;  %v8546_v14 = vpop.permute.xlu1 %3594  ;;  %v12001_v3 = vld [vmem:[#allocation71_spill] sm:$0xff] }
 0x46e   : > { %v3607_v4 = vsel %vm7440_vm11, %v11993_v35, 0.0  ;;  %v3608_v63 = vsel %vm8031_vm3, %v11994_v12, 0.0  ;;  %v1931_v24 = vrot.slane %v1930_v28, 1  ;;  %v8544_v9 = vadd.f32 %v3510_v36, %v3482_v39  ;;  %11996 = vst [vmem:[#allocation108_spill] sm:$0xff] %v8546_v14  ;;  %v12008_v36 = vld [vmem:[#allocation13_spill] sm:$0xff]  ;;  %v12009_v21 = vld [vmem:[#allocation23_spill] sm:$0xff] }
 0x46f   : > { %11992 = vst [vmem:[#allocation86_spill] sm:$0xff] %v8534_v16  ;;  %v1968_v31 = vrot.slane %v1967_v20, 1  ;;  %v8548_v2 = vadd.f32 %v3607_v4, %v3579_v7  ;;  %v8550_v11 = vadd.f32 %v3608_v63, %v3580_v22  ;;  %v2491_v41 = vsel %vm7440_vm11, %v2487_v44, 0.0  ;;  %v12004_v44 = vld [vmem:[#allocation2_spill] sm:$0xff]  ;;  %v12012_v35 = vld [vmem:[#allocation11_spill] sm:$0xff]  ;;  %v12013_v12 = vld [vmem:[#allocation84_spill] sm:$0xff] }
 0x470   : > { %11995 = vst [vmem:[#allocation109_spill] sm:$0xff] %v8544_v9  ;;  %v2492_v62 = vsel %vm7474_vm13, %v2488_v52, 0.0  ;;  %v8556_v19 = vmax.f32 %v1930_v28, %v1931_v24  ;;  %v8562_v42 = vmul.f32 %v8542_v40, %v11999_v33  ;;  %4601 = vrot.lane.b32.xlu1 %v12001_v3, %s5468_s12  ;;  %v8566_v30 = vadd.f32 %v2491_v41, %v2463_v49  ;;  %v12005_v52 = vld [vmem:[#allocation17_spill] sm:$0xff]  ;;  %v12014_v24 = vld [vmem:[#allocation102_spill] sm:$0xff]  ;;  %v12015_v41 = vld [vmem:[#allocation95_spill] sm:$0xff] }
 0x471   : > { %11997 = vst [vmem:[#allocation59_spill] sm:$0xff] %v8548_v2  ;;  %11998 = vst [vmem:[#allocation176_spill] sm:$0xff] %v8550_v11  ;;  %v8558_v13 = vmax.f32 %v1967_v20, %v1968_v31  ;;  %v8568_v61 = vadd.f32 %v2492_v62, %v2464_v25  ;;  %v12010_v20 = vld [vmem:[#allocation117_spill] sm:$0xff]  ;;  %v8594_v33 = vpop.permute.xlu1 %3617  ;;  %v12027_v16 = vld [vmem:[#allocation132_spill] sm:$0xff] }
 0x472   : > { %12000 = vst [vmem:[#allocation57_spill] sm:$0xff] %v8562_v42  ;;  %12002 = vst [vmem:[#allocation55_spill] sm:$0xff] %v8566_v30  ;;  %v1970_v39 = vsub.f32 %v12004_v44, %v8556_v19  ;;  %v1972_v59 = vsub.f32 %v12005_v52, %v8556_v19  ;;  %v1974_v7 = vsub.f32 %v12006_v29, %v8556_v19  ;;  %v12011_v49 = vld [vmem:[#allocation9_spill] sm:$0xff]  ;;  %v12017_v44 = vld [vmem:[#allocation123_spill] sm:$0xff] }
 0x473   : > { %12003 = vst [vmem:[#allocation103_spill] sm:$0xff] %v8568_v61  ;;  %v1976_v51 = vsub.f32 %v12007_v1, %v8556_v19  ;;  %v1978_v28 = vsub.f32 %v12008_v36, %v8556_v19  ;;  %v1980_v22 = vsub.f32 %v12009_v21, %v8556_v19  ;;  %v1982_v32 = vsub.f32 %v12010_v20, %v8556_v19  ;;  %v12018_v29 = vld [vmem:[#allocation75_spill] sm:$0xff]  ;;  %v12019_v36 = vld [vmem:[#allocation130_spill] sm:$0xff]  ;;  %v12033_v30 = vld [vmem:[#allocation4_spill] sm:$0xff] }
 0x474   : > { %v1984_v25 = vsub.f32 %v12011_v49, %v8556_v19  ;;  %v1986_v4 = vsub.f32 %v12012_v35, %v8556_v19  ;;  %v1988_v63 = vsub.f32 %v12013_v12, %v8556_v19  ;;  %v1990_v31 = vsub.f32 %v12014_v24, %v8556_v19  ;;  %12016 = vst [vmem:[#allocation53_spill] sm:$0xff] %v8594_v33  ;;  %v12020_v49 = vld [vmem:[#allocation72_spill] sm:$0xff]  ;;  %v12021_v35 = vld [vmem:[#allocation110_spill] sm:$0xff]  ;;  %v12061_v50 = vld [vmem:[#allocation111_spill] sm:$0xff] }
 0x475   : > { %v1992_v62 = vsub.f32 %v12015_v41, %v8556_v19  ;;  %v1994_v52 = vsub.f32 %v12017_v44, %v8556_v19  ;;  %v1996_v1 = vsub.f32 %v12018_v29, %v8556_v19  ;;  %v1998_v21 = vsub.f32 %v12019_v36, %v8556_v19  ;;  %4605 = vrot.lane.b32.xlu1 %v12020_v49, %s5468_s12  ;;  %v12022_v24 = vld [vmem:[#allocation112_spill] sm:$0xff]  ;;  %v12023_v44 = vld [vmem:[#allocation119_spill] sm:$0xff]  ;;  %v12024_v29 = vld [vmem:[#allocation121_spill] sm:$0xff]  ;;  %v8630_v5 = vpop.permute.xlu1 %3622 }
 0x476   : > { %v2000_v20 = vsub.f32 %v8389_v47, %v8556_v19  ;;  %v2002_v12 = vsub.f32 %v12021_v35, %v8556_v19  ;;  %v2004_v41 = vsub.f32 %v12022_v24, %v8556_v19  ;;  %v2006_v11 = vsub.f32 %v12023_v44, %v8556_v19  ;;  %v12025_v36 = vld [vmem:[#allocation127_spill] sm:$0xff]  ;;  %v12026_v47 = vld [vmem:[#allocation129_spill] sm:$0xff]  ;;  %v12028_v35 = vld [vmem:[#allocation134_spill] sm:$0xff]  ;;  %12032 = vst [vmem:[#allocation48_spill] sm:$0xff] %v8630_v5 }
 0x477   : > { %v2008_v2 = vsub.f32 %v12024_v29, %v8556_v19  ;;  %v2010_v33 = vsub.f32 %v12025_v36, %v8556_v19  ;;  %v2012_v9 = vsub.f32 %v12026_v47, %v8556_v19  ;;  %v2014_v14 = vsub.f32 %v12027_v16, %v8556_v19  ;;  %v12029_v24 = vld [vmem:[#allocation136_spill] sm:$0xff]  ;;  %v12030_v44 = vld [vmem:[#allocation138_spill] sm:$0xff]  ;;  %v12031_v29 = vld [vmem:[#allocation143_spill] sm:$0xff] }
 0x478   : > { %v2016_v0 = vsub.f32 %v12028_v35, %v8556_v19  ;;  %v2034_v48 = vmul.f32 1.442695, %v1970_v39  ;;  %v2038_v61 = vmul.f32 1.442695, %v1972_v59  ;;  %v2042_v23 = vmul.f32 1.442695, %v1974_v7 }
 0x479   : > { %v2046_v18 = vmul.f32 1.442695, %v1976_v51  ;;  %v12034_v5 = vld [vmem:[#allocation41_spill] sm:$0xff]  ;;  %v2050_v35 = vmul.f32 1.442695, %v1978_v28  ;;  %v8649_v3 = vpop.permute.xlu1 %4359 }
 0x47a   : > { %v12035_v16 = vld [vmem:[#allocation161_spill] sm:$0xff]  ;;  %5047 = vpow2.f32 %v2034_v48  ;;  %12037 = vst [vmem:[#allocation39_spill] sm:$0xff] %v8649_v3  ;;  %v2054_v51 = vmul.f32 1.442695, %v1980_v22  ;;  %v2058_v49 = vmul.f32 1.442695, %v1982_v32 }
 0x47b   : > { %v8647_v47 = vsel %vm567_vm7, %v12035_v16, 0.0  ;;  %5049 = vpow2.f32 %v2038_v61  ;;  %v12040_v36 = vld [vmem:[#allocation149_spill] sm:$0xff]  ;;  %v2062_v28 = vmul.f32 1.442695, %v1984_v25  ;;  %v2066_v54 = vmul.f32 1.442695, %v1986_v4 }
 0x47c   : > { %12036 = vst [vmem:[#allocation184_spill] sm:$0xff] %v8647_v47  ;;  %5051 = vpow2.f32 %v2042_v23  ;;  %v8659_v16 = vmul.f32 %v8542_v40, %v12040_v36  ;;  %v2070_v39 = vmul.f32 1.442695, %v1988_v63  ;;  %v2074_v15 = vmul.f32 1.442695, %v1990_v31  ;;  %v12043_v31 = vld [vmem:[#allocation101_spill] sm:$0xff] }
 0x47d   : > { %5053 = vpow2.f32 %v2046_v18  ;;  %v2078_v34 = vmul.f32 1.442695, %v1992_v62  ;;  %v2082_v7 = vmul.f32 1.442695, %v1994_v52  ;;  %v8664_v61 = vpop.permute.xlu1 %4363  ;;  %v2086_v23 = vmul.f32 1.442695, %v1996_v1 }
 0x47e   : > { %12041 = vst [vmem:[#allocation165_spill] sm:$0xff] %v8659_v16  ;;  %5055 = vpow2.f32 %v2050_v35  ;;  %12042 = vst [vmem:[#allocation185_spill] sm:$0xff] %v8664_v61  ;;  %v2090_v22 = vmul.f32 1.442695, %v1998_v21  ;;  %v2094_v32 = vmul.f32 1.442695, %v2000_v20 }
 0x47f   : > { %5057 = vpow2.f32 %v2054_v51  ;;  %v2098_v40 = vmul.f32 1.442695, %v2002_v12  ;;  %v2102_v36 = vmul.f32 1.442695, %v2004_v41  ;;  %v2106_v59 = vmul.f32 1.442695, %v2006_v11 }
 0x480   : > { %5059 = vpow2.f32 %v2058_v49  ;;  %v2110_v48 = vmul.f32 1.442695, %v2008_v2  ;;  %v8666_v18 = vmul.f32 1.442695, %v2010_v33  ;;  %v8668_v25 = vmul.f32 1.442695, %v2012_v9 }
 0x481   : > { %5061 = vpow2.f32 %v2062_v28  ;;  %v8670_v4 = vmul.f32 1.442695, %v2014_v14  ;;  %v8672_v63 = vmul.f32 1.442695, %v2016_v0  ;;  %v8676_v52 = vpop.permute.xlu1 %4376  ;;  %v12045_v1 = vld [vmem:[#allocation107_spill] sm:$0xff]  ;;  %v12046_v2 = vld [vmem:[#allocation89_spill] sm:$0xff] }
 0x482   : > { %5063 = vpow2.f32 %v2066_v54  ;;  %12044 = vst [vmem:[#allocation16_spill] sm:$0xff] %v8676_v52  ;;  %v12047_v9 = vld [vmem:[#allocation40_spill] sm:$0xff]  ;;  %v12048_v0 = vld [vmem:[#allocation83_spill] sm:$0xff]  ;;  %v12049_v20 = vld [vmem:[#allocation18_spill] sm:$0xff] }
 0x483   : > { %5065 = vpow2.f32 %v2070_v39  ;;  %v12050_v12 = vld [vmem:[#allocation87_spill] sm:$0xff]  ;;  %v12052_v39 = vld [vmem:[#allocation93_spill] sm:$0xff]  ;;  %v12056_v41 = vld [vmem:[#allocation10_spill] sm:$0xff] }
 0x484   : > { %v8684_v54 = vpop.eup %5047  ;;  %5067 = vpow2.f32 %v2074_v15  ;;  %v12053_v28 = vld [vmem:[#allocation15_spill] sm:$0xff]  ;;  %v12054_v15 = vld [vmem:[#allocation104_spill] sm:$0xff]  ;;  %v12060_v21 = vld [vmem:[#allocation181_spill] sm:$0xff] }
 0x485   : > { %v8692_v35 = vpop.eup %5049  ;;  %5069 = vpow2.f32 %v2078_v34  ;;  %v12057_v34 = vld [vmem:[#allocation126_spill] sm:$0xff]  ;;  %v8708_v53 = vpop.permute.xlu1 %4391  ;;  %v12062_v62 = vld [vmem:[#allocation115_spill] sm:$0xff]  ;;  %v12063_v47 = vld [vmem:[#allocation120_spill] sm:$0xff] }
 0x486   : > { %12051 = vst [vmem:[#allocation46_spill] sm:$0xff] %v8692_v35  ;;  %v8700_v11 = vpop.eup %5051  ;;  %5071 = vpow2.f32 %v2082_v7  ;;  %v2162_v49 = vadd.f32 %v8692_v35, %v8684_v54  ;;  %12058 = vst [vmem:[#allocation186_spill] sm:$0xff] %v8708_v53  ;;  %v12064_v33 = vld [vmem:[#allocation124_spill] sm:$0xff]  ;;  %v12066_v52 = vld [vmem:[#allocation131_spill] sm:$0xff] }
 0x487   : > { %12055 = vst [vmem:[#allocation8_spill] sm:$0xff] %v8700_v11  ;;  %v8710_v51 = vpop.eup %5053  ;;  %5073 = vpow2.f32 %v2086_v23  ;;  %v12065_v53 = vld [vmem:[#allocation128_spill] sm:$0xff]  ;;  %v12068_v42 = vld [vmem:[#allocation133_spill] sm:$0xff]  ;;  %v12069_v3 = vld [vmem:[#allocation135_spill] sm:$0xff] }
 0x488   : > { %12059 = vst [vmem:[#allocation188_spill] sm:$0xff] %v8710_v51  ;;  %v8718_v26 = vpop.eup %5055  ;;  %5075 = vpow2.f32 %v2090_v22  ;;  %v2163_v14 = vadd.f32 %v8700_v11, %v2162_v49  ;;  %v12072_v22 = vld [vmem:[#allocation141_spill] sm:$0xff] }
 0x489   : > { %v8725_v37 = vpop.eup %5057  ;;  %5077 = vpow2.f32 %v2094_v32  ;;  %v8740_v61 = vpop.permute.xlu1 %4395 }
 0x48a   : > { %v8733_v43 = vpop.eup %5059  ;;  %5079 = vpow2.f32 %v2098_v40  ;;  %v2164_v49 = vadd.f32 %v8710_v51, %v2163_v14  ;;  %12070 = vst [vmem:[#allocation148_spill] sm:$0xff] %v8740_v61  ;;  %v12073_v40 = vld [vmem:[#allocation145_spill] sm:$0xff] }
 0x48b   : > { %12067 = vst [vmem:[#allocation7_spill] sm:$0xff] %v8733_v43  ;;  %v8742_v7 = vpop.eup %5061  ;;  %5081 = vpow2.f32 %v2102_v36 }
 0x48c   : > { %v8750_v51 = vpop.eup %5063  ;;  %5083 = vpow2.f32 %v2106_v59  ;;  %v2165_v23 = vadd.f32 %v8718_v26, %v2164_v49  ;;  %v12076_v49 = vsub.f32 %v12029_v24, %v8556_v19  ;;  %v12079_v59 = vsub.f32 %v12030_v44, %v8556_v19 }
 0x48d   : > { %12074 = vst [vmem:[#allocation144_spill] sm:$0xff] %v8750_v51  ;;  %v8757_v61 = vpop.eup %5065  ;;  %5085 = vpow2.f32 %v2110_v48  ;;  %v8775_v35 = vpop.permute.xlu1 %4404  ;;  %v12080_v24 = vsub.f32 %v12031_v29, %v8556_v19  ;;  %v12083_v48 = vsub.f32 %v11961_v6, %v8556_v19  ;;  %v12084_v44 = vsub.f32 %v11967_v58, %v8556_v19 }
 0x48e   : > { %v8765_v11 = vpop.eup %5067  ;;  %5087 = vpow2.f32 %v8666_v18  ;;  %v2130_v36 = vmul.f32 1.442695, %v12076_v49  ;;  %v2166_v32 = vadd.f32 %v8725_v37, %v2165_v23  ;;  %12077 = vst [vmem:[#allocation147_spill] sm:$0xff] %v8775_v35  ;;  %v2134_v18 = vmul.f32 1.442695, %v12079_v59 }
 0x48f   : > { %12075 = vst [vmem:[#allocation152_spill] sm:$0xff] %v8765_v11  ;;  %v8777_v14 = vpop.eup %5069  ;;  %5089 = vpow2.f32 %v8668_v25  ;;  %v2138_v49 = vmul.f32 1.442695, %v12080_v24  ;;  %v12081_v23 = vsub.f32 %v11950_v45, %v8556_v19  ;;  %v2146_v25 = vmul.f32 1.442695, %v12083_v48 }
 0x490   : > { %12078 = vst [vmem:[#allocation79_spill] sm:$0xff] %v8777_v14  ;;  %v8789_v38 = vpop.eup %5071  ;;  %5091 = vpow2.f32 %v8670_v4  ;;  %v2150_v59 = vmul.f32 1.442695, %v12084_v44  ;;  %v2167_v16 = vadd.f32 %v8733_v43, %v2166_v32  ;;  %v12086_v45 = vsub.f32 %v11969_v60, %v8556_v19 }
 0x491   : > { %v2142_v17 = vmul.f32 1.442695, %v12081_v23  ;;  %12082 = vst [vmem:[#allocation70_spill] sm:$0xff] %v8789_v38  ;;  %v8799_v29 = vpop.eup %5073  ;;  %5093 = vpow2.f32 %v8672_v63  ;;  %v12087_v4 = vsub.f32 %v11975_v10, %v8556_v19  ;;  %v12088_v6 = vsub.f32 %v12033_v30, %v8558_v13  ;;  %v8820_v35 = vpop.permute.xlu1 %4423 }
 0x492   : > { %12085 = vst [vmem:[#allocation97_spill] sm:$0xff] %v8799_v29  ;;  %v2154_v24 = vmul.f32 1.442695, %v12086_v45  ;;  %v8811_v58 = vpop.eup %5075  ;;  %5095 = vpow2.f32 %v2130_v36  ;;  %v2168_v32 = vadd.f32 %v8742_v7, %v2167_v16  ;;  %v12090_v63 = vsub.f32 %v12034_v5, %v8558_v13 }
 0x493   : > { %v2158_v23 = vmul.f32 1.442695, %v12087_v4  ;;  %v2036_v48 = vmul.f32 1.442695, %v12088_v6  ;;  %12089 = vst [vmem:[#allocation98_spill] sm:$0xff] %v8811_v58  ;;  %v12091_v60 = vsub.f32 %v12043_v31, %v8558_v13  ;;  %v8822_v10 = vpop.eup %5077  ;;  %5097 = vpow2.f32 %v2134_v18 }
 0x494   : > { %v2040_v44 = vmul.f32 1.442695, %v12090_v63  ;;  %12092 = vst [vmem:[#allocation154_spill] sm:$0xff] %v8822_v10  ;;  %v12093_v19 = vsub.f32 %v12045_v1, %v8558_v13  ;;  %v12094_v16 = vsub.f32 %v12046_v2, %v8558_v13  ;;  %v12095_v5 = vsub.f32 %v12047_v9, %v8558_v13  ;;  %v8833_v6 = vpop.eup %5079 }
 0x495   : > { %v2044_v45 = vmul.f32 1.442695, %v12091_v60  ;;  %12096 = vst [vmem:[#allocation155_spill] sm:$0xff] %v8833_v6  ;;  %5099 = vpow2.f32 %v2138_v49  ;;  %v2169_v31 = vadd.f32 %v8750_v51, %v2168_v32  ;;  %v12097_v18 = vsub.f32 %v12048_v0, %v8558_v13  ;;  %v8844_v2 = vpop.eup %5081 }
 0x496   : > { %v2048_v30 = vmul.f32 1.442695, %v12093_v19  ;;  %v2052_v36 = vmul.f32 1.442695, %v12094_v16  ;;  %v2056_v4 = vmul.f32 1.442695, %v12095_v5  ;;  %v12098_v1 = vsub.f32 %v12049_v20, %v8558_v13  ;;  %v8861_v20 = vpop.eup %5083 }
 0x497   : > { %v2060_v63 = vmul.f32 1.442695, %v12097_v18  ;;  %5101 = vpow2.f32 %v2142_v17  ;;  %v12099_v9 = vsub.f32 %v12050_v12, %v8558_v13  ;;  %v12100_v49 = vsub.f32 %v12052_v39, %v8558_v13 }
 0x498   : > { %v8842_v60 = vmul.f32 1.442695, %v12098_v1  ;;  %v12101_v0 = vsub.f32 %v12053_v28, %v8558_v13  ;;  %5103 = vpow2.f32 %v2146_v25  ;;  %v2170_v17 = vadd.f32 %v8757_v61, %v2169_v31  ;;  %v8874_v1 = vpop.permute.xlu1 %4425  ;;  %v8876_v28 = vpop.eup %5085 }
 0x499   : > { %v8849_v19 = vmul.f32 1.442695, %v12099_v9  ;;  %v8854_v32 = vmul.f32 1.442695, %v12100_v49  ;;  %v12102_v12 = vsub.f32 %v12054_v15, %v8558_v13  ;;  %v12103_v39 = vsub.f32 %v12056_v41, %v8558_v13  ;;  %12104 = vst [vmem:[#allocation118_spill] sm:$0xff] %v8874_v1 }
 0x49a   : > { %v8859_v16 = vmul.f32 1.442695, %v12101_v0  ;;  %5105 = vpow2.f32 %v2150_v59  ;;  %v12105_v25 = vsub.f32 %v12057_v34, %v8558_v13  ;;  %v12106_v15 = vsub.f32 %v12060_v21, %v8558_v13  ;;  %v8893_v0 = vpop.eup %5087 }
 0x49b   : > { %v8867_v5 = vmul.f32 1.442695, %v12102_v12  ;;  %v8872_v18 = vmul.f32 1.442695, %v12103_v39  ;;  %v12107_v41 = vsub.f32 %v8400_v55, %v8558_v13  ;;  %5107 = vpow2.f32 %v2154_v24 }
 0x49c   : > { %v8881_v9 = vmul.f32 1.442695, %v12105_v25  ;;  %v8886_v31 = vmul.f32 1.442695, %v12106_v15  ;;  %v2171_v59 = vadd.f32 %v8765_v11, %v2170_v17  ;;  %v12108_v34 = vsub.f32 %v12061_v50, %v8558_v13  ;;  %v8906_v25 = vpop.eup %5089 }
 0x49d   : > { %v8891_v49 = vmul.f32 1.442695, %v12107_v41  ;;  %v12109_v21 = vsub.f32 %v12062_v62, %v8558_v13  ;;  %5109 = vpow2.f32 %v2158_v23  ;;  %v12110_v55 = vsub.f32 %v12063_v47, %v8558_v13  ;;  %v8923_v62 = vpop.eup %5091 }
 0x49e   : > { %v8899_v12 = vmul.f32 1.442695, %v12108_v34  ;;  %v12111_v24 = vsub.f32 %v12064_v33, %v8558_v13  ;;  %v12112_v50 = vsub.f32 %v12065_v53, %v8558_v13  ;;  %v2172_v34 = vadd.f32 %v8777_v14, %v2171_v59  ;;  %v8938_v53 = vpop.eup %5093 }
 0x49f   : > { %v8904_v39 = vmul.f32 1.442695, %v12109_v21  ;;  %v8911_v15 = vmul.f32 1.442695, %v12110_v55  ;;  %5111 = vpow2.f32 %v2036_v48  ;;  %v12113_v47 = vsub.f32 %v12066_v52, %v8558_v13  ;;  %v8936_v55 = vpop.permute.xlu1 %4429  ;;  %v12117_v48 = vld [vmem:[#allocation46_spill] sm:$0xff] }
 0x4a0   : > { %v8916_v17 = vmul.f32 1.442695, %v12111_v24  ;;  %v8921_v41 = vmul.f32 1.442695, %v12112_v50  ;;  %v12115_v33 = vsub.f32 %v12068_v42, %v8558_v13  ;;  %5113 = vpow2.f32 %v2040_v44  ;;  %v12118_v50 = vld [vmem:[#allocation8_spill] sm:$0xff] }
 0x4a1   : > { %v8929_v23 = vmul.f32 1.442695, %v12113_v47  ;;  %v12116_v24 = vsub.f32 %v12069_v3, %v8558_v13  ;;  %v12119_v47 = vld [vmem:[#allocation188_spill] sm:$0xff]  ;;  %v2173_v42 = vadd.f32 %v8789_v38, %v2172_v34  ;;  %5115 = vpow2.f32 %v2044_v45 }
 0x4a2   : > { %v8934_v21 = vmul.f32 1.442695, %v12115_v33  ;;  %v12120_v33 = vsub.f32 %v12071_v57, %v8558_v13  ;;  %5117 = vpow2.f32 %v2048_v30  ;;  %v12122_v52 = vsub.f32 %v12072_v22, %v8558_v13 }
 0x4a3   : > { %12114 = vst [vmem:[#allocation156_spill] sm:$0xff] %v8929_v23  ;;  %v8943_v59 = vmul.f32 1.442695, %v12116_v24  ;;  %v8949_v23 = vpop.eup %5095  ;;  %v12123_v34 = vsub.f32 %v12073_v40, %v8558_v13  ;;  %v2174_v3 = vadd.f32 %v8799_v29, %v2173_v42  ;;  %5119 = vpow2.f32 %v2052_v36  ;;  %v8986_v40 = vpop.permute.xlu1 %4440 }
 0x4a4   : > { %v8955_v44 = vmul.f32 1.442695, %v12120_v33  ;;  %v8959_v24 = vpop.eup %5097  ;;  %v8964_v1 = vmul.f32 1.442695, %v12122_v52  ;;  %v12124_v30 = vsub.f32 %v11954_v56, %v8558_v13  ;;  %v12125_v22 = vsub.f32 %v11962_v27, %v8558_v13 }
 0x4a5   : > { %v8969_v45 = vmul.f32 1.442695, %v12123_v34  ;;  %v8973_v33 = vpop.eup %5099  ;;  %5121 = vpow2.f32 %v2056_v4  ;;  %v12127_v57 = vsub.f32 %v11968_v8, %v8558_v13  ;;  %v12129_v56 = vsub.f32 %v11971_v46, %v8558_v13  ;;  %v12131_v8 = vld [vmem:[#allocation39_spill] sm:$0xff]  ;;  %v12133_v46 = vld [vmem:[#allocation180_spill] sm:$0xff] }
 0x4a6   : > { %12121 = vst [vmem:[#allocation157_spill] sm:$0xff] %v8955_v44  ;;  %v8979_v44 = vmul.f32 1.442695, %v12124_v30  ;;  %v8984_v52 = vmul.f32 1.442695, %v12125_v22  ;;  %v8988_v34 = vpop.eup %5101  ;;  %v2175_v22 = vadd.f32 %v8811_v58, %v2174_v3  ;;  %5123 = vpow2.f32 %v2060_v63  ;;  %v12138_v3 = vld [vmem:[#allocation148_spill] sm:$0xff] }
 0x4a7   : > { %v8993_v42 = vmul.f32 1.442695, %v12127_v57  ;;  %v8998_v36 = vmul.f32 1.442695, %v12129_v56  ;;  %v9002_v30 = vpop.eup %5103  ;;  %v12132_v57 = vld [vmem:[#allocation114_spill] sm:$0xff]  ;;  %5125 = vpow2.f32 %v8842_v60  ;;  %v12134_v56 = vsub.f32 %v12133_v46, %v8558_v13  ;;  %v12136_v60 = vld [vmem:[#allocation16_spill] sm:$0xff]  ;;  %v9031_v46 = vpop.permute.xlu1 %4455 }
 0x4a8   : > { %12126 = vst [vmem:[#allocation158_spill] sm:$0xff] %v8984_v52  ;;  %v12130_v52 = vld [vmem:[#allocation185_spill] sm:$0xff]  ;;  %v9011_v43 = vpop.eup %5105  ;;  %v2176_v11 = vadd.f32 %v8822_v10, %v2175_v22  ;;  %5127 = vpow2.f32 %v8849_v19  ;;  %12137 = vst [vmem:[#allocation47_spill] sm:$0xff] %v9031_v46  ;;  %v12139_v22 = vld [vmem:[#allocation186_spill] sm:$0xff] }
 0x4a9   : > { %12128 = vst [vmem:[#allocation159_spill] sm:$0xff] %v8993_v42  ;;  %v4366_v42 = vsel %vm11940_vm4, %v12131_v8, %v12130_v52  ;;  %v9017_v27 = vmul.f32 1.442695, %v12134_v56  ;;  %v4368_v63 = vsel %vm12135_vm2, %v12130_v52, %v12131_v8  ;;  %v9025_v4 = vpop.eup %5107  ;;  %5129 = vpow2.f32 %v8854_v32  ;;  %v12142_v8 = vld [vmem:[#allocation184_spill] sm:$0xff]  ;;  %v12143_v10 = vld [vmem:[#allocation162_spill] sm:$0xff] }
 0x4aa   : > { %v4381_v14 = vmul.f32 %v12136_v60, %v4368_v63  ;;  %v4382_v13 = vmul.f32 %v12136_v60, %v4366_v42  ;;  %v9033_v56 = vpop.eup %5109  ;;  %v4399_v19 = vsel %vm1332_vm6, %v12139_v22, %v12138_v3  ;;  %v2177_v42 = vadd.f32 %v8833_v6, %v2176_v11 }
 0x4ab   : > { %v5112_v63 = vpop.eup %5111  ;;  %5131 = vpow2.f32 %v8859_v16  ;;  %v4401_v11 = vsel %vm1332_vm6, %v12138_v3, %v12139_v22  ;;  %v9063_v51 = vpop.permute.xlu1 %4459  ;;  %vm12192_vm2 = vcmp.lt.s32.totalorder %v12132_v57, 113 }
 0x4ac   : > { %v4385_v38 = vsel %vm7450_vm12, %v4381_v14, 0.0  ;;  %v4386_v29 = vsel %vm7435_vm9, %v4382_v13, 0.0  ;;  %v5114_v52 = vpop.eup %5113  ;;  %5133 = vpow2.f32 %v8867_v5  ;;  %v2178_v14 = vadd.f32 %v8844_v2, %v2177_v42  ;;  %vm12193_vm6 = vmmov %vm12192_vm2 }
 0x4ad   : > { %v9052_v58 = vadd.f32 %v12142_v8, %v4385_v38  ;;  %v9055_v46 = vadd.f32 %v12143_v10, %v4386_v29  ;;  %v5116_v16 = vpop.eup %5115  ;;  %5135 = vpow2.f32 %v8872_v18  ;;  %v2199_v13 = vadd.f32 %v5114_v52, %v5112_v63  ;;  %v12144_v29 = vld [vmem:[#allocation147_spill] sm:$0xff] }
 0x4ae   : > { %v2239_v6 = vpack.c.bf16 %v5114_v52, %v5112_v63  ;;  %v5118_v5 = vpop.eup %5117  ;;  %5137 = vpow2.f32 %v8881_v9  ;;  %v2256_v38 = vpack.c.bf16 %v8876_v28, %v8861_v20  ;;  %v4411_v10 = vmul.f32 %v12144_v29, %v4401_v11 }
 0x4af   : > { %v4412_v8 = vmul.f32 %v12144_v29, %v4399_v19  ;;  %v5120_v3 = vpop.eup %5119  ;;  %v2179_v22 = vadd.f32 %v8861_v20, %v2178_v14  ;;  %5139 = vpow2.f32 %v8886_v31  ;;  %v2200_v18 = vadd.f32 %v5116_v16, %v2199_v13  ;;  %v12146_v19 = vld [vmem:[#allocation165_spill] sm:$0xff] }
 0x4b0   : > { %2270 = vmatprep.subr.bf16.mxu1 %v2239_v6  ;;  %v2241_v52 = vpack.c.bf16 %v5118_v5, %v5116_v16  ;;  %v5122_v63 = vpop.eup %5121  ;;  %5141 = vpow2.f32 %v8891_v49  ;;  %v12145_v9 = vpack.c.bf16 %v12117_v48, %v8684_v54  ;;  %v4415_v42 = vsel %vm567_vm7, %v4411_v10, 0.0  ;;  %v9086_v48 = vpop.permute.xlu1 %4468  ;;  %v12148_v29 = vld [vmem:[#allocation57_spill] sm:$0xff] }
 0x4b1   : > { %v12147_v11 = vsel %vm7435_vm9, %v12146_v19, 0.0  ;;  %v5124_v6 = vpop.eup %5123  ;;  %v2180_v16 = vadd.f32 %v8876_v28, %v2179_v22  ;;  %5143 = vpow2.f32 %v8899_v12  ;;  %v2201_v49 = vadd.f32 %v5118_v5, %v2200_v18  ;;  %v12152_v19 = vld [vmem:[#allocation170_spill] sm:$0xff] }
 0x4b2   : > { %2271 = vmatpush1.bf16.msra.mxu1 %v12145_v9  ;;  %v4420_v14 = vadd.f32 %v4412_v8, %v12147_v11  ;;  %v2243_v54 = vpack.c.bf16 %v5122_v63, %v5120_v3  ;;  %v5126_v13 = vpop.eup %5125  ;;  %5145 = vpow2.f32 %v8904_v39  ;;  %v12149_v10 = vsel %vm7450_vm12, %v12148_v29, 0.0  ;;  %v12150_v9 = vld [vmem:[#allocation168_spill] sm:$0xff] }
 0x4b3   : > { %2272 = vmatprep.subr.bf16.mxu1 %v2241_v52  ;;  %v4419_v8 = vadd.f32 %v4415_v42, %v12149_v10  ;;  %v4431_v22 = vsel %vm1365_vm10, %v8820_v35, %v12150_v9  ;;  %v4433_v12 = vsel %vm1365_vm10, %v12150_v9, %v8820_v35  ;;  %v5128_v5 = vpop.eup %5127  ;;  %v2181_v18 = vadd.f32 %v8893_v0, %v2180_v16 }
 0x4b4   : > { %5147 = vpow2.f32 %v8911_v15  ;;  %v2202_v39 = vadd.f32 %v5120_v3, %v2201_v49  ;;  %v2245_v60 = vpack.c.bf16 %v5126_v13, %v5124_v6  ;;  %v5130_v52 = vpop.eup %5129  ;;  %v12151_v42 = vpack.c.bf16 %v12119_v47, %v12118_v50  ;;  %v12153_v50 = vld [vmem:[#allocation156_spill] sm:$0xff] }
 0x4b5   : > { %5149 = vpow2.f32 %v8916_v17  ;;  %v4443_v11 = vmul.f32 %v12152_v19, %v4433_v12  ;;  %v4444_v29 = vmul.f32 %v12152_v19, %v4431_v22  ;;  %v9111_v10 = vpop.eup %5131  ;;  %v2182_v15 = vadd.f32 %v8906_v25, %v2181_v18  ;;  %v12172_v12 = vld [vmem:[#allocation152_spill] sm:$0xff] }
 0x4b6   : > { %2273 = vmatpush1.bf16.msra.mxu1 %v12151_v42  ;;  %5151 = vpow2.f32 %v8921_v41  ;;  %v2203_v3 = vadd.f32 %v5122_v63, %v2202_v39  ;;  %v2247_v17 = vpack.c.bf16 %v5130_v52, %v5128_v5  ;;  %v9115_v16 = vpop.eup %5133  ;;  %v9124_v42 = vpop.permute.xlu1 %4488  ;;  %v12156_v19 = vpack.c.bf16 %v8725_v37, %v8718_v26 }
 0x4b7   : > { %2274 = vmatprep.subr.bf16.mxu1 %v2243_v54  ;;  %5153 = vpow2.f32 %v12153_v50  ;;  %v4447_v49 = vsel %vm7483_vm15, %v4443_v11, 0.0  ;;  %v4448_v22 = vsel %vm7474_vm13, %v4444_v29, 0.0  ;;  %v9126_v18 = vpop.eup %5135  ;;  %v2183_v41 = vadd.f32 %v8923_v62, %v2182_v15  ;;  %v12157_v15 = vld [vmem:[#allocation118_spill] sm:$0xff]  ;;  %v12158_v50 = vld [vmem:[#allocation157_spill] sm:$0xff] }
 0x4b8   : > { %5155 = vpow2.f32 %v8934_v21  ;;  %v2204_v63 = vadd.f32 %v5124_v6, %v2203_v3  ;;  %v2249_v54 = vpack.c.bf16 %v9115_v16, %v9111_v10  ;;  %v9132_v39 = vpop.eup %5137  ;;  %v9138_v11 = vadd.f32 %v4447_v49, %v4419_v8 }
 0x4b9   : > { %5157 = vpow2.f32 %v8943_v59  ;;  %v9140_v29 = vadd.f32 %v4448_v22, %v4420_v14  ;;  %v4432_v21 = vsel %vm1365_vm10, %v12157_v15, %v8936_v55  ;;  %v9146_v6 = vpop.eup %5139  ;;  %v2184_v3 = vadd.f32 %v8938_v53, %v2183_v41 }
 0x4ba   : > { %2275 = vmatpush1.bf16.msra.mxu1 %v12156_v19  ;;  %5159 = vpow2.f32 %v12158_v50  ;;  %v2205_v59 = vadd.f32 %v5126_v13, %v2204_v63  ;;  %v2251_v37 = vpack.c.bf16 %v9132_v39, %v9126_v18  ;;  %v9152_v26 = vpop.eup %5141  ;;  %v4434_v14 = vsel %vm1365_vm10, %v8936_v55, %v12157_v15  ;;  %v9168_v41 = vpop.permute.xlu1 %4492  ;;  %v12159_v55 = vld [vmem:[#allocation7_spill] sm:$0xff]  ;;  %v12161_v50 = vld [vmem:[#allocation158_spill] sm:$0xff] }
 0x4bb   : > { %2276 = vmatprep.subr.bf16.mxu1 %v2245_v60  ;;  %5161 = vpow2.f32 %v8964_v1  ;;  %v4446_v49 = vmul.f32 %v8986_v40, %v4432_v21  ;;  %v9162_v22 = vpop.eup %5143  ;;  %v2185_v13 = vadd.f32 %v8949_v23, %v2184_v3  ;;  %v2253_v1 = vpack.c.bf16 %v9152_v26, %v9146_v6 }
 0x4bc   : > { %5163 = vpow2.f32 %v8969_v45  ;;  %v2206_v60 = vadd.f32 %v5128_v5, %v2205_v59  ;;  %v9170_v63 = vpop.eup %5145  ;;  %v12160_v19 = vpack.c.bf16 %v8742_v7, %v12159_v55  ;;  %v4445_v15 = vmul.f32 %v8986_v40, %v4434_v14  ;;  %v12162_v40 = vld [vmem:[#allocation159_spill] sm:$0xff] }
 0x4bd   : > { %5165 = vpow2.f32 %v8979_v44  ;;  %v4450_v21 = vsel %vm7474_vm13, %v4446_v49, 0.0  ;;  %v2186_v3 = vadd.f32 %v8959_v24, %v2185_v13  ;;  %v2255_v7 = vpack.c.bf16 %v9170_v63, %v9162_v22 }
 0x4be   : > { %2277 = vmatpush1.bf16.msra.mxu1 %v12160_v19  ;;  %v9181_v5 = vpop.eup %5147  ;;  %5167 = vpow2.f32 %v12161_v50  ;;  %v2207_v59 = vadd.f32 %v5130_v52, %v2206_v60  ;;  %v4449_v14 = vsel %vm7483_vm15, %v4445_v15, 0.0  ;;  %v4454_v49 = vadd.f32 %v4450_v21, %v9055_v46  ;;  %v9202_v19 = vpop.permute.xlu1 %4520  ;;  %v12163_v46 = vld [vmem:[#allocation144_spill] sm:$0xff] }
 0x4bf   : > { %2278 = vmatprep.subr.bf16.mxu1 %v2247_v17  ;;  %v9187_v44 = vpop.eup %5149  ;;  %5169 = vpow2.f32 %v12162_v40  ;;  %v2187_v52 = vadd.f32 %v8973_v33, %v2186_v3  ;;  %v12164_v15 = vpack.c.bf16 %v8757_v61, %v12163_v46  ;;  %v4453_v21 = vadd.f32 %v4449_v14, %v9052_v58  ;;  %v12165_v3 = vld [vmem:[#allocation47_spill] sm:$0xff]  ;;  %v12166_v46 = vld [vmem:[#allocation69_spill] sm:$0xff] }
 0x4c0   : > { %v9195_v13 = vpop.eup %5151  ;;  %5171 = vpow2.f32 %v8998_v36  ;;  %v2208_v17 = vadd.f32 %v9111_v10, %v2207_v59  ;;  %v2257_v60 = vpack.c.bf16 %v9187_v44, %v9181_v5  ;;  %v4463_v36 = vsel %vm1400_vm14, %v12165_v3, %v9063_v51 }
 0x4c1   : > { %v9204_v47 = vpop.eup %5153  ;;  %5173 = vpow2.f32 %v9017_v27  ;;  %v4465_v10 = vsel %vm1400_vm14, %v9063_v51, %v12165_v3  ;;  %v2188_v27 = vadd.f32 %v8988_v34, %v2187_v52  ;;  %v4476_v14 = vmul.f32 %v9086_v48, %v4463_v36  ;;  %v12167_v51 = vld [vmem:[#allocation49_spill] sm:$0xff]  ;;  %v12169_v52 = vld [vmem:[#allocation182_spill] sm:$0xff] }
 0x4c2   : > { %2279 = vmatpush1.bf16.msra.mxu1 %v12164_v15  ;;  %v9219_v50 = vpop.eup %5155  ;;  %v2209_v59 = vadd.f32 %v9115_v16, %v2208_v17  ;;  %v4475_v58 = vmul.f32 %v9086_v48, %v4465_v10  ;;  %v4495_v15 = vmul.f32 %v9124_v42, %v12166_v46  ;;  %v4496_v3 = vmul.f32 %v9124_v42, %v12167_v51  ;;  %v12171_v42 = vld [vmem:[#allocation79_spill] sm:$0xff]  ;;  %v9259_v48 = vpop.permute.xlu1 %4548 }
 0x4c3   : > { %2280 = vmatprep.subr.bf16.mxu1 %v2249_v54  ;;  %v9226_v40 = vpop.eup %5157  ;;  %v12170_v16 = vsel %vm7422_vm8, %v12169_v52, 0.0  ;;  %v2189_v10 = vadd.f32 %v9002_v30, %v2188_v27  ;;  %v12173_v35 = vpack.c.bf16 %v12171_v42, %v12172_v12  ;;  %v12174_v27 = vld [vmem:[#allocation183_spill] sm:$0xff]  ;;  %12176 = vst [vmem:[#allocation160_spill] sm:$0xff] %v9259_v48  ;;  %vm12212_vm7 = vcmask 1043456  }
 0x4c4   : > { %v9237_v54 = vadd.f32 %v12170_v16, %v4453_v21  ;;  %v9239_v17 = vpop.eup %5159  ;;  %v2210_v45 = vadd.f32 %v9126_v18, %v2209_v59  ;;  %v4479_v36 = vsel %vm7422_vm8, %v4475_v58, 0.0  ;;  %v4480_v21 = vsel %vm7435_vm9, %v4476_v14, 0.0 }
 0x4c5   : > { %v9247_v8 = vpop.eup %5161  ;;  %v4483_v52 = vadd.f32 %v4479_v36, %v9138_v11  ;;  %v12175_v59 = vsel %vm7435_vm9, %v12174_v27, 0.0  ;;  %v2190_v58 = vadd.f32 %v9011_v43, %v2189_v10  ;;  %v4484_v32 = vadd.f32 %v4480_v21, %v9140_v29  ;;  %v12177_v11 = vld [vmem:[#allocation116_spill] sm:$0xff]  ;;  %v12179_v29 = vld [vmem:[#allocation113_spill] sm:$0xff]  ;;  %vm12215_vm9 = vmmov %vm12212_vm7 }
 0x4c6   : > { %2281 = vmatpush1.bf16.msra.mxu1 %v12173_v35  ;;  %v4486_v16 = vadd.f32 %v12175_v59, %v4454_v49  ;;  %v9261_v31 = vpop.eup %5163  ;;  %v2211_v61 = vadd.f32 %v9132_v39, %v2210_v45  ;;  %v2263_v35 = vpack.c.bf16 %v9247_v8, %v9239_v17  ;;  %v4527_v14 = vsel %vm7440_vm11, %v12177_v11, 0.0  ;;  %v12180_v27 = vld [vmem:[#allocation97_spill] sm:$0xff]  ;;  %v12181_v59 = vld [vmem:[#allocation70_spill] sm:$0xff] }
 0x4c7   : > { %2282 = vmatprep.subr.bf16.mxu1 %v2251_v37  ;;  %v9271_v12 = vpop.eup %5165  ;;  %v4499_v36 = vadd.f32 %v4495_v15, %v4483_v52  ;;  %v2191_v45 = vadd.f32 %v9025_v4, %v2190_v58  ;;  %v4500_v39 = vadd.f32 %v4496_v3, %v4484_v32  ;;  %v4528_v21 = vsel %vm7474_vm13, %v12179_v29, 0.0  ;;  %v9305_v29 = vpop.permute.xlu1 %4580 }
 0x4c8   : > { %v9276_v42 = vpop.eup %5167  ;;  %v2212_v10 = vadd.f32 %v9146_v6, %v2211_v61  ;;  %v12182_v11 = vpack.c.bf16 %v12180_v27, %v12181_v59  ;;  %12185 = vst [vmem:[#allocation190_spill] sm:$0xff] %v9305_v29  ;;  %v12186_v59 = vld [vmem:[#allocation154_spill] sm:$0xff]  ;;  %vm12218_vm10 = vcmask 64512  }
 0x4c9   : > { %v9282_v37 = vpop.eup %5169  ;;  %v9290_v15 = vadd.f32 %v4527_v14, %v4499_v36  ;;  %v9295_v61 = vadd.f32 %v9033_v56, %v2191_v45  ;;  %v9303_v32 = vadd.f32 %v4528_v21, %v4500_v39  ;;  %v4538_v36 = vpop.permute.xlu0 %4537  ;;  %v12190_v21 = vld [vmem:[#allocation155_spill] sm:$0xff]  ;;  %vm12220_vm12 = vmmov %vm12218_vm10 }
 0x4ca   : > { %2283 = vmatpush1.bf16.msra.mxu1 %v12182_v11  ;;  %v9292_v52 = vpop.eup %5171  ;;  %v2213_v58 = vadd.f32 %v9152_v26, %v2212_v10  ;;  %v2267_v3 = vpack.c.bf16 %v9282_v37, %v9276_v42  ;;  %v12187_v11 = vld [vmem:[#allocation98_spill] sm:$0xff]  ;;  %vm12224_vm14 = vmmov %vm12218_vm10 }
 0x4cb   : > { %12183 = vst [vmem:[#allocation94_spill] sm:$0xff] %v9290_v15  ;;  %2284 = vmatprep.subr.bf16.mxu1 %v2253_v1  ;;  %12184 = vst [vmem:[#allocation189_spill] sm:$0xff] %v9303_v32  ;;  %v5174_v14 = vpop.eup %5173  ;;  %v12188_v10 = vpack.c.bf16 %v12186_v59, %v12187_v11  ;;  %v9316_v26 = vpop.permute.xlu1 %4584  ;;  %v12195_v11 = vld [vmem:[#allocation72_spill] sm:$0xff] }
 0x4cc   : > { %v2214_v27 = vadd.f32 %v9162_v22, %v2213_v58  ;;  %v2269_v45 = vpack.c.bf16 %v5174_v14, %v9292_v52  ;;  %12189 = vst [vmem:[#allocation22_spill] sm:$0xff] %v9316_v26  ;;  %v12191_v58 = vpack.c.bf16 %v8844_v2, %v12190_v21  ;;  %v12194_v2 = vld [vmem:[#allocation71_spill] sm:$0xff]  ;;  %vm12226_vm15 = vmmov %vm12218_vm10 }
 0x4cd   : > { %v4542_v39 = vpop.permute.xlu0 %4541 }
 0x4ce   : > { %2285 = vmatpush1.bf16.msra.mxu1 %v12188_v10  ;;  %v2215_v6 = vadd.f32 %v9170_v63, %v2214_v27  ;;  %v4544_v22 = vsel %vm12192_vm2, %v4538_v36, %v4542_v39  ;;  %v4546_v63 = vsel %vm12193_vm6, %v4542_v39, %v4538_v36  ;;  %v12197_v10 = vld [vmem:[#allocation37_spill] sm:$0xff] }
 0x4cf   : > { %2286 = vmatprep.subr.bf16.mxu1 %v2255_v7  ;;  %v4506_v27 = vpop.permute.xlu1 %4505  ;;  %v4497_v7 = vmul.f32 %v9168_v41, %v12194_v2 }
 0x4d0   : > { %v2216_v1 = vadd.f32 %v9181_v5, %v2215_v6  ;;  %v4498_v5 = vmul.f32 %v9168_v41, %v12195_v11  ;;  %v4557_v6 = vmul.f32 %v12197_v10, %v4544_v22 }
 0x4d2   : > { %2287 = vmatpush1.bf16.msra.mxu1 %v12191_v58  ;;  %v2217_v18 = vadd.f32 %v9187_v44, %v2216_v1  ;;  %v4502_v39 = vadd.f32 %v4498_v5, %v4486_v16  ;;  %v12199_v58 = vpack.c.bf16 %v9226_v40, %v9219_v50  ;;  %v12204_v5 = vpack.c.bf16 %v8959_v24, %v8949_v23 }
 0x4d3   : > { %2288 = vmatprep.subr.bf16.mxu1 %v2257_v60  ;;  %v12196_v60 = vpack.c.bf16 %v9204_v47, %v9195_v13 }
 0x4d4   : > { %v2218_v59 = vadd.f32 %v9195_v13, %v2217_v18  ;;  %v4510_v18 = vpop.permute.xlu1 %4509  ;;  %v12198_v13 = vpack.c.bf16 %v8906_v25, %v8893_v0  ;;  %v4561_v25 = vsel %vm7422_vm8, %v4557_v6, 0.0 }
 0x4d5   : > { %v4512_v36 = vsel %vm1449_vm0, %v4506_v27, %v4510_v18  ;;  %v4514_v20 = vsel %vm1449_vm0, %v4510_v18, %v4506_v27  ;;  %vm12228_vm0 = vmmov %vm12218_vm10 }
 0x4d6   : > { %2289 = vmatpush1.bf16.msra.mxu1 %v2256_v38  ;;  %v2219_v44 = vadd.f32 %v9204_v47, %v2218_v59  ;;  %v4558_v38 = vmul.f32 %v12197_v10, %v4546_v63  ;;  %v4525_v41 = vmul.f32 %v9202_v19, %v4512_v36  ;;  %v4526_v1 = vmul.f32 %v9202_v19, %v4514_v20  ;;  %v12208_v10 = vld [vmem:[#allocation6_spill] sm:$0xff]  ;;  %vm12230_vm4 = vmmov %vm12228_vm0 }
 0x4d7   : > { %2290 = vmatprep.subr.bf16.mxu1 %v12196_v60  ;;  %v4501_v47 = vadd.f32 %v4497_v7, %v9237_v54  ;;  %v12207_v60 = vld [vmem:[#allocation5_spill] sm:$0xff]  ;;  %vm12232_vm2 = vmmov %vm12228_vm0 }
 0x4d8   : > { %v2220_v28 = vadd.f32 %v9219_v50, %v2219_v44  ;;  %v4529_v27 = vsel %vm7440_vm11, %v4525_v41, 0.0  ;;  %v4530_v59 = vsel %vm7474_vm13, %v4526_v1, 0.0  ;;  %v4562_v16 = vsel %vm7870_vm5, %v4558_v38, 0.0  ;;  %vm12222_vm13 = vmmov %vm12218_vm10  ;;  %v12229_v38 = vld [vmem:[#allocation31_spill] sm:$0xff]  ;;  %v12231_v41 = vld [vmem:[#allocation34_spill] sm:$0xff] }
 0x4d9   : > { %v4533_v19 = vadd.f32 %v4529_v27, %v4501_v47  ;;  %v4534_v22 = vadd.f32 %v4530_v59, %v4502_v39  ;;  %v12201_v50 = vpack.c.bf16 %v8938_v53, %v8923_v62  ;;  %v12205_v62 = vpack.c.bf16 %v9271_v12, %v9261_v31  ;;  %v12206_v53 = vld [vmem:[#allocation51_spill] sm:$0xff]  ;;  %v12233_v1 = vld [vmem:[#allocation54_spill] sm:$0xff]  ;;  %vm12234_vm6 = vmmov %vm12228_vm0 }
 0x4da   : > { %2291 = vmatpush1.bf16.msra.mxu1 %v12198_v13  ;;  %v2221_v21 = vadd.f32 %v9226_v40, %v2220_v28  ;;  %v502_v18 = vadd.f32 %v12207_v60, %v12206_v53  ;;  %v504_v6 = vadd.f32 %v12208_v10, %v12206_v53  ;;  %v12235_v13 = vld [vmem:[#allocation56_spill] sm:$0xff]  ;;  %v12237_v47 = vld [vmem:[#allocation58_spill] sm:$0xff]  ;;  %v12239_v39 = vld [vmem:[#allocation61_spill] sm:$0xff] }
 0x4db   : > { %2292 = vmatprep.subr.bf16.mxu1 %v12199_v58  ;;  %v9371_v40 = vadd.f32 %v4561_v25, %v4533_v19  ;;  %v9373_v63 = vadd.f32 %v4562_v16, %v4534_v22  ;;  %v12243_v58 = vld [vmem:[#allocation66_spill] sm:$0xff]  ;;  %v12245_v27 = vld [vmem:[#allocation68_spill] sm:$0xff]  ;;  %v12247_v59 = vld [vmem:[#allocation73_spill] sm:$0xff]  ;;  %v2193_v19 = vrot.slane %v9295_v61, 4 }
 0x4dc   : > { %v2222_v0 = vadd.f32 %v9239_v17, %v2221_v21  ;;  %v12209_v17 = vpack.c.bf16 %v8988_v34, %v8973_v33  ;;  %v2629_v24 = vmul.f32 0.35355338, %v502_v18  ;;  %v12213_v33 = vld [vmem:[#allocation74_spill] sm:$0xff]  ;;  %v12214_v34 = vld [vmem:[#allocation77_spill] sm:$0xff]  ;;  %v12241_v21 = vld [vmem:[#allocation64_spill] sm:$0xff] }
 0x4dd   : > { %12202 = vst [vmem:[#allocation3_spill] sm:$0xff] %v9371_v40  ;;  %12203 = vst [vmem:[#allocation52_spill] sm:$0xff] %v9373_v63  ;;  %v12253_v10 = vld [vmem:[#allocation151_spill] sm:$0xff] }
 0x4de   : > { %2293 = vmatpush1.bf16.msra.mxu1 %v12201_v50  ;;  %v2223_v9 = vadd.f32 %v9247_v8, %v2222_v0  ;;  %v2631_v20 = vpack.c.bf16 %v2629_v24, %v2629_v24  ;;  %v2194_v0 = vadd.f32 %v2193_v19, %v9295_v61 }
 0x4df   : > { %2294 = vmatprep.subr.bf16.mxu1 %v2263_v35  ;;  %v2630_v35 = vmul.f32 0.35355338, %v504_v6 }
 0x4e0   : > { %v2224_v7 = vadd.f32 %v9261_v31, %v2223_v9  ;;  %v2195_v16 = vrot.slane %v2194_v0, 2 }
 0x4e1   : > { %v2632_v28 = vpack.c.bf16 %v2630_v35, %v2630_v35 }
 0x4e2   : > { %2295 = vmatpush1.bf16.msra.mxu1 %v12204_v5  ;;  %v2225_v44 = vadd.f32 %v9271_v12, %v2224_v7  ;;  %v12210_v12 = vpack.c.bf16 %v9011_v43, %v9002_v30  ;;  %v12217_v43 = vld [vmem:[#allocation24_spill] sm:$0xff]  ;;  %v12219_v30 = vld [vmem:[#allocation25_spill] sm:$0xff]  ;;  %v2196_v9 = vadd.f32 %v2195_v16, %v2194_v0  ;;  %v12249_v5 = vld [vmem:[#allocation146_spill] sm:$0xff] }
 0x4e3   : > { %2296 = vmatprep.subr.bf16.mxu1 %v12205_v62  ;;  %v12267_v16 = vld [vmem:[#allocation172_spill] sm:$0xff] }
 0x4e4   : > { %v2226_v8 = vadd.f32 %v9276_v42, %v2225_v44  ;;  %v12211_v42 = vpack.c.bf16 %v9033_v56, %v9025_v4  ;;  %v12221_v4 = vld [vmem:[#allocation26_spill] sm:$0xff]  ;;  %v12223_v56 = vld [vmem:[#allocation27_spill] sm:$0xff]  ;;  %v2197_v60 = vrot.slane %v2196_v9, 1 }
 0x4e5   : > { %v12250_v44 = vld [vmem:[#allocation142_spill] sm:$0xff] }
 0x4e6   : > { %2297 = vmatpush1.bf16.msra.mxu1 %v12209_v17  ;;  %v2227_v23 = vadd.f32 %v9282_v37, %v2226_v8  ;;  %v2236_v37 = vpack.c.bf16 %v12214_v34, %v12213_v33  ;;  %v12254_v8 = vld [vmem:[#allocation153_spill] sm:$0xff]  ;;  %v12255_v17 = vld [vmem:[#allocation92_spill] sm:$0xff]  ;;  %v2198_v24 = vadd.f32 %v2197_v60, %v2196_v9 }
 0x4e7   : > { %2298 = vmatprep.subr.bf16.mxu1 %v2267_v3  ;;  %v12216_v3 = vmov 0   ;;  %v12258_v33 = vld [vmem:[#allocation164_spill] sm:$0xff] }
 0x4e8   : > { %v2228_v31 = vadd.f32 %v9292_v52, %v2227_v23  ;;  %v2716_v52 = vsel %vm12215_vm9, %v2631_v20, 0  ;;  %vm12238_vm9 = vmmov %vm12228_vm0  ;;  %v2541_v23 = vsel %vm1517_vm1, %v12255_v17, %v12254_v8  ;;  %v12256_v20 = vld [vmem:[#allocation14_spill] sm:$0xff]  ;;  %5175 = vrcp.f32 %v2198_v24  ;;  %v12268_v60 = vld [vmem:[#allocation88_spill] sm:$0xff] }
 0x4ea   : > { %2299 = vmatpush1.bf16.msra.mxu1 %v12210_v12  ;;  %v2229_v36 = vadd.f32 %v5174_v14, %v2228_v31  ;;  %v12225_v14 = vld [vmem:[#allocation28_spill] sm:$0xff]  ;;  %v2539_v12 = vsel %vm1517_vm1, %v12254_v8, %v12255_v17  ;;  %v12270_v17 = vld [vmem:[#allocation19_spill] sm:$0xff] }
 0x4eb   : > { %2300 = vmatprep.subr.bf16.mxu1 %v2269_v45  ;;  %v12227_v45 = vld [vmem:[#allocation29_spill] sm:$0xff] }
 0x4ec   : > { %v2230_v22 = vrot.slane %v2229_v36, 4 }
 0x4ee   : > { %2301 = vmatpush1.bf16.msra.mxu1 %v12211_v42  ;;  %v2231_v25 = vadd.f32 %v2230_v22, %v2229_v36  ;;  %v12257_v42 = vld [vmem:[#allocation166_spill] sm:$0xff] }
 0x4ef   : > { %4783 = vmatprep.subr.msk.bf16.mxu1 %vm12212_vm7, %v2632_v28  ;;  %vm12236_vm7 = vmmov %vm12228_vm0  ;;  %v2552_v28 = vmul.f32 %v12256_v20, %v2541_v23 }
 0x4f0   : > { %v2232_v50 = vrot.slane %v2231_v25, 2 }
 0x4f1   : > { %2303 = vmatmul.mubr.bf16.vlgmr.msra.gmra.mrb[96].mxu1 %v2236_v37  ;;  %v12260_v37 = vld [vmem:[#allocation55_spill] sm:$0xff] }
 0x4f2   : > { %2722 = vmatpush1.bf16.msra.mxu1 %v2716_v52  ;;  %2753 = vmatprep.mubr.bf16.mxu1 %v12216_v3  ;;  %v2233_v7 = vadd.f32 %v2232_v50, %v2231_v25  ;;  %v5176_v19 = vpop.eup %5175 }
 0x4f4   : > { %v2234_v18 = vrot.slane %v2233_v7, 1 }
 0x4f6   : > { %v2235_v35 = vadd.f32 %v2234_v18, %v2233_v7  ;;  %v12269_v18 = vld [vmem:[#allocation177_spill] sm:$0xff] }
 0x4f7   : > { %v2610_v23 = vadd.f32 %v12269_v18, %v12270_v17 }
 0x4f8   : > { %5177 = vrcp.f32 %v2235_v35 }
 0x4f9   : > { %4784 = vmatmul.mubr.msk.bf16.vlgmr.msra.gmra.mrb[100].mxu1 %vm12218_vm10, %v12217_v43  ;;  %vm12240_vm10 = vmmov %vm12228_vm0 }
 0x4fa   : > { %2763 = vmatprep.mubr.bf16.mxu1 %v12216_v3 }
 0x501   : > { %4785 = vmatmul.mubr.msk.bf16.gmra.mrb[104].mxu1 %vm12220_vm12, %v12219_v30  ;;  %vm12242_vm12 = vmmov %vm12228_vm0  ;;  %v12262_v30 = vld [vmem:[#allocation103_spill] sm:$0xff] }
 0x502   : > { %2773 = vmatprep.mubr.bf16.mxu1 %v12216_v3  ;;  %v5178_v0 = vpop.eup %5177 }
 0x509   : > { %4786 = vmatmul.mubr.msk.bf16.gmra.mrb[108].mxu1 %vm12222_vm13, %v12221_v4  ;;  %vm12244_vm13 = vmmov %vm12228_vm0 }
 0x50a   : > { %2783 = vmatprep.mubr.bf16.mxu1 %v12216_v3 }
 0x511   : > { %4787 = vmatmul.mubr.msk.bf16.gmra.mrb[112].mxu1 %vm12224_vm14, %v12223_v56  ;;  %vm12246_vm14 = vmmov %vm12228_vm0  ;;  %v2551_v56 = vmul.f32 %v12256_v20, %v2539_v12 }
 0x512   : > { %2793 = vmatprep.mubr.bf16.mxu1 %v12216_v3 }
 0x519   : > { %4788 = vmatmul.mubr.msk.bf16.gmra.mrb[116].mxu1 %vm12226_vm15, %v12225_v14  ;;  %vm12248_vm15 = vmmov %vm12228_vm0  ;;  %v12263_v14 = vld [vmem:[#allocation169_spill] sm:$0xff] }
 0x51a   : > { %2803 = vmatprep.mubr.bf16.mxu1 %v12216_v3 }
 0x521   : > { %4789 = vmatmul.mubr.msk.bf16.gmra.mrb[120].mxu1 %vm12228_vm0, %v12227_v45  ;;  %vm12251_vm0 = vcmp.lt.s32.totalorder %v12132_v57, 113 }
 0x522   : > { %2813 = vmatprep.mubr.bf16.mxu1 %v12216_v3  ;;  %v2507_v62 = vsel %vm12251_vm0, %v12250_v44, %v12249_v5 }
 0x523   : > { %v2519_v6 = vmul.f32 %v12253_v10, %v2507_v62 }
 0x525   : > { %v2523_v31 = vsel %vm7422_vm8, %v2519_v6, 0.0 }
 0x526   : > { %v2527_v52 = vadd.f32 %v2523_v31, %v12260_v37 }
 0x529   : > { %4790 = vmatmul.mubr.msk.bf16.gmra.mrb[124].mxu1 %vm12230_vm4, %v12229_v38  ;;  %vm12252_vm4 = vmmov %vm12251_vm0  ;;  %v12264_v38 = vld [vmem:[#allocation167_spill] sm:$0xff] }
 0x52a   : > { %2823 = vmatprep.mubr.bf16.mxu1 %v12216_v3  ;;  %v2509_v53 = vsel %vm12252_vm4, %v12249_v5, %v12250_v44  ;;  %vm12389_vm0 = vmmov %vm12242_vm12 }
 0x52b   : > { %v2520_v61 = vmul.f32 %v12253_v10, %v2509_v53  ;;  %v2609_v10 = vadd.f32 %v12269_v18, %v12268_v60  ;;  %vm12391_vm4 = vmmov %vm12389_vm0 }
 0x52d   : > { %v2524_v36 = vsel %vm7870_vm5, %v2520_v61, 0.0 }
 0x52e   : > { %v2528_v4 = vadd.f32 %v2524_v36, %v12262_v30 }
 0x531   : > { %4791 = vmatmul.mubr.msk.bf16.gmra.mrb[128].mxu1 %vm12232_vm2, %v12231_v41  ;;  %vm12259_vm2 = vcmp.lt.s32.totalorder %v12132_v57, 111 }
 0x532   : > { %2833 = vmatprep.mubr.bf16.mxu1 %v12216_v3  ;;  %v2571_v34 = vsel %vm12259_vm2, %v12258_v33, %v12257_v42 }
 0x533   : > { %v2583_v45 = vmul.f32 %v12263_v14, %v2571_v34 }
 0x539   : > { %4792 = vmatmul.mubr.msk.bf16.gmra.mrb[132].mxu1 %vm12234_vm6, %v12233_v1  ;;  %vm12261_vm6 = vmmov %vm12259_vm2 }
 0x53a   : > { %2843 = vmatprep.mubr.bf16.mxu1 %v12216_v3  ;;  %v2573_v43 = vsel %vm12261_vm6, %v12257_v42, %v12258_v33  ;;  %vm12393_vm2 = vmmov %vm12389_vm0 }
 0x53b   : > { %v2584_v1 = vmul.f32 %v12263_v14, %v2573_v43  ;;  %vm12395_vm6 = vmmov %vm12389_vm0 }
 0x541   : > { %4793 = vmatmul.mubr.msk.bf16.gmra.mrb[136].mxu1 %vm12236_vm7, %v12235_v13  ;;  %vm12265_vm7 = vcmp.lt.s32.totalorder %v12264_v38, 240  ;;  %v2559_v13 = vadd.f32 %v2551_v56, %v2527_v52 }
 0x542   : > { %2853 = vmatprep.mubr.bf16.mxu1 %v12216_v3  ;;  %v2556_v41 = vsel %vm12265_vm7, %v2552_v28, 0.0  ;;  %vm12397_vm7 = vmmov %vm12389_vm0 }
 0x549   : > { %4794 = vmatmul.mubr.msk.bf16.gmra.mrb[140].mxu1 %vm12238_vm9, %v12237_v47  ;;  %v2560_v47 = vadd.f32 %v2556_v41, %v2528_v4  ;;  %vm12376_vm9 = vcmask 1043456  }
 0x54a   : > { %2863 = vmatprep.mubr.bf16.mxu1 %v12216_v3 }
 0x551   : > { %4795 = vmatmul.mubr.msk.bf16.gmra.mrb[144].mxu1 %vm12240_vm10, %v12239_v39  ;;  %v2587_v39 = vsel %vm7440_vm11, %v2583_v45, 0.0  ;;  %vm12379_vm10 = vmmov %vm12376_vm9 }
 0x552   : > { %2873 = vmatprep.mubr.bf16.mxu1 %v12216_v3 }
 0x559   : > { %4796 = vmatmul.mubr.msk.bf16.gmra.mrb[148].mxu1 %vm12242_vm12, %v12241_v21 }
 0x55a   : > { %2883 = vmatprep.mubr.bf16.mxu1 %v12216_v3 }
 0x561   : > { %4797 = vmatmul.mubr.msk.bf16.gmra.mrb[152].mxu1 %vm12244_vm13, %v12243_v58  ;;  %v2588_v58 = vsel %vm8031_vm3, %v2584_v1, 0.0  ;;  %vm12383_vm13 = vmmov %vm12242_vm12 }
 0x562   : > { %2893 = vmatprep.mubr.bf16.mxu1 %v12216_v3 }
 0x569   : > { %4798 = vmatmul.mubr.msk.bf16.gmra.mrb[156].mxu1 %vm12246_vm14, %v12245_v27  ;;  %v2591_v27 = vadd.f32 %v2587_v39, %v2559_v13  ;;  %vm12385_vm14 = vmmov %vm12242_vm12 }
 0x56a   : > { %2903 = vmatprep.mubr.bf16.mxu1 %v12216_v3 }
 0x56b   : > { %v2607_v50 = vadd.f32 %v12267_v16, %v2591_v27 }
 0x571   : > { %4799 = vmatmul.mubr.msk.bf16.gmra.mrb[160].mxu1 %vm12248_vm15, %v12247_v59  ;;  %v2592_v59 = vadd.f32 %v2588_v58, %v2560_v47  ;;  %vm12387_vm15 = vmmov %vm12242_vm12 }
 0x573   : > { %v2608_v5 = vadd.f32 %v12267_v16, %v2592_v59 }
 0x5c4   : > { %v2304_v22 = vpop.f32.mrb[96].mxu1 }
 0x5c5   : > { %v2315_v25 = vmul.f32 %v5176_v19, %v2304_v22  ;;  %v2306_v9 = vpop.f32.mrb[97].mxu1 }
 0x5c6   : > { %v2316_v7 = vmul.f32 %v5178_v0, %v2306_v9  ;;  %v2308_v44 = vpop.f32.mrb[98].mxu1 }
 0x5c7   : > { %v2611_v62 = vadd.f32 %v2607_v50, %v2315_v25  ;;  %v2317_v53 = vmul.f32 %v5176_v19, %v2308_v44  ;;  %v2310_v6 = vpop.f32.mrb[99].mxu1 }
 0x5c8   : > { %v2612_v61 = vadd.f32 %v2608_v5, %v2316_v7  ;;  %v2318_v8 = vmul.f32 %v5178_v0, %v2310_v6 }
 0x5c9   : > { %v2613_v24 = vadd.f32 %v2609_v10, %v2317_v53 }
 0x5ca   : > { %v4827_v35 = vpack.c.bf16 %v2612_v61, %v2611_v62  ;;  %v2614_v31 = vadd.f32 %v2610_v23, %v2318_v8 }
 0x5cc   : > { %2627 = vst [vmem:[%s8100_s15 + $0x10] sm:$0xff] %v4827_v35  ;;  %v4828_v12 = vpack.c.bf16 %v2614_v31, %v2613_v24  ;;  %v9506_v36 = vpop.f32.mrb[100].mxu1 }
 0x5cd   : > { %v9508_v20 = vpop.f32.mrb[101].mxu1 }
 0x5ce   : > { %2628 = vst [vmem:[%s8100_s15 + $0x18] sm:$0xff] %v4828_v12  ;;  %v9511_v28 = vpop.f32.mrb[102].mxu1 }
 0x5cf   : > { %v9513_v42 = vpop.f32.mrb[103].mxu1 }
 0x5d4   : > { %v9515_v33 = vpop.f32.mrb[104].mxu1 }
 0x5d5   : > { %v2914_v34 = vmax.f32 %v9506_v36, %v9515_v33  ;;  %v9519_v37 = vpop.f32.mrb[105].mxu1 }
 0x5d6   : > { %v2951_v52 = vmax.f32 %v9508_v20, %v9519_v37  ;;  %v9523_v43 = vpop.f32.mrb[106].mxu1 }
 0x5d7   : > { %v2915_v30 = vmax.f32 %v9511_v28, %v9523_v43  ;;  %v9527_v4 = vpop.f32.mrb[107].mxu1 }
 0x5d8   : > { %v2952_v56 = vmax.f32 %v9513_v42, %v9527_v4 }
 0x5dc   : > { %v9531_v14 = vpop.f32.mrb[108].mxu1 }
 0x5dd   : > { %v2916_v45 = vmax.f32 %v2914_v34, %v9531_v14  ;;  %v9534_v41 = vpop.f32.mrb[109].mxu1 }
 0x5de   : > { %v2953_v1 = vmax.f32 %v2951_v52, %v9534_v41  ;;  %v9537_v13 = vpop.f32.mrb[110].mxu1 }
 0x5df   : > { %v2917_v47 = vmax.f32 %v2915_v30, %v9537_v13  ;;  %v9540_v39 = vpop.f32.mrb[111].mxu1 }
 0x5e0   : > { %v2954_v58 = vmax.f32 %v2952_v56, %v9540_v39 }
 0x5e4   : > { %v9543_v27 = vpop.f32.mrb[112].mxu1 }
 0x5e5   : > { %v2918_v59 = vmax.f32 %v2916_v45, %v9543_v27  ;;  %v9546_v19 = vpop.f32.mrb[113].mxu1 }
 0x5e6   : > { %v2955_v22 = vmax.f32 %v2953_v1, %v9546_v19  ;;  %v9549_v0 = vpop.f32.mrb[114].mxu1 }
 0x5e7   : > { %v2919_v25 = vmax.f32 %v2917_v47, %v9549_v0  ;;  %v9552_v16 = vpop.f32.mrb[115].mxu1 }
 0x5e8   : > { %v2956_v50 = vmax.f32 %v2954_v58, %v9552_v16 }
 0x5ec   : > { %v9555_v9 = vpop.f32.mrb[116].mxu1 }
 0x5ed   : > { %v2920_v7 = vmax.f32 %v2918_v59, %v9555_v9  ;;  %v9558_v5 = vpop.f32.mrb[117].mxu1 }
 0x5ee   : > { %v2957_v44 = vmax.f32 %v2955_v22, %v9558_v5  ;;  %v9561_v62 = vpop.f32.mrb[118].mxu1 }
 0x5ef   : > { %v2921_v53 = vmax.f32 %v2919_v25, %v9561_v62  ;;  %v9564_v60 = vpop.f32.mrb[119].mxu1 }
 0x5f0   : > { %v2958_v18 = vmax.f32 %v2956_v50, %v9564_v60 }
 0x5f4   : > { %v9567_v10 = vpop.f32.mrb[120].mxu1 }
 0x5f5   : > { %v2922_v6 = vmax.f32 %v2920_v7, %v9567_v10  ;;  %v9570_v61 = vpop.f32.mrb[121].mxu1 }
 0x5f6   : > { %v2959_v8 = vmax.f32 %v2957_v44, %v9570_v61  ;;  %v9573_v17 = vpop.f32.mrb[122].mxu1 }
 0x5f7   : > { %v2923_v23 = vmax.f32 %v2921_v53, %v9573_v17  ;;  %v9576_v24 = vpop.f32.mrb[123].mxu1 }
 0x5f8   : > { %12271 = vst [vmem:[#allocation140_spill] sm:$0xff] %v9576_v24  ;;  %v2960_v35 = vmax.f32 %v2958_v18, %v9576_v24 }
 0x5fc   : > { %v9579_v31 = vpop.f32.mrb[124].mxu1 }
 0x5fd   : > { %v2924_v12 = vmax.f32 %v2922_v6, %v9579_v31  ;;  %v9582_v34 = vpop.f32.mrb[125].mxu1 }
 0x5fe   : > { %12272 = vst [vmem:[#allocation100_spill] sm:$0xff] %v9582_v34  ;;  %v2961_v52 = vmax.f32 %v2959_v8, %v9582_v34  ;;  %v9585_v30 = vpop.f32.mrb[126].mxu1 }
 0x5ff   : > { %v2925_v56 = vmax.f32 %v2923_v23, %v9585_v30  ;;  %v9588_v45 = vpop.f32.mrb[127].mxu1 }
 0x600   : > { %12273 = vst [vmem:[#allocation91_spill] sm:$0xff] %v9588_v45  ;;  %v2962_v1 = vmax.f32 %v2960_v35, %v9588_v45 }
 0x604   : > { %v9591_v47 = vpop.f32.mrb[128].mxu1 }
 0x605   : > { %v2926_v58 = vmax.f32 %v2924_v12, %v9591_v47  ;;  %v9594_v59 = vpop.f32.mrb[129].mxu1 }
 0x606   : > { %12274 = vst [vmem:[#allocation90_spill] sm:$0xff] %v9594_v59  ;;  %v2963_v22 = vmax.f32 %v2961_v52, %v9594_v59  ;;  %v9597_v25 = vpop.f32.mrb[130].mxu1 }
 0x607   : > { %v2927_v50 = vmax.f32 %v2925_v56, %v9597_v25  ;;  %v9600_v7 = vpop.f32.mrb[131].mxu1 }
 0x608   : > { %12275 = vst [vmem:[#allocation150_spill] sm:$0xff] %v9600_v7  ;;  %v2964_v44 = vmax.f32 %v2962_v1, %v9600_v7 }
 0x60c   : > { %v9603_v53 = vpop.f32.mrb[132].mxu1 }
 0x60d   : > { %v2928_v18 = vmax.f32 %v2926_v58, %v9603_v53  ;;  %v9606_v6 = vpop.f32.mrb[133].mxu1 }
 0x60e   : > { %12276 = vst [vmem:[#allocation2_spill] sm:$0xff] %v9606_v6  ;;  %v2965_v8 = vmax.f32 %v2963_v22, %v9606_v6  ;;  %v9609_v23 = vpop.f32.mrb[134].mxu1 }
 0x60f   : > { %v2929_v35 = vmax.f32 %v2927_v50, %v9609_v23  ;;  %v9612_v12 = vpop.f32.mrb[135].mxu1 }
 0x610   : > { %12277 = vst [vmem:[#allocation17_spill] sm:$0xff] %v9612_v12  ;;  %v2966_v52 = vmax.f32 %v2964_v44, %v9612_v12 }
 0x614   : > { %v9615_v56 = vpop.f32.mrb[136].mxu1 }
 0x615   : > { %v2930_v1 = vmax.f32 %v2928_v18, %v9615_v56  ;;  %v9618_v63 = vpop.f32.mrb[137].mxu1 }
 0x616   : > { %12278 = vst [vmem:[#allocation99_spill] sm:$0xff] %v9618_v63  ;;  %v2967_v58 = vmax.f32 %v2965_v8, %v9618_v63  ;;  %v9621_v40 = vpop.f32.mrb[138].mxu1 }
 0x617   : > { %v2931_v22 = vmax.f32 %v2929_v35, %v9621_v40  ;;  %v9624_v32 = vpop.f32.mrb[139].mxu1 }
 0x618   : > { %12279 = vst [vmem:[#allocation82_spill] sm:$0xff] %v9624_v32  ;;  %v2968_v50 = vmax.f32 %v2966_v52, %v9624_v32 }
 0x61c   : > { %v9627_v15 = vpop.f32.mrb[140].mxu1 }
 0x61d   : > { %v2932_v44 = vmax.f32 %v2930_v1, %v9627_v15  ;;  %v9630_v26 = vpop.f32.mrb[141].mxu1 }
 0x61e   : > { %12280 = vst [vmem:[#allocation13_spill] sm:$0xff] %v9630_v26  ;;  %v2969_v18 = vmax.f32 %v2967_v58, %v9630_v26  ;;  %v9633_v29 = vpop.f32.mrb[142].mxu1 }
 0x61f   : > { %v2933_v8 = vmax.f32 %v2931_v22, %v9633_v29  ;;  %v9636_v48 = vpop.f32.mrb[143].mxu1 }
 0x620   : > { %12281 = vst [vmem:[#allocation23_spill] sm:$0xff] %v9636_v48  ;;  %v2970_v35 = vmax.f32 %v2968_v50, %v9636_v48 }
 0x624   : > { %v9639_v2 = vpop.f32.mrb[144].mxu1 }
 0x625   : > { %v2934_v52 = vmax.f32 %v2932_v44, %v9639_v2  ;;  %v9642_v46 = vpop.f32.mrb[145].mxu1 }
 0x626   : > { %12282 = vst [vmem:[#allocation117_spill] sm:$0xff] %v9642_v46  ;;  %v2971_v1 = vmax.f32 %v2969_v18, %v9642_v46  ;;  %v9645_v21 = vpop.f32.mrb[146].mxu1 }
 0x627   : > { %v2935_v58 = vmax.f32 %v2933_v8, %v9645_v21  ;;  %v9648_v38 = vpop.f32.mrb[147].mxu1 }
 0x628   : > { %12283 = vst [vmem:[#allocation9_spill] sm:$0xff] %v9648_v38  ;;  %v2972_v22 = vmax.f32 %v2970_v35, %v9648_v38 }
 0x62c   : > { %v9651_v49 = vpop.f32.mrb[148].mxu1 }
 0x62d   : > { %v2936_v50 = vmax.f32 %v2934_v52, %v9651_v49  ;;  %v9654_v54 = vpop.f32.mrb[149].mxu1 }
 0x62e   : > { %12284 = vst [vmem:[#allocation11_spill] sm:$0xff] %v9654_v54  ;;  %v2973_v44 = vmax.f32 %v2971_v1, %v9654_v54  ;;  %v9657_v55 = vpop.f32.mrb[150].mxu1 }
 0x62f   : > { %v2937_v18 = vmax.f32 %v2935_v58, %v9657_v55  ;;  %v9660_v57 = vpop.f32.mrb[151].mxu1 }
 0x630   : > { %12285 = vst [vmem:[#allocation84_spill] sm:$0xff] %v9660_v57  ;;  %v2974_v8 = vmax.f32 %v2972_v22, %v9660_v57 }
 0x634   : > { %v9663_v11 = vpop.f32.mrb[152].mxu1 }
 0x635   : > { %v2938_v35 = vmax.f32 %v2936_v50, %v9663_v11  ;;  %v9666_v51 = vpop.f32.mrb[153].mxu1 }
 0x636   : > { %12286 = vst [vmem:[#allocation102_spill] sm:$0xff] %v9666_v51  ;;  %v2975_v52 = vmax.f32 %v2973_v44, %v9666_v51  ;;  %v9669_v3 = vpop.f32.mrb[154].mxu1 }
 0x637   : > { %v2939_v1 = vmax.f32 %v2937_v18, %v9669_v3  ;;  %v9672_v54 = vpop.f32.mrb[155].mxu1 }
 0x638   : > { %12287 = vst [vmem:[#allocation95_spill] sm:$0xff] %v9672_v54  ;;  %v2976_v58 = vmax.f32 %v2974_v8, %v9672_v54 }
 0x63c   : > { %v9675_v38 = vpop.f32.mrb[156].mxu1 }
 0x63d   : > { %v2940_v22 = vmax.f32 %v2938_v35, %v9675_v38  ;;  %v9678_v57 = vpop.f32.mrb[157].mxu1 }
 0x63e   : > { %12288 = vst [vmem:[#allocation123_spill] sm:$0xff] %v9678_v57  ;;  %v2977_v50 = vmax.f32 %v2975_v52, %v9678_v57  ;;  %v9681_v46 = vpop.f32.mrb[158].mxu1 }
 0x63f   : > { %v2941_v44 = vmax.f32 %v2939_v1, %v9681_v46  ;;  %v9684_v51 = vpop.f32.mrb[159].mxu1 }
 0x640   : > { %12289 = vst [vmem:[#allocation75_spill] sm:$0xff] %v9684_v51  ;;  %v2978_v18 = vmax.f32 %v2976_v58, %v9684_v51 }
 0x644   : > { %v9687_v48 = vpop.f32.mrb[160].mxu1 }
 0x645   : > { %v2942_v8 = vmax.f32 %v2940_v22, %v9687_v48  ;;  %v9690_v54 = vpop.f32.mrb[161].mxu1 }
 0x646   : > { %12290 = vst [vmem:[#allocation130_spill] sm:$0xff] %v9690_v54  ;;  %v2979_v35 = vmax.f32 %v2977_v50, %v9690_v54  ;;  %v9693_v26 = vpop.f32.mrb[162].mxu1 }
 0x647   : > { %v2943_v52 = vmax.f32 %v2941_v44, %v9693_v26  ;;  %v9696_v57 = vpop.f32.mrb[163].mxu1 }
 0x648   : > { %12291 = vst [vmem:[#allocation110_spill] sm:$0xff] %v9696_v57  ;;  %v2980_v1 = vmax.f32 %v2978_v18, %v9696_v57 }
 0x649   : > { %v2944_v32 = vmax.f32 %v2942_v8, %v2943_v52 }
 0x64a   : > { %v2981_v63 = vmax.f32 %v2979_v35, %v2980_v1 }
 0x64b   : > { %v2945_v12 = vrot.slane %v2944_v32, 4 }
 0x64c   : > { %v2982_v58 = vrot.slane %v2981_v63, 4 }
 0x64d   : > { %v2946_v51 = vmax.f32 %v2944_v32, %v2945_v12 }
 0x64e   : > { %v2983_v6 = vmax.f32 %v2981_v63, %v2982_v58 }
 0x64f   : > { %v2947_v7 = vrot.slane %v2946_v51, 2 }
 0x650   : > { %v2984_v22 = vrot.slane %v2983_v6, 2 }
 0x651   : > { %v2948_v59 = vmax.f32 %v2946_v51, %v2947_v7  ;;  %v12311_v7 = vld [vmem:[#allocation130_spill] sm:$0xff] }
 0x652   : > { %v2985_v45 = vmax.f32 %v2983_v6, %v2984_v22 }
 0x653   : > { %v2949_v34 = vrot.slane %v2948_v59, 1 }
 0x654   : > { %v2986_v50 = vrot.slane %v2985_v45, 1 }
 0x655   : > { %v9699_v54 = vmax.f32 %v2948_v59, %v2949_v34 }
 0x656   : > { %v9701_v24 = vmax.f32 %v2985_v45, %v2986_v50 }
 0x657   : > { %v2988_v44 = vsub.f32 %v9506_v36, %v9699_v54  ;;  %v2990_v18 = vsub.f32 %v9511_v28, %v9699_v54  ;;  %v2992_v32 = vsub.f32 %v9515_v33, %v9699_v54  ;;  %v2994_v63 = vsub.f32 %v9523_v43, %v9699_v54 }
 0x658   : > { %v2996_v51 = vsub.f32 %v9531_v14, %v9699_v54  ;;  %v2998_v34 = vsub.f32 %v9537_v13, %v9699_v54  ;;  %v3000_v45 = vsub.f32 %v9543_v27, %v9699_v54  ;;  %v3002_v36 = vsub.f32 %v9549_v0, %v9699_v54 }
 0x659   : > { %v3004_v28 = vsub.f32 %v9555_v9, %v9699_v54  ;;  %v3006_v33 = vsub.f32 %v9561_v62, %v9699_v54  ;;  %v3008_v43 = vsub.f32 %v9567_v10, %v9699_v54  ;;  %v3010_v14 = vsub.f32 %v9573_v17, %v9699_v54 }
 0x65a   : > { %v3012_v13 = vsub.f32 %v9579_v31, %v9699_v54  ;;  %v3014_v27 = vsub.f32 %v9585_v30, %v9699_v54  ;;  %v3016_v0 = vsub.f32 %v9591_v47, %v9699_v54  ;;  %v3018_v9 = vsub.f32 %v9597_v25, %v9699_v54 }
 0x65b   : > { %v3020_v62 = vsub.f32 %v9603_v53, %v9699_v54  ;;  %v3022_v10 = vsub.f32 %v9609_v23, %v9699_v54  ;;  %v3024_v17 = vsub.f32 %v9615_v56, %v9699_v54  ;;  %v3026_v31 = vsub.f32 %v9621_v40, %v9699_v54 }
 0x65c   : > { %v3028_v30 = vsub.f32 %v9627_v15, %v9699_v54  ;;  %v3030_v47 = vsub.f32 %v9633_v29, %v9699_v54  ;;  %v3032_v59 = vsub.f32 %v9639_v2, %v9699_v54  ;;  %v3034_v25 = vsub.f32 %v9645_v21, %v9699_v54 }
 0x65d   : > { %v3052_v23 = vmul.f32 1.442695, %v2988_v44  ;;  %v3056_v12 = vmul.f32 1.442695, %v2990_v18  ;;  %v3060_v56 = vmul.f32 1.442695, %v2992_v32 }
 0x65e   : > { %v3064_v35 = vmul.f32 1.442695, %v2994_v63  ;;  %v3068_v1 = vmul.f32 1.442695, %v2996_v51  ;;  %v3072_v58 = vmul.f32 1.442695, %v2998_v34 }
 0x65f   : > { %5179 = vpow2.f32 %v3052_v23  ;;  %v3076_v22 = vmul.f32 1.442695, %v3000_v45  ;;  %v3080_v50 = vmul.f32 1.442695, %v3002_v36  ;;  %v3084_v21 = vmul.f32 1.442695, %v3004_v28 }
 0x660   : > { %5181 = vpow2.f32 %v3056_v12  ;;  %v3088_v6 = vmul.f32 1.442695, %v3006_v33  ;;  %v3092_v44 = vmul.f32 1.442695, %v3008_v43  ;;  %v3096_v18 = vmul.f32 1.442695, %v3010_v14 }
 0x661   : > { %5183 = vpow2.f32 %v3060_v56  ;;  %v3100_v32 = vmul.f32 1.442695, %v3012_v13  ;;  %v3104_v8 = vmul.f32 1.442695, %v3014_v27  ;;  %v3108_v63 = vmul.f32 1.442695, %v3016_v0 }
 0x662   : > { %5185 = vpow2.f32 %v3064_v35  ;;  %v3112_v2 = vmul.f32 1.442695, %v3018_v9  ;;  %v3116_v52 = vmul.f32 1.442695, %v3020_v62  ;;  %v3120_v23 = vmul.f32 1.442695, %v3022_v10 }
 0x663   : > { %5187 = vpow2.f32 %v3068_v1  ;;  %v3124_v51 = vmul.f32 1.442695, %v3024_v17  ;;  %v3128_v34 = vmul.f32 1.442695, %v3026_v31  ;;  %v3132_v12 = vmul.f32 1.442695, %v3028_v30 }
 0x664   : > { %5189 = vpow2.f32 %v3072_v58  ;;  %v9771_v45 = vmul.f32 1.442695, %v3030_v47  ;;  %v9773_v36 = vmul.f32 1.442695, %v3032_v59  ;;  %v9775_v28 = vmul.f32 1.442695, %v3034_v25 }
 0x665   : > { %5191 = vpow2.f32 %v3076_v22  ;;  %v12292_v30 = vld [vmem:[#allocation140_spill] sm:$0xff]  ;;  %v12294_v56 = vld [vmem:[#allocation91_spill] sm:$0xff]  ;;  %v12295_v58 = vld [vmem:[#allocation90_spill] sm:$0xff] }
 0x666   : > { %5193 = vpow2.f32 %v3080_v50  ;;  %v12296_v50 = vld [vmem:[#allocation150_spill] sm:$0xff]  ;;  %v12298_v31 = vld [vmem:[#allocation17_spill] sm:$0xff]  ;;  %v12299_v17 = vld [vmem:[#allocation99_spill] sm:$0xff] }
 0x667   : > { %5195 = vpow2.f32 %v3084_v21  ;;  %v12293_v21 = vld [vmem:[#allocation100_spill] sm:$0xff]  ;;  %v12300_v22 = vld [vmem:[#allocation82_spill] sm:$0xff]  ;;  %v12301_v9 = vld [vmem:[#allocation13_spill] sm:$0xff] }
 0x668   : > { %5197 = vpow2.f32 %v3088_v6  ;;  %v12302_v0 = vld [vmem:[#allocation23_spill] sm:$0xff]  ;;  %v12303_v35 = vld [vmem:[#allocation117_spill] sm:$0xff]  ;;  %v12306_v33 = vld [vmem:[#allocation84_spill] sm:$0xff] }
 0x669   : > { %v9785_v27 = vpop.eup %5179  ;;  %5199 = vpow2.f32 %v3092_v44  ;;  %v12304_v14 = vld [vmem:[#allocation9_spill] sm:$0xff]  ;;  %v12305_v44 = vld [vmem:[#allocation11_spill] sm:$0xff] }
 0x66a   : > { %v9793_v10 = vpop.eup %5181  ;;  %5201 = vpow2.f32 %v3096_v18  ;;  %v12297_v18 = vld [vmem:[#allocation2_spill] sm:$0xff] }
 0x66b   : > { %v9801_v59 = vpop.eup %5183  ;;  %5203 = vpow2.f32 %v3100_v32  ;;  %v3180_v25 = vadd.f32 %v9793_v10, %v9785_v27  ;;  %v12310_v32 = vld [vmem:[#allocation75_spill] sm:$0xff] }
 0x66c   : > { %v9809_v1 = vpop.eup %5185  ;;  %5205 = vpow2.f32 %v3104_v8  ;;  %v12308_v8 = vld [vmem:[#allocation95_spill] sm:$0xff] }
 0x66d   : > { %v9817_v47 = vpop.eup %5187  ;;  %5207 = vpow2.f32 %v3108_v63  ;;  %v3181_v6 = vadd.f32 %v9801_v59, %v3180_v25 }
 0x66e   : > { %v9824_v62 = vpop.eup %5189  ;;  %5209 = vpow2.f32 %v3112_v2 }
 0x66f   : > { %v9832_v13 = vpop.eup %5191  ;;  %5211 = vpow2.f32 %v3116_v52  ;;  %v3182_v25 = vadd.f32 %v9809_v1, %v3181_v6 }
 0x670   : > { %v9839_v43 = vpop.eup %5193  ;;  %5213 = vpow2.f32 %v3120_v23 }
 0x671   : > { %v9847_v15 = vpop.eup %5195  ;;  %5215 = vpow2.f32 %v3124_v51  ;;  %v3183_v6 = vadd.f32 %v9817_v47, %v3182_v25  ;;  %v12312_v25 = vsub.f32 %v9651_v49, %v9699_v54 }
 0x672   : > { %v9854_v53 = vpop.eup %5197  ;;  %5217 = vpow2.f32 %v3128_v34  ;;  %v12313_v34 = vsub.f32 %v9657_v55, %v9699_v54 }
 0x673   : > { %v9862_v29 = vpop.eup %5199  ;;  %5219 = vpow2.f32 %v3132_v12  ;;  %v3148_v2 = vmul.f32 1.442695, %v12312_v25  ;;  %v3184_v23 = vadd.f32 %v9824_v62, %v3183_v6  ;;  %v12314_v12 = vsub.f32 %v9663_v11, %v9699_v54 }
 0x674   : > { %v9868_v40 = vpop.eup %5201  ;;  %5221 = vpow2.f32 %v9771_v45  ;;  %v3152_v52 = vmul.f32 1.442695, %v12313_v34  ;;  %v12315_v45 = vsub.f32 %v9669_v3, %v9699_v54  ;;  %v12319_v3 = vsub.f32 %v9687_v48, %v9699_v54 }
 0x675   : > { %v9874_v63 = vpop.eup %5203  ;;  %5223 = vpow2.f32 %v9773_v36  ;;  %v3156_v51 = vmul.f32 1.442695, %v12314_v12  ;;  %v3185_v49 = vadd.f32 %v9832_v13, %v3184_v23  ;;  %v12316_v36 = vsub.f32 %v9675_v38, %v9699_v54 }
 0x676   : > { %v9881_v25 = vpop.eup %5205  ;;  %5225 = vpow2.f32 %v9775_v28  ;;  %v3160_v6 = vmul.f32 1.442695, %v12315_v45  ;;  %v12317_v23 = vsub.f32 %v9681_v46, %v9699_v54 }
 0x677   : > { %v9887_v55 = vpop.eup %5207  ;;  %5227 = vpow2.f32 %v3148_v2  ;;  %v3164_v34 = vmul.f32 1.442695, %v12316_v36  ;;  %v3186_v11 = vadd.f32 %v9839_v43, %v3185_v49  ;;  %v3172_v2 = vmul.f32 1.442695, %v12319_v3 }
 0x678   : > { %v9893_v12 = vpop.eup %5209  ;;  %5229 = vpow2.f32 %v3152_v52  ;;  %v3168_v28 = vmul.f32 1.442695, %v12317_v23  ;;  %v12320_v49 = vsub.f32 %v9693_v26, %v9699_v54  ;;  %v12323_v26 = vsub.f32 %v9519_v37, %v9701_v24 }
 0x679   : > { %v9898_v57 = vpop.eup %5211  ;;  %5231 = vpow2.f32 %v3156_v51  ;;  %v3187_v45 = vadd.f32 %v9847_v15, %v3186_v11  ;;  %v12321_v51 = vsub.f32 %v9508_v20, %v9701_v24  ;;  %v12322_v11 = vsub.f32 %v9513_v42, %v9701_v24 }
 0x67a   : > { %12318 = vst [vmem:[#allocation112_spill] sm:$0xff] %v9898_v57  ;;  %v9904_v38 = vpop.eup %5213  ;;  %5233 = vpow2.f32 %v3160_v6  ;;  %v3176_v52 = vmul.f32 1.442695, %v12320_v49  ;;  %v3062_v54 = vmul.f32 1.442695, %v12323_v26  ;;  %v12324_v20 = vsub.f32 %v9527_v4, %v9701_v24 }
 0x67b   : > { %v9909_v36 = vpop.eup %5215  ;;  %5235 = vpow2.f32 %v3164_v34  ;;  %v3188_v46 = vadd.f32 %v9854_v53, %v3187_v45  ;;  %v3054_v23 = vmul.f32 1.442695, %v12321_v51  ;;  %v3058_v6 = vmul.f32 1.442695, %v12322_v11 }
 0x67c   : > { %v9915_v48 = vpop.eup %5217  ;;  %5237 = vpow2.f32 %v3168_v28  ;;  %v3066_v45 = vmul.f32 1.442695, %v12324_v20  ;;  %v12325_v28 = vsub.f32 %v9534_v41, %v9701_v24  ;;  %v12326_v42 = vsub.f32 %v9540_v39, %v9701_v24 }
 0x67d   : > { %v9923_v3 = vpop.eup %5219  ;;  %5239 = vpow2.f32 %v3172_v2  ;;  %v3189_v34 = vadd.f32 %v9862_v29, %v3188_v46  ;;  %v12327_v2 = vsub.f32 %v9546_v19, %v9701_v24  ;;  %v12328_v46 = vsub.f32 %v9552_v16, %v9701_v24 }
 0x67e   : > { %v3070_v49 = vmul.f32 1.442695, %v12325_v28  ;;  %v9932_v51 = vpop.eup %5221  ;;  %5241 = vpow2.f32 %v3176_v52  ;;  %v3074_v37 = vmul.f32 1.442695, %v12326_v42  ;;  %v12329_v52 = vsub.f32 %v9558_v5, %v9701_v24 }
 0x67f   : > { %v3078_v11 = vmul.f32 1.442695, %v12327_v2  ;;  %v3082_v4 = vmul.f32 1.442695, %v12328_v46  ;;  %v9943_v26 = vpop.eup %5223  ;;  %v3190_v41 = vadd.f32 %v9868_v40, %v3189_v34  ;;  %5243 = vpow2.f32 %v3054_v23 }
 0x680   : > { %v3086_v20 = vmul.f32 1.442695, %v12329_v52  ;;  %v12330_v39 = vsub.f32 %v9564_v60, %v9701_v24  ;;  %v9952_v42 = vpop.eup %5225  ;;  %5245 = vpow2.f32 %v3058_v6 }
 0x681   : > { %v9960_v34 = vpop.eup %5227  ;;  %v3191_v5 = vadd.f32 %v9874_v63, %v3190_v41  ;;  %5247 = vpow2.f32 %v3062_v54 }
 0x682   : > { %v3090_v28 = vmul.f32 1.442695, %v12330_v39  ;;  %v9967_v2 = vpop.eup %5229  ;;  %5249 = vpow2.f32 %v3066_v45  ;;  %v12331_v45 = vsub.f32 %v9570_v61, %v9701_v24  ;;  %v12332_v39 = vsub.f32 %v12292_v30, %v9701_v24 }
 0x683   : > { %v9975_v41 = vpop.eup %5231  ;;  %v3192_v54 = vadd.f32 %v9881_v25, %v3191_v5  ;;  %5251 = vpow2.f32 %v3070_v49 }
 0x684   : > { %v9982_v60 = vpop.eup %5233  ;;  %5253 = vpow2.f32 %v3074_v37  ;;  %v3094_v6 = vmul.f32 1.442695, %v12331_v45  ;;  %v3098_v52 = vmul.f32 1.442695, %v12332_v39 }
 0x685   : > { %v9990_v5 = vpop.eup %5235  ;;  %v3193_v49 = vadd.f32 %v9887_v55, %v3192_v54  ;;  %5255 = vpow2.f32 %v3078_v11  ;;  %v12333_v11 = vsub.f32 %v12293_v21, %v9701_v24  ;;  %v12338_v21 = vsub.f32 %v12298_v31, %v9701_v24 }
 0x686   : > { %v9998_v23 = vpop.eup %5237  ;;  %5257 = vpow2.f32 %v3082_v4  ;;  %v12334_v4 = vsub.f32 %v12294_v56, %v9701_v24  ;;  %v12337_v56 = vsub.f32 %v12297_v18, %v9701_v24  ;;  %v12341_v31 = vsub.f32 %v12301_v9, %v9701_v24 }
 0x687   : > { %v10003_v46 = vpop.eup %5239  ;;  %v3194_v16 = vadd.f32 %v9893_v12, %v3193_v49  ;;  %5259 = vpow2.f32 %v3086_v20  ;;  %v3102_v61 = vmul.f32 1.442695, %v12333_v11  ;;  %v12335_v20 = vsub.f32 %v12295_v58, %v9701_v24 }
 0x688   : > { %v10011_v45 = vpop.eup %5241  ;;  %5261 = vpow2.f32 %v3090_v28  ;;  %v3106_v30 = vmul.f32 1.442695, %v12334_v4  ;;  %v12336_v28 = vsub.f32 %v12296_v50, %v9701_v24  ;;  %v3118_v4 = vmul.f32 1.442695, %v12337_v56 }
 0x689   : > { %v5244_v39 = vpop.eup %5243  ;;  %v3195_v37 = vadd.f32 %v9898_v57, %v3194_v16  ;;  %5263 = vpow2.f32 %v3094_v6  ;;  %v3110_v49 = vmul.f32 1.442695, %v12335_v20  ;;  %v12339_v50 = vsub.f32 %v12299_v17, %v9701_v24 }
 0x68a   : > { %v5246_v11 = vpop.eup %5245  ;;  %5265 = vpow2.f32 %v3098_v52  ;;  %v3114_v54 = vmul.f32 1.442695, %v12336_v28  ;;  %v3122_v52 = vmul.f32 1.442695, %v12338_v21  ;;  %v3134_v21 = vmul.f32 1.442695, %v12341_v31 }
 0x68b   : > { %v5248_v19 = vpop.eup %5247  ;;  %v3196_v16 = vadd.f32 %v9904_v38, %v3195_v37  ;;  %5267 = vpow2.f32 %v3102_v61  ;;  %v3217_v6 = vadd.f32 %v5246_v11, %v5244_v39  ;;  %v3257_v58 = vpack.c.bf16 %v5246_v11, %v5244_v39 }
 0x68c   : > { %v5250_v20 = vpop.eup %5249  ;;  %5269 = vpow2.f32 %v3106_v30  ;;  %v3126_v28 = vmul.f32 1.442695, %v12339_v50  ;;  %v12340_v30 = vsub.f32 %v12300_v22, %v9701_v24  ;;  %v12342_v17 = vpack.c.bf16 %v9793_v10, %v9785_v27 }
 0x68d   : > { %v5252_v57 = vpop.eup %5251  ;;  %v3197_v18 = vadd.f32 %v9909_v36, %v3196_v16  ;;  %5271 = vpow2.f32 %v3110_v49  ;;  %v3218_v56 = vadd.f32 %v5248_v19, %v3217_v6  ;;  %3288 = vmatprep.subr.bf16.mxu0 %v3257_v58  ;;  %v3259_v37 = vpack.c.bf16 %v5250_v20, %v5248_v19 }
 0x68e   : > { %v5254_v61 = vpop.eup %5253  ;;  %5273 = vpow2.f32 %v3114_v54  ;;  %v3130_v39 = vmul.f32 1.442695, %v12340_v30  ;;  %3289 = vmatpush1.bf16.msra.mxu0 %v12342_v17  ;;  %v12343_v22 = vsub.f32 %v12302_v0, %v9701_v24  ;;  %v12344_v9 = vsub.f32 %v12303_v35, %v9701_v24  ;;  %v12349_v17 = vld [vmem:[#allocation102_spill] sm:$0xff] }
 0x68f   : > { %v5256_v11 = vpop.eup %5255  ;;  %v3198_v49 = vadd.f32 %v9915_v48, %v3197_v18  ;;  %5275 = vpow2.f32 %v3118_v4  ;;  %v3219_v16 = vadd.f32 %v5250_v20, %v3218_v56  ;;  %3290 = vmatprep.subr.bf16.mxu0 %v3259_v37  ;;  %v3261_v19 = vpack.c.bf16 %v5254_v61, %v5252_v57 }
 0x690   : > { %v5258_v54 = vpop.eup %5257  ;;  %5277 = vpow2.f32 %v3122_v52  ;;  %v3138_v6 = vmul.f32 1.442695, %v12343_v22  ;;  %v3142_v58 = vmul.f32 1.442695, %v12344_v9  ;;  %v12345_v20 = vsub.f32 %v12304_v14, %v9701_v24 }
 0x691   : > { %v5260_v50 = vpop.eup %5259  ;;  %v3199_v27 = vadd.f32 %v9923_v3, %v3198_v49  ;;  %5279 = vpow2.f32 %v3126_v28  ;;  %v3220_v10 = vadd.f32 %v5252_v57, %v3219_v16  ;;  %v3263_v18 = vpack.c.bf16 %v5258_v54, %v5256_v11 }
 0x692   : > { %v5262_v4 = vpop.eup %5261  ;;  %5281 = vpow2.f32 %v3130_v39  ;;  %v3146_v52 = vmul.f32 1.442695, %v12345_v20  ;;  %v12346_v0 = vsub.f32 %v12305_v44, %v9701_v24  ;;  %v12347_v35 = vpack.c.bf16 %v9809_v1, %v9801_v59 }
 0x693   : > { %v5264_v37 = vpop.eup %5263  ;;  %v3200_v30 = vadd.f32 %v9932_v51, %v3199_v27  ;;  %5283 = vpow2.f32 %v3134_v21  ;;  %v3221_v57 = vadd.f32 %v5254_v61, %v3220_v10  ;;  %v3265_v28 = vpack.c.bf16 %v5262_v4, %v5260_v50 }
 0x694   : > { %v3150_v56 = vmul.f32 1.442695, %v12346_v0  ;;  %3291 = vmatpush1.bf16.msra.mxu0 %v12347_v35  ;;  %v5266_v39 = vpop.eup %5265  ;;  %5285 = vpow2.f32 %v3138_v6  ;;  %v12348_v14 = vsub.f32 %v12306_v33, %v9701_v24  ;;  %v12350_v44 = vsub.f32 %v12349_v17, %v9701_v24  ;;  %v12352_v6 = vld [vmem:[#allocation123_spill] sm:$0xff] }
 0x695   : > { %3292 = vmatprep.subr.bf16.mxu0 %v3261_v19  ;;  %v5268_v16 = vpop.eup %5267  ;;  %v3201_v59 = vadd.f32 %v9943_v26, %v3200_v30  ;;  %5287 = vpow2.f32 %v3142_v58  ;;  %v3222_v1 = vadd.f32 %v5256_v11, %v3221_v57  ;;  %v3267_v22 = vpack.c.bf16 %v5266_v39, %v5264_v37 }
 0x696   : > { %v3154_v31 = vmul.f32 1.442695, %v12348_v14  ;;  %v3158_v49 = vmul.f32 1.442695, %v12350_v44  ;;  %v5270_v21 = vpop.eup %5269  ;;  %5289 = vpow2.f32 %v3146_v52  ;;  %v12351_v61 = vsub.f32 %v12308_v8, %v9701_v24 }
 0x697   : > { %v12353_v33 = vsub.f32 %v12352_v6, %v9701_v24  ;;  %v12354_v27 = vpack.c.bf16 %v9824_v62, %v9817_v47  ;;  %v5272_v10 = vpop.eup %5271  ;;  %v3202_v20 = vadd.f32 %v9952_v42, %v3201_v59  ;;  %5291 = vpow2.f32 %v3150_v56 }
 0x698   : > { %v3162_v19 = vmul.f32 1.442695, %v12351_v61  ;;  %v3223_v11 = vadd.f32 %v5258_v54, %v3222_v1  ;;  %v3269_v58 = vpack.c.bf16 %v5270_v21, %v5268_v16  ;;  %v5274_v52 = vpop.eup %5273  ;;  %5293 = vpow2.f32 %v3154_v31  ;;  %v12357_v54 = vld [vmem:[#allocation110_spill] sm:$0xff] }
 0x699   : > { %v3166_v9 = vmul.f32 1.442695, %v12353_v33  ;;  %3293 = vmatpush1.bf16.msra.mxu0 %v12354_v27  ;;  %v12355_v8 = vsub.f32 %v12310_v32, %v9701_v24  ;;  %v12356_v35 = vsub.f32 %v12311_v7, %v9701_v24  ;;  %v5276_v57 = vpop.eup %5275  ;;  %v3203_v62 = vadd.f32 %v9960_v34, %v3202_v20 }
 0x69a   : > { %3294 = vmatprep.subr.bf16.mxu0 %v3263_v18  ;;  %5295 = vpow2.f32 %v3158_v49  ;;  %v3224_v47 = vadd.f32 %v5260_v50, %v3223_v11  ;;  %v3271_v14 = vpack.c.bf16 %v5274_v52, %v5272_v10  ;;  %v5278_v56 = vpop.eup %5277  ;;  %v12358_v18 = vsub.f32 %v12357_v54, %v9701_v24 }
 0x69b   : > { %v3170_v0 = vmul.f32 1.442695, %v12355_v8  ;;  %v3174_v30 = vmul.f32 1.442695, %v12356_v35  ;;  %5297 = vpow2.f32 %v3162_v19  ;;  %v12359_v32 = vpack.c.bf16 %v9839_v43, %v9832_v13  ;;  %v5280_v17 = vpop.eup %5279 }
 0x69c   : > { %v3178_v31 = vmul.f32 1.442695, %v12358_v18  ;;  %v3204_v7 = vadd.f32 %v9967_v2, %v3203_v62  ;;  %5299 = vpow2.f32 %v3166_v9  ;;  %v3225_v44 = vadd.f32 %v5262_v4, %v3224_v47  ;;  %v5282_v49 = vpop.eup %5281 }
 0x69d   : > { %3295 = vmatpush1.bf16.msra.mxu0 %v12359_v32  ;;  %v3273_v59 = vpack.c.bf16 %v5278_v56, %v5276_v57  ;;  %5301 = vpow2.f32 %v3170_v0  ;;  %v5284_v50 = vpop.eup %5283  ;;  %v3275_v24 = vpack.c.bf16 %v5282_v49, %v5280_v17  ;;  %v12360_v43 = vpack.c.bf16 %v9854_v53, %v9847_v15 }
 0x69e   : > { %3296 = vmatprep.subr.bf16.mxu0 %v3265_v28  ;;  %v3205_v1 = vadd.f32 %v9975_v41, %v3204_v7  ;;  %5303 = vpow2.f32 %v3174_v30  ;;  %v3226_v61 = vadd.f32 %v5264_v37, %v3225_v44  ;;  %v5286_v19 = vpop.eup %5285  ;;  %v12361_v8 = vpack.c.bf16 %v9868_v40, %v9862_v29 }
 0x69f   : > { %5305 = vpow2.f32 %v3178_v31  ;;  %v5288_v13 = vpop.eup %5287  ;;  %v3277_v28 = vpack.c.bf16 %v5286_v19, %v5284_v50  ;;  %v12363_v7 = vpack.c.bf16 %v9893_v12, %v9887_v55  ;;  %v12367_v55 = vpack.c.bf16 %v9932_v51, %v9923_v3  ;;  %v12372_v51 = vld [vmem:[#allocation21_spill] sm:$0xff] }
 0x6a0   : > { %v3206_v6 = vadd.f32 %v9982_v60, %v3205_v1  ;;  %v3227_v4 = vadd.f32 %v5266_v39, %v3226_v61  ;;  %v5290_v33 = vpop.eup %5289 }
 0x6a1   : > { %3297 = vmatpush1.bf16.msra.mxu0 %v12360_v43  ;;  %v5292_v9 = vpop.eup %5291  ;;  %v3279_v11 = vpack.c.bf16 %v5290_v33, %v5288_v13 }
 0x6a2   : > { %3298 = vmatprep.subr.bf16.mxu0 %v3267_v22  ;;  %v3207_v27 = vadd.f32 %v9990_v5, %v3206_v6  ;;  %v3228_v20 = vadd.f32 %v5268_v16, %v3227_v4  ;;  %v5294_v37 = vpop.eup %5293  ;;  %v12362_v16 = vpack.c.bf16 %v9881_v25, %v9874_v63  ;;  %v12364_v63 = vld [vmem:[#allocation112_spill] sm:$0xff] }
 0x6a3   : > { %v3281_v35 = vpack.c.bf16 %v5294_v37, %v5292_v9  ;;  %v12365_v25 = vpack.c.bf16 %v9904_v38, %v12364_v63  ;;  %v12368_v38 = vpack.c.bf16 %v9952_v42, %v9943_v26  ;;  %v12373_v26 = vpack.c.bf16 %v9982_v60, %v9975_v41  ;;  %v12377_v60 = vld [vmem:[#allocation43_spill] sm:$0xff]  ;;  %v12378_v41 = vld [vmem:[#allocation50_spill] sm:$0xff] }
 0x6a4   : > { %v5296_v0 = vpop.eup %5295  ;;  %v3208_v53 = vadd.f32 %v9998_v23, %v3207_v27  ;;  %v3229_v15 = vadd.f32 %v5270_v21, %v3228_v20  ;;  %v12380_v20 = vmov 0  }
 0x6a5   : > { %3299 = vmatpush1.bf16.msra.mxu0 %v12361_v8  ;;  %v5298_v39 = vpop.eup %5297  ;;  %v12392_v8 = vld [vmem:[#allocation63_spill] sm:$0xff] }
 0x6a6   : > { %3300 = vmatprep.subr.bf16.mxu0 %v3269_v58  ;;  %v5300_v22 = vpop.eup %5299  ;;  %v3209_v30 = vadd.f32 %v10003_v46, %v3208_v53  ;;  %v3230_v62 = vadd.f32 %v5272_v10, %v3229_v15  ;;  %v3283_v47 = vpack.c.bf16 %v5298_v39, %v5296_v0  ;;  %v12396_v53 = vld [vmem:[#allocation78_spill] sm:$0xff]  ;;  %v12398_v15 = vld [vmem:[#allocation81_spill] sm:$0xff] }
 0x6a7   : > { %v5302_v54 = vpop.eup %5301 }
 0x6a8   : > { %v5304_v18 = vpop.eup %5303  ;;  %v10109_v40 = vadd.f32 %v10011_v45, %v3209_v30  ;;  %v3231_v29 = vadd.f32 %v5274_v52, %v3230_v62  ;;  %v3285_v21 = vpack.c.bf16 %v5302_v54, %v5300_v22  ;;  %v12366_v52 = vpack.c.bf16 %v9915_v48, %v9909_v36  ;;  %v12406_v30 = vld [vmem:[#allocation44_spill] sm:$0xff]  ;;  %v12408_v62 = vld [vmem:[#allocation62_spill] sm:$0xff] }
 0x6a9   : > { %3301 = vmatpush1.bf16.msra.mxu0 %v12362_v16  ;;  %v5306_v58 = vpop.eup %5305  ;;  %v12369_v36 = vpack.c.bf16 %v9967_v2, %v9960_v34  ;;  %v12374_v34 = vpack.c.bf16 %v9998_v23, %v9990_v5  ;;  %v12381_v23 = vld [vmem:[#allocation80_spill] sm:$0xff]  ;;  %v12382_v5 = vld [vmem:[#allocation30_spill] sm:$0xff] }
 0x6aa   : > { %3302 = vmatprep.subr.bf16.mxu0 %v3271_v14  ;;  %v3232_v31 = vadd.f32 %v5276_v57, %v3231_v29  ;;  %v3287_v32 = vpack.c.bf16 %v5306_v58, %v5304_v18  ;;  %v3211_v29 = vrot.slane %v10109_v40, 4 }
 0x6ac   : > { %v3233_v10 = vadd.f32 %v5278_v56, %v3232_v31 }
 0x6ad   : > { %3303 = vmatpush1.bf16.msra.mxu0 %v12363_v7 }
 0x6ae   : > { %3304 = vmatprep.subr.bf16.mxu0 %v3273_v59  ;;  %v3234_v44 = vadd.f32 %v5280_v17, %v3233_v10 }
 0x6b0   : > { %v3235_v1 = vadd.f32 %v5282_v49, %v3234_v44  ;;  %v12370_v49 = vld [vmem:[#allocation76_spill] sm:$0xff] }
 0x6b1   : > { %3305 = vmatpush1.bf16.msra.mxu0 %v12365_v25 }
 0x6b2   : > { %3306 = vmatprep.subr.bf16.mxu0 %v3275_v24  ;;  %v3236_v61 = vadd.f32 %v5284_v50, %v3235_v1  ;;  %v12371_v50 = vld [vmem:[#allocation20_spill] sm:$0xff]  ;;  %v524_v24 = vadd.f32 %v12372_v51, %v12370_v49  ;;  %v12413_v1 = vld [vmem:[#allocation106_spill] sm:$0xff] }
 0x6b3   : > { %v522_v3 = vadd.f32 %v12371_v50, %v12370_v49  ;;  %v12423_v51 = vld [vmem:[#allocation12_spill] sm:$0xff] }
 0x6b4   : > { %v3237_v57 = vadd.f32 %v5286_v19, %v3236_v61  ;;  %v12414_v61 = vld [vmem:[#allocation96_spill] sm:$0xff] }
 0x6b5   : > { %3307 = vmatpush1.bf16.msra.mxu0 %v12366_v52  ;;  %v3647_v43 = vmul.f32 0.35355338, %v522_v3  ;;  %v12415_v52 = vld [vmem:[#allocation114_spill] sm:$0xff] }
 0x6b6   : > { %3308 = vmatprep.subr.bf16.mxu0 %v3277_v28  ;;  %v3238_v14 = vadd.f32 %v5288_v13, %v3237_v57  ;;  %v3648_v13 = vmul.f32 0.35355338, %v524_v24  ;;  %v12424_v24 = vld [vmem:[#allocation45_spill] sm:$0xff] }
 0x6b7   : > { %v3649_v4 = vpack.c.bf16 %v3647_v43, %v3647_v43  ;;  %v12427_v43 = vld [vmem:[#allocation108_spill] sm:$0xff] }
 0x6b8   : > { %v3239_v12 = vadd.f32 %v5290_v33, %v3238_v14  ;;  %v3650_v28 = vpack.c.bf16 %v3648_v13, %v3648_v13  ;;  %v12375_v33 = vpack.c.bf16 %v10011_v45, %v10003_v46  ;;  %v12384_v46 = vld [vmem:[#allocation33_spill] sm:$0xff]  ;;  %v12386_v45 = vld [vmem:[#allocation36_spill] sm:$0xff] }
 0x6b9   : > { %3309 = vmatpush1.bf16.msra.mxu0 %v12367_v55  ;;  %v3734_v27 = vsel %vm12379_vm10, %v3649_v4, 0  ;;  %vm12401_vm10 = vmmov %vm12389_vm0  ;;  %v12418_v55 = vld [vmem:[#allocation187_spill] sm:$0xff]  ;;  %v12429_v4 = vld [vmem:[#allocation86_spill] sm:$0xff] }
 0x6ba   : > { %3310 = vmatprep.subr.bf16.mxu0 %v3279_v11  ;;  %v3240_v56 = vadd.f32 %v5292_v9, %v3239_v12  ;;  %v3254_v9 = vpack.c.bf16 %v12378_v41, %v12377_v60  ;;  %v12388_v11 = vld [vmem:[#allocation42_spill] sm:$0xff] }
 0x6bc   : > { %v3241_v17 = vadd.f32 %v5294_v37, %v3240_v56  ;;  %v12390_v37 = vld [vmem:[#allocation60_spill] sm:$0xff] }
 0x6bd   : > { %3311 = vmatpush1.bf16.msra.mxu0 %v12368_v38 }
 0x6be   : > { %3312 = vmatprep.subr.bf16.mxu0 %v3281_v35  ;;  %v3242_v59 = vadd.f32 %v5296_v0, %v3241_v17  ;;  %v12394_v0 = vld [vmem:[#allocation67_spill] sm:$0xff]  ;;  %v12400_v35 = vld [vmem:[#allocation32_spill] sm:$0xff] }
 0x6bf   : > { %v12419_v17 = vld [vmem:[#allocation163_spill] sm:$0xff] }
 0x6c0   : > { %v3243_v48 = vadd.f32 %v5298_v39, %v3242_v59  ;;  %v12402_v39 = vld [vmem:[#allocation35_spill] sm:$0xff]  ;;  %v12420_v59 = vld [vmem:[#allocation122_spill] sm:$0xff] }
 0x6c1   : > { %3313 = vmatpush1.bf16.msra.mxu0 %v12369_v36  ;;  %v3559_v36 = vsel %vm1517_vm1, %v12420_v59, %v12419_v17 }
 0x6c2   : > { %3314 = vmatprep.subr.bf16.mxu0 %v3283_v47  ;;  %v3244_v19 = vadd.f32 %v5300_v22, %v3243_v48  ;;  %v12404_v22 = vld [vmem:[#allocation38_spill] sm:$0xff]  ;;  %v12410_v47 = vld [vmem:[#allocation49_spill] sm:$0xff] }
 0x6c4   : > { %v3245_v42 = vadd.f32 %v5302_v54, %v3244_v19  ;;  %v12411_v54 = vld [vmem:[#allocation72_spill] sm:$0xff] }
 0x6c5   : > { %3315 = vmatpush1.bf16.msra.mxu0 %v12373_v26  ;;  %v4273_v16 = vpack.c.bf16 %v12411_v54, %v12410_v47  ;;  %v3557_v26 = vsel %vm1517_vm1, %v12419_v17, %v12420_v59 }
 0x6c6   : > { %3316 = vmatprep.subr.bf16.mxu0 %v3285_v21  ;;  %v3246_v6 = vadd.f32 %v5304_v18, %v3245_v42  ;;  %v12412_v18 = vld [vmem:[#allocation65_spill] sm:$0xff] }
 0x6c8   : > { %v3247_v2 = vadd.f32 %v5306_v58, %v3246_v6  ;;  %v3212_v58 = vadd.f32 %v3211_v29, %v10109_v40  ;;  %v12428_v6 = vld [vmem:[#allocation125_spill] sm:$0xff] }
 0x6c9   : > { %3317 = vmatpush1.bf16.msra.mxu0 %v12374_v34  ;;  %v3570_v34 = vmul.f32 %v12428_v6, %v3559_v36  ;;  %v3569_v41 = vmul.f32 %v12428_v6, %v3557_v26 }
 0x6ca   : > { %3318 = vmatprep.subr.bf16.mxu0 %v3287_v32  ;;  %v3248_v21 = vrot.slane %v3247_v2, 4  ;;  %v3213_v32 = vrot.slane %v3212_v58, 2 }
 0x6cc   : > { %v3249_v31 = vadd.f32 %v3248_v21, %v3247_v2  ;;  %v3214_v10 = vadd.f32 %v3213_v32, %v3212_v58  ;;  %v12438_v32 = vld [vmem:[#allocation176_spill] sm:$0xff] }
 0x6cd   : > { %3319 = vmatpush1.bf16.msra.mxu0 %v12375_v33  ;;  %v12430_v33 = vld [vmem:[#allocation109_spill] sm:$0xff] }
 0x6ce   : > { %4802 = vmatprep.subr.msk.bf16.mxu0 %vm12376_vm9, %v3650_v28  ;;  %vm12399_vm9 = vmmov %vm12389_vm0  ;;  %v3250_v7 = vrot.slane %v3249_v31, 2  ;;  %v3215_v63 = vrot.slane %v3214_v10, 1 }
 0x6d0   : > { %3321 = vmatmul.mubr.bf16.vlgmr.msra.gmra.mrb[68].mxu0 %v3254_v9  ;;  %v3251_v44 = vadd.f32 %v3250_v7, %v3249_v31  ;;  %v3216_v56 = vadd.f32 %v3215_v63, %v3214_v10 }
 0x6d1   : > { %3740 = vmatpush1.bf16.msra.mxu0 %v3734_v27  ;;  %3771 = vmatprep.mubr.bf16.mxu0 %v12380_v20 }
 0x6d2   : > { %v3252_v25 = vrot.slane %v3251_v44, 1  ;;  %5307 = vrcp.f32 %v3216_v56 }
 0x6d4   : > { %v3253_v38 = vadd.f32 %v3252_v25, %v3251_v44 }
 0x6d6   : > { %5309 = vrcp.f32 %v3253_v38 }
 0x6d8   : > { %4803 = vmatmul.mubr.msk.bf16.vlgmr.msra.gmra.mrb[72].mxu0 %vm12242_vm12, %v12381_v23  ;;  %vm12403_vm12 = vmmov %vm12389_vm0 }
 0x6d9   : > { %3781 = vmatprep.mubr.bf16.mxu0 %v12380_v20 }
 0x6e0   : > { %4804 = vmatmul.mubr.msk.bf16.gmra.mrb[76].mxu0 %vm12383_vm13, %v12382_v5  ;;  %vm12405_vm13 = vmmov %vm12389_vm0 }
 0x6e1   : > { %3791 = vmatprep.mubr.bf16.mxu0 %v12380_v20 }
 0x6e8   : > { %4805 = vmatmul.mubr.msk.bf16.gmra.mrb[80].mxu0 %vm12385_vm14, %v12384_v46  ;;  %vm12407_vm14 = vmmov %vm12389_vm0 }
 0x6e9   : > { %3801 = vmatprep.mubr.bf16.mxu0 %v12380_v20 }
 0x6f0   : > { %4806 = vmatmul.mubr.msk.bf16.gmra.mrb[84].mxu0 %vm12387_vm15, %v12386_v45  ;;  %vm12409_vm15 = vmmov %vm12389_vm0 }
 0x6f1   : > { %3811 = vmatprep.mubr.bf16.mxu0 %v12380_v20 }
 0x6f8   : > { %4807 = vmatmul.mubr.msk.bf16.gmra.mrb[88].mxu0 %vm12389_vm0, %v12388_v11 }
 0x6f9   : > { %3821 = vmatprep.mubr.bf16.mxu0 %v12380_v20 }
 0x700   : > { %4808 = vmatmul.mubr.msk.bf16.gmra.mrb[92].mxu0 %vm12391_vm4, %v12390_v37  ;;  %vm12416_vm4 = vcmp.lt.s32.totalorder %v12415_v52, 113 }
 0x701   : > { %3831 = vmatprep.mubr.bf16.mxu0 %v12380_v20  ;;  %v3525_v57 = vsel %vm12416_vm4, %v12414_v61, %v12413_v1 }
 0x702   : > { %v3537_v12 = vmul.f32 %v12418_v55, %v3525_v57 }
 0x704   : > { %v3541_v49 = vsel %vm7422_vm8, %v3537_v12, 0.0 }
 0x705   : > { %v3545_v28 = vadd.f32 %v3541_v49, %v12429_v4 }
 0x707   : > { %v3577_v45 = vadd.f32 %v3569_v41, %v3545_v28 }
 0x708   : > { %4809 = vmatmul.mubr.msk.bf16.gmra.mrb[96].mxu0 %vm12393_vm2, %v12392_v8  ;;  %vm12417_vm2 = vmmov %vm12416_vm4 }
 0x709   : > { %3841 = vmatprep.mubr.bf16.mxu0 %v12380_v20  ;;  %v3527_v14 = vsel %vm12417_vm2, %v12413_v1, %v12414_v61 }
 0x70a   : > { %v3538_v40 = vmul.f32 %v12418_v55, %v3527_v14 }
 0x70c   : > { %v3542_v3 = vsel %vm7870_vm5, %v3538_v40, 0.0 }
 0x70d   : > { %v3546_v60 = vadd.f32 %v3542_v3, %v12430_v33 }
 0x710   : > { %4810 = vmatmul.mubr.msk.bf16.gmra.mrb[100].mxu0 %vm12395_vm6, %v12394_v0  ;;  %vm12425_vm6 = vcmp.lt.s32.totalorder %v12415_v52, 111  ;;  %v5308_v0 = vpop.eup %5307 }
 0x711   : > { %3851 = vmatprep.mubr.bf16.mxu0 %v12380_v20  ;;  %v3589_v19 = vsel %vm12425_vm6, %v12424_v24, %v12423_v51 }
 0x712   : > { %v3601_v13 = vmul.f32 %v12427_v43, %v3589_v19 }
 0x714   : > { %v3605_v27 = vsel %vm7440_vm11, %v3601_v13, 0.0 }
 0x715   : > { %v3609_v37 = vadd.f32 %v3605_v27, %v3577_v45 }
 0x718   : > { %4811 = vmatmul.mubr.msk.bf16.gmra.mrb[104].mxu0 %vm12397_vm7, %v12396_v53  ;;  %vm12426_vm7 = vmmov %vm12425_vm6 }
 0x719   : > { %3861 = vmatprep.mubr.bf16.mxu0 %v12380_v20  ;;  %v3591_v42 = vsel %vm12426_vm7, %v12423_v51, %v12424_v24 }
 0x71a   : > { %v3602_v2 = vmul.f32 %v12427_v43, %v3591_v42 }
 0x71c   : > { %v3606_v46 = vsel %vm8031_vm3, %v3602_v2, 0.0 }
 0x720   : > { %4812 = vmatmul.mubr.msk.bf16.gmra.mrb[108].mxu0 %vm12399_vm9, %v12398_v15  ;;  %v5310_v15 = vpop.eup %5309 }
 0x721   : > { %3871 = vmatprep.mubr.bf16.mxu0 %v12380_v20 }
 0x728   : > { %4813 = vmatmul.mubr.msk.bf16.gmra.mrb[112].mxu0 %vm12401_vm10, %v12400_v35  ;;  %v12435_v35 = vld [vmem:[#allocation53_spill] sm:$0xff]  ;;  %vm12544_vm10 = vmmov %vm12417_vm2 }
 0x729   : > { %3881 = vmatprep.mubr.bf16.mxu0 %v12380_v20 }
 0x730   : > { %4814 = vmatmul.mubr.msk.bf16.gmra.mrb[116].mxu0 %vm12403_vm12, %v12402_v39  ;;  %v3625_v39 = vadd.f32 %v12435_v35, %v3609_v37  ;;  %vm12545_vm12 = vmmov %vm12417_vm2 }
 0x731   : > { %3891 = vmatprep.mubr.bf16.mxu0 %v12380_v20 }
 0x738   : > { %4815 = vmatmul.mubr.msk.bf16.gmra.mrb[120].mxu0 %vm12405_vm13, %v12404_v22  ;;  %vm12547_vm13 = vmmov %vm12425_vm6 }
 0x739   : > { %3901 = vmatprep.mubr.bf16.mxu0 %v12380_v20 }
 0x740   : > { %4816 = vmatmul.mubr.msk.bf16.gmra.mrb[124].mxu0 %vm12407_vm14, %v12406_v30  ;;  %vm12548_vm14 = vmmov %vm12425_vm6 }
 0x741   : > { %3911 = vmatprep.mubr.bf16.mxu0 %v12380_v20 }
 0x748   : > { %4817 = vmatmul.mubr.msk.bf16.gmra.mrb[128].mxu0 %vm12409_vm15, %v12408_v62  ;;  %vm12550_vm15 = vmmov %vm12425_vm6 }
 0x749   : > { %3921 = vmatprep.mubr.bf16.mxu0 %v12380_v20  ;;  %v12432_v20 = vld [vmem:[#allocation167_spill] sm:$0xff] }
 0x74a   : > { %vm12433_vm9 = vcmp.lt.s32.totalorder %v12432_v20, 240 }
 0x74b   : > { %v3574_v23 = vsel %vm12433_vm9, %v3570_v34, 0.0 }
 0x74c   : > { %v3578_v11 = vadd.f32 %v3574_v23, %v3546_v60 }
 0x74e   : > { %v3610_v8 = vadd.f32 %v3606_v46, %v3578_v11 }
 0x750   : > { %4818 = vmatmul.mubr.msk.bf16.gmra.mrb[132].mxu0 %vm12389_vm0, %v12412_v18  ;;  %v3626_v62 = vadd.f32 %v12435_v35, %v3610_v8  ;;  %v12437_v18 = vld [vmem:[#allocation48_spill] sm:$0xff]  ;;  %vm12553_vm0 = vmmov %vm12425_vm6 }
 0x751   : > { %4338 = vmatprep.mubr.bf16.mxu0 %v4273_v16  ;;  %v12436_v16 = vld [vmem:[#allocation59_spill] sm:$0xff]  ;;  %v3628_v7 = vadd.f32 %v12437_v18, %v12438_v32 }
 0x752   : > { %v3627_v29 = vadd.f32 %v12437_v18, %v12436_v16 }
 0x7a3   : > { %v3322_v53 = vpop.f32.mrb[68].mxu0 }
 0x7a4   : > { %v3333_v22 = vmul.f32 %v5308_v0, %v3322_v53  ;;  %v3324_v30 = vpop.f32.mrb[69].mxu0 }
 0x7a5   : > { %v3334_v47 = vmul.f32 %v5310_v15, %v3324_v30  ;;  %v3326_v54 = vpop.f32.mrb[70].mxu0 }
 0x7a6   : > { %v3629_v21 = vadd.f32 %v3625_v39, %v3333_v22  ;;  %v3335_v58 = vmul.f32 %v5308_v0, %v3326_v54  ;;  %v3328_v31 = vpop.f32.mrb[71].mxu0 }
 0x7a7   : > { %v3630_v10 = vadd.f32 %v3626_v62, %v3334_v47  ;;  %v3336_v44 = vmul.f32 %v5310_v15, %v3328_v31 }
 0x7a8   : > { %v3631_v63 = vadd.f32 %v3627_v29, %v3335_v58 }
 0x7a9   : > { %v4829_v25 = vpack.c.bf16 %v3630_v10, %v3629_v21  ;;  %v3632_v1 = vadd.f32 %v3628_v7, %v3336_v44 }
 0x7ab   : > { %3645 = vst [vmem:[%s8100_s15 + $0x20] sm:$0xff] %v4829_v25  ;;  %v4830_v61 = vpack.c.bf16 %v3632_v1, %v3631_v63  ;;  %v10247_v57 = vpop.f32.mrb[72].mxu0 }
 0x7ac   : > { %v10249_v14 = vpop.f32.mrb[73].mxu0 }
 0x7ad   : > { %3646 = vst [vmem:[%s8100_s15 + $0x28] sm:$0xff] %v4830_v61  ;;  %v10252_v55 = vpop.f32.mrb[74].mxu0 }
 0x7ae   : > { %v10254_v12 = vpop.f32.mrb[75].mxu0 }
 0x7b3   : > { %v10256_v40 = vpop.f32.mrb[76].mxu0 }
 0x7b4   : > { %v3932_v56 = vmax.f32 %v10247_v57, %v10256_v40  ;;  %v10260_v38 = vpop.f32.mrb[77].mxu0 }
 0x7b5   : > { %v3969_v17 = vmax.f32 %v10249_v14, %v10260_v38  ;;  %v10264_v59 = vpop.f32.mrb[78].mxu0 }
 0x7b6   : > { %v3933_v36 = vmax.f32 %v10252_v55, %v10264_v59  ;;  %v10268_v49 = vpop.f32.mrb[79].mxu0 }
 0x7b7   : > { %v3970_v3 = vmax.f32 %v10254_v12, %v10268_v49 }
 0x7bb   : > { %v10272_v51 = vpop.f32.mrb[80].mxu0 }
 0x7bc   : > { %v3934_v24 = vmax.f32 %v3932_v56, %v10272_v51  ;;  %v10275_v19 = vpop.f32.mrb[81].mxu0 }
 0x7bd   : > { %v3971_v26 = vmax.f32 %v3969_v17, %v10275_v19  ;;  %v10278_v42 = vpop.f32.mrb[82].mxu0 }
 0x7be   : > { %v3935_v43 = vmax.f32 %v3933_v36, %v10278_v42  ;;  %v10281_v13 = vpop.f32.mrb[83].mxu0 }
 0x7bf   : > { %v3972_v6 = vmax.f32 %v3970_v3, %v10281_v13 }
 0x7c3   : > { %v10284_v34 = vpop.f32.mrb[84].mxu0 }
 0x7c4   : > { %v3936_v2 = vmax.f32 %v3934_v24, %v10284_v34  ;;  %v10287_v4 = vpop.f32.mrb[85].mxu0 }
 0x7c5   : > { %v3973_v28 = vmax.f32 %v3971_v26, %v10287_v4  ;;  %v10290_v33 = vpop.f32.mrb[86].mxu0 }
 0x7c6   : > { %v3937_v60 = vmax.f32 %v3935_v43, %v10290_v33  ;;  %v10293_v41 = vpop.f32.mrb[87].mxu0 }
 0x7c7   : > { %v3974_v27 = vmax.f32 %v3972_v6, %v10293_v41 }
 0x7cb   : > { %v10296_v23 = vpop.f32.mrb[88].mxu0 }
 0x7cc   : > { %v3938_v46 = vmax.f32 %v3936_v2, %v10296_v23  ;;  %v10299_v45 = vpop.f32.mrb[89].mxu0 }
 0x7cd   : > { %v3975_v11 = vmax.f32 %v3973_v28, %v10299_v45  ;;  %v10302_v37 = vpop.f32.mrb[90].mxu0 }
 0x7ce   : > { %v3939_v8 = vmax.f32 %v3937_v60, %v10302_v37  ;;  %v10305_v0 = vpop.f32.mrb[91].mxu0 }
 0x7cf   : > { %v3976_v53 = vmax.f32 %v3974_v27, %v10305_v0 }
 0x7d3   : > { %v10308_v15 = vpop.f32.mrb[92].mxu0 }
 0x7d4   : > { %v3940_v35 = vmax.f32 %v3938_v46, %v10308_v15  ;;  %v10311_v39 = vpop.f32.mrb[93].mxu0 }
 0x7d5   : > { %v3977_v22 = vmax.f32 %v3975_v11, %v10311_v39  ;;  %v10314_v30 = vpop.f32.mrb[94].mxu0 }
 0x7d6   : > { %v3941_v62 = vmax.f32 %v3939_v8, %v10314_v30  ;;  %v10317_v47 = vpop.f32.mrb[95].mxu0 }
 0x7d7   : > { %12439 = vst [vmem:[#allocation119_spill] sm:$0xff] %v10317_v47  ;;  %v3978_v54 = vmax.f32 %v3976_v53, %v10317_v47 }
 0x7db   : > { %v10320_v16 = vpop.f32.mrb[96].mxu0 }
 0x7dc   : > { %v3942_v18 = vmax.f32 %v3940_v35, %v10320_v16  ;;  %v10323_v29 = vpop.f32.mrb[97].mxu0 }
 0x7dd   : > { %12440 = vst [vmem:[#allocation121_spill] sm:$0xff] %v10323_v29  ;;  %v3979_v21 = vmax.f32 %v3977_v22, %v10323_v29  ;;  %v10326_v58 = vpop.f32.mrb[98].mxu0 }
 0x7de   : > { %v3943_v31 = vmax.f32 %v3941_v62, %v10326_v58  ;;  %v10329_v32 = vpop.f32.mrb[99].mxu0 }
 0x7df   : > { %12441 = vst [vmem:[#allocation127_spill] sm:$0xff] %v10329_v32  ;;  %v3980_v7 = vmax.f32 %v3978_v54, %v10329_v32 }
 0x7e3   : > { %v10332_v10 = vpop.f32.mrb[100].mxu0 }
 0x7e4   : > { %v3944_v44 = vmax.f32 %v3942_v18, %v10332_v10  ;;  %v10335_v63 = vpop.f32.mrb[101].mxu0 }
 0x7e5   : > { %12442 = vst [vmem:[#allocation129_spill] sm:$0xff] %v10335_v63  ;;  %v3981_v25 = vmax.f32 %v3979_v21, %v10335_v63  ;;  %v10338_v1 = vpop.f32.mrb[102].mxu0 }
 0x7e6   : > { %v3945_v61 = vmax.f32 %v3943_v31, %v10338_v1  ;;  %v10341_v56 = vpop.f32.mrb[103].mxu0 }
 0x7e7   : > { %12443 = vst [vmem:[#allocation132_spill] sm:$0xff] %v10341_v56  ;;  %v3982_v17 = vmax.f32 %v3980_v7, %v10341_v56 }
 0x7eb   : > { %v10344_v36 = vpop.f32.mrb[104].mxu0 }
 0x7ec   : > { %v3946_v3 = vmax.f32 %v3944_v44, %v10344_v36  ;;  %v10347_v24 = vpop.f32.mrb[105].mxu0 }
 0x7ed   : > { %12444 = vst [vmem:[#allocation134_spill] sm:$0xff] %v10347_v24  ;;  %v3983_v26 = vmax.f32 %v3981_v25, %v10347_v24  ;;  %v10350_v43 = vpop.f32.mrb[106].mxu0 }
 0x7ee   : > { %v3947_v6 = vmax.f32 %v3945_v61, %v10350_v43  ;;  %v10353_v2 = vpop.f32.mrb[107].mxu0 }
 0x7ef   : > { %12445 = vst [vmem:[#allocation136_spill] sm:$0xff] %v10353_v2  ;;  %v3984_v28 = vmax.f32 %v3982_v17, %v10353_v2 }
 0x7f3   : > { %v10356_v60 = vpop.f32.mrb[108].mxu0 }
 0x7f4   : > { %v3948_v27 = vmax.f32 %v3946_v3, %v10356_v60  ;;  %v10359_v46 = vpop.f32.mrb[109].mxu0 }
 0x7f5   : > { %12446 = vst [vmem:[#allocation138_spill] sm:$0xff] %v10359_v46  ;;  %v3985_v11 = vmax.f32 %v3983_v26, %v10359_v46  ;;  %v10362_v8 = vpop.f32.mrb[110].mxu0 }
 0x7f6   : > { %v3949_v53 = vmax.f32 %v3947_v6, %v10362_v8  ;;  %v10365_v35 = vpop.f32.mrb[111].mxu0 }
 0x7f7   : > { %12447 = vst [vmem:[#allocation143_spill] sm:$0xff] %v10365_v35  ;;  %v3986_v22 = vmax.f32 %v3984_v28, %v10365_v35 }
 0x7fb   : > { %v10368_v62 = vpop.f32.mrb[112].mxu0 }
 0x7fc   : > { %v3950_v54 = vmax.f32 %v3948_v27, %v10368_v62  ;;  %v10371_v18 = vpop.f32.mrb[113].mxu0 }
 0x7fd   : > { %12448 = vst [vmem:[#allocation4_spill] sm:$0xff] %v10371_v18  ;;  %v3987_v21 = vmax.f32 %v3985_v11, %v10371_v18  ;;  %v10374_v31 = vpop.f32.mrb[114].mxu0 }
 0x7fe   : > { %v3951_v7 = vmax.f32 %v3949_v53, %v10374_v31  ;;  %v10377_v44 = vpop.f32.mrb[115].mxu0 }
 0x7ff   : > { %12449 = vst [vmem:[#allocation41_spill] sm:$0xff] %v10377_v44  ;;  %v3988_v25 = vmax.f32 %v3986_v22, %v10377_v44 }
 0x803   : > { %v10380_v61 = vpop.f32.mrb[116].mxu0 }
 0x804   : > { %v3952_v17 = vmax.f32 %v3950_v54, %v10380_v61  ;;  %v10383_v3 = vpop.f32.mrb[117].mxu0 }
 0x805   : > { %12450 = vst [vmem:[#allocation161_spill] sm:$0xff] %v10383_v3  ;;  %v3989_v26 = vmax.f32 %v3987_v21, %v10383_v3  ;;  %v10386_v6 = vpop.f32.mrb[118].mxu0 }
 0x806   : > { %v3953_v28 = vmax.f32 %v3951_v7, %v10386_v6  ;;  %v10389_v27 = vpop.f32.mrb[119].mxu0 }
 0x807   : > { %12451 = vst [vmem:[#allocation149_spill] sm:$0xff] %v10389_v27  ;;  %v3990_v11 = vmax.f32 %v3988_v25, %v10389_v27 }
 0x80b   : > { %v10392_v53 = vpop.f32.mrb[120].mxu0 }
 0x80c   : > { %v3954_v22 = vmax.f32 %v3952_v17, %v10392_v53  ;;  %v10395_v5 = vpop.f32.mrb[121].mxu0 }
 0x80d   : > { %12452 = vst [vmem:[#allocation101_spill] sm:$0xff] %v10395_v5  ;;  %v3991_v54 = vmax.f32 %v3989_v26, %v10395_v5  ;;  %v10398_v9 = vpop.f32.mrb[122].mxu0 }
 0x80e   : > { %v3955_v21 = vmax.f32 %v3953_v28, %v10398_v9  ;;  %v10401_v20 = vpop.f32.mrb[123].mxu0 }
 0x80f   : > { %12453 = vst [vmem:[#allocation107_spill] sm:$0xff] %v10401_v20  ;;  %v3992_v7 = vmax.f32 %v3990_v11, %v10401_v20 }
 0x813   : > { %v10404_v50 = vpop.f32.mrb[124].mxu0 }
 0x814   : > { %v3956_v25 = vmax.f32 %v3954_v22, %v10404_v50  ;;  %v10407_v48 = vpop.f32.mrb[125].mxu0 }
 0x815   : > { %12454 = vst [vmem:[#allocation89_spill] sm:$0xff] %v10407_v48  ;;  %v3993_v17 = vmax.f32 %v3991_v54, %v10407_v48  ;;  %v10410_v52 = vpop.f32.mrb[126].mxu0 }
 0x816   : > { %v3957_v26 = vmax.f32 %v3955_v21, %v10410_v52  ;;  %v10413_v5 = vpop.f32.mrb[127].mxu0 }
 0x817   : > { %12455 = vst [vmem:[#allocation40_spill] sm:$0xff] %v10413_v5  ;;  %v3994_v28 = vmax.f32 %v3992_v7, %v10413_v5 }
 0x81b   : > { %v10416_v27 = vpop.f32.mrb[128].mxu0 }
 0x81c   : > { %v3958_v11 = vmax.f32 %v3956_v25, %v10416_v27  ;;  %v10419_v20 = vpop.f32.mrb[129].mxu0 }
 0x81d   : > { %12456 = vst [vmem:[#allocation83_spill] sm:$0xff] %v10419_v20  ;;  %v3995_v22 = vmax.f32 %v3993_v17, %v10419_v20  ;;  %v10422_v3 = vpop.f32.mrb[130].mxu0 }
 0x81e   : > { %v3959_v54 = vmax.f32 %v3957_v26, %v10422_v3  ;;  %v10425_v48 = vpop.f32.mrb[131].mxu0 }
 0x81f   : > { %12457 = vst [vmem:[#allocation18_spill] sm:$0xff] %v10425_v48  ;;  %v3996_v21 = vmax.f32 %v3994_v28, %v10425_v48 }
 0x823   : > { %v10428_v44 = vpop.f32.mrb[132].mxu0 }
 0x824   : > { %v3960_v7 = vmax.f32 %v3958_v11, %v10428_v44  ;;  %v10431_v5 = vpop.f32.mrb[133].mxu0 }
 0x825   : > { %12458 = vst [vmem:[#allocation87_spill] sm:$0xff] %v10431_v5  ;;  %v3997_v25 = vmax.f32 %v3995_v22, %v10431_v5  ;;  %v10434_v18 = vpop.f32.mrb[134].mxu0 }
 0x826   : > { %v3961_v17 = vmax.f32 %v3959_v54, %v10434_v18  ;;  %v10437_v20 = vpop.f32.mrb[135].mxu0 }
 0x827   : > { %12459 = vst [vmem:[#allocation93_spill] sm:$0xff] %v10437_v20  ;;  %v3998_v26 = vmax.f32 %v3996_v21, %v10437_v20 }
 0x828   : > { %v3962_v35 = vmax.f32 %v3960_v7, %v3961_v17 }
 0x829   : > { %v3999_v46 = vmax.f32 %v3997_v25, %v3998_v26 }
 0x82a   : > { %v3963_v2 = vrot.slane %v3962_v35, 4 }
 0x82b   : > { %v4000_v28 = vrot.slane %v3999_v46, 4 }
 0x82c   : > { %v3964_v48 = vmax.f32 %v3962_v35, %v3963_v2 }
 0x82d   : > { %v4001_v24 = vmax.f32 %v3999_v46, %v4000_v28 }
 0x82e   : > { %v3965_v56 = vrot.slane %v3964_v48, 2 }
 0x82f   : > { %v4002_v11 = vrot.slane %v4001_v24, 2 }
 0x830   : > { %v3966_v63 = vmax.f32 %v3964_v48, %v3965_v56  ;;  %v12479_v56 = vld [vmem:[#allocation87_spill] sm:$0xff] }
 0x831   : > { %v4003_v32 = vmax.f32 %v4001_v24, %v4002_v11 }
 0x832   : > { %v3967_v29 = vrot.slane %v3966_v63, 1 }
 0x833   : > { %v4004_v22 = vrot.slane %v4003_v32, 1 }
 0x834   : > { %v10440_v5 = vmax.f32 %v3966_v63, %v3967_v29 }
 0x835   : > { %v10442_v47 = vmax.f32 %v4003_v32, %v4004_v22 }
 0x836   : > { %v4006_v54 = vsub.f32 %v10247_v57, %v10440_v5  ;;  %v4008_v21 = vsub.f32 %v10252_v55, %v10440_v5  ;;  %v4010_v2 = vsub.f32 %v10256_v40, %v10440_v5  ;;  %v4012_v46 = vsub.f32 %v10264_v59, %v10440_v5 }
 0x837   : > { %v4014_v48 = vsub.f32 %v10272_v51, %v10440_v5  ;;  %v4016_v29 = vsub.f32 %v10278_v42, %v10440_v5  ;;  %v4018_v32 = vsub.f32 %v10284_v34, %v10440_v5  ;;  %v4020_v57 = vsub.f32 %v10290_v33, %v10440_v5 }
 0x838   : > { %v4022_v55 = vsub.f32 %v10296_v23, %v10440_v5  ;;  %v4024_v40 = vsub.f32 %v10302_v37, %v10440_v5  ;;  %v4026_v59 = vsub.f32 %v10308_v15, %v10440_v5  ;;  %v4028_v51 = vsub.f32 %v10314_v30, %v10440_v5 }
 0x839   : > { %v4030_v42 = vsub.f32 %v10320_v16, %v10440_v5  ;;  %v4032_v34 = vsub.f32 %v10326_v58, %v10440_v5  ;;  %v4034_v33 = vsub.f32 %v10332_v10, %v10440_v5  ;;  %v4036_v23 = vsub.f32 %v10338_v1, %v10440_v5 }
 0x83a   : > { %v4038_v37 = vsub.f32 %v10344_v36, %v10440_v5  ;;  %v4040_v15 = vsub.f32 %v10350_v43, %v10440_v5  ;;  %v4042_v30 = vsub.f32 %v10356_v60, %v10440_v5  ;;  %v4044_v16 = vsub.f32 %v10362_v8, %v10440_v5 }
 0x83b   : > { %v4046_v58 = vsub.f32 %v10368_v62, %v10440_v5  ;;  %v4048_v10 = vsub.f32 %v10374_v31, %v10440_v5  ;;  %v4050_v63 = vsub.f32 %v10380_v61, %v10440_v5  ;;  %v4052_v1 = vsub.f32 %v10386_v6, %v10440_v5 }
 0x83c   : > { %v4070_v31 = vmul.f32 1.442695, %v4006_v54  ;;  %v4074_v61 = vmul.f32 1.442695, %v4008_v21  ;;  %v4078_v6 = vmul.f32 1.442695, %v4010_v2 }
 0x83d   : > { %v4082_v25 = vmul.f32 1.442695, %v4012_v46  ;;  %v4086_v26 = vmul.f32 1.442695, %v4014_v48  ;;  %v4090_v28 = vmul.f32 1.442695, %v4016_v29 }
 0x83e   : > { %5311 = vpow2.f32 %v4070_v31  ;;  %v4094_v11 = vmul.f32 1.442695, %v4018_v32  ;;  %v4098_v22 = vmul.f32 1.442695, %v4020_v57  ;;  %v4102_v35 = vmul.f32 1.442695, %v4022_v55 }
 0x83f   : > { %5313 = vpow2.f32 %v4074_v61  ;;  %v4106_v62 = vmul.f32 1.442695, %v4024_v40  ;;  %v4110_v54 = vmul.f32 1.442695, %v4026_v59  ;;  %v4114_v21 = vmul.f32 1.442695, %v4028_v51 }
 0x840   : > { %5315 = vpow2.f32 %v4078_v6  ;;  %v4118_v2 = vmul.f32 1.442695, %v4030_v42  ;;  %v4122_v7 = vmul.f32 1.442695, %v4032_v34  ;;  %v4126_v46 = vmul.f32 1.442695, %v4034_v33 }
 0x841   : > { %5317 = vpow2.f32 %v4082_v25  ;;  %v4130_v8 = vmul.f32 1.442695, %v4036_v23  ;;  %v4134_v17 = vmul.f32 1.442695, %v4038_v37  ;;  %v4138_v31 = vmul.f32 1.442695, %v4040_v15 }
 0x842   : > { %5319 = vpow2.f32 %v4086_v26  ;;  %v4142_v48 = vmul.f32 1.442695, %v4042_v30  ;;  %v4146_v29 = vmul.f32 1.442695, %v4044_v16  ;;  %v4150_v61 = vmul.f32 1.442695, %v4046_v58 }
 0x843   : > { %5321 = vpow2.f32 %v4090_v28  ;;  %v10512_v32 = vmul.f32 1.442695, %v4048_v10  ;;  %v10514_v57 = vmul.f32 1.442695, %v4050_v63  ;;  %v10516_v55 = vmul.f32 1.442695, %v4052_v1 }
 0x844   : > { %5323 = vpow2.f32 %v4094_v11  ;;  %v12460_v58 = vld [vmem:[#allocation119_spill] sm:$0xff]  ;;  %v12463_v28 = vld [vmem:[#allocation129_spill] sm:$0xff]  ;;  %v12466_v16 = vld [vmem:[#allocation136_spill] sm:$0xff] }
 0x845   : > { %5325 = vpow2.f32 %v4098_v22  ;;  %v12462_v6 = vld [vmem:[#allocation127_spill] sm:$0xff]  ;;  %v12464_v22 = vld [vmem:[#allocation132_spill] sm:$0xff]  ;;  %v12467_v30 = vld [vmem:[#allocation138_spill] sm:$0xff] }
 0x846   : > { %5327 = vpow2.f32 %v4102_v35  ;;  %v12461_v35 = vld [vmem:[#allocation121_spill] sm:$0xff]  ;;  %v12468_v11 = vld [vmem:[#allocation143_spill] sm:$0xff]  ;;  %v12469_v23 = vld [vmem:[#allocation4_spill] sm:$0xff] }
 0x847   : > { %5329 = vpow2.f32 %v4106_v62  ;;  %v12470_v33 = vld [vmem:[#allocation41_spill] sm:$0xff]  ;;  %v12474_v40 = vld [vmem:[#allocation107_spill] sm:$0xff] }
 0x848   : > { %v10526_v34 = vpop.eup %5311  ;;  %5331 = vpow2.f32 %v4110_v54  ;;  %v12471_v25 = vld [vmem:[#allocation161_spill] sm:$0xff] }
 0x849   : > { %v10534_v15 = vpop.eup %5313  ;;  %5333 = vpow2.f32 %v4114_v21  ;;  %v12465_v21 = vld [vmem:[#allocation134_spill] sm:$0xff]  ;;  %v12472_v51 = vld [vmem:[#allocation149_spill] sm:$0xff] }
 0x84a   : > { %v10542_v63 = vpop.eup %5315  ;;  %5335 = vpow2.f32 %v4118_v2  ;;  %v4198_v1 = vadd.f32 %v10534_v15, %v10526_v34  ;;  %v12473_v54 = vld [vmem:[#allocation101_spill] sm:$0xff]  ;;  %v12478_v2 = vld [vmem:[#allocation18_spill] sm:$0xff] }
 0x84b   : > { %v10550_v26 = vpop.eup %5317  ;;  %5337 = vpow2.f32 %v4122_v7  ;;  %v12476_v7 = vld [vmem:[#allocation40_spill] sm:$0xff] }
 0x84c   : > { %v10558_v10 = vpop.eup %5319  ;;  %5339 = vpow2.f32 %v4126_v46  ;;  %v4199_v62 = vadd.f32 %v10542_v63, %v4198_v1 }
 0x84d   : > { %v10565_v37 = vpop.eup %5321  ;;  %5341 = vpow2.f32 %v4130_v8 }
 0x84e   : > { %v10573_v42 = vpop.eup %5323  ;;  %5343 = vpow2.f32 %v4134_v17  ;;  %v4200_v1 = vadd.f32 %v10550_v26, %v4199_v62 }
 0x84f   : > { %v10580_v59 = vpop.eup %5325  ;;  %5345 = vpow2.f32 %v4138_v31 }
 0x850   : > { %v10588_v43 = vpop.eup %5327  ;;  %5347 = vpow2.f32 %v4142_v48  ;;  %v4201_v62 = vadd.f32 %v10558_v10, %v4200_v1  ;;  %v12480_v1 = vsub.f32 %v10392_v53, %v10440_v5 }
 0x851   : > { %v10595_v36 = vpop.eup %5329  ;;  %5349 = vpow2.f32 %v4146_v29  ;;  %v12481_v29 = vsub.f32 %v10398_v9, %v10440_v5 }
 0x852   : > { %v10603_v60 = vpop.eup %5331  ;;  %5351 = vpow2.f32 %v4150_v61  ;;  %v4166_v8 = vmul.f32 1.442695, %v12480_v1  ;;  %v4202_v31 = vadd.f32 %v10565_v37, %v4201_v62  ;;  %v12482_v61 = vsub.f32 %v10404_v50, %v10440_v5 }
 0x853   : > { %v10609_v24 = vpop.eup %5333  ;;  %5353 = vpow2.f32 %v10512_v32  ;;  %v4170_v17 = vmul.f32 1.442695, %v12481_v29  ;;  %v12483_v32 = vsub.f32 %v10410_v52, %v10440_v5  ;;  %v12487_v52 = vsub.f32 %v10428_v44, %v10440_v5 }
 0x854   : > { %v10615_v46 = vpop.eup %5335  ;;  %5355 = vpow2.f32 %v10514_v57  ;;  %v4174_v48 = vmul.f32 1.442695, %v12482_v61  ;;  %v4203_v53 = vadd.f32 %v10573_v42, %v4202_v31  ;;  %v12484_v57 = vsub.f32 %v10416_v27, %v10440_v5 }
 0x855   : > { %v10622_v1 = vpop.eup %5337  ;;  %5357 = vpow2.f32 %v10516_v55  ;;  %v4178_v62 = vmul.f32 1.442695, %v12483_v32  ;;  %v12485_v31 = vsub.f32 %v10422_v3, %v10440_v5 }
 0x856   : > { %v10628_v9 = vpop.eup %5339  ;;  %5359 = vpow2.f32 %v4166_v8  ;;  %v4182_v29 = vmul.f32 1.442695, %v12484_v57  ;;  %v4204_v50 = vadd.f32 %v10580_v59, %v4203_v53  ;;  %v4190_v8 = vmul.f32 1.442695, %v12487_v52 }
 0x857   : > { %v10634_v61 = vpop.eup %5341  ;;  %5361 = vpow2.f32 %v4170_v17  ;;  %v4186_v55 = vmul.f32 1.442695, %v12485_v31  ;;  %v12488_v53 = vsub.f32 %v10434_v18, %v10440_v5  ;;  %v12491_v5 = vsub.f32 %v10260_v38, %v10442_v47 }
 0x858   : > { %v10639_v20 = vpop.eup %5343  ;;  %5363 = vpow2.f32 %v4174_v48  ;;  %v4205_v32 = vadd.f32 %v10588_v43, %v4204_v50  ;;  %v12489_v48 = vsub.f32 %v10249_v14, %v10442_v47  ;;  %v12490_v50 = vsub.f32 %v10254_v12, %v10442_v47 }
 0x859   : > { %12486 = vst [vmem:[#allocation15_spill] sm:$0xff] %v10639_v20  ;;  %v10645_v27 = vpop.eup %5345  ;;  %5365 = vpow2.f32 %v4178_v62  ;;  %v4194_v17 = vmul.f32 1.442695, %v12488_v53  ;;  %v4080_v18 = vmul.f32 1.442695, %v12491_v5  ;;  %v12492_v14 = vsub.f32 %v10268_v49, %v10442_v47 }
 0x85a   : > { %v10650_v57 = vpop.eup %5347  ;;  %5367 = vpow2.f32 %v4182_v29  ;;  %v4206_v3 = vadd.f32 %v10595_v36, %v4205_v32  ;;  %v4072_v31 = vmul.f32 1.442695, %v12489_v48  ;;  %v4076_v62 = vmul.f32 1.442695, %v12490_v50 }
 0x85b   : > { %v10656_v44 = vpop.eup %5349  ;;  %5369 = vpow2.f32 %v4186_v55  ;;  %v4084_v32 = vmul.f32 1.442695, %v12492_v14  ;;  %v12493_v55 = vsub.f32 %v10275_v19, %v10442_v47  ;;  %v12494_v12 = vsub.f32 %v10281_v13, %v10442_v47 }
 0x85c   : > { %v10664_v52 = vpop.eup %5351  ;;  %5371 = vpow2.f32 %v4190_v8  ;;  %v4207_v29 = vadd.f32 %v10603_v60, %v4206_v3  ;;  %v12495_v8 = vsub.f32 %v10287_v4, %v10442_v47  ;;  %v12496_v3 = vsub.f32 %v10293_v41, %v10442_v47 }
 0x85d   : > { %v4088_v53 = vmul.f32 1.442695, %v12493_v55  ;;  %v10673_v48 = vpop.eup %5353  ;;  %5373 = vpow2.f32 %v4194_v17  ;;  %v4092_v38 = vmul.f32 1.442695, %v12494_v12  ;;  %v12497_v17 = vsub.f32 %v10299_v45, %v10442_v47 }
 0x85e   : > { %v4096_v50 = vmul.f32 1.442695, %v12495_v8  ;;  %v4100_v49 = vmul.f32 1.442695, %v12496_v3  ;;  %v10684_v5 = vpop.eup %5355  ;;  %v4208_v19 = vadd.f32 %v10609_v24, %v4207_v29  ;;  %5375 = vpow2.f32 %v4072_v31 }
 0x85f   : > { %v4104_v14 = vmul.f32 1.442695, %v12497_v17  ;;  %v12498_v13 = vsub.f32 %v10305_v0, %v10442_v47  ;;  %v10693_v12 = vpop.eup %5357  ;;  %5377 = vpow2.f32 %v4076_v62 }
 0x860   : > { %v10701_v29 = vpop.eup %5359  ;;  %v4209_v45 = vadd.f32 %v10615_v46, %v4208_v19  ;;  %5379 = vpow2.f32 %v4080_v18 }
 0x861   : > { %v4108_v55 = vmul.f32 1.442695, %v12498_v13  ;;  %v10708_v8 = vpop.eup %5361  ;;  %5381 = vpow2.f32 %v4084_v32  ;;  %v12499_v32 = vsub.f32 %v10311_v39, %v10442_v47  ;;  %v12500_v13 = vsub.f32 %v12460_v58, %v10442_v47 }
 0x862   : > { %v10716_v19 = vpop.eup %5363  ;;  %v4210_v18 = vadd.f32 %v10622_v1, %v4209_v45  ;;  %5383 = vpow2.f32 %v4088_v53 }
 0x863   : > { %v10723_v0 = vpop.eup %5365  ;;  %5385 = vpow2.f32 %v4092_v38  ;;  %v4112_v62 = vmul.f32 1.442695, %v12499_v32  ;;  %v4116_v17 = vmul.f32 1.442695, %v12500_v13 }
 0x864   : > { %v10731_v45 = vpop.eup %5367  ;;  %v4211_v53 = vadd.f32 %v10628_v9, %v4210_v18  ;;  %5387 = vpow2.f32 %v4096_v50  ;;  %v12501_v50 = vsub.f32 %v12461_v35, %v10442_v47  ;;  %v12506_v35 = vsub.f32 %v12466_v16, %v10442_v47 }
 0x865   : > { %v10739_v31 = vpop.eup %5369  ;;  %5389 = vpow2.f32 %v4100_v49  ;;  %v12502_v49 = vsub.f32 %v12462_v6, %v10442_v47  ;;  %v12505_v6 = vsub.f32 %v12465_v21, %v10442_v47  ;;  %v12509_v16 = vsub.f32 %v12469_v23, %v10442_v47 }
 0x866   : > { %v10744_v3 = vpop.eup %5371  ;;  %v4212_v41 = vadd.f32 %v10634_v61, %v4211_v53  ;;  %5391 = vpow2.f32 %v4104_v14  ;;  %v4120_v39 = vmul.f32 1.442695, %v12501_v50  ;;  %v12503_v14 = vsub.f32 %v12463_v28, %v10442_v47 }
 0x867   : > { %v10752_v32 = vpop.eup %5373  ;;  %5393 = vpow2.f32 %v4108_v55  ;;  %v4124_v58 = vmul.f32 1.442695, %v12502_v49  ;;  %v12504_v55 = vsub.f32 %v12464_v22, %v10442_v47  ;;  %v4136_v49 = vmul.f32 1.442695, %v12505_v6 }
 0x868   : > { %v5376_v13 = vpop.eup %5375  ;;  %v4213_v38 = vadd.f32 %v10639_v20, %v4212_v41  ;;  %5395 = vpow2.f32 %v4112_v62  ;;  %v4128_v53 = vmul.f32 1.442695, %v12503_v14  ;;  %v12507_v22 = vsub.f32 %v12467_v30, %v10442_v47 }
 0x869   : > { %v5378_v50 = vpop.eup %5377  ;;  %5397 = vpow2.f32 %v4116_v17  ;;  %v4132_v18 = vmul.f32 1.442695, %v12504_v55  ;;  %v4140_v17 = vmul.f32 1.442695, %v12506_v35  ;;  %v4152_v35 = vmul.f32 1.442695, %v12509_v16 }
 0x86a   : > { %v5380_v4 = vpop.eup %5379  ;;  %v4214_v41 = vadd.f32 %v10645_v27, %v4213_v38  ;;  %5399 = vpow2.f32 %v4120_v39  ;;  %v4235_v62 = vadd.f32 %v5378_v50, %v5376_v13  ;;  %v4275_v28 = vpack.c.bf16 %v5378_v50, %v5376_v13 }
 0x86b   : > { %v5382_v14 = vpop.eup %5381  ;;  %5401 = vpow2.f32 %v4124_v58  ;;  %v4144_v55 = vmul.f32 1.442695, %v12507_v22  ;;  %v12508_v58 = vsub.f32 %v12468_v11, %v10442_v47  ;;  %v12510_v30 = vpack.c.bf16 %v10534_v15, %v10526_v34 }
 0x86c   : > { %v5384_v20 = vpop.eup %5383  ;;  %v4215_v21 = vadd.f32 %v10650_v57, %v4214_v41  ;;  %5403 = vpow2.f32 %v4128_v53  ;;  %v4236_v6 = vadd.f32 %v5380_v4, %v4235_v62  ;;  %4306 = vmatprep.subr.bf16.mxu0 %v4275_v28  ;;  %v4277_v38 = vpack.c.bf16 %v5382_v14, %v5380_v4 }
 0x86d   : > { %v5386_v39 = vpop.eup %5385  ;;  %5405 = vpow2.f32 %v4132_v18  ;;  %v4148_v13 = vmul.f32 1.442695, %v12508_v58  ;;  %4307 = vmatpush1.bf16.msra.mxu0 %v12510_v30  ;;  %v12511_v11 = vsub.f32 %v12470_v33, %v10442_v47  ;;  %v12512_v23 = vsub.f32 %v12471_v25, %v10442_v47  ;;  %v12517_v30 = vld [vmem:[#allocation89_spill] sm:$0xff] }
 0x86e   : > { %v5388_v50 = vpop.eup %5387  ;;  %v4216_v53 = vadd.f32 %v10656_v44, %v4215_v21  ;;  %5407 = vpow2.f32 %v4136_v49  ;;  %v4237_v41 = vadd.f32 %v5382_v14, %v4236_v6  ;;  %4308 = vmatprep.subr.bf16.mxu0 %v4277_v38  ;;  %v4279_v4 = vpack.c.bf16 %v5386_v39, %v5384_v20 }
 0x86f   : > { %v5390_v18 = vpop.eup %5389  ;;  %5409 = vpow2.f32 %v4140_v17  ;;  %v4156_v62 = vmul.f32 1.442695, %v12511_v11  ;;  %v4160_v28 = vmul.f32 1.442695, %v12512_v23  ;;  %v12513_v14 = vsub.f32 %v12472_v51, %v10442_v47 }
 0x870   : > { %v5392_v22 = vpop.eup %5391  ;;  %v4217_v34 = vadd.f32 %v10664_v52, %v4216_v53  ;;  %5411 = vpow2.f32 %v4144_v55  ;;  %v4238_v15 = vadd.f32 %v5384_v20, %v4237_v41  ;;  %v4281_v21 = vpack.c.bf16 %v5390_v18, %v5388_v50 }
 0x871   : > { %v5394_v49 = vpop.eup %5393  ;;  %5413 = vpow2.f32 %v4148_v13  ;;  %v4164_v17 = vmul.f32 1.442695, %v12513_v14  ;;  %v12514_v33 = vsub.f32 %v12473_v54, %v10442_v47  ;;  %v12515_v25 = vpack.c.bf16 %v10550_v26, %v10542_v63 }
 0x872   : > { %v5396_v38 = vpop.eup %5395  ;;  %v4218_v58 = vadd.f32 %v10673_v48, %v4217_v34  ;;  %5415 = vpow2.f32 %v4152_v35  ;;  %v4239_v20 = vadd.f32 %v5386_v39, %v4238_v15  ;;  %v4283_v55 = vpack.c.bf16 %v5394_v49, %v5392_v22 }
 0x873   : > { %v4168_v6 = vmul.f32 1.442695, %v12514_v33  ;;  %4309 = vmatpush1.bf16.msra.mxu0 %v12515_v25  ;;  %v5398_v13 = vpop.eup %5397  ;;  %5417 = vpow2.f32 %v4156_v62  ;;  %v12516_v51 = vsub.f32 %v12474_v40, %v10442_v47  ;;  %v12518_v54 = vsub.f32 %v12517_v30, %v10442_v47  ;;  %v12520_v62 = vld [vmem:[#allocation83_spill] sm:$0xff] }
 0x874   : > { %4310 = vmatprep.subr.bf16.mxu0 %v4279_v4  ;;  %v5400_v41 = vpop.eup %5399  ;;  %v4219_v63 = vadd.f32 %v10684_v5, %v4218_v58  ;;  %5419 = vpow2.f32 %v4160_v28  ;;  %v4240_v26 = vadd.f32 %v5388_v50, %v4239_v20  ;;  %v4285_v11 = vpack.c.bf16 %v5398_v13, %v5396_v38 }
 0x875   : > { %v4172_v16 = vmul.f32 1.442695, %v12516_v51  ;;  %v4176_v53 = vmul.f32 1.442695, %v12518_v54  ;;  %v5402_v35 = vpop.eup %5401  ;;  %5421 = vpow2.f32 %v4164_v17  ;;  %v12519_v39 = vsub.f32 %v12476_v7, %v10442_v47 }
 0x876   : > { %v12521_v40 = vsub.f32 %v12520_v62, %v10442_v47  ;;  %v12522_v34 = vpack.c.bf16 %v10565_v37, %v10558_v10  ;;  %v5404_v15 = vpop.eup %5403  ;;  %v4220_v14 = vadd.f32 %v10693_v12, %v4219_v63  ;;  %5423 = vpow2.f32 %v4168_v6 }
 0x877   : > { %v4180_v4 = vmul.f32 1.442695, %v12519_v39  ;;  %v4241_v50 = vadd.f32 %v5390_v18, %v4240_v26  ;;  %v4287_v28 = vpack.c.bf16 %v5402_v35, %v5400_v41  ;;  %v5406_v17 = vpop.eup %5405  ;;  %5425 = vpow2.f32 %v4172_v16  ;;  %v12525_v18 = vld [vmem:[#allocation93_spill] sm:$0xff] }
 0x878   : > { %v4184_v23 = vmul.f32 1.442695, %v12521_v40  ;;  %4311 = vmatpush1.bf16.msra.mxu0 %v12522_v34  ;;  %v12523_v7 = vsub.f32 %v12478_v2, %v10442_v47  ;;  %v12524_v25 = vsub.f32 %v12479_v56, %v10442_v47  ;;  %v5408_v20 = vpop.eup %5407  ;;  %v4221_v37 = vadd.f32 %v10701_v29, %v4220_v14 }
 0x879   : > { %4312 = vmatprep.subr.bf16.mxu0 %v4281_v21  ;;  %5427 = vpow2.f32 %v4176_v53  ;;  %v4242_v10 = vadd.f32 %v5392_v22, %v4241_v50  ;;  %v4289_v51 = vpack.c.bf16 %v5406_v17, %v5404_v15  ;;  %v5410_v6 = vpop.eup %5409  ;;  %v12526_v21 = vsub.f32 %v12525_v18, %v10442_v47 }
 0x87a   : > { %v4188_v33 = vmul.f32 1.442695, %v12523_v7  ;;  %v4192_v58 = vmul.f32 1.442695, %v12524_v25  ;;  %5429 = vpow2.f32 %v4180_v4  ;;  %v12527_v2 = vpack.c.bf16 %v10580_v59, %v10573_v42  ;;  %v5412_v30 = vpop.eup %5411 }
 0x87b   : > { %v4196_v16 = vmul.f32 1.442695, %v12526_v21  ;;  %v4222_v56 = vadd.f32 %v10708_v8, %v4221_v37  ;;  %5431 = vpow2.f32 %v4184_v23  ;;  %v4243_v54 = vadd.f32 %v5394_v49, %v4242_v10  ;;  %v5414_v53 = vpop.eup %5413 }
 0x87c   : > { %4313 = vmatpush1.bf16.msra.mxu0 %v12527_v2  ;;  %v4291_v63 = vpack.c.bf16 %v5410_v6, %v5408_v20  ;;  %5433 = vpow2.f32 %v4188_v33  ;;  %v5416_v22 = vpop.eup %5415  ;;  %v4293_v47 = vpack.c.bf16 %v5414_v53, %v5412_v30  ;;  %v12528_v59 = vpack.c.bf16 %v10595_v36, %v10588_v43 }
 0x87d   : > { %4314 = vmatprep.subr.bf16.mxu0 %v4283_v55  ;;  %v4223_v26 = vadd.f32 %v10716_v19, %v4222_v56  ;;  %5435 = vpow2.f32 %v4192_v58  ;;  %v4244_v39 = vadd.f32 %v5396_v38, %v4243_v54  ;;  %v5418_v4 = vpop.eup %5417  ;;  %v12529_v7 = vpack.c.bf16 %v10609_v24, %v10603_v60 }
 0x87e   : > { %5437 = vpow2.f32 %v4196_v16  ;;  %v5420_v42 = vpop.eup %5419  ;;  %v4295_v55 = vpack.c.bf16 %v5418_v4, %v5416_v22  ;;  %v12531_v56 = vpack.c.bf16 %v10634_v61, %v10628_v9  ;;  %v12535_v9 = vpack.c.bf16 %v10673_v48, %v10664_v52 }
 0x87f   : > { %v4224_v62 = vadd.f32 %v10723_v0, %v4223_v26  ;;  %v4245_v49 = vadd.f32 %v5398_v13, %v4244_v39  ;;  %v5422_v40 = vpop.eup %5421  ;;  %v12532_v26 = vld [vmem:[#allocation15_spill] sm:$0xff]  ;;  %v12538_v52 = vpack.c.bf16 %v10723_v0, %v10716_v19 }
 0x880   : > { %4315 = vmatpush1.bf16.msra.mxu0 %v12528_v59  ;;  %v5424_v23 = vpop.eup %5423  ;;  %v4297_v50 = vpack.c.bf16 %v5422_v40, %v5420_v42  ;;  %v4617_v59 = vpop.permute.xlu1 %4616 }
 0x881   : > { %4316 = vmatprep.subr.bf16.mxu0 %v4285_v11  ;;  %v4225_v34 = vadd.f32 %v10731_v45, %v4224_v62  ;;  %v4246_v14 = vadd.f32 %v5400_v41, %v4245_v49  ;;  %v5426_v38 = vpop.eup %5425  ;;  %v12530_v41 = vpack.c.bf16 %v10622_v1, %v10615_v46  ;;  %v12533_v46 = vpack.c.bf16 %v10645_v27, %v12532_v26 }
 0x882   : > { %v4299_v25 = vpack.c.bf16 %v5426_v38, %v5424_v23  ;;  %v12536_v27 = vpack.c.bf16 %v10693_v12, %v10684_v5  ;;  %v12539_v5 = vpack.c.bf16 %v10739_v31, %v10731_v45 }
 0x883   : > { %v5428_v33 = vpop.eup %5427  ;;  %v4226_v36 = vadd.f32 %v10739_v31, %v4225_v34  ;;  %v4247_v43 = vadd.f32 %v5402_v35, %v4246_v14 }
 0x884   : > { %4317 = vmatpush1.bf16.msra.mxu0 %v12529_v7  ;;  %v5430_v13 = vpop.eup %5429  ;;  %v4536_v0 = vpop.permute.xlu1 %4535 }
 0x885   : > { %4318 = vmatprep.subr.bf16.mxu0 %v4287_v28  ;;  %v5432_v11 = vpop.eup %5431  ;;  %v4227_v58 = vadd.f32 %v10744_v3, %v4226_v36  ;;  %v4248_v37 = vadd.f32 %v5404_v15, %v4247_v43  ;;  %v4301_v10 = vpack.c.bf16 %v5430_v13, %v5428_v33 }
 0x886   : > { %v5434_v18 = vpop.eup %5433 }
 0x887   : > { %v5436_v21 = vpop.eup %5435  ;;  %v4228_v24 = vadd.f32 %v10752_v32, %v4227_v58  ;;  %v4249_v60 = vadd.f32 %v5406_v17, %v4248_v37  ;;  %v4303_v16 = vpack.c.bf16 %v5434_v18, %v5432_v11  ;;  %v12534_v17 = vpack.c.bf16 %v10656_v44, %v10650_v57  ;;  %v12546_v37 = vld [vmem:[#allocation160_spill] sm:$0xff] }
 0x888   : > { %4319 = vmatpush1.bf16.msra.mxu0 %v12530_v41  ;;  %v5438_v35 = vpop.eup %5437  ;;  %v12537_v57 = vpack.c.bf16 %v10708_v8, %v10701_v29  ;;  %v12540_v29 = vpack.c.bf16 %v10752_v32, %v10744_v3  ;;  %v12541_v8 = vld [vmem:[#allocation69_spill] sm:$0xff]  ;;  %v4540_v19 = vpop.permute.xlu1 %4539 }
 0x889   : > { %4320 = vmatprep.subr.bf16.mxu0 %v4289_v51  ;;  %v4250_v28 = vadd.f32 %v5408_v20, %v4249_v60  ;;  %v4305_v2 = vpack.c.bf16 %v5438_v35, %v5436_v21  ;;  %v4229_v49 = vrot.slane %v4228_v24, 4 }
 0x88b   : > { %v4251_v15 = vadd.f32 %v5410_v6, %v4250_v28  ;;  %v4230_v45 = vadd.f32 %v4229_v49, %v4228_v24  ;;  %v12563_v49 = vld [vmem:[#allocation3_spill] sm:$0xff] }
 0x88c   : > { %4321 = vmatpush1.bf16.msra.mxu0 %v12531_v56 }
 0x88d   : > { %4322 = vmatprep.subr.bf16.mxu0 %v4291_v63  ;;  %v4252_v54 = vadd.f32 %v5412_v30, %v4251_v15  ;;  %v4231_v3 = vrot.slane %v4230_v45, 2 }
 0x88f   : > { %v4253_v1 = vadd.f32 %v5414_v53, %v4252_v54 }
 0x890   : > { %4323 = vmatpush1.bf16.msra.mxu0 %v12533_v46  ;;  %v12552_v46 = vld [vmem:[#allocation139_spill] sm:$0xff] }
 0x891   : > { %4324 = vmatprep.subr.bf16.mxu0 %v4293_v47  ;;  %v4254_v39 = vadd.f32 %v5416_v22, %v4253_v1  ;;  %v12542_v47 = vld [vmem:[#allocation71_spill] sm:$0xff] }
 0x893   : > { %v4255_v20 = vadd.f32 %v5418_v4, %v4254_v39  ;;  %v4272_v4 = vpack.c.bf16 %v12542_v47, %v12541_v8 }
 0x894   : > { %4325 = vmatpush1.bf16.msra.mxu0 %v12534_v17 }
 0x895   : > { %4326 = vmatprep.subr.bf16.mxu0 %v4295_v55  ;;  %v4256_v51 = vadd.f32 %v5420_v42, %v4255_v20  ;;  %v4568_v42 = vpop.permute.xlu1 %4567 }
 0x897   : > { %v4257_v61 = vadd.f32 %v5422_v40, %v4256_v51  ;;  %v4570_v40 = vpop.permute.xlu0 %4569 }
 0x898   : > { %4327 = vmatpush1.bf16.msra.mxu0 %v12535_v9 }
 0x899   : > { %4328 = vmatprep.subr.bf16.mxu0 %v4297_v50  ;;  %v4258_v6 = vadd.f32 %v5424_v23, %v4257_v61  ;;  %v4572_v62 = vpop.permute.xlu1 %4571  ;;  %v4232_v50 = vadd.f32 %v4231_v3, %v4230_v45 }
 0x89b   : > { %v4259_v30 = vadd.f32 %v5426_v38, %v4258_v6  ;;  %v4574_v34 = vpop.permute.xlu0 %4573  ;;  %v4233_v36 = vrot.slane %v4232_v50, 1 }
 0x89c   : > { %4329 = vmatpush1.bf16.msra.mxu0 %v12536_v27  ;;  %v4578_v61 = vsel %vm1517_vm1, %v4574_v34, %v4570_v40  ;;  %v12555_v27 = vld [vmem:[#allocation22_spill] sm:$0xff] }
 0x89d   : > { %4330 = vmatprep.subr.bf16.mxu0 %v4299_v25  ;;  %v4260_v63 = vadd.f32 %v5428_v33, %v4259_v30  ;;  %v10879_v31 = vpop.permute.xlu1 %4635  ;;  %v4543_v25 = vsel %vm12544_vm10, %v4536_v0, %v4540_v19  ;;  %v4590_v30 = vmul.f32 %v12555_v27, %v4578_v61 }
 0x89f   : > { %v4261_v44 = vadd.f32 %v5430_v13, %v4260_v63  ;;  %v10881_v7 = vpop.permute.xlu0 %4640  ;;  %v12556_v63 = vld [vmem:[#allocation94_spill] sm:$0xff] }
 0x8a0   : > { %4331 = vmatpush1.bf16.msra.mxu0 %v12537_v57 }
 0x8a1   : > { %4332 = vmatprep.subr.bf16.mxu0 %v4301_v10  ;;  %v4262_v53 = vadd.f32 %v5432_v11, %v4261_v44  ;;  %v4600_v14 = vpop.permute.xlu1 %4599  ;;  %v4545_v11 = vsel %vm12545_vm12, %v4540_v19, %v4536_v0  ;;  %v4555_v10 = vmul.f32 %v12546_v37, %v4543_v25 }
 0x8a2   : > { %v4556_v24 = vmul.f32 %v12546_v37, %v4545_v11 }
 0x8a3   : > { %v4263_v48 = vadd.f32 %v5434_v18, %v4262_v53  ;;  %v4604_v58 = vpop.permute.xlu0 %4603  ;;  %v4577_v18 = vsel %vm1517_vm1, %v4572_v62, %v4568_v42  ;;  %v4559_v26 = vsel %vm7422_vm8, %v4555_v10, 0.0  ;;  %vm12558_vm8 = vmmov %vm12433_vm9 }
 0x8a4   : > { %4333 = vmatpush1.bf16.msra.mxu0 %v12538_v52  ;;  %v4607_v60 = vsel %vm12547_vm13, %v4600_v14, %v4604_v58  ;;  %v4609_v28 = vsel %vm12548_vm14, %v4604_v58, %v4600_v14  ;;  %v4560_v20 = vsel %vm7870_vm5, %v4556_v24, 0.0  ;;  %v4563_v57 = vadd.f32 %v4559_v26, %v12556_v63  ;;  %vm12562_vm5 = vmmov %vm12558_vm8 }
 0x8a5   : > { %4334 = vmatprep.subr.bf16.mxu0 %v4303_v16  ;;  %v4264_v22 = vadd.f32 %v5436_v21, %v4263_v48  ;;  %v4602_v33 = vpop.permute.xlu1 %4601  ;;  %v4234_v21 = vadd.f32 %v4233_v36, %v4232_v50  ;;  %v4619_v1 = vmul.f32 %v12552_v46, %v4607_v60  ;;  %v4620_v9 = vmul.f32 %v12552_v46, %v4609_v28 }
 0x8a6   : > { %v4576_v48 = vsel %vm1517_vm1, %v4570_v40, %v4574_v34 }
 0x8a7   : > { %v4265_v12 = vadd.f32 %v5438_v35, %v4264_v22  ;;  %v4575_v35 = vsel %vm1517_vm1, %v4568_v42, %v4572_v62  ;;  %5439 = vrcp.f32 %v4234_v21  ;;  %v12559_v22 = vld [vmem:[#allocation189_spill] sm:$0xff]  ;;  %v4589_v8 = vmul.f32 %v12555_v27, %v4576_v48 }
 0x8a8   : > { %4335 = vmatpush1.bf16.msra.mxu0 %v12539_v5  ;;  %v4564_v5 = vadd.f32 %v4560_v20, %v12559_v22  ;;  %v4624_v0 = vsel %vm8031_vm3, %v4620_v9, 0.0 }
 0x8a9   : > { %4336 = vmatprep.subr.bf16.mxu0 %v4305_v2  ;;  %v4266_v55 = vrot.slane %v4265_v12, 4  ;;  %v4606_v41 = vpop.permute.xlu1 %4605  ;;  %v12549_v2 = vld [vmem:[#allocation190_spill] sm:$0xff] }
 0x8aa   : > { %v4588_v56 = vmul.f32 %v12549_v2, %v4577_v18  ;;  %v4608_v15 = vsel %vm12550_vm15, %v4602_v33, %v4606_v41  ;;  %v4610_v39 = vsel %vm12553_vm0, %v4606_v41, %v4602_v33  ;;  %v4587_v51 = vmul.f32 %v12549_v2, %v4575_v35 }
 0x8ab   : > { %v4267_v23 = vadd.f32 %v4266_v55, %v4265_v12  ;;  %v4621_v6 = vmul.f32 %v4617_v59, %v4608_v15  ;;  %v4622_v52 = vmul.f32 %v4617_v59, %v4610_v39  ;;  %v4594_v59 = vsel %vm12562_vm5, %v4590_v30, 0.0 }
 0x8ac   : > { %4337 = vmatpush1.bf16.msra.mxu0 %v12540_v29  ;;  %v4592_v53 = vsel %vm12558_vm8, %v4588_v56, 0.0  ;;  %v4623_v29 = vsel %vm7440_vm11, %v4619_v1, 0.0  ;;  %v4595_v47 = vadd.f32 %v4587_v51, %v4563_v57  ;;  %v4597_v55 = vadd.f32 %v4589_v8, %v12563_v49 }
 0x8ad   : > { %v4268_v32 = vrot.slane %v4267_v23, 2  ;;  %v4596_v19 = vadd.f32 %v4592_v53, %v4564_v5  ;;  %v4625_v42 = vsel %vm7440_vm11, %v4621_v6, 0.0  ;;  %v4626_v40 = vsel %vm8031_vm3, %v4622_v52, 0.0 }
 0x8ae   : > { %v4627_v62 = vadd.f32 %v4623_v29, %v4595_v47  ;;  %v4629_v14 = vadd.f32 %v4625_v42, %v4597_v55 }
 0x8af   : > { %4339 = vmatmul.mubr.bf16.vlgmr.msra.gmra.mrb[136].mxu0 %v4272_v4  ;;  %v4269_v38 = vadd.f32 %v4268_v32, %v4267_v23  ;;  %v4628_v45 = vadd.f32 %v4624_v0, %v4596_v19  ;;  %v12564_v23 = vld [vmem:[#allocation52_spill] sm:$0xff] }
 0x8b0   : > { %v4598_v34 = vadd.f32 %v4594_v59, %v12564_v23  ;;  %v4643_v36 = vadd.f32 %v10879_v31, %v4627_v62  ;;  %v4645_v10 = vadd.f32 %v10881_v7, %v4629_v14 }
 0x8b1   : > { %v4270_v13 = vrot.slane %v4269_v38, 1  ;;  %v5440_v3 = vpop.eup %5439 }
 0x8b2   : > { %v4630_v32 = vadd.f32 %v4626_v40, %v4598_v34 }
 0x8b3   : > { %v4271_v16 = vadd.f32 %v4270_v13, %v4269_v38  ;;  %v4644_v13 = vadd.f32 %v10879_v31, %v4628_v45 }
 0x8b4   : > { %v4646_v24 = vadd.f32 %v10881_v7, %v4630_v32 }
 0x8b5   : > { %5441 = vrcp.f32 %v4271_v16 }
 0x8bf   : > { %v5442_v38 = vpop.eup %5441 }
 0x982   : > { %v4340_v50 = vpop.f32.mrb[136].mxu0 }
 0x983   : > { %v4351_v33 = vmul.f32 %v5440_v3, %v4340_v50  ;;  %v4342_v43 = vpop.f32.mrb[137].mxu0 }
 0x984   : > { %v4352_v25 = vmul.f32 %v5442_v38, %v4342_v43  ;;  %v4344_v11 = vpop.f32.mrb[138].mxu0 }
 0x985   : > { %v4647_v58 = vadd.f32 %v4643_v36, %v4351_v33  ;;  %v4353_v37 = vmul.f32 %v5440_v3, %v4344_v11  ;;  %v4346_v18 = vpop.f32.mrb[139].mxu0 }
 0x986   : > { %v4648_v41 = vadd.f32 %v4644_v13, %v4352_v25  ;;  %v4354_v21 = vmul.f32 %v5442_v38, %v4346_v18 }
 0x987   : > { %v4649_v60 = vadd.f32 %v4645_v10, %v4353_v37 }
 0x988   : > { %v4831_v16 = vpack.c.bf16 %v4648_v41, %v4647_v58  ;;  %v4650_v35 = vadd.f32 %v4646_v24, %v4354_v21 }
 0x98a   : > { %4663 = vst [vmem:[%s8100_s15 + $0x30] sm:$0xff] %v4831_v16  ;;  %v4832_v28 = vpack.c.bf16 %v4650_v35, %v4649_v60 }
 0x98c   : > { %4664 = vst [vmem:[%s8100_s15 + $0x38] sm:$0xff] %v4832_v28 }
 0x98d PF: > { %s15_s18 = sadd.s32 1, %s5453_s18  }
 0x98e   : > { %p12_p4 = scmp.ge.s32.totalorder %s15_s18, 4  }
 0x990   :  { %14 = sbr.rel (!%p12_p4) target bundleno = 1 (0x1), region = 70 }

</bundles_post_ra>
